<compile_context>
chip_gen: v6e
topology: v6e:2x2x1
jax: 0.10.0
libtpu: 0.0.40
codegen_flags: <defaults>
</compile_context>

<pallas_src>
import functools

import numpy as np
import jax
import jax.numpy as jnp
from jax.experimental import pallas as pl
from jax.experimental.pallas import tpu as pltpu


# Order in which weight arrays are passed to (and unpacked inside) the kernel.
WKEYS = (
    "stem_w", "stem_s", "stem_b",
    "b1_dw_w", "b1_dw_s", "b1_dw_b", "b1_pw_w", "b1_pw_s", "b1_pw_b",
    "b2_e_w", "b2_e_s", "b2_e_b", "b2_dw_w", "b2_dw_s", "b2_dw_b",
    "b2_se_w1", "b2_se_b1", "b2_se_w2", "b2_se_b2",
    "b2_p_w", "b2_p_s", "b2_p_b",
    "b3_e_w", "b3_e_s", "b3_e_b", "b3_dw_w", "b3_dw_s", "b3_dw_b",
    "b3_se_w1", "b3_se_b1", "b3_se_w2", "b3_se_b2",
    "b3_p_w", "b3_p_s", "b3_p_b",
    "head_w", "head_b", "cls_w", "cls_b",
)


# ---------------------------------------------------------------------------
# Fused whole-network kernel (one image per grid step)
# ---------------------------------------------------------------------------

def mobilenetv3_kernel(cols_ref, sel_ref, *rest, H1, W1):
    """Full MobileNetV3 forward for ONE image, all intermediates VMEM-resident.

    cols_ref : (1, H1*W1, 9*Cin)  im2col'd stem patches (3x3 / stride 2 / pad 1)
    sel_ref  : (H1*W1//4, H1*W1)  stride-2 row-selection matrix (for block-2 dw)
    rest     : weight refs (len(WKEYS)) + logits out ref + 6 VMEM scratches
    """
    nw = len(WKEYS)
    wd = dict(zip(WKEYS, rest[:nw]))
    out_ref = rest[nw]
    pad1, flat1, pad2, flat2, pad3, flat3 = rest[nw + 1:]

    f32 = jnp.float32
    H2, W2 = H1 // 2, W1 // 2

    # -------- helpers (traced inline; weights come from the closure) --------
    def mm_affine(xv, name, act):
        """act((x @ W) * scale + bias): 1x1 conv with folded BN (bf16 MXU, f32 acc)."""
        wref = wd[name + "_w"]
        y = jnp.dot(xv.astype(wref.dtype), wref[...], preferred_element_type=f32)
        y = y * wd[name + "_s"][0] + wd[name + "_b"][0]
        return jnp.maximum(y, 0.0) if act else y

    def dw3x3(pad_ref, flat_ref, h2d, prefix, Hc, Wc):
        """Depthwise 3x3 / stride 1 / pad 1 + folded BN + ReLU.

        Input/output stay in the flat (Hc*Wc, C) layout; the padded spatial
        view lives only in the VMEM scratch (filled one spatial row at a time,
        so no in-kernel reshape is needed).
        """
        C = pad_ref.shape[2]
        wref = wd[prefix + "_w"]
        pad_ref[...] = jnp.zeros(pad_ref.shape, pad_ref.dtype)     # zero border
        for i in range(Hc):                                        # interior fill
            pad_ref[i + 1, 1:Wc + 1, :] = h2d[i * Wc:(i + 1) * Wc, :]
        xp = pad_ref[...]                                          # (Hc+2, Wc+2, C)
        acc = jnp.zeros((Hc, Wc, C), f32)
        for kh in range(3):
            for kw in range(3):
                acc = acc + xp[kh:kh + Hc, kw:kw + Wc, :] * wref[kh, kw]
        y = jnp.maximum(acc * wd[prefix + "_s"][0] + wd[prefix + "_b"][0], 0.0)
        for i in range(Hc):                                        # back to flat layout
            flat_ref[i * Wc:(i + 1) * Wc, :] = y[i]
        return flat_ref[...]                                       # (Hc*Wc, C)

    def se(hv, name):
        """Squeeze-and-Excite on a (HW, C) activation (pool->FC->ReLU->FC->sigmoid->scale)."""
        w1, w2 = wd[name + "_w1"], wd[name + "_w2"]
        pooled = jnp.mean(hv, axis=0, keepdims=True)                          # (1, C)
        z = jnp.dot(pooled.astype(w1.dtype), w1[...], preferred_element_type=f32)
        z = jnp.maximum(z + wd[name + "_b1"][0], 0.0)
        g = jnp.dot(z.astype(w2.dtype), w2[...], preferred_element_type=f32)
        g = jax.nn.sigmoid(g + wd[name + "_b2"][0])                           # (1, C)
        return hv * g

    # -------- conv_stem (3x3/s2, im2col'd in wrapper) + bn1 + act1 ----------
    cols = cols_ref[0]                                                        # (H1*W1, 27)
    x = jnp.dot(cols.astype(wd["stem_w"].dtype), wd["stem_w"][...],
                preferred_element_type=f32)
    x = jnp.maximum(x * wd["stem_s"][0] + wd["stem_b"][0], 0.0)               # (H1*W1, 16)

    # -------- block 1: depthwise-separable + residual -----------------------
    h = dw3x3(pad1, flat1, x, "b1_dw", H1, W1)                                # (H1*W1, 16)
    x = mm_affine(h, "b1_pw", act=False) + x

    # -------- block 2: expand -> dw 3x3 s2 -> SE -> project ------------------
    h = mm_affine(x, "b2_e", act=True)                                        # (H1*W1, 64)
    h = dw3x3(pad2, flat2, h, "b2_dw", H1, W1)                                # stride-1 result
    h = jnp.dot(sel_ref[...], h, preferred_element_type=f32)                  # stride-2 pick -> (H2*W2, 64)
    h = se(h, "b2_se")
    x = mm_affine(h, "b2_p", act=False)                                       # (H2*W2, 24)

    # -------- block 3: expand -> dw 3x3 s1 -> SE -> project + residual -------
    h = mm_affine(x, "b3_e", act=True)                                        # (H2*W2, 72)
    h = dw3x3(pad3, flat3, h, "b3_dw", H2, W2)
    h = se(h, "b3_se")
    x = mm_affine(h, "b3_p", act=False) + x                                   # (H2*W2, 24)

    # -------- global_pool -> conv_head (bias) -> act2 -> classifier ----------
    pooled = jnp.mean(x, axis=0, keepdims=True)                               # (1, 24)
    feat = jnp.dot(pooled.astype(wd["head_w"].dtype), wd["head_w"][...],
                   preferred_element_type=f32) + wd["head_b"][0]
    feat = jnp.maximum(feat, 0.0)                                             # (1, 128)
    logits = jnp.dot(feat.astype(wd["cls_w"].dtype), wd["cls_w"][...],
                     preferred_element_type=f32) + wd["cls_b"][0]             # (1, 10)
    out_ref[0] = logits


# ---------------------------------------------------------------------------
# Wrapper-side layout plumbing
# ---------------------------------------------------------------------------

def im2col_3x3_s2(x):
    """x: (N, H, W, C) -> (N, Ho*Wo, 9*C) patches for a 3x3 / stride-2 / pad-1 conv."""
    N, H, W, C = x.shape
    xp = jnp.pad(x, ((0, 0), (1, 1), (1, 1), (0, 0)))
    Ho, Wo = (H - 1) // 2 + 1, (W - 1) // 2 + 1
    cols = []
    for kh in range(3):
        for kw in range(3):
            cols.append(xp[:, kh:kh + 2 * Ho - 1:2, kw:kw + 2 * Wo - 1:2, :])
    patches = jnp.stack(cols, axis=3)                    # (N, Ho, Wo, 9, C)
    return patches.reshape(N, Ho * Wo, 9 * C), Ho, Wo


def make_stride2_selector(H, W):
    """(H//2*W//2, H*W) 0/1 matrix selecting even-(row,col) positions of a
    row-major flattened (H, W, C) activation (implements the stride-2 pick)."""
    Ho, Wo = H // 2, W // 2
    k = np.arange(Ho * Wo)
    src = 2 * (k // Wo) * W + 2 * (k % Wo)
    sel = np.zeros((Ho * Wo, H * W), np.float32)
    sel[k, src] = 1.0
    return jnp.asarray(sel)


def _const_map(ndim):
    return lambda n: (0,) * ndim


def mobilenetv3_forward(x_nchw, p):
    x = jnp.transpose(x_nchw, (0, 2, 3, 1)).astype(jnp.float32)   # NCHW -> NHWC
    N = x.shape[0]
    cols, Ho, Wo = im2col_3x3_s2(x)                               # (N, Ho*Wo, 27)
    sel = make_stride2_selector(Ho, Wo)                           # (Ho*Wo//4, Ho*Wo)
    num_classes = p["cls_w"].shape[1]
    c1 = p["b1_dw_w"].shape[-1]
    c2 = p["b2_dw_w"].shape[-1]
    c3 = p["b3_dw_w"].shape[-1]

    weights = [p[k] for k in WKEYS]
    in_specs = [
        pl.BlockSpec((1, Ho * Wo, cols.shape[-1]), lambda n: (n, 0, 0)),
        pl.BlockSpec(sel.shape, _const_map(2)),
    ] + [pl.BlockSpec(w.shape, _const_map(w.ndim)) for w in weights]

    out = pl.pallas_call(
        functools.partial(mobilenetv3_kernel, H1=Ho, W1=Wo),
        out_shape=jax.ShapeDtypeStruct((N, 1, num_classes), jnp.float32),
        grid=(N,),
        in_specs=in_specs,
        out_specs=pl.BlockSpec((1, 1, num_classes), lambda n: (n, 0, 0)),
        scratch_shapes=[
            pltpu.VMEM((Ho + 2, Wo + 2, c1), jnp.float32),        # pad1
            pltpu.VMEM((Ho * Wo, c1), jnp.float32),               # flat1
            pltpu.VMEM((Ho + 2, Wo + 2, c2), jnp.float32),        # pad2
            pltpu.VMEM((Ho * Wo, c2), jnp.float32),               # flat2
            pltpu.VMEM((Ho // 2 + 2, Wo // 2 + 2, c3), jnp.float32),  # pad3
            pltpu.VMEM(((Ho // 2) * (Wo // 2), c3), jnp.float32),     # flat3
        ],
        compiler_params=pltpu.CompilerParams(
            dimension_semantics=("parallel",)),                   # v7x: batch across 2 TCs
    )(cols, sel, *weights)
    return out.reshape(N, num_classes)


# ---------------------------------------------------------------------------
# Deterministic synthetic parameters (BN pre-folded; matmul weights in bf16)
# ---------------------------------------------------------------------------

def make_params():
    keys = iter(jax.random.split(jax.random.PRNGKey(42), 128))

    def w_(shape, dtype=jnp.bfloat16, scale=0.1):
        return (scale * jax.random.normal(next(keys), shape, jnp.float32)).astype(dtype)

    def bn_(c):
        s = 1.0 + 0.05 * jax.random.normal(next(keys), (1, c), jnp.float32)
        b = 0.05 * jax.random.normal(next(keys), (1, c), jnp.float32)
        return s, b

    p = {}
    # stem: 3x3 s2, 3 -> 16 (+BN+ReLU), weights stored in im2col (27, 16) form
    p["stem_w"] = w_((27, 16)); p["stem_s"], p["stem_b"] = bn_(16)
    # block 1: depthwise-separable (dw 3x3 s1 + pw 16->16) + residual
    p["b1_dw_w"] = w_((3, 3, 16), jnp.float32); p["b1_dw_s"], p["b1_dw_b"] = bn_(16)
    p["b1_pw_w"] = w_((16, 16)); p["b1_pw_s"], p["b1_pw_b"] = bn_(16)
    # block 2: inverted residual, expand 16->64, dw s2, SE(64->16), project 64->24
    p["b2_e_w"] = w_((16, 64)); p["b2_e_s"], p["b2_e_b"] = bn_(64)
    p["b2_dw_w"] = w_((3, 3, 64), jnp.float32); p["b2_dw_s"], p["b2_dw_b"] = bn_(64)
    p["b2_se_w1"] = w_((64, 16)); p["b2_se_b1"] = w_((1, 16), jnp.float32)
    p["b2_se_w2"] = w_((16, 64)); p["b2_se_b2"] = w_((1, 64), jnp.float32)
    p["b2_p_w"] = w_((64, 24)); p["b2_p_s"], p["b2_p_b"] = bn_(24)
    # block 3: inverted residual, expand 24->72, dw s1, SE(72->24), project 72->24, residual
    p["b3_e_w"] = w_((24, 72)); p["b3_e_s"], p["b3_e_b"] = bn_(72)
    p["b3_dw_w"] = w_((3, 3, 72), jnp.float32); p["b3_dw_s"], p["b3_dw_b"] = bn_(72)
    p["b3_se_w1"] = w_((72, 24)); p["b3_se_b1"] = w_((1, 24), jnp.float32)
    p["b3_se_w2"] = w_((24, 72)); p["b3_se_b2"] = w_((1, 72), jnp.float32)
    p["b3_p_w"] = w_((72, 24)); p["b3_p_s"], p["b3_p_b"] = bn_(24)
    # efficient head: GAP -> 1x1 conv 24 -> 128 (bias, no BN) + ReLU -> classifier 128 -> 10
    p["head_w"] = w_((24, 128)); p["head_b"] = w_((1, 128), jnp.float32)
    p["cls_w"] = w_((128, 10)); p["cls_b"] = w_((1, 10), jnp.float32)
    return p


if __name__ == "__main__":
    key = jax.random.PRNGKey(0)
    x = jax.random.normal(key, (2, 3, 32, 32), jnp.float32)   # NCHW like PyTorch
    params = make_params()

    fwd = jax.jit(mobilenetv3_forward)
    logits = fwd(x, params)
    jax.block_until_ready(logits)
    assert logits.shape == (2, 10)
    assert bool(jnp.all(jnp.isfinite(logits)))
    print("KERNEL_OK")
</pallas_src>

<mosaic_0001>
module attributes {stable_mosaic.version = 11 : i64} {
  func.func @mobilenetv3_kernel(%arg0: i32, %arg1: memref<1x256x27xf32, #tpu.memory_space<vmem>>, %arg2: memref<64x256xf32, #tpu.memory_space<vmem>>, %arg3: memref<27x16xbf16, #tpu.memory_space<vmem>>, %arg4: memref<1x16xf32, #tpu.memory_space<vmem>>, %arg5: memref<1x16xf32, #tpu.memory_space<vmem>>, %arg6: memref<3x3x16xf32, #tpu.memory_space<vmem>>, %arg7: memref<1x16xf32, #tpu.memory_space<vmem>>, %arg8: memref<1x16xf32, #tpu.memory_space<vmem>>, %arg9: memref<16x16xbf16, #tpu.memory_space<vmem>>, %arg10: memref<1x16xf32, #tpu.memory_space<vmem>>, %arg11: memref<1x16xf32, #tpu.memory_space<vmem>>, %arg12: memref<16x64xbf16, #tpu.memory_space<vmem>>, %arg13: memref<1x64xf32, #tpu.memory_space<vmem>>, %arg14: memref<1x64xf32, #tpu.memory_space<vmem>>, %arg15: memref<3x3x64xf32, #tpu.memory_space<vmem>>, %arg16: memref<1x64xf32, #tpu.memory_space<vmem>>, %arg17: memref<1x64xf32, #tpu.memory_space<vmem>>, %arg18: memref<64x16xbf16, #tpu.memory_space<vmem>>, %arg19: memref<1x16xf32, #tpu.memory_space<vmem>>, %arg20: memref<16x64xbf16, #tpu.memory_space<vmem>>, %arg21: memref<1x64xf32, #tpu.memory_space<vmem>>, %arg22: memref<64x24xbf16, #tpu.memory_space<vmem>>, %arg23: memref<1x24xf32, #tpu.memory_space<vmem>>, %arg24: memref<1x24xf32, #tpu.memory_space<vmem>>, %arg25: memref<24x72xbf16, #tpu.memory_space<vmem>>, %arg26: memref<1x72xf32, #tpu.memory_space<vmem>>, %arg27: memref<1x72xf32, #tpu.memory_space<vmem>>, %arg28: memref<3x3x72xf32, #tpu.memory_space<vmem>>, %arg29: memref<1x72xf32, #tpu.memory_space<vmem>>, %arg30: memref<1x72xf32, #tpu.memory_space<vmem>>, %arg31: memref<72x24xbf16, #tpu.memory_space<vmem>>, %arg32: memref<1x24xf32, #tpu.memory_space<vmem>>, %arg33: memref<24x72xbf16, #tpu.memory_space<vmem>>, %arg34: memref<1x72xf32, #tpu.memory_space<vmem>>, %arg35: memref<72x24xbf16, #tpu.memory_space<vmem>>, %arg36: memref<1x24xf32, #tpu.memory_space<vmem>>, %arg37: memref<1x24xf32, #tpu.memory_space<vmem>>, %arg38: memref<24x128xbf16, #tpu.memory_space<vmem>>, %arg39: memref<1x128xf32, #tpu.memory_space<vmem>>, %arg40: memref<128x10xbf16, #tpu.memory_space<vmem>>, %arg41: memref<1x10xf32, #tpu.memory_space<vmem>>, %arg42: memref<1x1x10xf32, #tpu.memory_space<vmem>>, %arg43: memref<18x18x16xf32, #tpu.memory_space<vmem>>, %arg44: memref<256x16xf32, #tpu.memory_space<vmem>>, %arg45: memref<18x18x64xf32, #tpu.memory_space<vmem>>, %arg46: memref<256x64xf32, #tpu.memory_space<vmem>>, %arg47: memref<10x10x72xf32, #tpu.memory_space<vmem>>, %arg48: memref<64x72xf32, #tpu.memory_space<vmem>>) attributes {dimension_semantics = [#tpu.dimension_semantics<parallel>], iteration_bounds = array<i64: 2>, scalar_prefetch = 0 : i64, scratch_operands = 6 : i64, tpu.core_type = #tpu.core_type<tc>, window_params = [{transform_indices = @transform_0, window_bounds = array<i64: 1, 256, 27>}, {pipeline_mode = #tpu.pipeline_mode<synchronous>, transform_indices = @transform_1, window_bounds = array<i64: 64, 256>}, {pipeline_mode = #tpu.pipeline_mode<synchronous>, transform_indices = @transform_2, window_bounds = array<i64: 27, 16>}, {pipeline_mode = #tpu.pipeline_mode<synchronous>, transform_indices = @transform_3, window_bounds = array<i64: 1, 16>}, {pipeline_mode = #tpu.pipeline_mode<synchronous>, transform_indices = @transform_4, window_bounds = array<i64: 1, 16>}, {pipeline_mode = #tpu.pipeline_mode<synchronous>, transform_indices = @transform_5, window_bounds = array<i64: 3, 3, 16>}, {pipeline_mode = #tpu.pipeline_mode<synchronous>, transform_indices = @transform_6, window_bounds = array<i64: 1, 16>}, {pipeline_mode = #tpu.pipeline_mode<synchronous>, transform_indices = @transform_7, window_bounds = array<i64: 1, 16>}, {pipeline_mode = #tpu.pipeline_mode<synchronous>, transform_indices = @transform_8, window_bounds = array<i64: 16, 16>}, {pipeline_mode = #tpu.pipeline_mode<synchronous>, transform_indices = @transform_9, window_bounds = array<i64: 1, 16>}, {pipeline_mode = #tpu.pipeline_mode<synchronous>, transform_indices = @transform_10, window_bounds = array<i64: 1, 16>}, {pipeline_mode = #tpu.pipeline_mode<synchronous>, transform_indices = @transform_11, window_bounds = array<i64: 16, 64>}, {pipeline_mode = #tpu.pipeline_mode<synchronous>, transform_indices = @transform_12, window_bounds = array<i64: 1, 64>}, {pipeline_mode = #tpu.pipeline_mode<synchronous>, transform_indices = @transform_13, window_bounds = array<i64: 1, 64>}, {pipeline_mode = #tpu.pipeline_mode<synchronous>, transform_indices = @transform_14, window_bounds = array<i64: 3, 3, 64>}, {pipeline_mode = #tpu.pipeline_mode<synchronous>, transform_indices = @transform_15, window_bounds = array<i64: 1, 64>}, {pipeline_mode = #tpu.pipeline_mode<synchronous>, transform_indices = @transform_16, window_bounds = array<i64: 1, 64>}, {pipeline_mode = #tpu.pipeline_mode<synchronous>, transform_indices = @transform_17, window_bounds = array<i64: 64, 16>}, {pipeline_mode = #tpu.pipeline_mode<synchronous>, transform_indices = @transform_18, window_bounds = array<i64: 1, 16>}, {pipeline_mode = #tpu.pipeline_mode<synchronous>, transform_indices = @transform_19, window_bounds = array<i64: 16, 64>}, {pipeline_mode = #tpu.pipeline_mode<synchronous>, transform_indices = @transform_20, window_bounds = array<i64: 1, 64>}, {pipeline_mode = #tpu.pipeline_mode<synchronous>, transform_indices = @transform_21, window_bounds = array<i64: 64, 24>}, {pipeline_mode = #tpu.pipeline_mode<synchronous>, transform_indices = @transform_22, window_bounds = array<i64: 1, 24>}, {pipeline_mode = #tpu.pipeline_mode<synchronous>, transform_indices = @transform_23, window_bounds = array<i64: 1, 24>}, {pipeline_mode = #tpu.pipeline_mode<synchronous>, transform_indices = @transform_24, window_bounds = array<i64: 24, 72>}, {pipeline_mode = #tpu.pipeline_mode<synchronous>, transform_indices = @transform_25, window_bounds = array<i64: 1, 72>}, {pipeline_mode = #tpu.pipeline_mode<synchronous>, transform_indices = @transform_26, window_bounds = array<i64: 1, 72>}, {pipeline_mode = #tpu.pipeline_mode<synchronous>, transform_indices = @transform_27, window_bounds = array<i64: 3, 3, 72>}, {pipeline_mode = #tpu.pipeline_mode<synchronous>, transform_indices = @transform_28, window_bounds = array<i64: 1, 72>}, {pipeline_mode = #tpu.pipeline_mode<synchronous>, transform_indices = @transform_29, window_bounds = array<i64: 1, 72>}, {pipeline_mode = #tpu.pipeline_mode<synchronous>, transform_indices = @transform_30, window_bounds = array<i64: 72, 24>}, {pipeline_mode = #tpu.pipeline_mode<synchronous>, transform_indices = @transform_31, window_bounds = array<i64: 1, 24>}, {pipeline_mode = #tpu.pipeline_mode<synchronous>, transform_indices = @transform_32, window_bounds = array<i64: 24, 72>}, {pipeline_mode = #tpu.pipeline_mode<synchronous>, transform_indices = @transform_33, window_bounds = array<i64: 1, 72>}, {pipeline_mode = #tpu.pipeline_mode<synchronous>, transform_indices = @transform_34, window_bounds = array<i64: 72, 24>}, {pipeline_mode = #tpu.pipeline_mode<synchronous>, transform_indices = @transform_35, window_bounds = array<i64: 1, 24>}, {pipeline_mode = #tpu.pipeline_mode<synchronous>, transform_indices = @transform_36, window_bounds = array<i64: 1, 24>}, {pipeline_mode = #tpu.pipeline_mode<synchronous>, transform_indices = @transform_37, window_bounds = array<i64: 24, 128>}, {pipeline_mode = #tpu.pipeline_mode<synchronous>, transform_indices = @transform_38, window_bounds = array<i64: 1, 128>}, {pipeline_mode = #tpu.pipeline_mode<synchronous>, transform_indices = @transform_39, window_bounds = array<i64: 128, 10>}, {pipeline_mode = #tpu.pipeline_mode<synchronous>, transform_indices = @transform_40, window_bounds = array<i64: 1, 10>}, {transform_indices = @transform_41, window_bounds = array<i64: 1, 1, 10>}]} {
    %c0 = arith.constant 0 : index
    %c0_0 = arith.constant 0 : index
    %c0_1 = arith.constant 0 : index
    %0 = vector.load %arg1[%c0, %c0_0, %c0_1] : memref<1x256x27xf32, #tpu.memory_space<vmem>>, vector<1x256x27xf32>
    %1 = vector.shape_cast %0 : vector<1x256x27xf32> to vector<256x27xf32>
    %2 = arith.truncf %1 : vector<256x27xf32> to vector<256x27xbf16>
    %c0_2 = arith.constant 0 : index
    %c0_3 = arith.constant 0 : index
    %3 = vector.load %arg3[%c0_2, %c0_3] : memref<27x16xbf16, #tpu.memory_space<vmem>>, vector<27x16xbf16>
    %cst = arith.constant dense<0.000000e+00> : vector<256x16xf32>
    %4 = tpu.matmul %2, %3, %cst {dimension_numbers = #tpu.dot_dimension_numbers<[1], [0], [0], [1], [0, 0, 1, 1], [], []>} : vector<256x27xbf16>, vector<27x16xbf16>, vector<256x16xf32> -> vector<256x16xf32>
    %c0_4 = arith.constant 0 : index
    %c0_5 = arith.constant 0 : index
    %5 = vector.load %arg4[%c0_4, %c0_5] : memref<1x16xf32, #tpu.memory_space<vmem>>, vector<1x16xf32>
    %6 = vector.shape_cast %5 : vector<1x16xf32> to vector<16xf32>
    %7 = vector.shape_cast %6 : vector<16xf32> to vector<1x16xf32>
    %8 = vector.broadcast %7 : vector<1x16xf32> to vector<256x16xf32>
    %9 = arith.mulf %4, %8 : vector<256x16xf32>
    %c0_6 = arith.constant 0 : index
    %c0_7 = arith.constant 0 : index
    %10 = vector.load %arg5[%c0_6, %c0_7] : memref<1x16xf32, #tpu.memory_space<vmem>>, vector<1x16xf32>
    %11 = vector.shape_cast %10 : vector<1x16xf32> to vector<16xf32>
    %12 = vector.shape_cast %11 : vector<16xf32> to vector<1x16xf32>
    %13 = vector.broadcast %12 : vector<1x16xf32> to vector<256x16xf32>
    %14 = arith.addf %9, %13 : vector<256x16xf32>
    %cst_8 = arith.constant 0.000000e+00 : f32
    %15 = vector.broadcast %cst_8 : f32 to vector<256x16xf32>
    %16 = arith.maximumf %14, %15 : vector<256x16xf32>
    %cst_9 = arith.constant 0.000000e+00 : f32
    %17 = vector.broadcast %cst_9 : f32 to vector<18x18x16xf32>
    %c0_10 = arith.constant 0 : index
    %c0_11 = arith.constant 0 : index
    %c0_12 = arith.constant 0 : index
    %18 = vector.load %arg43[%c0_10, %c0_11, %c0_12] : memref<18x18x16xf32, #tpu.memory_space<vmem>>, vector<18x18x16xf32>
    tpu.vector_store %arg43[%c0_10, %c0_11, %c0_12], %17 {strides = array<i32>} : memref<18x18x16xf32, #tpu.memory_space<vmem>>, vector<18x18x16xf32>,
    %19 = vector.extract_strided_slice %16 {offsets = [0, 0], sizes = [16, 16], strides = [1, 1]} : vector<256x16xf32> to vector<16x16xf32>
    %c1 = arith.constant 1 : index
    %c1_13 = arith.constant 1 : index
    %c0_14 = arith.constant 0 : index
    %20 = vector.load %arg43[%c1, %c1_13, %c0_14] : memref<18x18x16xf32, #tpu.memory_space<vmem>>, vector<1x16x16xf32>
    %21 = vector.shape_cast %20 : vector<1x16x16xf32> to vector<16x16xf32>
    %22 = vector.shape_cast %19 : vector<16x16xf32> to vector<1x16x16xf32>
    tpu.vector_store %arg43[%c1, %c1_13, %c0_14], %22 {strides = array<i32>} : memref<18x18x16xf32, #tpu.memory_space<vmem>>, vector<1x16x16xf32>,
    %23 = vector.extract_strided_slice %16 {offsets = [16, 0], sizes = [16, 16], strides = [1, 1]} : vector<256x16xf32> to vector<16x16xf32>
    %c2 = arith.constant 2 : index
    %c1_15 = arith.constant 1 : index
    %c0_16 = arith.constant 0 : index
    %24 = vector.load %arg43[%c2, %c1_15, %c0_16] : memref<18x18x16xf32, #tpu.memory_space<vmem>>, vector<1x16x16xf32>
    %25 = vector.shape_cast %24 : vector<1x16x16xf32> to vector<16x16xf32>
    %26 = vector.shape_cast %23 : vector<16x16xf32> to vector<1x16x16xf32>
    tpu.vector_store %arg43[%c2, %c1_15, %c0_16], %26 {strides = array<i32>} : memref<18x18x16xf32, #tpu.memory_space<vmem>>, vector<1x16x16xf32>,
    %27 = vector.extract_strided_slice %16 {offsets = [32, 0], sizes = [16, 16], strides = [1, 1]} : vector<256x16xf32> to vector<16x16xf32>
    %c3 = arith.constant 3 : index
    %c1_17 = arith.constant 1 : index
    %c0_18 = arith.constant 0 : index
    %28 = vector.load %arg43[%c3, %c1_17, %c0_18] : memref<18x18x16xf32, #tpu.memory_space<vmem>>, vector<1x16x16xf32>
    %29 = vector.shape_cast %28 : vector<1x16x16xf32> to vector<16x16xf32>
    %30 = vector.shape_cast %27 : vector<16x16xf32> to vector<1x16x16xf32>
    tpu.vector_store %arg43[%c3, %c1_17, %c0_18], %30 {strides = array<i32>} : memref<18x18x16xf32, #tpu.memory_space<vmem>>, vector<1x16x16xf32>,
    %31 = vector.extract_strided_slice %16 {offsets = [48, 0], sizes = [16, 16], strides = [1, 1]} : vector<256x16xf32> to vector<16x16xf32>
    %c4 = arith.constant 4 : index
    %c1_19 = arith.constant 1 : index
    %c0_20 = arith.constant 0 : index
    %32 = vector.load %arg43[%c4, %c1_19, %c0_20] : memref<18x18x16xf32, #tpu.memory_space<vmem>>, vector<1x16x16xf32>
    %33 = vector.shape_cast %32 : vector<1x16x16xf32> to vector<16x16xf32>
    %34 = vector.shape_cast %31 : vector<16x16xf32> to vector<1x16x16xf32>
    tpu.vector_store %arg43[%c4, %c1_19, %c0_20], %34 {strides = array<i32>} : memref<18x18x16xf32, #tpu.memory_space<vmem>>, vector<1x16x16xf32>,
    %35 = vector.extract_strided_slice %16 {offsets = [64, 0], sizes = [16, 16], strides = [1, 1]} : vector<256x16xf32> to vector<16x16xf32>
    %c5 = arith.constant 5 : index
    %c1_21 = arith.constant 1 : index
    %c0_22 = arith.constant 0 : index
    %36 = vector.load %arg43[%c5, %c1_21, %c0_22] : memref<18x18x16xf32, #tpu.memory_space<vmem>>, vector<1x16x16xf32>
    %37 = vector.shape_cast %36 : vector<1x16x16xf32> to vector<16x16xf32>
    %38 = vector.shape_cast %35 : vector<16x16xf32> to vector<1x16x16xf32>
    tpu.vector_store %arg43[%c5, %c1_21, %c0_22], %38 {strides = array<i32>} : memref<18x18x16xf32, #tpu.memory_space<vmem>>, vector<1x16x16xf32>,
    %39 = vector.extract_strided_slice %16 {offsets = [80, 0], sizes = [16, 16], strides = [1, 1]} : vector<256x16xf32> to vector<16x16xf32>
    %c6 = arith.constant 6 : index
    %c1_23 = arith.constant 1 : index
    %c0_24 = arith.constant 0 : index
    %40 = vector.load %arg43[%c6, %c1_23, %c0_24] : memref<18x18x16xf32, #tpu.memory_space<vmem>>, vector<1x16x16xf32>
    %41 = vector.shape_cast %40 : vector<1x16x16xf32> to vector<16x16xf32>
    %42 = vector.shape_cast %39 : vector<16x16xf32> to vector<1x16x16xf32>
    tpu.vector_store %arg43[%c6, %c1_23, %c0_24], %42 {strides = array<i32>} : memref<18x18x16xf32, #tpu.memory_space<vmem>>, vector<1x16x16xf32>,
    %43 = vector.extract_strided_slice %16 {offsets = [96, 0], sizes = [16, 16], strides = [1, 1]} : vector<256x16xf32> to vector<16x16xf32>
    %c7 = arith.constant 7 : index
    %c1_25 = arith.constant 1 : index
    %c0_26 = arith.constant 0 : index
    %44 = vector.load %arg43[%c7, %c1_25, %c0_26] : memref<18x18x16xf32, #tpu.memory_space<vmem>>, vector<1x16x16xf32>
    %45 = vector.shape_cast %44 : vector<1x16x16xf32> to vector<16x16xf32>
    %46 = vector.shape_cast %43 : vector<16x16xf32> to vector<1x16x16xf32>
    tpu.vector_store %arg43[%c7, %c1_25, %c0_26], %46 {strides = array<i32>} : memref<18x18x16xf32, #tpu.memory_space<vmem>>, vector<1x16x16xf32>,
    %47 = vector.extract_strided_slice %16 {offsets = [112, 0], sizes = [16, 16], strides = [1, 1]} : vector<256x16xf32> to vector<16x16xf32>
    %c8 = arith.constant 8 : index
    %c1_27 = arith.constant 1 : index
    %c0_28 = arith.constant 0 : index
    %48 = vector.load %arg43[%c8, %c1_27, %c0_28] : memref<18x18x16xf32, #tpu.memory_space<vmem>>, vector<1x16x16xf32>
    %49 = vector.shape_cast %48 : vector<1x16x16xf32> to vector<16x16xf32>
    %50 = vector.shape_cast %47 : vector<16x16xf32> to vector<1x16x16xf32>
    tpu.vector_store %arg43[%c8, %c1_27, %c0_28], %50 {strides = array<i32>} : memref<18x18x16xf32, #tpu.memory_space<vmem>>, vector<1x16x16xf32>,
    %51 = vector.extract_strided_slice %16 {offsets = [128, 0], sizes = [16, 16], strides = [1, 1]} : vector<256x16xf32> to vector<16x16xf32>
    %c9 = arith.constant 9 : index
    %c1_29 = arith.constant 1 : index
    %c0_30 = arith.constant 0 : index
    %52 = vector.load %arg43[%c9, %c1_29, %c0_30] : memref<18x18x16xf32, #tpu.memory_space<vmem>>, vector<1x16x16xf32>
    %53 = vector.shape_cast %52 : vector<1x16x16xf32> to vector<16x16xf32>
    %54 = vector.shape_cast %51 : vector<16x16xf32> to vector<1x16x16xf32>
    tpu.vector_store %arg43[%c9, %c1_29, %c0_30], %54 {strides = array<i32>} : memref<18x18x16xf32, #tpu.memory_space<vmem>>, vector<1x16x16xf32>,
    %55 = vector.extract_strided_slice %16 {offsets = [144, 0], sizes = [16, 16], strides = [1, 1]} : vector<256x16xf32> to vector<16x16xf32>
    %c10 = arith.constant 10 : index
    %c1_31 = arith.constant 1 : index
    %c0_32 = arith.constant 0 : index
    %56 = vector.load %arg43[%c10, %c1_31, %c0_32] : memref<18x18x16xf32, #tpu.memory_space<vmem>>, vector<1x16x16xf32>
    %57 = vector.shape_cast %56 : vector<1x16x16xf32> to vector<16x16xf32>
    %58 = vector.shape_cast %55 : vector<16x16xf32> to vector<1x16x16xf32>
    tpu.vector_store %arg43[%c10, %c1_31, %c0_32], %58 {strides = array<i32>} : memref<18x18x16xf32, #tpu.memory_space<vmem>>, vector<1x16x16xf32>,
    %59 = vector.extract_strided_slice %16 {offsets = [160, 0], sizes = [16, 16], strides = [1, 1]} : vector<256x16xf32> to vector<16x16xf32>
    %c11 = arith.constant 11 : index
    %c1_33 = arith.constant 1 : index
    %c0_34 = arith.constant 0 : index
    %60 = vector.load %arg43[%c11, %c1_33, %c0_34] : memref<18x18x16xf32, #tpu.memory_space<vmem>>, vector<1x16x16xf32>
    %61 = vector.shape_cast %60 : vector<1x16x16xf32> to vector<16x16xf32>
    %62 = vector.shape_cast %59 : vector<16x16xf32> to vector<1x16x16xf32>
    tpu.vector_store %arg43[%c11, %c1_33, %c0_34], %62 {strides = array<i32>} : memref<18x18x16xf32, #tpu.memory_space<vmem>>, vector<1x16x16xf32>,
    %63 = vector.extract_strided_slice %16 {offsets = [176, 0], sizes = [16, 16], strides = [1, 1]} : vector<256x16xf32> to vector<16x16xf32>
    %c12 = arith.constant 12 : index
    %c1_35 = arith.constant 1 : index
    %c0_36 = arith.constant 0 : index
    %64 = vector.load %arg43[%c12, %c1_35, %c0_36] : memref<18x18x16xf32, #tpu.memory_space<vmem>>, vector<1x16x16xf32>
    %65 = vector.shape_cast %64 : vector<1x16x16xf32> to vector<16x16xf32>
    %66 = vector.shape_cast %63 : vector<16x16xf32> to vector<1x16x16xf32>
    tpu.vector_store %arg43[%c12, %c1_35, %c0_36], %66 {strides = array<i32>} : memref<18x18x16xf32, #tpu.memory_space<vmem>>, vector<1x16x16xf32>,
    %67 = vector.extract_strided_slice %16 {offsets = [192, 0], sizes = [16, 16], strides = [1, 1]} : vector<256x16xf32> to vector<16x16xf32>
    %c13 = arith.constant 13 : index
    %c1_37 = arith.constant 1 : index
    %c0_38 = arith.constant 0 : index
    %68 = vector.load %arg43[%c13, %c1_37, %c0_38] : memref<18x18x16xf32, #tpu.memory_space<vmem>>, vector<1x16x16xf32>
    %69 = vector.shape_cast %68 : vector<1x16x16xf32> to vector<16x16xf32>
    %70 = vector.shape_cast %67 : vector<16x16xf32> to vector<1x16x16xf32>
    tpu.vector_store %arg43[%c13, %c1_37, %c0_38], %70 {strides = array<i32>} : memref<18x18x16xf32, #tpu.memory_space<vmem>>, vector<1x16x16xf32>,
    %71 = vector.extract_strided_slice %16 {offsets = [208, 0], sizes = [16, 16], strides = [1, 1]} : vector<256x16xf32> to vector<16x16xf32>
    %c14 = arith.constant 14 : index
    %c1_39 = arith.constant 1 : index
    %c0_40 = arith.constant 0 : index
    %72 = vector.load %arg43[%c14, %c1_39, %c0_40] : memref<18x18x16xf32, #tpu.memory_space<vmem>>, vector<1x16x16xf32>
    %73 = vector.shape_cast %72 : vector<1x16x16xf32> to vector<16x16xf32>
    %74 = vector.shape_cast %71 : vector<16x16xf32> to vector<1x16x16xf32>
    tpu.vector_store %arg43[%c14, %c1_39, %c0_40], %74 {strides = array<i32>} : memref<18x18x16xf32, #tpu.memory_space<vmem>>, vector<1x16x16xf32>,
    %75 = vector.extract_strided_slice %16 {offsets = [224, 0], sizes = [16, 16], strides = [1, 1]} : vector<256x16xf32> to vector<16x16xf32>
    %c15 = arith.constant 15 : index
    %c1_41 = arith.constant 1 : index
    %c0_42 = arith.constant 0 : index
    %76 = vector.load %arg43[%c15, %c1_41, %c0_42] : memref<18x18x16xf32, #tpu.memory_space<vmem>>, vector<1x16x16xf32>
    %77 = vector.shape_cast %76 : vector<1x16x16xf32> to vector<16x16xf32>
    %78 = vector.shape_cast %75 : vector<16x16xf32> to vector<1x16x16xf32>
    tpu.vector_store %arg43[%c15, %c1_41, %c0_42], %78 {strides = array<i32>} : memref<18x18x16xf32, #tpu.memory_space<vmem>>, vector<1x16x16xf32>,
    %79 = vector.extract_strided_slice %16 {offsets = [240, 0], sizes = [16, 16], strides = [1, 1]} : vector<256x16xf32> to vector<16x16xf32>
    %c16 = arith.constant 16 : index
    %c1_43 = arith.constant 1 : index
    %c0_44 = arith.constant 0 : index
    %80 = vector.load %arg43[%c16, %c1_43, %c0_44] : memref<18x18x16xf32, #tpu.memory_space<vmem>>, vector<1x16x16xf32>
    %81 = vector.shape_cast %80 : vector<1x16x16xf32> to vector<16x16xf32>
    %82 = vector.shape_cast %79 : vector<16x16xf32> to vector<1x16x16xf32>
    tpu.vector_store %arg43[%c16, %c1_43, %c0_44], %82 {strides = array<i32>} : memref<18x18x16xf32, #tpu.memory_space<vmem>>, vector<1x16x16xf32>,
    %c0_45 = arith.constant 0 : index
    %c0_46 = arith.constant 0 : index
    %c0_47 = arith.constant 0 : index
    %83 = vector.load %arg43[%c0_45, %c0_46, %c0_47] : memref<18x18x16xf32, #tpu.memory_space<vmem>>, vector<18x18x16xf32>
    %cst_48 = arith.constant 0.000000e+00 : f32
    %84 = vector.broadcast %cst_48 : f32 to vector<16x16x16xf32>
    %85 = vector.extract_strided_slice %83 {offsets = [0, 0, 0], sizes = [16, 16, 16], strides = [1, 1, 1]} : vector<18x18x16xf32> to vector<16x16x16xf32>
    %c0_49 = arith.constant 0 : index
    %c0_50 = arith.constant 0 : index
    %c0_51 = arith.constant 0 : index
    %86 = vector.load %arg6[%c0_49, %c0_50, %c0_51] : memref<3x3x16xf32, #tpu.memory_space<vmem>>, vector<1x1x16xf32>
    %87 = vector.shape_cast %86 : vector<1x1x16xf32> to vector<16xf32>
    %88 = vector.shape_cast %87 : vector<16xf32> to vector<1x1x16xf32>
    %89 = vector.broadcast %88 : vector<1x1x16xf32> to vector<16x16x16xf32>
    %90 = arith.mulf %85, %89 : vector<16x16x16xf32>
    %91 = arith.addf %84, %90 : vector<16x16x16xf32>
    %92 = vector.extract_strided_slice %83 {offsets = [0, 1, 0], sizes = [16, 16, 16], strides = [1, 1, 1]} : vector<18x18x16xf32> to vector<16x16x16xf32>
    %c0_52 = arith.constant 0 : index
    %c1_53 = arith.constant 1 : index
    %c0_54 = arith.constant 0 : index
    %93 = vector.load %arg6[%c0_52, %c1_53, %c0_54] : memref<3x3x16xf32, #tpu.memory_space<vmem>>, vector<1x1x16xf32>
    %94 = vector.shape_cast %93 : vector<1x1x16xf32> to vector<16xf32>
    %95 = vector.shape_cast %94 : vector<16xf32> to vector<1x1x16xf32>
    %96 = vector.broadcast %95 : vector<1x1x16xf32> to vector<16x16x16xf32>
    %97 = arith.mulf %92, %96 : vector<16x16x16xf32>
    %98 = arith.addf %91, %97 : vector<16x16x16xf32>
    %99 = vector.extract_strided_slice %83 {offsets = [0, 2, 0], sizes = [16, 16, 16], strides = [1, 1, 1]} : vector<18x18x16xf32> to vector<16x16x16xf32>
    %c0_55 = arith.constant 0 : index
    %c2_56 = arith.constant 2 : index
    %c0_57 = arith.constant 0 : index
    %100 = vector.load %arg6[%c0_55, %c2_56, %c0_57] : memref<3x3x16xf32, #tpu.memory_space<vmem>>, vector<1x1x16xf32>
    %101 = vector.shape_cast %100 : vector<1x1x16xf32> to vector<16xf32>
    %102 = vector.shape_cast %101 : vector<16xf32> to vector<1x1x16xf32>
    %103 = vector.broadcast %102 : vector<1x1x16xf32> to vector<16x16x16xf32>
    %104 = arith.mulf %99, %103 : vector<16x16x16xf32>
    %105 = arith.addf %98, %104 : vector<16x16x16xf32>
    %106 = vector.extract_strided_slice %83 {offsets = [1, 0, 0], sizes = [16, 16, 16], strides = [1, 1, 1]} : vector<18x18x16xf32> to vector<16x16x16xf32>
    %c1_58 = arith.constant 1 : index
    %c0_59 = arith.constant 0 : index
    %c0_60 = arith.constant 0 : index
    %107 = vector.load %arg6[%c1_58, %c0_59, %c0_60] : memref<3x3x16xf32, #tpu.memory_space<vmem>>, vector<1x1x16xf32>
    %108 = vector.shape_cast %107 : vector<1x1x16xf32> to vector<16xf32>
    %109 = vector.shape_cast %108 : vector<16xf32> to vector<1x1x16xf32>
    %110 = vector.broadcast %109 : vector<1x1x16xf32> to vector<16x16x16xf32>
    %111 = arith.mulf %106, %110 : vector<16x16x16xf32>
    %112 = arith.addf %105, %111 : vector<16x16x16xf32>
    %113 = vector.extract_strided_slice %83 {offsets = [1, 1, 0], sizes = [16, 16, 16], strides = [1, 1, 1]} : vector<18x18x16xf32> to vector<16x16x16xf32>
    %c1_61 = arith.constant 1 : index
    %c1_62 = arith.constant 1 : index
    %c0_63 = arith.constant 0 : index
    %114 = vector.load %arg6[%c1_61, %c1_62, %c0_63] : memref<3x3x16xf32, #tpu.memory_space<vmem>>, vector<1x1x16xf32>
    %115 = vector.shape_cast %114 : vector<1x1x16xf32> to vector<16xf32>
    %116 = vector.shape_cast %115 : vector<16xf32> to vector<1x1x16xf32>
    %117 = vector.broadcast %116 : vector<1x1x16xf32> to vector<16x16x16xf32>
    %118 = arith.mulf %113, %117 : vector<16x16x16xf32>
    %119 = arith.addf %112, %118 : vector<16x16x16xf32>
    %120 = vector.extract_strided_slice %83 {offsets = [1, 2, 0], sizes = [16, 16, 16], strides = [1, 1, 1]} : vector<18x18x16xf32> to vector<16x16x16xf32>
    %c1_64 = arith.constant 1 : index
    %c2_65 = arith.constant 2 : index
    %c0_66 = arith.constant 0 : index
    %121 = vector.load %arg6[%c1_64, %c2_65, %c0_66] : memref<3x3x16xf32, #tpu.memory_space<vmem>>, vector<1x1x16xf32>
    %122 = vector.shape_cast %121 : vector<1x1x16xf32> to vector<16xf32>
    %123 = vector.shape_cast %122 : vector<16xf32> to vector<1x1x16xf32>
    %124 = vector.broadcast %123 : vector<1x1x16xf32> to vector<16x16x16xf32>
    %125 = arith.mulf %120, %124 : vector<16x16x16xf32>
    %126 = arith.addf %119, %125 : vector<16x16x16xf32>
    %127 = vector.extract_strided_slice %83 {offsets = [2, 0, 0], sizes = [16, 16, 16], strides = [1, 1, 1]} : vector<18x18x16xf32> to vector<16x16x16xf32>
    %c2_67 = arith.constant 2 : index
    %c0_68 = arith.constant 0 : index
    %c0_69 = arith.constant 0 : index
    %128 = vector.load %arg6[%c2_67, %c0_68, %c0_69] : memref<3x3x16xf32, #tpu.memory_space<vmem>>, vector<1x1x16xf32>
    %129 = vector.shape_cast %128 : vector<1x1x16xf32> to vector<16xf32>
    %130 = vector.shape_cast %129 : vector<16xf32> to vector<1x1x16xf32>
    %131 = vector.broadcast %130 : vector<1x1x16xf32> to vector<16x16x16xf32>
    %132 = arith.mulf %127, %131 : vector<16x16x16xf32>
    %133 = arith.addf %126, %132 : vector<16x16x16xf32>
    %134 = vector.extract_strided_slice %83 {offsets = [2, 1, 0], sizes = [16, 16, 16], strides = [1, 1, 1]} : vector<18x18x16xf32> to vector<16x16x16xf32>
    %c2_70 = arith.constant 2 : index
    %c1_71 = arith.constant 1 : index
    %c0_72 = arith.constant 0 : index
    %135 = vector.load %arg6[%c2_70, %c1_71, %c0_72] : memref<3x3x16xf32, #tpu.memory_space<vmem>>, vector<1x1x16xf32>
    %136 = vector.shape_cast %135 : vector<1x1x16xf32> to vector<16xf32>
    %137 = vector.shape_cast %136 : vector<16xf32> to vector<1x1x16xf32>
    %138 = vector.broadcast %137 : vector<1x1x16xf32> to vector<16x16x16xf32>
    %139 = arith.mulf %134, %138 : vector<16x16x16xf32>
    %140 = arith.addf %133, %139 : vector<16x16x16xf32>
    %141 = vector.extract_strided_slice %83 {offsets = [2, 2, 0], sizes = [16, 16, 16], strides = [1, 1, 1]} : vector<18x18x16xf32> to vector<16x16x16xf32>
    %c2_73 = arith.constant 2 : index
    %c2_74 = arith.constant 2 : index
    %c0_75 = arith.constant 0 : index
    %142 = vector.load %arg6[%c2_73, %c2_74, %c0_75] : memref<3x3x16xf32, #tpu.memory_space<vmem>>, vector<1x1x16xf32>
    %143 = vector.shape_cast %142 : vector<1x1x16xf32> to vector<16xf32>
    %144 = vector.shape_cast %143 : vector<16xf32> to vector<1x1x16xf32>
    %145 = vector.broadcast %144 : vector<1x1x16xf32> to vector<16x16x16xf32>
    %146 = arith.mulf %141, %145 : vector<16x16x16xf32>
    %147 = arith.addf %140, %146 : vector<16x16x16xf32>
    %c0_76 = arith.constant 0 : index
    %c0_77 = arith.constant 0 : index
    %148 = vector.load %arg7[%c0_76, %c0_77] : memref<1x16xf32, #tpu.memory_space<vmem>>, vector<1x16xf32>
    %149 = vector.shape_cast %148 : vector<1x16xf32> to vector<16xf32>
    %150 = vector.shape_cast %149 : vector<16xf32> to vector<1x1x16xf32>
    %151 = vector.broadcast %150 : vector<1x1x16xf32> to vector<16x16x16xf32>
    %152 = arith.mulf %147, %151 : vector<16x16x16xf32>
    %c0_78 = arith.constant 0 : index
    %c0_79 = arith.constant 0 : index
    %153 = vector.load %arg8[%c0_78, %c0_79] : memref<1x16xf32, #tpu.memory_space<vmem>>, vector<1x16xf32>
    %154 = vector.shape_cast %153 : vector<1x16xf32> to vector<16xf32>
    %155 = vector.shape_cast %154 : vector<16xf32> to vector<1x1x16xf32>
    %156 = vector.broadcast %155 : vector<1x1x16xf32> to vector<16x16x16xf32>
    %157 = arith.addf %152, %156 : vector<16x16x16xf32>
    %cst_80 = arith.constant 0.000000e+00 : f32
    %158 = vector.broadcast %cst_80 : f32 to vector<16x16x16xf32>
    %159 = arith.maximumf %157, %158 : vector<16x16x16xf32>
    %160 = vector.extract_strided_slice %159 {offsets = [0, 0, 0], sizes = [1, 16, 16], strides = [1, 1, 1]} : vector<16x16x16xf32> to vector<1x16x16xf32>
    %161 = vector.shape_cast %160 : vector<1x16x16xf32> to vector<16x16xf32>
    %c0_81 = arith.constant 0 : index
    %c0_82 = arith.constant 0 : index
    %162 = vector.load %arg44[%c0_81, %c0_82] : memref<256x16xf32, #tpu.memory_space<vmem>>, vector<16x16xf32>
    tpu.vector_store %arg44[%c0_81, %c0_82], %161 {strides = array<i32>} : memref<256x16xf32, #tpu.memory_space<vmem>>, vector<16x16xf32>,
    %163 = vector.extract_strided_slice %159 {offsets = [1, 0, 0], sizes = [1, 16, 16], strides = [1, 1, 1]} : vector<16x16x16xf32> to vector<1x16x16xf32>
    %164 = vector.shape_cast %163 : vector<1x16x16xf32> to vector<16x16xf32>
    %c16_83 = arith.constant 16 : index
    %c0_84 = arith.constant 0 : index
    %165 = vector.load %arg44[%c16_83, %c0_84] : memref<256x16xf32, #tpu.memory_space<vmem>>, vector<16x16xf32>
    tpu.vector_store %arg44[%c16_83, %c0_84], %164 {strides = array<i32>} : memref<256x16xf32, #tpu.memory_space<vmem>>, vector<16x16xf32>,
    %166 = vector.extract_strided_slice %159 {offsets = [2, 0, 0], sizes = [1, 16, 16], strides = [1, 1, 1]} : vector<16x16x16xf32> to vector<1x16x16xf32>
    %167 = vector.shape_cast %166 : vector<1x16x16xf32> to vector<16x16xf32>
    %c32 = arith.constant 32 : index
    %c0_85 = arith.constant 0 : index
    %168 = vector.load %arg44[%c32, %c0_85] : memref<256x16xf32, #tpu.memory_space<vmem>>, vector<16x16xf32>
    tpu.vector_store %arg44[%c32, %c0_85], %167 {strides = array<i32>} : memref<256x16xf32, #tpu.memory_space<vmem>>, vector<16x16xf32>,
    %169 = vector.extract_strided_slice %159 {offsets = [3, 0, 0], sizes = [1, 16, 16], strides = [1, 1, 1]} : vector<16x16x16xf32> to vector<1x16x16xf32>
    %170 = vector.shape_cast %169 : vector<1x16x16xf32> to vector<16x16xf32>
    %c48 = arith.constant 48 : index
    %c0_86 = arith.constant 0 : index
    %171 = vector.load %arg44[%c48, %c0_86] : memref<256x16xf32, #tpu.memory_space<vmem>>, vector<16x16xf32>
    tpu.vector_store %arg44[%c48, %c0_86], %170 {strides = array<i32>} : memref<256x16xf32, #tpu.memory_space<vmem>>, vector<16x16xf32>,
    %172 = vector.extract_strided_slice %159 {offsets = [4, 0, 0], sizes = [1, 16, 16], strides = [1, 1, 1]} : vector<16x16x16xf32> to vector<1x16x16xf32>
    %173 = vector.shape_cast %172 : vector<1x16x16xf32> to vector<16x16xf32>
    %c64 = arith.constant 64 : index
    %c0_87 = arith.constant 0 : index
    %174 = vector.load %arg44[%c64, %c0_87] : memref<256x16xf32, #tpu.memory_space<vmem>>, vector<16x16xf32>
    tpu.vector_store %arg44[%c64, %c0_87], %173 {strides = array<i32>} : memref<256x16xf32, #tpu.memory_space<vmem>>, vector<16x16xf32>,
    %175 = vector.extract_strided_slice %159 {offsets = [5, 0, 0], sizes = [1, 16, 16], strides = [1, 1, 1]} : vector<16x16x16xf32> to vector<1x16x16xf32>
    %176 = vector.shape_cast %175 : vector<1x16x16xf32> to vector<16x16xf32>
    %c80 = arith.constant 80 : index
    %c0_88 = arith.constant 0 : index
    %177 = vector.load %arg44[%c80, %c0_88] : memref<256x16xf32, #tpu.memory_space<vmem>>, vector<16x16xf32>
    tpu.vector_store %arg44[%c80, %c0_88], %176 {strides = array<i32>} : memref<256x16xf32, #tpu.memory_space<vmem>>, vector<16x16xf32>,
    %178 = vector.extract_strided_slice %159 {offsets = [6, 0, 0], sizes = [1, 16, 16], strides = [1, 1, 1]} : vector<16x16x16xf32> to vector<1x16x16xf32>
    %179 = vector.shape_cast %178 : vector<1x16x16xf32> to vector<16x16xf32>
    %c96 = arith.constant 96 : index
    %c0_89 = arith.constant 0 : index
    %180 = vector.load %arg44[%c96, %c0_89] : memref<256x16xf32, #tpu.memory_space<vmem>>, vector<16x16xf32>
    tpu.vector_store %arg44[%c96, %c0_89], %179 {strides = array<i32>} : memref<256x16xf32, #tpu.memory_space<vmem>>, vector<16x16xf32>,
    %181 = vector.extract_strided_slice %159 {offsets = [7, 0, 0], sizes = [1, 16, 16], strides = [1, 1, 1]} : vector<16x16x16xf32> to vector<1x16x16xf32>
    %182 = vector.shape_cast %181 : vector<1x16x16xf32> to vector<16x16xf32>
    %c112 = arith.constant 112 : index
    %c0_90 = arith.constant 0 : index
    %183 = vector.load %arg44[%c112, %c0_90] : memref<256x16xf32, #tpu.memory_space<vmem>>, vector<16x16xf32>
    tpu.vector_store %arg44[%c112, %c0_90], %182 {strides = array<i32>} : memref<256x16xf32, #tpu.memory_space<vmem>>, vector<16x16xf32>,
    %184 = vector.extract_strided_slice %159 {offsets = [8, 0, 0], sizes = [1, 16, 16], strides = [1, 1, 1]} : vector<16x16x16xf32> to vector<1x16x16xf32>
    %185 = vector.shape_cast %184 : vector<1x16x16xf32> to vector<16x16xf32>
    %c128 = arith.constant 128 : index
    %c0_91 = arith.constant 0 : index
    %186 = vector.load %arg44[%c128, %c0_91] : memref<256x16xf32, #tpu.memory_space<vmem>>, vector<16x16xf32>
    tpu.vector_store %arg44[%c128, %c0_91], %185 {strides = array<i32>} : memref<256x16xf32, #tpu.memory_space<vmem>>, vector<16x16xf32>,
    %187 = vector.extract_strided_slice %159 {offsets = [9, 0, 0], sizes = [1, 16, 16], strides = [1, 1, 1]} : vector<16x16x16xf32> to vector<1x16x16xf32>
    %188 = vector.shape_cast %187 : vector<1x16x16xf32> to vector<16x16xf32>
    %c144 = arith.constant 144 : index
    %c0_92 = arith.constant 0 : index
    %189 = vector.load %arg44[%c144, %c0_92] : memref<256x16xf32, #tpu.memory_space<vmem>>, vector<16x16xf32>
    tpu.vector_store %arg44[%c144, %c0_92], %188 {strides = array<i32>} : memref<256x16xf32, #tpu.memory_space<vmem>>, vector<16x16xf32>,
    %190 = vector.extract_strided_slice %159 {offsets = [10, 0, 0], sizes = [1, 16, 16], strides = [1, 1, 1]} : vector<16x16x16xf32> to vector<1x16x16xf32>
    %191 = vector.shape_cast %190 : vector<1x16x16xf32> to vector<16x16xf32>
    %c160 = arith.constant 160 : index
    %c0_93 = arith.constant 0 : index
    %192 = vector.load %arg44[%c160, %c0_93] : memref<256x16xf32, #tpu.memory_space<vmem>>, vector<16x16xf32>
    tpu.vector_store %arg44[%c160, %c0_93], %191 {strides = array<i32>} : memref<256x16xf32, #tpu.memory_space<vmem>>, vector<16x16xf32>,
    %193 = vector.extract_strided_slice %159 {offsets = [11, 0, 0], sizes = [1, 16, 16], strides = [1, 1, 1]} : vector<16x16x16xf32> to vector<1x16x16xf32>
    %194 = vector.shape_cast %193 : vector<1x16x16xf32> to vector<16x16xf32>
    %c176 = arith.constant 176 : index
    %c0_94 = arith.constant 0 : index
    %195 = vector.load %arg44[%c176, %c0_94] : memref<256x16xf32, #tpu.memory_space<vmem>>, vector<16x16xf32>
    tpu.vector_store %arg44[%c176, %c0_94], %194 {strides = array<i32>} : memref<256x16xf32, #tpu.memory_space<vmem>>, vector<16x16xf32>,
    %196 = vector.extract_strided_slice %159 {offsets = [12, 0, 0], sizes = [1, 16, 16], strides = [1, 1, 1]} : vector<16x16x16xf32> to vector<1x16x16xf32>
    %197 = vector.shape_cast %196 : vector<1x16x16xf32> to vector<16x16xf32>
    %c192 = arith.constant 192 : index
    %c0_95 = arith.constant 0 : index
    %198 = vector.load %arg44[%c192, %c0_95] : memref<256x16xf32, #tpu.memory_space<vmem>>, vector<16x16xf32>
    tpu.vector_store %arg44[%c192, %c0_95], %197 {strides = array<i32>} : memref<256x16xf32, #tpu.memory_space<vmem>>, vector<16x16xf32>,
    %199 = vector.extract_strided_slice %159 {offsets = [13, 0, 0], sizes = [1, 16, 16], strides = [1, 1, 1]} : vector<16x16x16xf32> to vector<1x16x16xf32>
    %200 = vector.shape_cast %199 : vector<1x16x16xf32> to vector<16x16xf32>
    %c208 = arith.constant 208 : index
    %c0_96 = arith.constant 0 : index
    %201 = vector.load %arg44[%c208, %c0_96] : memref<256x16xf32, #tpu.memory_space<vmem>>, vector<16x16xf32>
    tpu.vector_store %arg44[%c208, %c0_96], %200 {strides = array<i32>} : memref<256x16xf32, #tpu.memory_space<vmem>>, vector<16x16xf32>,
    %202 = vector.extract_strided_slice %159 {offsets = [14, 0, 0], sizes = [1, 16, 16], strides = [1, 1, 1]} : vector<16x16x16xf32> to vector<1x16x16xf32>
    %203 = vector.shape_cast %202 : vector<1x16x16xf32> to vector<16x16xf32>
    %c224 = arith.constant 224 : index
    %c0_97 = arith.constant 0 : index
    %204 = vector.load %arg44[%c224, %c0_97] : memref<256x16xf32, #tpu.memory_space<vmem>>, vector<16x16xf32>
    tpu.vector_store %arg44[%c224, %c0_97], %203 {strides = array<i32>} : memref<256x16xf32, #tpu.memory_space<vmem>>, vector<16x16xf32>,
    %205 = vector.extract_strided_slice %159 {offsets = [15, 0, 0], sizes = [1, 16, 16], strides = [1, 1, 1]} : vector<16x16x16xf32> to vector<1x16x16xf32>
    %206 = vector.shape_cast %205 : vector<1x16x16xf32> to vector<16x16xf32>
    %c240 = arith.constant 240 : index
    %c0_98 = arith.constant 0 : index
    %207 = vector.load %arg44[%c240, %c0_98] : memref<256x16xf32, #tpu.memory_space<vmem>>, vector<16x16xf32>
    tpu.vector_store %arg44[%c240, %c0_98], %206 {strides = array<i32>} : memref<256x16xf32, #tpu.memory_space<vmem>>, vector<16x16xf32>,
    %c0_99 = arith.constant 0 : index
    %c0_100 = arith.constant 0 : index
    %208 = vector.load %arg44[%c0_99, %c0_100] : memref<256x16xf32, #tpu.memory_space<vmem>>, vector<256x16xf32>
    %209 = arith.truncf %208 : vector<256x16xf32> to vector<256x16xbf16>
    %c0_101 = arith.constant 0 : index
    %c0_102 = arith.constant 0 : index
    %210 = vector.load %arg9[%c0_101, %c0_102] : memref<16x16xbf16, #tpu.memory_space<vmem>>, vector<16x16xbf16>
    %cst_103 = arith.constant dense<0.000000e+00> : vector<256x16xf32>
    %211 = tpu.matmul %209, %210, %cst_103 {dimension_numbers = #tpu.dot_dimension_numbers<[1], [0], [0], [1], [0, 0, 1, 1], [], []>} : vector<256x16xbf16>, vector<16x16xbf16>, vector<256x16xf32> -> vector<256x16xf32>
    %c0_104 = arith.constant 0 : index
    %c0_105 = arith.constant 0 : index
    %212 = vector.load %arg10[%c0_104, %c0_105] : memref<1x16xf32, #tpu.memory_space<vmem>>, vector<1x16xf32>
    %213 = vector.shape_cast %212 : vector<1x16xf32> to vector<16xf32>
    %214 = vector.shape_cast %213 : vector<16xf32> to vector<1x16xf32>
    %215 = vector.broadcast %214 : vector<1x16xf32> to vector<256x16xf32>
    %216 = arith.mulf %211, %215 : vector<256x16xf32>
    %c0_106 = arith.constant 0 : index
    %c0_107 = arith.constant 0 : index
    %217 = vector.load %arg11[%c0_106, %c0_107] : memref<1x16xf32, #tpu.memory_space<vmem>>, vector<1x16xf32>
    %218 = vector.shape_cast %217 : vector<1x16xf32> to vector<16xf32>
    %219 = vector.shape_cast %218 : vector<16xf32> to vector<1x16xf32>
    %220 = vector.broadcast %219 : vector<1x16xf32> to vector<256x16xf32>
    %221 = arith.addf %216, %220 : vector<256x16xf32>
    %222 = arith.addf %221, %16 : vector<256x16xf32>
    %223 = arith.truncf %222 : vector<256x16xf32> to vector<256x16xbf16>
    %c0_108 = arith.constant 0 : index
    %c0_109 = arith.constant 0 : index
    %224 = vector.load %arg12[%c0_108, %c0_109] : memref<16x64xbf16, #tpu.memory_space<vmem>>, vector<16x64xbf16>
    %cst_110 = arith.constant dense<0.000000e+00> : vector<256x64xf32>
    %225 = tpu.matmul %223, %224, %cst_110 {dimension_numbers = #tpu.dot_dimension_numbers<[1], [0], [0], [1], [0, 0, 1, 1], [], []>} : vector<256x16xbf16>, vector<16x64xbf16>, vector<256x64xf32> -> vector<256x64xf32>
    %c0_111 = arith.constant 0 : index
    %c0_112 = arith.constant 0 : index
    %226 = vector.load %arg13[%c0_111, %c0_112] : memref<1x64xf32, #tpu.memory_space<vmem>>, vector<1x64xf32>
    %227 = vector.shape_cast %226 : vector<1x64xf32> to vector<64xf32>
    %228 = vector.shape_cast %227 : vector<64xf32> to vector<1x64xf32>
    %229 = vector.broadcast %228 : vector<1x64xf32> to vector<256x64xf32>
    %230 = arith.mulf %225, %229 : vector<256x64xf32>
    %c0_113 = arith.constant 0 : index
    %c0_114 = arith.constant 0 : index
    %231 = vector.load %arg14[%c0_113, %c0_114] : memref<1x64xf32, #tpu.memory_space<vmem>>, vector<1x64xf32>
    %232 = vector.shape_cast %231 : vector<1x64xf32> to vector<64xf32>
    %233 = vector.shape_cast %232 : vector<64xf32> to vector<1x64xf32>
    %234 = vector.broadcast %233 : vector<1x64xf32> to vector<256x64xf32>
    %235 = arith.addf %230, %234 : vector<256x64xf32>
    %cst_115 = arith.constant 0.000000e+00 : f32
    %236 = vector.broadcast %cst_115 : f32 to vector<256x64xf32>
    %237 = arith.maximumf %235, %236 : vector<256x64xf32>
    %cst_116 = arith.constant 0.000000e+00 : f32
    %238 = vector.broadcast %cst_116 : f32 to vector<18x18x64xf32>
    %c0_117 = arith.constant 0 : index
    %c0_118 = arith.constant 0 : index
    %c0_119 = arith.constant 0 : index
    %239 = vector.load %arg45[%c0_117, %c0_118, %c0_119] : memref<18x18x64xf32, #tpu.memory_space<vmem>>, vector<18x18x64xf32>
    tpu.vector_store %arg45[%c0_117, %c0_118, %c0_119], %238 {strides = array<i32>} : memref<18x18x64xf32, #tpu.memory_space<vmem>>, vector<18x18x64xf32>,
    %240 = vector.extract_strided_slice %237 {offsets = [0, 0], sizes = [16, 64], strides = [1, 1]} : vector<256x64xf32> to vector<16x64xf32>
    %c1_120 = arith.constant 1 : index
    %c1_121 = arith.constant 1 : index
    %c0_122 = arith.constant 0 : index
    %241 = vector.load %arg45[%c1_120, %c1_121, %c0_122] : memref<18x18x64xf32, #tpu.memory_space<vmem>>, vector<1x16x64xf32>
    %242 = vector.shape_cast %241 : vector<1x16x64xf32> to vector<16x64xf32>
    %243 = vector.shape_cast %240 : vector<16x64xf32> to vector<1x16x64xf32>
    tpu.vector_store %arg45[%c1_120, %c1_121, %c0_122], %243 {strides = array<i32>} : memref<18x18x64xf32, #tpu.memory_space<vmem>>, vector<1x16x64xf32>,
    %244 = vector.extract_strided_slice %237 {offsets = [16, 0], sizes = [16, 64], strides = [1, 1]} : vector<256x64xf32> to vector<16x64xf32>
    %c2_123 = arith.constant 2 : index
    %c1_124 = arith.constant 1 : index
    %c0_125 = arith.constant 0 : index
    %245 = vector.load %arg45[%c2_123, %c1_124, %c0_125] : memref<18x18x64xf32, #tpu.memory_space<vmem>>, vector<1x16x64xf32>
    %246 = vector.shape_cast %245 : vector<1x16x64xf32> to vector<16x64xf32>
    %247 = vector.shape_cast %244 : vector<16x64xf32> to vector<1x16x64xf32>
    tpu.vector_store %arg45[%c2_123, %c1_124, %c0_125], %247 {strides = array<i32>} : memref<18x18x64xf32, #tpu.memory_space<vmem>>, vector<1x16x64xf32>,
    %248 = vector.extract_strided_slice %237 {offsets = [32, 0], sizes = [16, 64], strides = [1, 1]} : vector<256x64xf32> to vector<16x64xf32>
    %c3_126 = arith.constant 3 : index
    %c1_127 = arith.constant 1 : index
    %c0_128 = arith.constant 0 : index
    %249 = vector.load %arg45[%c3_126, %c1_127, %c0_128] : memref<18x18x64xf32, #tpu.memory_space<vmem>>, vector<1x16x64xf32>
    %250 = vector.shape_cast %249 : vector<1x16x64xf32> to vector<16x64xf32>
    %251 = vector.shape_cast %248 : vector<16x64xf32> to vector<1x16x64xf32>
    tpu.vector_store %arg45[%c3_126, %c1_127, %c0_128], %251 {strides = array<i32>} : memref<18x18x64xf32, #tpu.memory_space<vmem>>, vector<1x16x64xf32>,
    %252 = vector.extract_strided_slice %237 {offsets = [48, 0], sizes = [16, 64], strides = [1, 1]} : vector<256x64xf32> to vector<16x64xf32>
    %c4_129 = arith.constant 4 : index
    %c1_130 = arith.constant 1 : index
    %c0_131 = arith.constant 0 : index
    %253 = vector.load %arg45[%c4_129, %c1_130, %c0_131] : memref<18x18x64xf32, #tpu.memory_space<vmem>>, vector<1x16x64xf32>
    %254 = vector.shape_cast %253 : vector<1x16x64xf32> to vector<16x64xf32>
    %255 = vector.shape_cast %252 : vector<16x64xf32> to vector<1x16x64xf32>
    tpu.vector_store %arg45[%c4_129, %c1_130, %c0_131], %255 {strides = array<i32>} : memref<18x18x64xf32, #tpu.memory_space<vmem>>, vector<1x16x64xf32>,
    %256 = vector.extract_strided_slice %237 {offsets = [64, 0], sizes = [16, 64], strides = [1, 1]} : vector<256x64xf32> to vector<16x64xf32>
    %c5_132 = arith.constant 5 : index
    %c1_133 = arith.constant 1 : index
    %c0_134 = arith.constant 0 : index
    %257 = vector.load %arg45[%c5_132, %c1_133, %c0_134] : memref<18x18x64xf32, #tpu.memory_space<vmem>>, vector<1x16x64xf32>
    %258 = vector.shape_cast %257 : vector<1x16x64xf32> to vector<16x64xf32>
    %259 = vector.shape_cast %256 : vector<16x64xf32> to vector<1x16x64xf32>
    tpu.vector_store %arg45[%c5_132, %c1_133, %c0_134], %259 {strides = array<i32>} : memref<18x18x64xf32, #tpu.memory_space<vmem>>, vector<1x16x64xf32>,
    %260 = vector.extract_strided_slice %237 {offsets = [80, 0], sizes = [16, 64], strides = [1, 1]} : vector<256x64xf32> to vector<16x64xf32>
    %c6_135 = arith.constant 6 : index
    %c1_136 = arith.constant 1 : index
    %c0_137 = arith.constant 0 : index
    %261 = vector.load %arg45[%c6_135, %c1_136, %c0_137] : memref<18x18x64xf32, #tpu.memory_space<vmem>>, vector<1x16x64xf32>
    %262 = vector.shape_cast %261 : vector<1x16x64xf32> to vector<16x64xf32>
    %263 = vector.shape_cast %260 : vector<16x64xf32> to vector<1x16x64xf32>
    tpu.vector_store %arg45[%c6_135, %c1_136, %c0_137], %263 {strides = array<i32>} : memref<18x18x64xf32, #tpu.memory_space<vmem>>, vector<1x16x64xf32>,
    %264 = vector.extract_strided_slice %237 {offsets = [96, 0], sizes = [16, 64], strides = [1, 1]} : vector<256x64xf32> to vector<16x64xf32>
    %c7_138 = arith.constant 7 : index
    %c1_139 = arith.constant 1 : index
    %c0_140 = arith.constant 0 : index
    %265 = vector.load %arg45[%c7_138, %c1_139, %c0_140] : memref<18x18x64xf32, #tpu.memory_space<vmem>>, vector<1x16x64xf32>
    %266 = vector.shape_cast %265 : vector<1x16x64xf32> to vector<16x64xf32>
    %267 = vector.shape_cast %264 : vector<16x64xf32> to vector<1x16x64xf32>
    tpu.vector_store %arg45[%c7_138, %c1_139, %c0_140], %267 {strides = array<i32>} : memref<18x18x64xf32, #tpu.memory_space<vmem>>, vector<1x16x64xf32>,
    %268 = vector.extract_strided_slice %237 {offsets = [112, 0], sizes = [16, 64], strides = [1, 1]} : vector<256x64xf32> to vector<16x64xf32>
    %c8_141 = arith.constant 8 : index
    %c1_142 = arith.constant 1 : index
    %c0_143 = arith.constant 0 : index
    %269 = vector.load %arg45[%c8_141, %c1_142, %c0_143] : memref<18x18x64xf32, #tpu.memory_space<vmem>>, vector<1x16x64xf32>
    %270 = vector.shape_cast %269 : vector<1x16x64xf32> to vector<16x64xf32>
    %271 = vector.shape_cast %268 : vector<16x64xf32> to vector<1x16x64xf32>
    tpu.vector_store %arg45[%c8_141, %c1_142, %c0_143], %271 {strides = array<i32>} : memref<18x18x64xf32, #tpu.memory_space<vmem>>, vector<1x16x64xf32>,
    %272 = vector.extract_strided_slice %237 {offsets = [128, 0], sizes = [16, 64], strides = [1, 1]} : vector<256x64xf32> to vector<16x64xf32>
    %c9_144 = arith.constant 9 : index
    %c1_145 = arith.constant 1 : index
    %c0_146 = arith.constant 0 : index
    %273 = vector.load %arg45[%c9_144, %c1_145, %c0_146] : memref<18x18x64xf32, #tpu.memory_space<vmem>>, vector<1x16x64xf32>
    %274 = vector.shape_cast %273 : vector<1x16x64xf32> to vector<16x64xf32>
    %275 = vector.shape_cast %272 : vector<16x64xf32> to vector<1x16x64xf32>
    tpu.vector_store %arg45[%c9_144, %c1_145, %c0_146], %275 {strides = array<i32>} : memref<18x18x64xf32, #tpu.memory_space<vmem>>, vector<1x16x64xf32>,
    %276 = vector.extract_strided_slice %237 {offsets = [144, 0], sizes = [16, 64], strides = [1, 1]} : vector<256x64xf32> to vector<16x64xf32>
    %c10_147 = arith.constant 10 : index
    %c1_148 = arith.constant 1 : index
    %c0_149 = arith.constant 0 : index
    %277 = vector.load %arg45[%c10_147, %c1_148, %c0_149] : memref<18x18x64xf32, #tpu.memory_space<vmem>>, vector<1x16x64xf32>
    %278 = vector.shape_cast %277 : vector<1x16x64xf32> to vector<16x64xf32>
    %279 = vector.shape_cast %276 : vector<16x64xf32> to vector<1x16x64xf32>
    tpu.vector_store %arg45[%c10_147, %c1_148, %c0_149], %279 {strides = array<i32>} : memref<18x18x64xf32, #tpu.memory_space<vmem>>, vector<1x16x64xf32>,
    %280 = vector.extract_strided_slice %237 {offsets = [160, 0], sizes = [16, 64], strides = [1, 1]} : vector<256x64xf32> to vector<16x64xf32>
    %c11_150 = arith.constant 11 : index
    %c1_151 = arith.constant 1 : index
    %c0_152 = arith.constant 0 : index
    %281 = vector.load %arg45[%c11_150, %c1_151, %c0_152] : memref<18x18x64xf32, #tpu.memory_space<vmem>>, vector<1x16x64xf32>
    %282 = vector.shape_cast %281 : vector<1x16x64xf32> to vector<16x64xf32>
    %283 = vector.shape_cast %280 : vector<16x64xf32> to vector<1x16x64xf32>
    tpu.vector_store %arg45[%c11_150, %c1_151, %c0_152], %283 {strides = array<i32>} : memref<18x18x64xf32, #tpu.memory_space<vmem>>, vector<1x16x64xf32>,
    %284 = vector.extract_strided_slice %237 {offsets = [176, 0], sizes = [16, 64], strides = [1, 1]} : vector<256x64xf32> to vector<16x64xf32>
    %c12_153 = arith.constant 12 : index
    %c1_154 = arith.constant 1 : index
    %c0_155 = arith.constant 0 : index
    %285 = vector.load %arg45[%c12_153, %c1_154, %c0_155] : memref<18x18x64xf32, #tpu.memory_space<vmem>>, vector<1x16x64xf32>
    %286 = vector.shape_cast %285 : vector<1x16x64xf32> to vector<16x64xf32>
    %287 = vector.shape_cast %284 : vector<16x64xf32> to vector<1x16x64xf32>
    tpu.vector_store %arg45[%c12_153, %c1_154, %c0_155], %287 {strides = array<i32>} : memref<18x18x64xf32, #tpu.memory_space<vmem>>, vector<1x16x64xf32>,
    %288 = vector.extract_strided_slice %237 {offsets = [192, 0], sizes = [16, 64], strides = [1, 1]} : vector<256x64xf32> to vector<16x64xf32>
    %c13_156 = arith.constant 13 : index
    %c1_157 = arith.constant 1 : index
    %c0_158 = arith.constant 0 : index
    %289 = vector.load %arg45[%c13_156, %c1_157, %c0_158] : memref<18x18x64xf32, #tpu.memory_space<vmem>>, vector<1x16x64xf32>
    %290 = vector.shape_cast %289 : vector<1x16x64xf32> to vector<16x64xf32>
    %291 = vector.shape_cast %288 : vector<16x64xf32> to vector<1x16x64xf32>
    tpu.vector_store %arg45[%c13_156, %c1_157, %c0_158], %291 {strides = array<i32>} : memref<18x18x64xf32, #tpu.memory_space<vmem>>, vector<1x16x64xf32>,
    %292 = vector.extract_strided_slice %237 {offsets = [208, 0], sizes = [16, 64], strides = [1, 1]} : vector<256x64xf32> to vector<16x64xf32>
    %c14_159 = arith.constant 14 : index
    %c1_160 = arith.constant 1 : index
    %c0_161 = arith.constant 0 : index
    %293 = vector.load %arg45[%c14_159, %c1_160, %c0_161] : memref<18x18x64xf32, #tpu.memory_space<vmem>>, vector<1x16x64xf32>
    %294 = vector.shape_cast %293 : vector<1x16x64xf32> to vector<16x64xf32>
    %295 = vector.shape_cast %292 : vector<16x64xf32> to vector<1x16x64xf32>
    tpu.vector_store %arg45[%c14_159, %c1_160, %c0_161], %295 {strides = array<i32>} : memref<18x18x64xf32, #tpu.memory_space<vmem>>, vector<1x16x64xf32>,
    %296 = vector.extract_strided_slice %237 {offsets = [224, 0], sizes = [16, 64], strides = [1, 1]} : vector<256x64xf32> to vector<16x64xf32>
    %c15_162 = arith.constant 15 : index
    %c1_163 = arith.constant 1 : index
    %c0_164 = arith.constant 0 : index
    %297 = vector.load %arg45[%c15_162, %c1_163, %c0_164] : memref<18x18x64xf32, #tpu.memory_space<vmem>>, vector<1x16x64xf32>
    %298 = vector.shape_cast %297 : vector<1x16x64xf32> to vector<16x64xf32>
    %299 = vector.shape_cast %296 : vector<16x64xf32> to vector<1x16x64xf32>
    tpu.vector_store %arg45[%c15_162, %c1_163, %c0_164], %299 {strides = array<i32>} : memref<18x18x64xf32, #tpu.memory_space<vmem>>, vector<1x16x64xf32>,
    %300 = vector.extract_strided_slice %237 {offsets = [240, 0], sizes = [16, 64], strides = [1, 1]} : vector<256x64xf32> to vector<16x64xf32>
    %c16_165 = arith.constant 16 : index
    %c1_166 = arith.constant 1 : index
    %c0_167 = arith.constant 0 : index
    %301 = vector.load %arg45[%c16_165, %c1_166, %c0_167] : memref<18x18x64xf32, #tpu.memory_space<vmem>>, vector<1x16x64xf32>
    %302 = vector.shape_cast %301 : vector<1x16x64xf32> to vector<16x64xf32>
    %303 = vector.shape_cast %300 : vector<16x64xf32> to vector<1x16x64xf32>
    tpu.vector_store %arg45[%c16_165, %c1_166, %c0_167], %303 {strides = array<i32>} : memref<18x18x64xf32, #tpu.memory_space<vmem>>, vector<1x16x64xf32>,
    %c0_168 = arith.constant 0 : index
    %c0_169 = arith.constant 0 : index
    %c0_170 = arith.constant 0 : index
    %304 = vector.load %arg45[%c0_168, %c0_169, %c0_170] : memref<18x18x64xf32, #tpu.memory_space<vmem>>, vector<18x18x64xf32>
    %cst_171 = arith.constant 0.000000e+00 : f32
    %305 = vector.broadcast %cst_171 : f32 to vector<16x16x64xf32>
    %306 = vector.extract_strided_slice %304 {offsets = [0, 0, 0], sizes = [16, 16, 64], strides = [1, 1, 1]} : vector<18x18x64xf32> to vector<16x16x64xf32>
    %c0_172 = arith.constant 0 : index
    %c0_173 = arith.constant 0 : index
    %c0_174 = arith.constant 0 : index
    %307 = vector.load %arg15[%c0_172, %c0_173, %c0_174] : memref<3x3x64xf32, #tpu.memory_space<vmem>>, vector<1x1x64xf32>
    %308 = vector.shape_cast %307 : vector<1x1x64xf32> to vector<64xf32>
    %309 = vector.shape_cast %308 : vector<64xf32> to vector<1x1x64xf32>
    %310 = vector.broadcast %309 : vector<1x1x64xf32> to vector<16x16x64xf32>
    %311 = arith.mulf %306, %310 : vector<16x16x64xf32>
    %312 = arith.addf %305, %311 : vector<16x16x64xf32>
    %313 = vector.extract_strided_slice %304 {offsets = [0, 1, 0], sizes = [16, 16, 64], strides = [1, 1, 1]} : vector<18x18x64xf32> to vector<16x16x64xf32>
    %c0_175 = arith.constant 0 : index
    %c1_176 = arith.constant 1 : index
    %c0_177 = arith.constant 0 : index
    %314 = vector.load %arg15[%c0_175, %c1_176, %c0_177] : memref<3x3x64xf32, #tpu.memory_space<vmem>>, vector<1x1x64xf32>
    %315 = vector.shape_cast %314 : vector<1x1x64xf32> to vector<64xf32>
    %316 = vector.shape_cast %315 : vector<64xf32> to vector<1x1x64xf32>
    %317 = vector.broadcast %316 : vector<1x1x64xf32> to vector<16x16x64xf32>
    %318 = arith.mulf %313, %317 : vector<16x16x64xf32>
    %319 = arith.addf %312, %318 : vector<16x16x64xf32>
    %320 = vector.extract_strided_slice %304 {offsets = [0, 2, 0], sizes = [16, 16, 64], strides = [1, 1, 1]} : vector<18x18x64xf32> to vector<16x16x64xf32>
    %c0_178 = arith.constant 0 : index
    %c2_179 = arith.constant 2 : index
    %c0_180 = arith.constant 0 : index
    %321 = vector.load %arg15[%c0_178, %c2_179, %c0_180] : memref<3x3x64xf32, #tpu.memory_space<vmem>>, vector<1x1x64xf32>
    %322 = vector.shape_cast %321 : vector<1x1x64xf32> to vector<64xf32>
    %323 = vector.shape_cast %322 : vector<64xf32> to vector<1x1x64xf32>
    %324 = vector.broadcast %323 : vector<1x1x64xf32> to vector<16x16x64xf32>
    %325 = arith.mulf %320, %324 : vector<16x16x64xf32>
    %326 = arith.addf %319, %325 : vector<16x16x64xf32>
    %327 = vector.extract_strided_slice %304 {offsets = [1, 0, 0], sizes = [16, 16, 64], strides = [1, 1, 1]} : vector<18x18x64xf32> to vector<16x16x64xf32>
    %c1_181 = arith.constant 1 : index
    %c0_182 = arith.constant 0 : index
    %c0_183 = arith.constant 0 : index
    %328 = vector.load %arg15[%c1_181, %c0_182, %c0_183] : memref<3x3x64xf32, #tpu.memory_space<vmem>>, vector<1x1x64xf32>
    %329 = vector.shape_cast %328 : vector<1x1x64xf32> to vector<64xf32>
    %330 = vector.shape_cast %329 : vector<64xf32> to vector<1x1x64xf32>
    %331 = vector.broadcast %330 : vector<1x1x64xf32> to vector<16x16x64xf32>
    %332 = arith.mulf %327, %331 : vector<16x16x64xf32>
    %333 = arith.addf %326, %332 : vector<16x16x64xf32>
    %334 = vector.extract_strided_slice %304 {offsets = [1, 1, 0], sizes = [16, 16, 64], strides = [1, 1, 1]} : vector<18x18x64xf32> to vector<16x16x64xf32>
    %c1_184 = arith.constant 1 : index
    %c1_185 = arith.constant 1 : index
    %c0_186 = arith.constant 0 : index
    %335 = vector.load %arg15[%c1_184, %c1_185, %c0_186] : memref<3x3x64xf32, #tpu.memory_space<vmem>>, vector<1x1x64xf32>
    %336 = vector.shape_cast %335 : vector<1x1x64xf32> to vector<64xf32>
    %337 = vector.shape_cast %336 : vector<64xf32> to vector<1x1x64xf32>
    %338 = vector.broadcast %337 : vector<1x1x64xf32> to vector<16x16x64xf32>
    %339 = arith.mulf %334, %338 : vector<16x16x64xf32>
    %340 = arith.addf %333, %339 : vector<16x16x64xf32>
    %341 = vector.extract_strided_slice %304 {offsets = [1, 2, 0], sizes = [16, 16, 64], strides = [1, 1, 1]} : vector<18x18x64xf32> to vector<16x16x64xf32>
    %c1_187 = arith.constant 1 : index
    %c2_188 = arith.constant 2 : index
    %c0_189 = arith.constant 0 : index
    %342 = vector.load %arg15[%c1_187, %c2_188, %c0_189] : memref<3x3x64xf32, #tpu.memory_space<vmem>>, vector<1x1x64xf32>
    %343 = vector.shape_cast %342 : vector<1x1x64xf32> to vector<64xf32>
    %344 = vector.shape_cast %343 : vector<64xf32> to vector<1x1x64xf32>
    %345 = vector.broadcast %344 : vector<1x1x64xf32> to vector<16x16x64xf32>
    %346 = arith.mulf %341, %345 : vector<16x16x64xf32>
    %347 = arith.addf %340, %346 : vector<16x16x64xf32>
    %348 = vector.extract_strided_slice %304 {offsets = [2, 0, 0], sizes = [16, 16, 64], strides = [1, 1, 1]} : vector<18x18x64xf32> to vector<16x16x64xf32>
    %c2_190 = arith.constant 2 : index
    %c0_191 = arith.constant 0 : index
    %c0_192 = arith.constant 0 : index
    %349 = vector.load %arg15[%c2_190, %c0_191, %c0_192] : memref<3x3x64xf32, #tpu.memory_space<vmem>>, vector<1x1x64xf32>
    %350 = vector.shape_cast %349 : vector<1x1x64xf32> to vector<64xf32>
    %351 = vector.shape_cast %350 : vector<64xf32> to vector<1x1x64xf32>
    %352 = vector.broadcast %351 : vector<1x1x64xf32> to vector<16x16x64xf32>
    %353 = arith.mulf %348, %352 : vector<16x16x64xf32>
    %354 = arith.addf %347, %353 : vector<16x16x64xf32>
    %355 = vector.extract_strided_slice %304 {offsets = [2, 1, 0], sizes = [16, 16, 64], strides = [1, 1, 1]} : vector<18x18x64xf32> to vector<16x16x64xf32>
    %c2_193 = arith.constant 2 : index
    %c1_194 = arith.constant 1 : index
    %c0_195 = arith.constant 0 : index
    %356 = vector.load %arg15[%c2_193, %c1_194, %c0_195] : memref<3x3x64xf32, #tpu.memory_space<vmem>>, vector<1x1x64xf32>
    %357 = vector.shape_cast %356 : vector<1x1x64xf32> to vector<64xf32>
    %358 = vector.shape_cast %357 : vector<64xf32> to vector<1x1x64xf32>
    %359 = vector.broadcast %358 : vector<1x1x64xf32> to vector<16x16x64xf32>
    %360 = arith.mulf %355, %359 : vector<16x16x64xf32>
    %361 = arith.addf %354, %360 : vector<16x16x64xf32>
    %362 = vector.extract_strided_slice %304 {offsets = [2, 2, 0], sizes = [16, 16, 64], strides = [1, 1, 1]} : vector<18x18x64xf32> to vector<16x16x64xf32>
    %c2_196 = arith.constant 2 : index
    %c2_197 = arith.constant 2 : index
    %c0_198 = arith.constant 0 : index
    %363 = vector.load %arg15[%c2_196, %c2_197, %c0_198] : memref<3x3x64xf32, #tpu.memory_space<vmem>>, vector<1x1x64xf32>
    %364 = vector.shape_cast %363 : vector<1x1x64xf32> to vector<64xf32>
    %365 = vector.shape_cast %364 : vector<64xf32> to vector<1x1x64xf32>
    %366 = vector.broadcast %365 : vector<1x1x64xf32> to vector<16x16x64xf32>
    %367 = arith.mulf %362, %366 : vector<16x16x64xf32>
    %368 = arith.addf %361, %367 : vector<16x16x64xf32>
    %c0_199 = arith.constant 0 : index
    %c0_200 = arith.constant 0 : index
    %369 = vector.load %arg16[%c0_199, %c0_200] : memref<1x64xf32, #tpu.memory_space<vmem>>, vector<1x64xf32>
    %370 = vector.shape_cast %369 : vector<1x64xf32> to vector<64xf32>
    %371 = vector.shape_cast %370 : vector<64xf32> to vector<1x1x64xf32>
    %372 = vector.broadcast %371 : vector<1x1x64xf32> to vector<16x16x64xf32>
    %373 = arith.mulf %368, %372 : vector<16x16x64xf32>
    %c0_201 = arith.constant 0 : index
    %c0_202 = arith.constant 0 : index
    %374 = vector.load %arg17[%c0_201, %c0_202] : memref<1x64xf32, #tpu.memory_space<vmem>>, vector<1x64xf32>
    %375 = vector.shape_cast %374 : vector<1x64xf32> to vector<64xf32>
    %376 = vector.shape_cast %375 : vector<64xf32> to vector<1x1x64xf32>
    %377 = vector.broadcast %376 : vector<1x1x64xf32> to vector<16x16x64xf32>
    %378 = arith.addf %373, %377 : vector<16x16x64xf32>
    %cst_203 = arith.constant 0.000000e+00 : f32
    %379 = vector.broadcast %cst_203 : f32 to vector<16x16x64xf32>
    %380 = arith.maximumf %378, %379 : vector<16x16x64xf32>
    %381 = vector.extract_strided_slice %380 {offsets = [0, 0, 0], sizes = [1, 16, 64], strides = [1, 1, 1]} : vector<16x16x64xf32> to vector<1x16x64xf32>
    %382 = vector.shape_cast %381 : vector<1x16x64xf32> to vector<16x64xf32>
    %c0_204 = arith.constant 0 : index
    %c0_205 = arith.constant 0 : index
    %383 = vector.load %arg46[%c0_204, %c0_205] : memref<256x64xf32, #tpu.memory_space<vmem>>, vector<16x64xf32>
    tpu.vector_store %arg46[%c0_204, %c0_205], %382 {strides = array<i32>} : memref<256x64xf32, #tpu.memory_space<vmem>>, vector<16x64xf32>,
    %384 = vector.extract_strided_slice %380 {offsets = [1, 0, 0], sizes = [1, 16, 64], strides = [1, 1, 1]} : vector<16x16x64xf32> to vector<1x16x64xf32>
    %385 = vector.shape_cast %384 : vector<1x16x64xf32> to vector<16x64xf32>
    %c16_206 = arith.constant 16 : index
    %c0_207 = arith.constant 0 : index
    %386 = vector.load %arg46[%c16_206, %c0_207] : memref<256x64xf32, #tpu.memory_space<vmem>>, vector<16x64xf32>
    tpu.vector_store %arg46[%c16_206, %c0_207], %385 {strides = array<i32>} : memref<256x64xf32, #tpu.memory_space<vmem>>, vector<16x64xf32>,
    %387 = vector.extract_strided_slice %380 {offsets = [2, 0, 0], sizes = [1, 16, 64], strides = [1, 1, 1]} : vector<16x16x64xf32> to vector<1x16x64xf32>
    %388 = vector.shape_cast %387 : vector<1x16x64xf32> to vector<16x64xf32>
    %c32_208 = arith.constant 32 : index
    %c0_209 = arith.constant 0 : index
    %389 = vector.load %arg46[%c32_208, %c0_209] : memref<256x64xf32, #tpu.memory_space<vmem>>, vector<16x64xf32>
    tpu.vector_store %arg46[%c32_208, %c0_209], %388 {strides = array<i32>} : memref<256x64xf32, #tpu.memory_space<vmem>>, vector<16x64xf32>,
    %390 = vector.extract_strided_slice %380 {offsets = [3, 0, 0], sizes = [1, 16, 64], strides = [1, 1, 1]} : vector<16x16x64xf32> to vector<1x16x64xf32>
    %391 = vector.shape_cast %390 : vector<1x16x64xf32> to vector<16x64xf32>
    %c48_210 = arith.constant 48 : index
    %c0_211 = arith.constant 0 : index
    %392 = vector.load %arg46[%c48_210, %c0_211] : memref<256x64xf32, #tpu.memory_space<vmem>>, vector<16x64xf32>
    tpu.vector_store %arg46[%c48_210, %c0_211], %391 {strides = array<i32>} : memref<256x64xf32, #tpu.memory_space<vmem>>, vector<16x64xf32>,
    %393 = vector.extract_strided_slice %380 {offsets = [4, 0, 0], sizes = [1, 16, 64], strides = [1, 1, 1]} : vector<16x16x64xf32> to vector<1x16x64xf32>
    %394 = vector.shape_cast %393 : vector<1x16x64xf32> to vector<16x64xf32>
    %c64_212 = arith.constant 64 : index
    %c0_213 = arith.constant 0 : index
    %395 = vector.load %arg46[%c64_212, %c0_213] : memref<256x64xf32, #tpu.memory_space<vmem>>, vector<16x64xf32>
    tpu.vector_store %arg46[%c64_212, %c0_213], %394 {strides = array<i32>} : memref<256x64xf32, #tpu.memory_space<vmem>>, vector<16x64xf32>,
    %396 = vector.extract_strided_slice %380 {offsets = [5, 0, 0], sizes = [1, 16, 64], strides = [1, 1, 1]} : vector<16x16x64xf32> to vector<1x16x64xf32>
    %397 = vector.shape_cast %396 : vector<1x16x64xf32> to vector<16x64xf32>
    %c80_214 = arith.constant 80 : index
    %c0_215 = arith.constant 0 : index
    %398 = vector.load %arg46[%c80_214, %c0_215] : memref<256x64xf32, #tpu.memory_space<vmem>>, vector<16x64xf32>
    tpu.vector_store %arg46[%c80_214, %c0_215], %397 {strides = array<i32>} : memref<256x64xf32, #tpu.memory_space<vmem>>, vector<16x64xf32>,
    %399 = vector.extract_strided_slice %380 {offsets = [6, 0, 0], sizes = [1, 16, 64], strides = [1, 1, 1]} : vector<16x16x64xf32> to vector<1x16x64xf32>
    %400 = vector.shape_cast %399 : vector<1x16x64xf32> to vector<16x64xf32>
    %c96_216 = arith.constant 96 : index
    %c0_217 = arith.constant 0 : index
    %401 = vector.load %arg46[%c96_216, %c0_217] : memref<256x64xf32, #tpu.memory_space<vmem>>, vector<16x64xf32>
    tpu.vector_store %arg46[%c96_216, %c0_217], %400 {strides = array<i32>} : memref<256x64xf32, #tpu.memory_space<vmem>>, vector<16x64xf32>,
    %402 = vector.extract_strided_slice %380 {offsets = [7, 0, 0], sizes = [1, 16, 64], strides = [1, 1, 1]} : vector<16x16x64xf32> to vector<1x16x64xf32>
    %403 = vector.shape_cast %402 : vector<1x16x64xf32> to vector<16x64xf32>
    %c112_218 = arith.constant 112 : index
    %c0_219 = arith.constant 0 : index
    %404 = vector.load %arg46[%c112_218, %c0_219] : memref<256x64xf32, #tpu.memory_space<vmem>>, vector<16x64xf32>
    tpu.vector_store %arg46[%c112_218, %c0_219], %403 {strides = array<i32>} : memref<256x64xf32, #tpu.memory_space<vmem>>, vector<16x64xf32>,
    %405 = vector.extract_strided_slice %380 {offsets = [8, 0, 0], sizes = [1, 16, 64], strides = [1, 1, 1]} : vector<16x16x64xf32> to vector<1x16x64xf32>
    %406 = vector.shape_cast %405 : vector<1x16x64xf32> to vector<16x64xf32>
    %c128_220 = arith.constant 128 : index
    %c0_221 = arith.constant 0 : index
    %407 = vector.load %arg46[%c128_220, %c0_221] : memref<256x64xf32, #tpu.memory_space<vmem>>, vector<16x64xf32>
    tpu.vector_store %arg46[%c128_220, %c0_221], %406 {strides = array<i32>} : memref<256x64xf32, #tpu.memory_space<vmem>>, vector<16x64xf32>,
    %408 = vector.extract_strided_slice %380 {offsets = [9, 0, 0], sizes = [1, 16, 64], strides = [1, 1, 1]} : vector<16x16x64xf32> to vector<1x16x64xf32>
    %409 = vector.shape_cast %408 : vector<1x16x64xf32> to vector<16x64xf32>
    %c144_222 = arith.constant 144 : index
    %c0_223 = arith.constant 0 : index
    %410 = vector.load %arg46[%c144_222, %c0_223] : memref<256x64xf32, #tpu.memory_space<vmem>>, vector<16x64xf32>
    tpu.vector_store %arg46[%c144_222, %c0_223], %409 {strides = array<i32>} : memref<256x64xf32, #tpu.memory_space<vmem>>, vector<16x64xf32>,
    %411 = vector.extract_strided_slice %380 {offsets = [10, 0, 0], sizes = [1, 16, 64], strides = [1, 1, 1]} : vector<16x16x64xf32> to vector<1x16x64xf32>
    %412 = vector.shape_cast %411 : vector<1x16x64xf32> to vector<16x64xf32>
    %c160_224 = arith.constant 160 : index
    %c0_225 = arith.constant 0 : index
    %413 = vector.load %arg46[%c160_224, %c0_225] : memref<256x64xf32, #tpu.memory_space<vmem>>, vector<16x64xf32>
    tpu.vector_store %arg46[%c160_224, %c0_225], %412 {strides = array<i32>} : memref<256x64xf32, #tpu.memory_space<vmem>>, vector<16x64xf32>,
    %414 = vector.extract_strided_slice %380 {offsets = [11, 0, 0], sizes = [1, 16, 64], strides = [1, 1, 1]} : vector<16x16x64xf32> to vector<1x16x64xf32>
    %415 = vector.shape_cast %414 : vector<1x16x64xf32> to vector<16x64xf32>
    %c176_226 = arith.constant 176 : index
    %c0_227 = arith.constant 0 : index
    %416 = vector.load %arg46[%c176_226, %c0_227] : memref<256x64xf32, #tpu.memory_space<vmem>>, vector<16x64xf32>
    tpu.vector_store %arg46[%c176_226, %c0_227], %415 {strides = array<i32>} : memref<256x64xf32, #tpu.memory_space<vmem>>, vector<16x64xf32>,
    %417 = vector.extract_strided_slice %380 {offsets = [12, 0, 0], sizes = [1, 16, 64], strides = [1, 1, 1]} : vector<16x16x64xf32> to vector<1x16x64xf32>
    %418 = vector.shape_cast %417 : vector<1x16x64xf32> to vector<16x64xf32>
    %c192_228 = arith.constant 192 : index
    %c0_229 = arith.constant 0 : index
    %419 = vector.load %arg46[%c192_228, %c0_229] : memref<256x64xf32, #tpu.memory_space<vmem>>, vector<16x64xf32>
    tpu.vector_store %arg46[%c192_228, %c0_229], %418 {strides = array<i32>} : memref<256x64xf32, #tpu.memory_space<vmem>>, vector<16x64xf32>,
    %420 = vector.extract_strided_slice %380 {offsets = [13, 0, 0], sizes = [1, 16, 64], strides = [1, 1, 1]} : vector<16x16x64xf32> to vector<1x16x64xf32>
    %421 = vector.shape_cast %420 : vector<1x16x64xf32> to vector<16x64xf32>
    %c208_230 = arith.constant 208 : index
    %c0_231 = arith.constant 0 : index
    %422 = vector.load %arg46[%c208_230, %c0_231] : memref<256x64xf32, #tpu.memory_space<vmem>>, vector<16x64xf32>
    tpu.vector_store %arg46[%c208_230, %c0_231], %421 {strides = array<i32>} : memref<256x64xf32, #tpu.memory_space<vmem>>, vector<16x64xf32>,
    %423 = vector.extract_strided_slice %380 {offsets = [14, 0, 0], sizes = [1, 16, 64], strides = [1, 1, 1]} : vector<16x16x64xf32> to vector<1x16x64xf32>
    %424 = vector.shape_cast %423 : vector<1x16x64xf32> to vector<16x64xf32>
    %c224_232 = arith.constant 224 : index
    %c0_233 = arith.constant 0 : index
    %425 = vector.load %arg46[%c224_232, %c0_233] : memref<256x64xf32, #tpu.memory_space<vmem>>, vector<16x64xf32>
    tpu.vector_store %arg46[%c224_232, %c0_233], %424 {strides = array<i32>} : memref<256x64xf32, #tpu.memory_space<vmem>>, vector<16x64xf32>,
    %426 = vector.extract_strided_slice %380 {offsets = [15, 0, 0], sizes = [1, 16, 64], strides = [1, 1, 1]} : vector<16x16x64xf32> to vector<1x16x64xf32>
    %427 = vector.shape_cast %426 : vector<1x16x64xf32> to vector<16x64xf32>
    %c240_234 = arith.constant 240 : index
    %c0_235 = arith.constant 0 : index
    %428 = vector.load %arg46[%c240_234, %c0_235] : memref<256x64xf32, #tpu.memory_space<vmem>>, vector<16x64xf32>
    tpu.vector_store %arg46[%c240_234, %c0_235], %427 {strides = array<i32>} : memref<256x64xf32, #tpu.memory_space<vmem>>, vector<16x64xf32>,
    %c0_236 = arith.constant 0 : index
    %c0_237 = arith.constant 0 : index
    %429 = vector.load %arg46[%c0_236, %c0_237] : memref<256x64xf32, #tpu.memory_space<vmem>>, vector<256x64xf32>
    %c0_238 = arith.constant 0 : index
    %c0_239 = arith.constant 0 : index
    %430 = vector.load %arg2[%c0_238, %c0_239] : memref<64x256xf32, #tpu.memory_space<vmem>>, vector<64x256xf32>
    %cst_240 = arith.constant dense<0.000000e+00> : vector<64x64xf32>
    %431 = tpu.matmul %430, %429, %cst_240 {dimension_numbers = #tpu.dot_dimension_numbers<[1], [0], [0], [1], [0, 0, 1, 1], [], []>} : vector<64x256xf32>, vector<256x64xf32>, vector<64x64xf32> -> vector<64x64xf32>
    %cst_241 = arith.constant dense<0.000000e+00> : vector<64xf32>
    %432 = vector.multi_reduction <add>, %431, %cst_241 [0] : vector<64x64xf32> to vector<64xf32>
    %433 = vector.shape_cast %432 : vector<64xf32> to vector<1x64xf32>
    %cst_242 = arith.constant 6.400000e+01 : f32
    %434 = vector.broadcast %cst_242 : f32 to vector<1x64xf32>
    %435 = arith.divf %433, %434 : vector<1x64xf32>
    %436 = arith.truncf %435 : vector<1x64xf32> to vector<1x64xbf16>
    %c0_243 = arith.constant 0 : index
    %c0_244 = arith.constant 0 : index
    %437 = vector.load %arg18[%c0_243, %c0_244] : memref<64x16xbf16, #tpu.memory_space<vmem>>, vector<64x16xbf16>
    %cst_245 = arith.constant dense<0.000000e+00> : vector<1x16xf32>
    %438 = tpu.matmul %436, %437, %cst_245 {dimension_numbers = #tpu.dot_dimension_numbers<[1], [0], [0], [1], [0, 0, 1, 1], [], []>} : vector<1x64xbf16>, vector<64x16xbf16>, vector<1x16xf32> -> vector<1x16xf32>
    %c0_246 = arith.constant 0 : index
    %c0_247 = arith.constant 0 : index
    %439 = vector.load %arg19[%c0_246, %c0_247] : memref<1x16xf32, #tpu.memory_space<vmem>>, vector<1x16xf32>
    %440 = vector.shape_cast %439 : vector<1x16xf32> to vector<16xf32>
    %441 = vector.shape_cast %440 : vector<16xf32> to vector<1x16xf32>
    %442 = arith.addf %438, %441 : vector<1x16xf32>
    %cst_248 = arith.constant 0.000000e+00 : f32
    %443 = vector.broadcast %cst_248 : f32 to vector<1x16xf32>
    %444 = arith.maximumf %442, %443 : vector<1x16xf32>
    %445 = arith.truncf %444 : vector<1x16xf32> to vector<1x16xbf16>
    %c0_249 = arith.constant 0 : index
    %c0_250 = arith.constant 0 : index
    %446 = vector.load %arg20[%c0_249, %c0_250] : memref<16x64xbf16, #tpu.memory_space<vmem>>, vector<16x64xbf16>
    %cst_251 = arith.constant dense<0.000000e+00> : vector<1x64xf32>
    %447 = tpu.matmul %445, %446, %cst_251 {dimension_numbers = #tpu.dot_dimension_numbers<[1], [0], [0], [1], [0, 0, 1, 1], [], []>} : vector<1x16xbf16>, vector<16x64xbf16>, vector<1x64xf32> -> vector<1x64xf32>
    %c0_252 = arith.constant 0 : index
    %c0_253 = arith.constant 0 : index
    %448 = vector.load %arg21[%c0_252, %c0_253] : memref<1x64xf32, #tpu.memory_space<vmem>>, vector<1x64xf32>
    %449 = vector.shape_cast %448 : vector<1x64xf32> to vector<64xf32>
    %450 = vector.shape_cast %449 : vector<64xf32> to vector<1x64xf32>
    %451 = arith.addf %447, %450 : vector<1x64xf32>
    %452 = arith.negf %451 : vector<1x64xf32>
    %453 = math.exp %452 : vector<1x64xf32>
    %cst_254 = arith.constant 1.000000e+00 : f32
    %454 = vector.broadcast %cst_254 : f32 to vector<1x64xf32>
    %455 = arith.addf %454, %453 : vector<1x64xf32>
    %456 = arith.divf %454, %455 : vector<1x64xf32>
    %457 = vector.broadcast %456 : vector<1x64xf32> to vector<64x64xf32>
    %458 = arith.mulf %431, %457 : vector<64x64xf32>
    %459 = arith.truncf %458 : vector<64x64xf32> to vector<64x64xbf16>
    %c0_255 = arith.constant 0 : index
    %c0_256 = arith.constant 0 : index
    %460 = vector.load %arg22[%c0_255, %c0_256] : memref<64x24xbf16, #tpu.memory_space<vmem>>, vector<64x24xbf16>
    %cst_257 = arith.constant dense<0.000000e+00> : vector<64x24xf32>
    %461 = tpu.matmul %459, %460, %cst_257 {dimension_numbers = #tpu.dot_dimension_numbers<[1], [0], [0], [1], [0, 0, 1, 1], [], []>} : vector<64x64xbf16>, vector<64x24xbf16>, vector<64x24xf32> -> vector<64x24xf32>
    %c0_258 = arith.constant 0 : index
    %c0_259 = arith.constant 0 : index
    %462 = vector.load %arg23[%c0_258, %c0_259] : memref<1x24xf32, #tpu.memory_space<vmem>>, vector<1x24xf32>
    %463 = vector.shape_cast %462 : vector<1x24xf32> to vector<24xf32>
    %464 = vector.shape_cast %463 : vector<24xf32> to vector<1x24xf32>
    %465 = vector.broadcast %464 : vector<1x24xf32> to vector<64x24xf32>
    %466 = arith.mulf %461, %465 : vector<64x24xf32>
    %c0_260 = arith.constant 0 : index
    %c0_261 = arith.constant 0 : index
    %467 = vector.load %arg24[%c0_260, %c0_261] : memref<1x24xf32, #tpu.memory_space<vmem>>, vector<1x24xf32>
    %468 = vector.shape_cast %467 : vector<1x24xf32> to vector<24xf32>
    %469 = vector.shape_cast %468 : vector<24xf32> to vector<1x24xf32>
    %470 = vector.broadcast %469 : vector<1x24xf32> to vector<64x24xf32>
    %471 = arith.addf %466, %470 : vector<64x24xf32>
    %472 = arith.truncf %471 : vector<64x24xf32> to vector<64x24xbf16>
    %c0_262 = arith.constant 0 : index
    %c0_263 = arith.constant 0 : index
    %473 = vector.load %arg25[%c0_262, %c0_263] : memref<24x72xbf16, #tpu.memory_space<vmem>>, vector<24x72xbf16>
    %cst_264 = arith.constant dense<0.000000e+00> : vector<64x72xf32>
    %474 = tpu.matmul %472, %473, %cst_264 {dimension_numbers = #tpu.dot_dimension_numbers<[1], [0], [0], [1], [0, 0, 1, 1], [], []>} : vector<64x24xbf16>, vector<24x72xbf16>, vector<64x72xf32> -> vector<64x72xf32>
    %c0_265 = arith.constant 0 : index
    %c0_266 = arith.constant 0 : index
    %475 = vector.load %arg26[%c0_265, %c0_266] : memref<1x72xf32, #tpu.memory_space<vmem>>, vector<1x72xf32>
    %476 = vector.shape_cast %475 : vector<1x72xf32> to vector<72xf32>
    %477 = vector.shape_cast %476 : vector<72xf32> to vector<1x72xf32>
    %478 = vector.broadcast %477 : vector<1x72xf32> to vector<64x72xf32>
    %479 = arith.mulf %474, %478 : vector<64x72xf32>
    %c0_267 = arith.constant 0 : index
    %c0_268 = arith.constant 0 : index
    %480 = vector.load %arg27[%c0_267, %c0_268] : memref<1x72xf32, #tpu.memory_space<vmem>>, vector<1x72xf32>
    %481 = vector.shape_cast %480 : vector<1x72xf32> to vector<72xf32>
    %482 = vector.shape_cast %481 : vector<72xf32> to vector<1x72xf32>
    %483 = vector.broadcast %482 : vector<1x72xf32> to vector<64x72xf32>
    %484 = arith.addf %479, %483 : vector<64x72xf32>
    %cst_269 = arith.constant 0.000000e+00 : f32
    %485 = vector.broadcast %cst_269 : f32 to vector<64x72xf32>
    %486 = arith.maximumf %484, %485 : vector<64x72xf32>
    %cst_270 = arith.constant 0.000000e+00 : f32
    %487 = vector.broadcast %cst_270 : f32 to vector<10x10x72xf32>
    %c0_271 = arith.constant 0 : index
    %c0_272 = arith.constant 0 : index
    %c0_273 = arith.constant 0 : index
    %488 = vector.load %arg47[%c0_271, %c0_272, %c0_273] : memref<10x10x72xf32, #tpu.memory_space<vmem>>, vector<10x10x72xf32>
    tpu.vector_store %arg47[%c0_271, %c0_272, %c0_273], %487 {strides = array<i32>} : memref<10x10x72xf32, #tpu.memory_space<vmem>>, vector<10x10x72xf32>,
    %489 = vector.extract_strided_slice %486 {offsets = [0, 0], sizes = [8, 72], strides = [1, 1]} : vector<64x72xf32> to vector<8x72xf32>
    %c1_274 = arith.constant 1 : index
    %c1_275 = arith.constant 1 : index
    %c0_276 = arith.constant 0 : index
    %490 = vector.load %arg47[%c1_274, %c1_275, %c0_276] : memref<10x10x72xf32, #tpu.memory_space<vmem>>, vector<1x8x72xf32>
    %491 = vector.shape_cast %490 : vector<1x8x72xf32> to vector<8x72xf32>
    %492 = vector.shape_cast %489 : vector<8x72xf32> to vector<1x8x72xf32>
    tpu.vector_store %arg47[%c1_274, %c1_275, %c0_276], %492 {strides = array<i32>} : memref<10x10x72xf32, #tpu.memory_space<vmem>>, vector<1x8x72xf32>,
    %493 = vector.extract_strided_slice %486 {offsets = [8, 0], sizes = [8, 72], strides = [1, 1]} : vector<64x72xf32> to vector<8x72xf32>
    %c2_277 = arith.constant 2 : index
    %c1_278 = arith.constant 1 : index
    %c0_279 = arith.constant 0 : index
    %494 = vector.load %arg47[%c2_277, %c1_278, %c0_279] : memref<10x10x72xf32, #tpu.memory_space<vmem>>, vector<1x8x72xf32>
    %495 = vector.shape_cast %494 : vector<1x8x72xf32> to vector<8x72xf32>
    %496 = vector.shape_cast %493 : vector<8x72xf32> to vector<1x8x72xf32>
    tpu.vector_store %arg47[%c2_277, %c1_278, %c0_279], %496 {strides = array<i32>} : memref<10x10x72xf32, #tpu.memory_space<vmem>>, vector<1x8x72xf32>,
    %497 = vector.extract_strided_slice %486 {offsets = [16, 0], sizes = [8, 72], strides = [1, 1]} : vector<64x72xf32> to vector<8x72xf32>
    %c3_280 = arith.constant 3 : index
    %c1_281 = arith.constant 1 : index
    %c0_282 = arith.constant 0 : index
    %498 = vector.load %arg47[%c3_280, %c1_281, %c0_282] : memref<10x10x72xf32, #tpu.memory_space<vmem>>, vector<1x8x72xf32>
    %499 = vector.shape_cast %498 : vector<1x8x72xf32> to vector<8x72xf32>
    %500 = vector.shape_cast %497 : vector<8x72xf32> to vector<1x8x72xf32>
    tpu.vector_store %arg47[%c3_280, %c1_281, %c0_282], %500 {strides = array<i32>} : memref<10x10x72xf32, #tpu.memory_space<vmem>>, vector<1x8x72xf32>,
    %501 = vector.extract_strided_slice %486 {offsets = [24, 0], sizes = [8, 72], strides = [1, 1]} : vector<64x72xf32> to vector<8x72xf32>
    %c4_283 = arith.constant 4 : index
    %c1_284 = arith.constant 1 : index
    %c0_285 = arith.constant 0 : index
    %502 = vector.load %arg47[%c4_283, %c1_284, %c0_285] : memref<10x10x72xf32, #tpu.memory_space<vmem>>, vector<1x8x72xf32>
    %503 = vector.shape_cast %502 : vector<1x8x72xf32> to vector<8x72xf32>
    %504 = vector.shape_cast %501 : vector<8x72xf32> to vector<1x8x72xf32>
    tpu.vector_store %arg47[%c4_283, %c1_284, %c0_285], %504 {strides = array<i32>} : memref<10x10x72xf32, #tpu.memory_space<vmem>>, vector<1x8x72xf32>,
    %505 = vector.extract_strided_slice %486 {offsets = [32, 0], sizes = [8, 72], strides = [1, 1]} : vector<64x72xf32> to vector<8x72xf32>
    %c5_286 = arith.constant 5 : index
    %c1_287 = arith.constant 1 : index
    %c0_288 = arith.constant 0 : index
    %506 = vector.load %arg47[%c5_286, %c1_287, %c0_288] : memref<10x10x72xf32, #tpu.memory_space<vmem>>, vector<1x8x72xf32>
    %507 = vector.shape_cast %506 : vector<1x8x72xf32> to vector<8x72xf32>
    %508 = vector.shape_cast %505 : vector<8x72xf32> to vector<1x8x72xf32>
    tpu.vector_store %arg47[%c5_286, %c1_287, %c0_288], %508 {strides = array<i32>} : memref<10x10x72xf32, #tpu.memory_space<vmem>>, vector<1x8x72xf32>,
    %509 = vector.extract_strided_slice %486 {offsets = [40, 0], sizes = [8, 72], strides = [1, 1]} : vector<64x72xf32> to vector<8x72xf32>
    %c6_289 = arith.constant 6 : index
    %c1_290 = arith.constant 1 : index
    %c0_291 = arith.constant 0 : index
    %510 = vector.load %arg47[%c6_289, %c1_290, %c0_291] : memref<10x10x72xf32, #tpu.memory_space<vmem>>, vector<1x8x72xf32>
    %511 = vector.shape_cast %510 : vector<1x8x72xf32> to vector<8x72xf32>
    %512 = vector.shape_cast %509 : vector<8x72xf32> to vector<1x8x72xf32>
    tpu.vector_store %arg47[%c6_289, %c1_290, %c0_291], %512 {strides = array<i32>} : memref<10x10x72xf32, #tpu.memory_space<vmem>>, vector<1x8x72xf32>,
    %513 = vector.extract_strided_slice %486 {offsets = [48, 0], sizes = [8, 72], strides = [1, 1]} : vector<64x72xf32> to vector<8x72xf32>
    %c7_292 = arith.constant 7 : index
    %c1_293 = arith.constant 1 : index
    %c0_294 = arith.constant 0 : index
    %514 = vector.load %arg47[%c7_292, %c1_293, %c0_294] : memref<10x10x72xf32, #tpu.memory_space<vmem>>, vector<1x8x72xf32>
    %515 = vector.shape_cast %514 : vector<1x8x72xf32> to vector<8x72xf32>
    %516 = vector.shape_cast %513 : vector<8x72xf32> to vector<1x8x72xf32>
    tpu.vector_store %arg47[%c7_292, %c1_293, %c0_294], %516 {strides = array<i32>} : memref<10x10x72xf32, #tpu.memory_space<vmem>>, vector<1x8x72xf32>,
    %517 = vector.extract_strided_slice %486 {offsets = [56, 0], sizes = [8, 72], strides = [1, 1]} : vector<64x72xf32> to vector<8x72xf32>
    %c8_295 = arith.constant 8 : index
    %c1_296 = arith.constant 1 : index
    %c0_297 = arith.constant 0 : index
    %518 = vector.load %arg47[%c8_295, %c1_296, %c0_297] : memref<10x10x72xf32, #tpu.memory_space<vmem>>, vector<1x8x72xf32>
    %519 = vector.shape_cast %518 : vector<1x8x72xf32> to vector<8x72xf32>
    %520 = vector.shape_cast %517 : vector<8x72xf32> to vector<1x8x72xf32>
    tpu.vector_store %arg47[%c8_295, %c1_296, %c0_297], %520 {strides = array<i32>} : memref<10x10x72xf32, #tpu.memory_space<vmem>>, vector<1x8x72xf32>,
    %c0_298 = arith.constant 0 : index
    %c0_299 = arith.constant 0 : index
    %c0_300 = arith.constant 0 : index
    %521 = vector.load %arg47[%c0_298, %c0_299, %c0_300] : memref<10x10x72xf32, #tpu.memory_space<vmem>>, vector<10x10x72xf32>
    %cst_301 = arith.constant 0.000000e+00 : f32
    %522 = vector.broadcast %cst_301 : f32 to vector<8x8x72xf32>
    %523 = vector.extract_strided_slice %521 {offsets = [0, 0, 0], sizes = [8, 8, 72], strides = [1, 1, 1]} : vector<10x10x72xf32> to vector<8x8x72xf32>
    %c0_302 = arith.constant 0 : index
    %c0_303 = arith.constant 0 : index
    %c0_304 = arith.constant 0 : index
    %524 = vector.load %arg28[%c0_302, %c0_303, %c0_304] : memref<3x3x72xf32, #tpu.memory_space<vmem>>, vector<1x1x72xf32>
    %525 = vector.shape_cast %524 : vector<1x1x72xf32> to vector<72xf32>
    %526 = vector.shape_cast %525 : vector<72xf32> to vector<1x1x72xf32>
    %527 = vector.broadcast %526 : vector<1x1x72xf32> to vector<8x8x72xf32>
    %528 = arith.mulf %523, %527 : vector<8x8x72xf32>
    %529 = arith.addf %522, %528 : vector<8x8x72xf32>
    %530 = vector.extract_strided_slice %521 {offsets = [0, 1, 0], sizes = [8, 8, 72], strides = [1, 1, 1]} : vector<10x10x72xf32> to vector<8x8x72xf32>
    %c0_305 = arith.constant 0 : index
    %c1_306 = arith.constant 1 : index
    %c0_307 = arith.constant 0 : index
    %531 = vector.load %arg28[%c0_305, %c1_306, %c0_307] : memref<3x3x72xf32, #tpu.memory_space<vmem>>, vector<1x1x72xf32>
    %532 = vector.shape_cast %531 : vector<1x1x72xf32> to vector<72xf32>
    %533 = vector.shape_cast %532 : vector<72xf32> to vector<1x1x72xf32>
    %534 = vector.broadcast %533 : vector<1x1x72xf32> to vector<8x8x72xf32>
    %535 = arith.mulf %530, %534 : vector<8x8x72xf32>
    %536 = arith.addf %529, %535 : vector<8x8x72xf32>
    %537 = vector.extract_strided_slice %521 {offsets = [0, 2, 0], sizes = [8, 8, 72], strides = [1, 1, 1]} : vector<10x10x72xf32> to vector<8x8x72xf32>
    %c0_308 = arith.constant 0 : index
    %c2_309 = arith.constant 2 : index
    %c0_310 = arith.constant 0 : index
    %538 = vector.load %arg28[%c0_308, %c2_309, %c0_310] : memref<3x3x72xf32, #tpu.memory_space<vmem>>, vector<1x1x72xf32>
    %539 = vector.shape_cast %538 : vector<1x1x72xf32> to vector<72xf32>
    %540 = vector.shape_cast %539 : vector<72xf32> to vector<1x1x72xf32>
    %541 = vector.broadcast %540 : vector<1x1x72xf32> to vector<8x8x72xf32>
    %542 = arith.mulf %537, %541 : vector<8x8x72xf32>
    %543 = arith.addf %536, %542 : vector<8x8x72xf32>
    %544 = vector.extract_strided_slice %521 {offsets = [1, 0, 0], sizes = [8, 8, 72], strides = [1, 1, 1]} : vector<10x10x72xf32> to vector<8x8x72xf32>
    %c1_311 = arith.constant 1 : index
    %c0_312 = arith.constant 0 : index
    %c0_313 = arith.constant 0 : index
    %545 = vector.load %arg28[%c1_311, %c0_312, %c0_313] : memref<3x3x72xf32, #tpu.memory_space<vmem>>, vector<1x1x72xf32>
    %546 = vector.shape_cast %545 : vector<1x1x72xf32> to vector<72xf32>
    %547 = vector.shape_cast %546 : vector<72xf32> to vector<1x1x72xf32>
    %548 = vector.broadcast %547 : vector<1x1x72xf32> to vector<8x8x72xf32>
    %549 = arith.mulf %544, %548 : vector<8x8x72xf32>
    %550 = arith.addf %543, %549 : vector<8x8x72xf32>
    %551 = vector.extract_strided_slice %521 {offsets = [1, 1, 0], sizes = [8, 8, 72], strides = [1, 1, 1]} : vector<10x10x72xf32> to vector<8x8x72xf32>
    %c1_314 = arith.constant 1 : index
    %c1_315 = arith.constant 1 : index
    %c0_316 = arith.constant 0 : index
    %552 = vector.load %arg28[%c1_314, %c1_315, %c0_316] : memref<3x3x72xf32, #tpu.memory_space<vmem>>, vector<1x1x72xf32>
    %553 = vector.shape_cast %552 : vector<1x1x72xf32> to vector<72xf32>
    %554 = vector.shape_cast %553 : vector<72xf32> to vector<1x1x72xf32>
    %555 = vector.broadcast %554 : vector<1x1x72xf32> to vector<8x8x72xf32>
    %556 = arith.mulf %551, %555 : vector<8x8x72xf32>
    %557 = arith.addf %550, %556 : vector<8x8x72xf32>
    %558 = vector.extract_strided_slice %521 {offsets = [1, 2, 0], sizes = [8, 8, 72], strides = [1, 1, 1]} : vector<10x10x72xf32> to vector<8x8x72xf32>
    %c1_317 = arith.constant 1 : index
    %c2_318 = arith.constant 2 : index
    %c0_319 = arith.constant 0 : index
    %559 = vector.load %arg28[%c1_317, %c2_318, %c0_319] : memref<3x3x72xf32, #tpu.memory_space<vmem>>, vector<1x1x72xf32>
    %560 = vector.shape_cast %559 : vector<1x1x72xf32> to vector<72xf32>
    %561 = vector.shape_cast %560 : vector<72xf32> to vector<1x1x72xf32>
    %562 = vector.broadcast %561 : vector<1x1x72xf32> to vector<8x8x72xf32>
    %563 = arith.mulf %558, %562 : vector<8x8x72xf32>
    %564 = arith.addf %557, %563 : vector<8x8x72xf32>
    %565 = vector.extract_strided_slice %521 {offsets = [2, 0, 0], sizes = [8, 8, 72], strides = [1, 1, 1]} : vector<10x10x72xf32> to vector<8x8x72xf32>
    %c2_320 = arith.constant 2 : index
    %c0_321 = arith.constant 0 : index
    %c0_322 = arith.constant 0 : index
    %566 = vector.load %arg28[%c2_320, %c0_321, %c0_322] : memref<3x3x72xf32, #tpu.memory_space<vmem>>, vector<1x1x72xf32>
    %567 = vector.shape_cast %566 : vector<1x1x72xf32> to vector<72xf32>
    %568 = vector.shape_cast %567 : vector<72xf32> to vector<1x1x72xf32>
    %569 = vector.broadcast %568 : vector<1x1x72xf32> to vector<8x8x72xf32>
    %570 = arith.mulf %565, %569 : vector<8x8x72xf32>
    %571 = arith.addf %564, %570 : vector<8x8x72xf32>
    %572 = vector.extract_strided_slice %521 {offsets = [2, 1, 0], sizes = [8, 8, 72], strides = [1, 1, 1]} : vector<10x10x72xf32> to vector<8x8x72xf32>
    %c2_323 = arith.constant 2 : index
    %c1_324 = arith.constant 1 : index
    %c0_325 = arith.constant 0 : index
    %573 = vector.load %arg28[%c2_323, %c1_324, %c0_325] : memref<3x3x72xf32, #tpu.memory_space<vmem>>, vector<1x1x72xf32>
    %574 = vector.shape_cast %573 : vector<1x1x72xf32> to vector<72xf32>
    %575 = vector.shape_cast %574 : vector<72xf32> to vector<1x1x72xf32>
    %576 = vector.broadcast %575 : vector<1x1x72xf32> to vector<8x8x72xf32>
    %577 = arith.mulf %572, %576 : vector<8x8x72xf32>
    %578 = arith.addf %571, %577 : vector<8x8x72xf32>
    %579 = vector.extract_strided_slice %521 {offsets = [2, 2, 0], sizes = [8, 8, 72], strides = [1, 1, 1]} : vector<10x10x72xf32> to vector<8x8x72xf32>
    %c2_326 = arith.constant 2 : index
    %c2_327 = arith.constant 2 : index
    %c0_328 = arith.constant 0 : index
    %580 = vector.load %arg28[%c2_326, %c2_327, %c0_328] : memref<3x3x72xf32, #tpu.memory_space<vmem>>, vector<1x1x72xf32>
    %581 = vector.shape_cast %580 : vector<1x1x72xf32> to vector<72xf32>
    %582 = vector.shape_cast %581 : vector<72xf32> to vector<1x1x72xf32>
    %583 = vector.broadcast %582 : vector<1x1x72xf32> to vector<8x8x72xf32>
    %584 = arith.mulf %579, %583 : vector<8x8x72xf32>
    %585 = arith.addf %578, %584 : vector<8x8x72xf32>
    %c0_329 = arith.constant 0 : index
    %c0_330 = arith.constant 0 : index
    %586 = vector.load %arg29[%c0_329, %c0_330] : memref<1x72xf32, #tpu.memory_space<vmem>>, vector<1x72xf32>
    %587 = vector.shape_cast %586 : vector<1x72xf32> to vector<72xf32>
    %588 = vector.shape_cast %587 : vector<72xf32> to vector<1x1x72xf32>
    %589 = vector.broadcast %588 : vector<1x1x72xf32> to vector<8x8x72xf32>
    %590 = arith.mulf %585, %589 : vector<8x8x72xf32>
    %c0_331 = arith.constant 0 : index
    %c0_332 = arith.constant 0 : index
    %591 = vector.load %arg30[%c0_331, %c0_332] : memref<1x72xf32, #tpu.memory_space<vmem>>, vector<1x72xf32>
    %592 = vector.shape_cast %591 : vector<1x72xf32> to vector<72xf32>
    %593 = vector.shape_cast %592 : vector<72xf32> to vector<1x1x72xf32>
    %594 = vector.broadcast %593 : vector<1x1x72xf32> to vector<8x8x72xf32>
    %595 = arith.addf %590, %594 : vector<8x8x72xf32>
    %cst_333 = arith.constant 0.000000e+00 : f32
    %596 = vector.broadcast %cst_333 : f32 to vector<8x8x72xf32>
    %597 = arith.maximumf %595, %596 : vector<8x8x72xf32>
    %598 = vector.extract_strided_slice %597 {offsets = [0, 0, 0], sizes = [1, 8, 72], strides = [1, 1, 1]} : vector<8x8x72xf32> to vector<1x8x72xf32>
    %599 = vector.shape_cast %598 : vector<1x8x72xf32> to vector<8x72xf32>
    %c0_334 = arith.constant 0 : index
    %c0_335 = arith.constant 0 : index
    %600 = vector.load %arg48[%c0_334, %c0_335] : memref<64x72xf32, #tpu.memory_space<vmem>>, vector<8x72xf32>
    tpu.vector_store %arg48[%c0_334, %c0_335], %599 {strides = array<i32>} : memref<64x72xf32, #tpu.memory_space<vmem>>, vector<8x72xf32>,
    %601 = vector.extract_strided_slice %597 {offsets = [1, 0, 0], sizes = [1, 8, 72], strides = [1, 1, 1]} : vector<8x8x72xf32> to vector<1x8x72xf32>
    %602 = vector.shape_cast %601 : vector<1x8x72xf32> to vector<8x72xf32>
    %c8_336 = arith.constant 8 : index
    %c0_337 = arith.constant 0 : index
    %603 = vector.load %arg48[%c8_336, %c0_337] : memref<64x72xf32, #tpu.memory_space<vmem>>, vector<8x72xf32>
    tpu.vector_store %arg48[%c8_336, %c0_337], %602 {strides = array<i32>} : memref<64x72xf32, #tpu.memory_space<vmem>>, vector<8x72xf32>,
    %604 = vector.extract_strided_slice %597 {offsets = [2, 0, 0], sizes = [1, 8, 72], strides = [1, 1, 1]} : vector<8x8x72xf32> to vector<1x8x72xf32>
    %605 = vector.shape_cast %604 : vector<1x8x72xf32> to vector<8x72xf32>
    %c16_338 = arith.constant 16 : index
    %c0_339 = arith.constant 0 : index
    %606 = vector.load %arg48[%c16_338, %c0_339] : memref<64x72xf32, #tpu.memory_space<vmem>>, vector<8x72xf32>
    tpu.vector_store %arg48[%c16_338, %c0_339], %605 {strides = array<i32>} : memref<64x72xf32, #tpu.memory_space<vmem>>, vector<8x72xf32>,
    %607 = vector.extract_strided_slice %597 {offsets = [3, 0, 0], sizes = [1, 8, 72], strides = [1, 1, 1]} : vector<8x8x72xf32> to vector<1x8x72xf32>
    %608 = vector.shape_cast %607 : vector<1x8x72xf32> to vector<8x72xf32>
    %c24 = arith.constant 24 : index
    %c0_340 = arith.constant 0 : index
    %609 = vector.load %arg48[%c24, %c0_340] : memref<64x72xf32, #tpu.memory_space<vmem>>, vector<8x72xf32>
    tpu.vector_store %arg48[%c24, %c0_340], %608 {strides = array<i32>} : memref<64x72xf32, #tpu.memory_space<vmem>>, vector<8x72xf32>,
    %610 = vector.extract_strided_slice %597 {offsets = [4, 0, 0], sizes = [1, 8, 72], strides = [1, 1, 1]} : vector<8x8x72xf32> to vector<1x8x72xf32>
    %611 = vector.shape_cast %610 : vector<1x8x72xf32> to vector<8x72xf32>
    %c32_341 = arith.constant 32 : index
    %c0_342 = arith.constant 0 : index
    %612 = vector.load %arg48[%c32_341, %c0_342] : memref<64x72xf32, #tpu.memory_space<vmem>>, vector<8x72xf32>
    tpu.vector_store %arg48[%c32_341, %c0_342], %611 {strides = array<i32>} : memref<64x72xf32, #tpu.memory_space<vmem>>, vector<8x72xf32>,
    %613 = vector.extract_strided_slice %597 {offsets = [5, 0, 0], sizes = [1, 8, 72], strides = [1, 1, 1]} : vector<8x8x72xf32> to vector<1x8x72xf32>
    %614 = vector.shape_cast %613 : vector<1x8x72xf32> to vector<8x72xf32>
    %c40 = arith.constant 40 : index
    %c0_343 = arith.constant 0 : index
    %615 = vector.load %arg48[%c40, %c0_343] : memref<64x72xf32, #tpu.memory_space<vmem>>, vector<8x72xf32>
    tpu.vector_store %arg48[%c40, %c0_343], %614 {strides = array<i32>} : memref<64x72xf32, #tpu.memory_space<vmem>>, vector<8x72xf32>,
    %616 = vector.extract_strided_slice %597 {offsets = [6, 0, 0], sizes = [1, 8, 72], strides = [1, 1, 1]} : vector<8x8x72xf32> to vector<1x8x72xf32>
    %617 = vector.shape_cast %616 : vector<1x8x72xf32> to vector<8x72xf32>
    %c48_344 = arith.constant 48 : index
    %c0_345 = arith.constant 0 : index
    %618 = vector.load %arg48[%c48_344, %c0_345] : memref<64x72xf32, #tpu.memory_space<vmem>>, vector<8x72xf32>
    tpu.vector_store %arg48[%c48_344, %c0_345], %617 {strides = array<i32>} : memref<64x72xf32, #tpu.memory_space<vmem>>, vector<8x72xf32>,
    %619 = vector.extract_strided_slice %597 {offsets = [7, 0, 0], sizes = [1, 8, 72], strides = [1, 1, 1]} : vector<8x8x72xf32> to vector<1x8x72xf32>
    %620 = vector.shape_cast %619 : vector<1x8x72xf32> to vector<8x72xf32>
    %c56 = arith.constant 56 : index
    %c0_346 = arith.constant 0 : index
    %621 = vector.load %arg48[%c56, %c0_346] : memref<64x72xf32, #tpu.memory_space<vmem>>, vector<8x72xf32>
    tpu.vector_store %arg48[%c56, %c0_346], %620 {strides = array<i32>} : memref<64x72xf32, #tpu.memory_space<vmem>>, vector<8x72xf32>,
    %c0_347 = arith.constant 0 : index
    %c0_348 = arith.constant 0 : index
    %622 = vector.load %arg48[%c0_347, %c0_348] : memref<64x72xf32, #tpu.memory_space<vmem>>, vector<64x72xf32>
    %cst_349 = arith.constant dense<0.000000e+00> : vector<72xf32>
    %623 = vector.multi_reduction <add>, %622, %cst_349 [0] : vector<64x72xf32> to vector<72xf32>
    %624 = vector.shape_cast %623 : vector<72xf32> to vector<1x72xf32>
    %cst_350 = arith.constant 6.400000e+01 : f32
    %625 = vector.broadcast %cst_350 : f32 to vector<1x72xf32>
    %626 = arith.divf %624, %625 : vector<1x72xf32>
    %627 = arith.truncf %626 : vector<1x72xf32> to vector<1x72xbf16>
    %c0_351 = arith.constant 0 : index
    %c0_352 = arith.constant 0 : index
    %628 = vector.load %arg31[%c0_351, %c0_352] : memref<72x24xbf16, #tpu.memory_space<vmem>>, vector<72x24xbf16>
    %cst_353 = arith.constant dense<0.000000e+00> : vector<1x24xf32>
    %629 = tpu.matmul %627, %628, %cst_353 {dimension_numbers = #tpu.dot_dimension_numbers<[1], [0], [0], [1], [0, 0, 1, 1], [], []>} : vector<1x72xbf16>, vector<72x24xbf16>, vector<1x24xf32> -> vector<1x24xf32>
    %c0_354 = arith.constant 0 : index
    %c0_355 = arith.constant 0 : index
    %630 = vector.load %arg32[%c0_354, %c0_355] : memref<1x24xf32, #tpu.memory_space<vmem>>, vector<1x24xf32>
    %631 = vector.shape_cast %630 : vector<1x24xf32> to vector<24xf32>
    %632 = vector.shape_cast %631 : vector<24xf32> to vector<1x24xf32>
    %633 = arith.addf %629, %632 : vector<1x24xf32>
    %cst_356 = arith.constant 0.000000e+00 : f32
    %634 = vector.broadcast %cst_356 : f32 to vector<1x24xf32>
    %635 = arith.maximumf %633, %634 : vector<1x24xf32>
    %636 = arith.truncf %635 : vector<1x24xf32> to vector<1x24xbf16>
    %c0_357 = arith.constant 0 : index
    %c0_358 = arith.constant 0 : index
    %637 = vector.load %arg33[%c0_357, %c0_358] : memref<24x72xbf16, #tpu.memory_space<vmem>>, vector<24x72xbf16>
    %cst_359 = arith.constant dense<0.000000e+00> : vector<1x72xf32>
    %638 = tpu.matmul %636, %637, %cst_359 {dimension_numbers = #tpu.dot_dimension_numbers<[1], [0], [0], [1], [0, 0, 1, 1], [], []>} : vector<1x24xbf16>, vector<24x72xbf16>, vector<1x72xf32> -> vector<1x72xf32>
    %c0_360 = arith.constant 0 : index
    %c0_361 = arith.constant 0 : index
    %639 = vector.load %arg34[%c0_360, %c0_361] : memref<1x72xf32, #tpu.memory_space<vmem>>, vector<1x72xf32>
    %640 = vector.shape_cast %639 : vector<1x72xf32> to vector<72xf32>
    %641 = vector.shape_cast %640 : vector<72xf32> to vector<1x72xf32>
    %642 = arith.addf %638, %641 : vector<1x72xf32>
    %643 = arith.negf %642 : vector<1x72xf32>
    %644 = math.exp %643 : vector<1x72xf32>
    %cst_362 = arith.constant 1.000000e+00 : f32
    %645 = vector.broadcast %cst_362 : f32 to vector<1x72xf32>
    %646 = arith.addf %645, %644 : vector<1x72xf32>
    %647 = arith.divf %645, %646 : vector<1x72xf32>
    %648 = vector.broadcast %647 : vector<1x72xf32> to vector<64x72xf32>
    %649 = arith.mulf %622, %648 : vector<64x72xf32>
    %650 = arith.truncf %649 : vector<64x72xf32> to vector<64x72xbf16>
    %c0_363 = arith.constant 0 : index
    %c0_364 = arith.constant 0 : index
    %651 = vector.load %arg35[%c0_363, %c0_364] : memref<72x24xbf16, #tpu.memory_space<vmem>>, vector<72x24xbf16>
    %cst_365 = arith.constant dense<0.000000e+00> : vector<64x24xf32>
    %652 = tpu.matmul %650, %651, %cst_365 {dimension_numbers = #tpu.dot_dimension_numbers<[1], [0], [0], [1], [0, 0, 1, 1], [], []>} : vector<64x72xbf16>, vector<72x24xbf16>, vector<64x24xf32> -> vector<64x24xf32>
    %c0_366 = arith.constant 0 : index
    %c0_367 = arith.constant 0 : index
    %653 = vector.load %arg36[%c0_366, %c0_367] : memref<1x24xf32, #tpu.memory_space<vmem>>, vector<1x24xf32>
    %654 = vector.shape_cast %653 : vector<1x24xf32> to vector<24xf32>
    %655 = vector.shape_cast %654 : vector<24xf32> to vector<1x24xf32>
    %656 = vector.broadcast %655 : vector<1x24xf32> to vector<64x24xf32>
    %657 = arith.mulf %652, %656 : vector<64x24xf32>
    %c0_368 = arith.constant 0 : index
    %c0_369 = arith.constant 0 : index
    %658 = vector.load %arg37[%c0_368, %c0_369] : memref<1x24xf32, #tpu.memory_space<vmem>>, vector<1x24xf32>
    %659 = vector.shape_cast %658 : vector<1x24xf32> to vector<24xf32>
    %660 = vector.shape_cast %659 : vector<24xf32> to vector<1x24xf32>
    %661 = vector.broadcast %660 : vector<1x24xf32> to vector<64x24xf32>
    %662 = arith.addf %657, %661 : vector<64x24xf32>
    %663 = arith.addf %662, %471 : vector<64x24xf32>
    %cst_370 = arith.constant dense<0.000000e+00> : vector<24xf32>
    %664 = vector.multi_reduction <add>, %663, %cst_370 [0] : vector<64x24xf32> to vector<24xf32>
    %665 = vector.shape_cast %664 : vector<24xf32> to vector<1x24xf32>
    %cst_371 = arith.constant 6.400000e+01 : f32
    %666 = vector.broadcast %cst_371 : f32 to vector<1x24xf32>
    %667 = arith.divf %665, %666 : vector<1x24xf32>
    %668 = arith.truncf %667 : vector<1x24xf32> to vector<1x24xbf16>
    %c0_372 = arith.constant 0 : index
    %c0_373 = arith.constant 0 : index
    %669 = vector.load %arg38[%c0_372, %c0_373] : memref<24x128xbf16, #tpu.memory_space<vmem>>, vector<24x128xbf16>
    %cst_374 = arith.constant dense<0.000000e+00> : vector<1x128xf32>
    %670 = tpu.matmul %668, %669, %cst_374 {dimension_numbers = #tpu.dot_dimension_numbers<[1], [0], [0], [1], [0, 0, 1, 1], [], []>} : vector<1x24xbf16>, vector<24x128xbf16>, vector<1x128xf32> -> vector<1x128xf32>
    %c0_375 = arith.constant 0 : index
    %c0_376 = arith.constant 0 : index
    %671 = vector.load %arg39[%c0_375, %c0_376] : memref<1x128xf32, #tpu.memory_space<vmem>>, vector<1x128xf32>
    %672 = vector.shape_cast %671 : vector<1x128xf32> to vector<128xf32>
    %673 = vector.shape_cast %672 : vector<128xf32> to vector<1x128xf32>
    %674 = arith.addf %670, %673 : vector<1x128xf32>
    %cst_377 = arith.constant 0.000000e+00 : f32
    %675 = vector.broadcast %cst_377 : f32 to vector<1x128xf32>
    %676 = arith.maximumf %674, %675 : vector<1x128xf32>
    %677 = arith.truncf %676 : vector<1x128xf32> to vector<1x128xbf16>
    %c0_378 = arith.constant 0 : index
    %c0_379 = arith.constant 0 : index
    %678 = vector.load %arg40[%c0_378, %c0_379] : memref<128x10xbf16, #tpu.memory_space<vmem>>, vector<128x10xbf16>
    %cst_380 = arith.constant dense<0.000000e+00> : vector<1x10xf32>
    %679 = tpu.matmul %677, %678, %cst_380 {dimension_numbers = #tpu.dot_dimension_numbers<[1], [0], [0], [1], [0, 0, 1, 1], [], []>} : vector<1x128xbf16>, vector<128x10xbf16>, vector<1x10xf32> -> vector<1x10xf32>
    %c0_381 = arith.constant 0 : index
    %c0_382 = arith.constant 0 : index
    %680 = vector.load %arg41[%c0_381, %c0_382] : memref<1x10xf32, #tpu.memory_space<vmem>>, vector<1x10xf32>
    %681 = vector.shape_cast %680 : vector<1x10xf32> to vector<10xf32>
    %682 = vector.shape_cast %681 : vector<10xf32> to vector<1x10xf32>
    %683 = arith.addf %679, %682 : vector<1x10xf32>
    %c0_383 = arith.constant 0 : index
    %c0_384 = arith.constant 0 : index
    %c0_385 = arith.constant 0 : index
    %684 = vector.load %arg42[%c0_383, %c0_384, %c0_385] : memref<1x1x10xf32, #tpu.memory_space<vmem>>, vector<1x1x10xf32>
    %685 = vector.shape_cast %684 : vector<1x1x10xf32> to vector<1x10xf32>
    %686 = vector.shape_cast %683 : vector<1x10xf32> to vector<1x1x10xf32>
    tpu.vector_store %arg42[%c0_383, %c0_384, %c0_385], %686 {strides = array<i32>} : memref<1x1x10xf32, #tpu.memory_space<vmem>>, vector<1x1x10xf32>,
    return
  }
  func.func @transform_0(%arg0: i32) -> (i32, i32, i32) {
    %c0_i32 = arith.constant 0 : i32
    %c0_i32_0 = arith.constant 0 : i32
    %c0_i32_1 = arith.constant 0 : i32
    return %arg0, %c0_i32, %c0_i32_0 : i32, i32, i32
  }
  func.func @transform_1(%arg0: i32) -> (i32, i32) {
    %c0_i32 = arith.constant 0 : i32
    %c0_i32_0 = arith.constant 0 : i32
    %c0_i32_1 = arith.constant 0 : i32
    return %c0_i32, %c0_i32_0 : i32, i32
  }
  func.func @transform_2(%arg0: i32) -> (i32, i32) {
    %c0_i32 = arith.constant 0 : i32
    %c0_i32_0 = arith.constant 0 : i32
    %c0_i32_1 = arith.constant 0 : i32
    return %c0_i32, %c0_i32_0 : i32, i32
  }
  func.func @transform_3(%arg0: i32) -> (i32, i32) {
    %c0_i32 = arith.constant 0 : i32
    %c0_i32_0 = arith.constant 0 : i32
    %c0_i32_1 = arith.constant 0 : i32
    return %c0_i32, %c0_i32_0 : i32, i32
  }
  func.func @transform_4(%arg0: i32) -> (i32, i32) {
    %c0_i32 = arith.constant 0 : i32
    %c0_i32_0 = arith.constant 0 : i32
    %c0_i32_1 = arith.constant 0 : i32
    return %c0_i32, %c0_i32_0 : i32, i32
  }
  func.func @transform_5(%arg0: i32) -> (i32, i32, i32) {
    %c0_i32 = arith.constant 0 : i32
    %c0_i32_0 = arith.constant 0 : i32
    %c0_i32_1 = arith.constant 0 : i32
    %c0_i32_2 = arith.constant 0 : i32
    return %c0_i32, %c0_i32_0, %c0_i32_1 : i32, i32, i32
  }
  func.func @transform_6(%arg0: i32) -> (i32, i32) {
    %c0_i32 = arith.constant 0 : i32
    %c0_i32_0 = arith.constant 0 : i32
    %c0_i32_1 = arith.constant 0 : i32
    return %c0_i32, %c0_i32_0 : i32, i32
  }
  func.func @transform_7(%arg0: i32) -> (i32, i32) {
    %c0_i32 = arith.constant 0 : i32
    %c0_i32_0 = arith.constant 0 : i32
    %c0_i32_1 = arith.constant 0 : i32
    return %c0_i32, %c0_i32_0 : i32, i32
  }
  func.func @transform_8(%arg0: i32) -> (i32, i32) {
    %c0_i32 = arith.constant 0 : i32
    %c0_i32_0 = arith.constant 0 : i32
    %c0_i32_1 = arith.constant 0 : i32
    return %c0_i32, %c0_i32_0 : i32, i32
  }
  func.func @transform_9(%arg0: i32) -> (i32, i32) {
    %c0_i32 = arith.constant 0 : i32
    %c0_i32_0 = arith.constant 0 : i32
    %c0_i32_1 = arith.constant 0 : i32
    return %c0_i32, %c0_i32_0 : i32, i32
  }
  func.func @transform_10(%arg0: i32) -> (i32, i32) {
    %c0_i32 = arith.constant 0 : i32
    %c0_i32_0 = arith.constant 0 : i32
    %c0_i32_1 = arith.constant 0 : i32
    return %c0_i32, %c0_i32_0 : i32, i32
  }
  func.func @transform_11(%arg0: i32) -> (i32, i32) {
    %c0_i32 = arith.constant 0 : i32
    %c0_i32_0 = arith.constant 0 : i32
    %c0_i32_1 = arith.constant 0 : i32
    return %c0_i32, %c0_i32_0 : i32, i32
  }
  func.func @transform_12(%arg0: i32) -> (i32, i32) {
    %c0_i32 = arith.constant 0 : i32
    %c0_i32_0 = arith.constant 0 : i32
    %c0_i32_1 = arith.constant 0 : i32
    return %c0_i32, %c0_i32_0 : i32, i32
  }
  func.func @transform_13(%arg0: i32) -> (i32, i32) {
    %c0_i32 = arith.constant 0 : i32
    %c0_i32_0 = arith.constant 0 : i32
    %c0_i32_1 = arith.constant 0 : i32
    return %c0_i32, %c0_i32_0 : i32, i32
  }
  func.func @transform_14(%arg0: i32) -> (i32, i32, i32) {
    %c0_i32 = arith.constant 0 : i32
    %c0_i32_0 = arith.constant 0 : i32
    %c0_i32_1 = arith.constant 0 : i32
    %c0_i32_2 = arith.constant 0 : i32
    return %c0_i32, %c0_i32_0, %c0_i32_1 : i32, i32, i32
  }
  func.func @transform_15(%arg0: i32) -> (i32, i32) {
    %c0_i32 = arith.constant 0 : i32
    %c0_i32_0 = arith.constant 0 : i32
    %c0_i32_1 = arith.constant 0 : i32
    return %c0_i32, %c0_i32_0 : i32, i32
  }
  func.func @transform_16(%arg0: i32) -> (i32, i32) {
    %c0_i32 = arith.constant 0 : i32
    %c0_i32_0 = arith.constant 0 : i32
    %c0_i32_1 = arith.constant 0 : i32
    return %c0_i32, %c0_i32_0 : i32, i32
  }
  func.func @transform_17(%arg0: i32) -> (i32, i32) {
    %c0_i32 = arith.constant 0 : i32
    %c0_i32_0 = arith.constant 0 : i32
    %c0_i32_1 = arith.constant 0 : i32
    return %c0_i32, %c0_i32_0 : i32, i32
  }
  func.func @transform_18(%arg0: i32) -> (i32, i32) {
    %c0_i32 = arith.constant 0 : i32
    %c0_i32_0 = arith.constant 0 : i32
    %c0_i32_1 = arith.constant 0 : i32
    return %c0_i32, %c0_i32_0 : i32, i32
  }
  func.func @transform_19(%arg0: i32) -> (i32, i32) {
    %c0_i32 = arith.constant 0 : i32
    %c0_i32_0 = arith.constant 0 : i32
    %c0_i32_1 = arith.constant 0 : i32
    return %c0_i32, %c0_i32_0 : i32, i32
  }
  func.func @transform_20(%arg0: i32) -> (i32, i32) {
    %c0_i32 = arith.constant 0 : i32
    %c0_i32_0 = arith.constant 0 : i32
    %c0_i32_1 = arith.constant 0 : i32
    return %c0_i32, %c0_i32_0 : i32, i32
  }
  func.func @transform_21(%arg0: i32) -> (i32, i32) {
    %c0_i32 = arith.constant 0 : i32
    %c0_i32_0 = arith.constant 0 : i32
    %c0_i32_1 = arith.constant 0 : i32
    return %c0_i32, %c0_i32_0 : i32, i32
  }
  func.func @transform_22(%arg0: i32) -> (i32, i32) {
    %c0_i32 = arith.constant 0 : i32
    %c0_i32_0 = arith.constant 0 : i32
    %c0_i32_1 = arith.constant 0 : i32
    return %c0_i32, %c0_i32_0 : i32, i32
  }
  func.func @transform_23(%arg0: i32) -> (i32, i32) {
    %c0_i32 = arith.constant 0 : i32
    %c0_i32_0 = arith.constant 0 : i32
    %c0_i32_1 = arith.constant 0 : i32
    return %c0_i32, %c0_i32_0 : i32, i32
  }
  func.func @transform_24(%arg0: i32) -> (i32, i32) {
    %c0_i32 = arith.constant 0 : i32
    %c0_i32_0 = arith.constant 0 : i32
    %c0_i32_1 = arith.constant 0 : i32
    return %c0_i32, %c0_i32_0 : i32, i32
  }
  func.func @transform_25(%arg0: i32) -> (i32, i32) {
    %c0_i32 = arith.constant 0 : i32
    %c0_i32_0 = arith.constant 0 : i32
    %c0_i32_1 = arith.constant 0 : i32
    return %c0_i32, %c0_i32_0 : i32, i32
  }
  func.func @transform_26(%arg0: i32) -> (i32, i32) {
    %c0_i32 = arith.constant 0 : i32
    %c0_i32_0 = arith.constant 0 : i32
    %c0_i32_1 = arith.constant 0 : i32
    return %c0_i32, %c0_i32_0 : i32, i32
  }
  func.func @transform_27(%arg0: i32) -> (i32, i32, i32) {
    %c0_i32 = arith.constant 0 : i32
    %c0_i32_0 = arith.constant 0 : i32
    %c0_i32_1 = arith.constant 0 : i32
    %c0_i32_2 = arith.constant 0 : i32
    return %c0_i32, %c0_i32_0, %c0_i32_1 : i32, i32, i32
  }
  func.func @transform_28(%arg0: i32) -> (i32, i32) {
    %c0_i32 = arith.constant 0 : i32
    %c0_i32_0 = arith.constant 0 : i32
    %c0_i32_1 = arith.constant 0 : i32
    return %c0_i32, %c0_i32_0 : i32, i32
  }
  func.func @transform_29(%arg0: i32) -> (i32, i32) {
    %c0_i32 = arith.constant 0 : i32
    %c0_i32_0 = arith.constant 0 : i32
    %c0_i32_1 = arith.constant 0 : i32
    return %c0_i32, %c0_i32_0 : i32, i32
  }
  func.func @transform_30(%arg0: i32) -> (i32, i32) {
    %c0_i32 = arith.constant 0 : i32
    %c0_i32_0 = arith.constant 0 : i32
    %c0_i32_1 = arith.constant 0 : i32
    return %c0_i32, %c0_i32_0 : i32, i32
  }
  func.func @transform_31(%arg0: i32) -> (i32, i32) {
    %c0_i32 = arith.constant 0 : i32
    %c0_i32_0 = arith.constant 0 : i32
    %c0_i32_1 = arith.constant 0 : i32
    return %c0_i32, %c0_i32_0 : i32, i32
  }
  func.func @transform_32(%arg0: i32) -> (i32, i32) {
    %c0_i32 = arith.constant 0 : i32
    %c0_i32_0 = arith.constant 0 : i32
    %c0_i32_1 = arith.constant 0 : i32
    return %c0_i32, %c0_i32_0 : i32, i32
  }
  func.func @transform_33(%arg0: i32) -> (i32, i32) {
    %c0_i32 = arith.constant 0 : i32
    %c0_i32_0 = arith.constant 0 : i32
    %c0_i32_1 = arith.constant 0 : i32
    return %c0_i32, %c0_i32_0 : i32, i32
  }
  func.func @transform_34(%arg0: i32) -> (i32, i32) {
    %c0_i32 = arith.constant 0 : i32
    %c0_i32_0 = arith.constant 0 : i32
    %c0_i32_1 = arith.constant 0 : i32
    return %c0_i32, %c0_i32_0 : i32, i32
  }
  func.func @transform_35(%arg0: i32) -> (i32, i32) {
    %c0_i32 = arith.constant 0 : i32
    %c0_i32_0 = arith.constant 0 : i32
    %c0_i32_1 = arith.constant 0 : i32
    return %c0_i32, %c0_i32_0 : i32, i32
  }
  func.func @transform_36(%arg0: i32) -> (i32, i32) {
    %c0_i32 = arith.constant 0 : i32
    %c0_i32_0 = arith.constant 0 : i32
    %c0_i32_1 = arith.constant 0 : i32
    return %c0_i32, %c0_i32_0 : i32, i32
  }
  func.func @transform_37(%arg0: i32) -> (i32, i32) {
    %c0_i32 = arith.constant 0 : i32
    %c0_i32_0 = arith.constant 0 : i32
    %c0_i32_1 = arith.constant 0 : i32
    return %c0_i32, %c0_i32_0 : i32, i32
  }
  func.func @transform_38(%arg0: i32) -> (i32, i32) {
    %c0_i32 = arith.constant 0 : i32
    %c0_i32_0 = arith.constant 0 : i32
    %c0_i32_1 = arith.constant 0 : i32
    return %c0_i32, %c0_i32_0 : i32, i32
  }
  func.func @transform_39(%arg0: i32) -> (i32, i32) {
    %c0_i32 = arith.constant 0 : i32
    %c0_i32_0 = arith.constant 0 : i32
    %c0_i32_1 = arith.constant 0 : i32
    return %c0_i32, %c0_i32_0 : i32, i32
  }
  func.func @transform_40(%arg0: i32) -> (i32, i32) {
    %c0_i32 = arith.constant 0 : i32
    %c0_i32_0 = arith.constant 0 : i32
    %c0_i32_1 = arith.constant 0 : i32
    return %c0_i32, %c0_i32_0 : i32, i32
  }
  func.func @transform_41(%arg0: i32) -> (i32, i32, i32) {
    %c0_i32 = arith.constant 0 : i32
    %c0_i32_0 = arith.constant 0 : i32
    %c0_i32_1 = arith.constant 0 : i32
    return %arg0, %c0_i32, %c0_i32_0 : i32, i32, i32
  }
}

</mosaic_0001>

<bundles_post_ra>
// kernel: mobilenetv3_forward.1
= control target key start
LH: loop header
LB: loop body
LE: loop exit
PB: predicated region body
PF: predicated region fallthrough
CT: control target
= control target key end

     0   :  { %s9028_s6 = smov 1   ;;  %s9029_s10 = smov 2   ;;  %s14536_s0 = inlined_call_operand.smem [shape: u32[42], index: -1, kind: input, shape index: {}] }
   0x1   :  { %s9081_s5 = sld [smem:[%s14536_s0]]   ;;  %s9030_s14 = smov 3  }
   0x2   :  { %s9086_s9 = sld [smem:[%s14536_s0 + %s9028_s6]]   ;;  %s9031_s18 = smov 4  }
   0x3   :  { %s9091_s13 = sld [smem:[%s14536_s0 + %s9029_s10]]   ;;  %s9032_s22 = smov 5  }
   0x4   :  { %s9096_s17 = sld [smem:[%s14536_s0 + %s9030_s14]]   ;;  %s9033_s26 = smov 6  }
   0x5   :  { %s9101_s21 = sld [smem:[%s14536_s0 + %s9031_s18]]   ;;  %s9034_s30 = smov 7  }
   0x6   :  { %s9106_s25 = sld [smem:[%s14536_s0 + %s9032_s22]]   ;;  %s9035_s4 = smov 8  }
   0x7   :  { %14804 = sst [smem:[#allocation11_spill]] %s9081_s5  ;;  %s9036_s10 = smov 9  }
   0x8   :  { %14805 = sst [smem:[#allocation12_spill]] %s9086_s9  ;;  %s9037_s15 = smov 10  }
   0x9   :  { %14806 = sst [smem:[#allocation13_spill]] %s9091_s13  ;;  %s9038_s20 = smov 11  }
   0xa   :  { %s9111_s29 = sld [smem:[%s14536_s0 + %s9033_s26]]   ;;  %s9039_s26 = smov 12  }
   0xb   :  { %s9116_s3 = sld [smem:[%s14536_s0 + %s9034_s30]]   ;;  %s9040_s1 = smov 13  }
   0xc   :  { %s9121_s8 = sld [smem:[%s14536_s0 + %s9035_s4]]   ;;  %s9041_s7 = smov 14  }
   0xd   :  { %s9126_s14 = sld [smem:[%s14536_s0 + %s9036_s10]]   ;;  %s9043_s22 = smov 16  }
   0xe   :  { %s9131_s19 = sld [smem:[%s14536_s0 + %s9037_s15]]   ;;  %s9042_s15 = smov 15  }
   0xf   :  { %s9136_s24 = sld [smem:[%s14536_s0 + %s9038_s20]]   ;;  %s9044_s28 = smov 17  }
  0x10   :  { %s9141_s30 = sld [smem:[%s14536_s0 + %s9039_s26]]  }
  0x11   :  { %14807 = sst [smem:[#allocation14_spill]] %s9116_s3 }
  0x12   :  { %14808 = sst [smem:[#allocation15_spill]] %s9121_s8 }
  0x13   :  { %14809 = sst [smem:[#allocation16_spill]] %s9126_s14 }
  0x14   :  { %s9146_s6 = sld [smem:[%s14536_s0 + %s9040_s1]]  }
  0x15   :  { %s9151_s12 = sld [smem:[%s14536_s0 + %s9041_s7]]   ;;  %s9045_s7 = smov 18  }
  0x16   :  { %s9156_s20 = sld [smem:[%s14536_s0 + %s9042_s15]]   ;;  %s9046_s15 = smov 19  }
  0x17   :  { %s9161_s27 = sld [smem:[%s14536_s0 + %s9043_s22]]   ;;  %s9047_s22 = smov 20  }
  0x18   :  { %s9166_s4 = sld [smem:[%s14536_s0 + %s9044_s28]]   ;;  %s9048_s28 = smov 21  }
  0x19   :  { %s9171_s9 = sld [smem:[%s14536_s0 + %s9045_s7]]   ;;  %s9049_s7 = smov 22  }
  0x1a   :  { %14810 = sst [smem:[#allocation17_spill]] %s9146_s6 }
  0x1b   :  { %14811 = sst [smem:[#allocation18_spill]] %s9151_s12 }
  0x1c   :  { %14812 = sst [smem:[#allocation19_spill]] %s9156_s20 }
  0x1d   :  { %14813 = sst [smem:[#allocation20_spill]] %s9161_s27 }
  0x1e   :  { %14814 = sst [smem:[#allocation21_spill]] %s9166_s4 }
  0x1f   :  { %14815 = sst [smem:[#allocation22_spill]] %s9171_s9 }
  0x20   :  { %s9176_s20 = sld [smem:[%s14536_s0 + %s9046_s15]]   ;;  %s9050_s15 = smov 23  }
  0x21   :  { %s9181_s27 = sld [smem:[%s14536_s0 + %s9047_s22]]   ;;  %s9051_s22 = smov 24  }
  0x22   :  { %s9186_s4 = sld [smem:[%s14536_s0 + %s9048_s28]]   ;;  %s9052_s28 = smov 25  }
  0x23   :  { %s9191_s9 = sld [smem:[%s14536_s0 + %s9049_s7]]   ;;  %s9053_s7 = smov 26  }
  0x26   :  { %14816 = sst [smem:[#allocation23_spill]] %s9176_s20 }
  0x27   :  { %14817 = sst [smem:[#allocation24_spill]] %s9181_s27 }
  0x28   :  { %14818 = sst [smem:[#allocation25_spill]] %s9186_s4 }
  0x29   :  { %14819 = sst [smem:[#allocation26_spill]] %s9191_s9 }
  0x2a   :  { %s9196_s20 = sld [smem:[%s14536_s0 + %s9050_s15]]   ;;  %s9054_s15 = smov 27  }
  0x2b   :  { %s9201_s27 = sld [smem:[%s14536_s0 + %s9051_s22]]   ;;  %s9055_s22 = smov 28  }
  0x2c   :  { %s9206_s4 = sld [smem:[%s14536_s0 + %s9052_s28]]   ;;  %s9056_s28 = smov 29  }
  0x2d   :  { %s9211_s9 = sld [smem:[%s14536_s0 + %s9053_s7]]   ;;  %s9057_s7 = smov 30  }
  0x30   :  { %14820 = sst [smem:[#allocation27_spill]] %s9196_s20 }
  0x31   :  { %14821 = sst [smem:[#allocation28_spill]] %s9201_s27 }
  0x32   :  { %14822 = sst [smem:[#allocation29_spill]] %s9206_s4 }
  0x33   :  { %14823 = sst [smem:[#allocation30_spill]] %s9211_s9 }
  0x34   :  { %s9216_s20 = sld [smem:[%s14536_s0 + %s9054_s15]]   ;;  %s9058_s15 = smov 31  }
  0x35   :  { %s9221_s27 = sld [smem:[%s14536_s0 + %s9055_s22]]   ;;  %s9059_s22 = smov 32  }
  0x36   :  { %s9226_s4 = sld [smem:[%s14536_s0 + %s9056_s28]]   ;;  %s9060_s28 = smov 33  }
  0x37   :  { %s9231_s9 = sld [smem:[%s14536_s0 + %s9057_s7]]   ;;  %s9061_s7 = smov 34  }
  0x3a   :  { %14824 = sst [smem:[#allocation31_spill]] %s9216_s20 }
  0x3b   :  { %14825 = sst [smem:[#allocation32_spill]] %s9221_s27 }
  0x3c   :  { %14826 = sst [smem:[#allocation33_spill]] %s9226_s4 }
  0x3d   :  { %14827 = sst [smem:[#allocation34_spill]] %s9231_s9 }
  0x3e   :  { %s9236_s20 = sld [smem:[%s14536_s0 + %s9058_s15]]   ;;  %s9062_s15 = smov 35  }
  0x3f   :  { %s9241_s27 = sld [smem:[%s14536_s0 + %s9059_s22]]   ;;  %s9063_s22 = smov 36  }
  0x40   :  { %s9246_s4 = sld [smem:[%s14536_s0 + %s9060_s28]]   ;;  %s9064_s28 = smov 37  }
  0x41   :  { %s9251_s9 = sld [smem:[%s14536_s0 + %s9061_s7]]   ;;  %s9065_s7 = smov 38  }
  0x44   :  { %14828 = sst [smem:[#allocation35_spill]] %s9236_s20 }
  0x45   :  { %14829 = sst [smem:[#allocation36_spill]] %s9241_s27 }
  0x46   :  { %14830 = sst [smem:[#allocation37_spill]] %s9246_s4 }
  0x47   :  { %14831 = sst [smem:[#allocation38_spill]] %s9251_s9 }
  0x48   :  { %s9256_s20 = sld [smem:[%s14536_s0 + %s9062_s15]]   ;;  %s9066_s15 = smov 39  }
  0x49   :  { %s9261_s27 = sld [smem:[%s14536_s0 + %s9063_s22]]   ;;  %s9067_s22 = smov 40  }
  0x4a   :  { %s9266_s4 = sld [smem:[%s14536_s0 + %s9064_s28]]   ;;  %s9068_s28 = smov 41  }
  0x4b   :  { %s9271_s9 = sld [smem:[%s14536_s0 + %s9065_s7]]  }
  0x4e   :  { %14832 = sst [smem:[#allocation39_spill]] %s9256_s20 }
  0x4f   :  { %14833 = sst [smem:[#allocation40_spill]] %s9261_s27 }
  0x50   :  { %14834 = sst [smem:[#allocation41_spill]] %s9266_s4 }
  0x51   :  { %14835 = sst [smem:[#allocation42_spill]] %s9271_s9 }
  0x52   :  { %s9276_s20 = sld [smem:[%s14536_s0 + %s9066_s15]]  }
  0x53   :  { %s9281_s27 = sld [smem:[%s14536_s0 + %s9067_s22]]  }
  0x54   :  { %s9286_s4 = sld [smem:[%s14536_s0 + %s9068_s28]]  }
  0x55   :  { %88 = vsyncpa [#allocation9], 0 }
  0x56   :  { %90 = vsyncpa [#allocation9 + $0x1], 0  ;;  %s9288_s7 = smov 0   ;;  %s9290_s10 = smov 0  }
  0x57   :  { %s9292_s11 = smov 0   ;;  %s9294_s15 = smov 0  }
  0x58 LB: > { %s14836_s13 = sld [smem:[#allocation13_spill]]  ;;  %s9309_s0 = sadd.s32 4294967295, %s9026_s15   ;;  %s9026_s15 = sphi %s9294_s15, %s15544_s15   ;;  %s9022_s11 = sphi %s9292_s11, %s15543_s11   ;;  %s9018_s10 = sphi %s9290_s10, %s15542_s10   ;;  %s9014_s7 = sphi %s9288_s7, %s15541_s7  }
  0x59   : > { %s14837_s12 = sld [smem:[#allocation18_spill]]  ;;  %s8190_s16 = sadd.s32 4294967294, %s9026_s15  }
  0x5a   : > { %s14838_s6 = sld [smem:[#allocation17_spill]]  ;;  %s9313_s18 = sadd.s32 1, %s9026_s15  }
  0x5b   : > { %s14839_s3 = sld [smem:[#allocation14_spill]]  ;;  %s969_s22 = sadd.s32 1, %s9022_s11 }
  0x5c   : > { %s966_s23 = ssub.s32 %s9026_s15, %s9313_s18  ;;  %p979_p0 = scmp.ne.s32.totalorder %s9022_s11, %s9018_s10 }
  0x5d   : > { %p967_p1 = scmp.eq.s32.totalorder %s966_s23, 0  ;;  %p980_p2 = scmp.eq.s32.totalorder %s9309_s0, 1 }
  0x5e   : > { %p985_p3 = scmp.ne.s32.totalorder %s9018_s10, %s9014_s7  ;;  %p986_p4 = scmp.eq.s32.totalorder %s8190_s16, 1 }
  0x5f   : > { %s9324_s26 = scalar_select %p967_p1, %s9022_s11, %s969_s22  }
  0x60   : > { %p9326_p5 = por %p980_p2, %p979_p0  ;;  %p9330_p6 = por %p986_p4, %p985_p3 }
  0x61   : > { %p8193_p7 = scmp.ge.s32.totalorder %s9026_s15, 1  ;;  %p1132_p8 = scmp.lt.s32.totalorder %s9026_s15, 3 }
  0x63   : > { %p1133_p9 = pnand %p8193_p7, %p1132_p8 }
  0x65   : > { %1136 = sbr.rel (%p1133_p9) target bundleno = 3594 (0xe0a), region = 184 }
  0x6a   : > { %s14842_s5 = sld [smem:[#allocation11_spill]]  ;;  %v8829_v0 = vld [vmem:[%s14836_s13 + $0x8] sm:$0x3f]   ;;  %vm1349_vm0 = vcmask 1044480   ;;  %vm1350_vm1 = vcmask 1045504   ;;  %v9069_v1 = vmov 65535  }
  0x6b   : > { %v1351_v2 = vsel %vm1349_vm0, 4294967295, %v9069_v1  ;;  %p1231_p10 = scmp.lt.s32.totalorder %s9309_s0, 1  ;;  %v8830_v5 = vld [vmem:[%s14836_s13] sm:$0xff]   ;;  %vm1300_vm2 = vcmask 220160   ;;  %vm1627_vm3 = vcmask 130048   ;;  %v14548_v54 = vmov 0.0  }
  0x6c   : > { %v1352_v3 = vsel %vm1350_vm1, %v1351_v2, 0  ;;  %1635 = vst.msk [vmem:[#allocation2 + $0x30] sm:$0xff] %vm1627_vm3, %v14548_v54  ;;  %1636 = vst.msk [vmem:[#allocation2 + $0x38] sm:$0xff] %vm1627_vm3, %v14548_v54  ;;  %vm1630_vm4 = vcmask 123904   ;;  %v9501_v55 = vld [vmem:[%s9106_s25 + $0x1] ss:$0 sm:$0xff] }
  0x6d   : > { %v1354_v4 = vand.u32 %v8829_v0, %v1352_v3  ;;  %s1232_s2 = scalar_select %p1231_p10, %s9309_s0, 1  ;;  %1628 = vst.msk [vmem:[#allocation2] sm:$0xff] %vm1627_vm3, %v14548_v54  ;;  %1629 = vst.msk [vmem:[#allocation2 + $0x8] sm:$0xff] %vm1627_vm3, %v14548_v54  ;;  %v9504_v59 = vld [vmem:[%s9096_s17] ss:$0 sm:$0xff]  ;;  %vm1955_vm5 = vcmask 1046528  }
  0x6e   : > { %1632 = vst.msk [vmem:[#allocation2 + $0x18] sm:$0xff] %vm1627_vm3, %v14548_v54  ;;  %1633 = vst.msk [vmem:[#allocation2 + $0x20] sm:$0xff] %vm1627_vm3, %v14548_v54  ;;  %v9509_v62 = vld [vmem:[%s9106_s25 + $0x2] ss:$0 sm:$0xff]  ;;  %v9512_v0 = vld [vmem:[%s9101_s21] ss:$0 sm:$0xff] }
  0x6f   : > { %8526 = vmatprep.subr.bf16.mxu0 %v1354_v4  ;;  %s8366_s16 = sshll.u32 %s1232_s2, 8  ;;  %1638 = vst.msk [vmem:[#allocation2 + $0x48] sm:$0xff] %vm1627_vm3, %v14548_v54  ;;  %1639 = vst.msk [vmem:[#allocation2 + $0x50] sm:$0xff] %vm1627_vm3, %v14548_v54  ;;  %s14846_s8 = sld [smem:[#allocation15_spill]]  ;;  %vm4325_vm6 = vcmask 523264   ;;  %vm4328_vm7 = vcmask 517120  }
  0x70   : > { %8527 = vmatpush3.bf16.msra.mxu0 %v1354_v4  ;;  %s9342_s22 = scalar_lea.vmem %s14842_s5, %s8366_s16  ;;  %1641 = vst.msk [vmem:[#allocation2 + $0x60] sm:$0xff] %vm1627_vm3, %v14548_v54  ;;  %1642 = vst.msk [vmem:[#allocation2 + $0x68] sm:$0xff] %vm1627_vm3, %v14548_v54  ;;  %s15230_s14 = sld [smem:[#allocation16_spill]]  ;;  %vm9071_vm8 = vmmov 0   ;;  %vm6801_vm9 = vcmask 1043456   ;;  %vm6788_vm10 = vcmask 195584  }
  0x71   : > { %8528 = vmatprep.subr.bf16.mxu0 %v8830_v5  ;;  %v1237_v6 = vld [vmem:[%s9342_s22] sm:$0xff]  ;;  %v1238_v7 = vld [vmem:[%s9342_s22 + $0x8] sm:$0xff]  ;;  %v1239_v8 = vld [vmem:[%s9342_s22 + $0x10] sm:$0xff]  ;;  %1644 = vst.msk [vmem:[#allocation2 + $0x78] sm:$0xff] %vm1627_vm3, %v14548_v54  ;;  %s15332_s23 = sld [smem:[#allocation19_spill]]  ;;  %vm6908_vm11 = vcmask 588800  }
  0x72   : > { %v1269_v9 = vpack.c.bf16 %v1238_v7, %v1237_v6  ;;  %v1240_v10 = vld [vmem:[%s9342_s22 + $0x18] sm:$0xff]  ;;  %v1241_v11 = vld [vmem:[%s9342_s22 + $0x20] sm:$0xff]  ;;  %v1242_v12 = vld [vmem:[%s9342_s22 + $0x28] sm:$0xff]  ;;  %1645 = vst.msk [vmem:[#allocation2 + $0x80] sm:$0xff] %vm1627_vm3, %v14548_v54  ;;  %s15337_s2 = sld [smem:[#allocation20_spill]]  ;;  %vm6910_vm12 = vcmask 582656  }
  0x73   : > { %v1270_v13 = vpack.c.bf16 %v1240_v10, %v1239_v8  ;;  %v1271_v14 = vpack.c.bf16 %v1242_v12, %v1241_v11  ;;  %v1243_v15 = vld [vmem:[%s9342_s22 + $0x30] sm:$0xff]  ;;  %v1244_v16 = vld [vmem:[%s9342_s22 + $0x38] sm:$0xff]  ;;  %v1245_v17 = vld [vmem:[%s9342_s22 + $0x40] sm:$0xff]  ;;  %1647 = vst.msk [vmem:[#allocation2 + $0x90] sm:$0xff] %vm1627_vm3, %v14548_v54  ;;  %s15447_s16 = sld [smem:[#allocation12_spill]]  ;;  %vm8079_vm13 = vcmask 73728  }
  0x74   : > { %8529 = vmatpush3.bf16.msra.mxu0 %v8830_v5  ;;  %8530 = vmatprep.mubr.msk.bf16.mxu0 %vm1300_vm2, %v1269_v9  ;;  %v1246_v18 = vld [vmem:[%s9342_s22 + $0x48] sm:$0xff]  ;;  %v1272_v19 = vpack.c.bf16 %v1244_v16, %v1243_v15  ;;  %v1247_v21 = vld [vmem:[%s9342_s22 + $0x50] sm:$0xff]  ;;  %v1248_v22 = vld [vmem:[%s9342_s22 + $0x58] sm:$0xff]  ;;  %1648 = vst.msk [vmem:[#allocation2 + $0x98] sm:$0xff] %vm1627_vm3, %v14548_v54  ;;  %s15500_s5 = sld [smem:[#allocation25_spill]] }
  0x75   : > { %v1273_v20 = vpack.c.bf16 %v1246_v18, %v1245_v17  ;;  %v1249_v23 = vld [vmem:[%s9342_s22 + $0x60] sm:$0xff]  ;;  %v1250_v24 = vld [vmem:[%s9342_s22 + $0x68] sm:$0xff]  ;;  %v1274_v25 = vpack.c.bf16 %v1248_v22, %v1247_v21  ;;  %v1251_v27 = vld [vmem:[%s9342_s22 + $0x70] sm:$0xff]  ;;  %1650 = vst.msk [vmem:[#allocation2 + $0xa8] sm:$0xff] %vm1627_vm3, %v14548_v54  ;;  %s15540_s9 = sld [smem:[#allocation42_spill]] }
  0x76   : > { %v1275_v26 = vpack.c.bf16 %v1250_v24, %v1249_v23  ;;  %v1252_v28 = vld [vmem:[%s9342_s22 + $0x78] sm:$0xff]  ;;  %v1253_v29 = vld [vmem:[%s9342_s22 + $0x80] sm:$0xff]  ;;  %v1254_v30 = vld [vmem:[%s9342_s22 + $0x88] sm:$0xff]  ;;  %1651 = vst.msk [vmem:[#allocation2 + $0xb0] sm:$0xff] %vm1627_vm3, %v14548_v54 }
  0x77   : > { %8531 = vmatmul.mubr.msk.bf16.vlgmr.msra.gmra.mxu0 %vm1300_vm2, %v1270_v13  ;;  %v1276_v31 = vpack.c.bf16 %v1252_v28, %v1251_v27  ;;  %v1277_v32 = vpack.c.bf16 %v1254_v30, %v1253_v29  ;;  %v1255_v33 = vld [vmem:[%s9342_s22 + $0x90] sm:$0xff]  ;;  %v1256_v34 = vld [vmem:[%s9342_s22 + $0x98] sm:$0xff]  ;;  %v1257_v35 = vld [vmem:[%s9342_s22 + $0xa0] sm:$0xff]  ;;  %1653 = vst.msk [vmem:[#allocation2 + $0xc0] sm:$0xff] %vm1627_vm3, %v14548_v54 }
  0x78   : > { %8534 = vmatprep.mubr.msk.bf16.mxu0 %vm1300_vm2, %v1271_v14  ;;  %v1258_v36 = vld [vmem:[%s9342_s22 + $0xa8] sm:$0xff]  ;;  %v1278_v37 = vpack.c.bf16 %v1256_v34, %v1255_v33  ;;  %v1259_v39 = vld [vmem:[%s9342_s22 + $0xb0] sm:$0xff]  ;;  %v1260_v40 = vld [vmem:[%s9342_s22 + $0xb8] sm:$0xff]  ;;  %1654 = vst.msk [vmem:[#allocation2 + $0xc8] sm:$0xff] %vm1627_vm3, %v14548_v54 }
  0x79   : > { %v1279_v38 = vpack.c.bf16 %v1258_v36, %v1257_v35  ;;  %v1261_v41 = vld [vmem:[%s9342_s22 + $0xc0] sm:$0xff]  ;;  %v1262_v42 = vld [vmem:[%s9342_s22 + $0xc8] sm:$0xff]  ;;  %v1280_v43 = vpack.c.bf16 %v1260_v40, %v1259_v39  ;;  %v1263_v45 = vld [vmem:[%s9342_s22 + $0xd0] sm:$0xff]  ;;  %1656 = vst.msk [vmem:[#allocation2 + $0xd8] sm:$0xff] %vm1627_vm3, %v14548_v54 }
  0x7a   : > { %v1281_v44 = vpack.c.bf16 %v1262_v42, %v1261_v41  ;;  %v1264_v46 = vld [vmem:[%s9342_s22 + $0xd8] sm:$0xff]  ;;  %v1265_v47 = vld [vmem:[%s9342_s22 + $0xe0] sm:$0xff]  ;;  %v1266_v48 = vld [vmem:[%s9342_s22 + $0xe8] sm:$0xff]  ;;  %1657 = vst.msk [vmem:[#allocation2 + $0xe0] sm:$0xff] %vm1627_vm3, %v14548_v54 }
  0x7b   : > { %v1282_v49 = vpack.c.bf16 %v1264_v46, %v1263_v45  ;;  %v1283_v50 = vpack.c.bf16 %v1266_v48, %v1265_v47  ;;  %v1267_v51 = vld [vmem:[%s9342_s22 + $0xf0] sm:$0xff]  ;;  %v1268_v52 = vld [vmem:[%s9342_s22 + $0xf8] sm:$0xff]  ;;  %1659 = vst.msk [vmem:[#allocation2 + $0xf0] sm:$0xff] %vm1627_vm3, %v14548_v54  ;;  %1660 = vst.msk [vmem:[#allocation2 + $0xf8] sm:$0xff] %vm1627_vm3, %v14548_v54  ;;  %s15497_s22 = sld [smem:[#allocation21_spill]] }
  0x7c   : > { %v1284_v53 = vpack.c.bf16 %v1268_v52, %v1267_v51  ;;  %1662 = vst.msk [vmem:[#allocation2 + $0x108] sm:$0xff] %vm1627_vm3, %v14548_v54  ;;  %1663 = vst.msk [vmem:[#allocation2 + $0x110] sm:$0xff] %vm1627_vm3, %v14548_v54  ;;  %v1731_v56 = vld [vmem:[#allocation2] sm:$0xff]  ;;  %v1732_v57 = vld [vmem:[#allocation2 + $0x8] sm:$0xff] }
  0x7d   : > { %1665 = vst.msk [vmem:[#allocation2 + $0x120] sm:$0xff] %vm1627_vm3, %v14548_v54  ;;  %1666 = vst.msk [vmem:[#allocation2 + $0x128] sm:$0xff] %vm1627_vm3, %v14548_v54  ;;  %v1859_v60 = vmul.f32 %v9501_v55, %v1731_v56  ;;  %v1860_v61 = vmul.f32 %v9501_v55, %v1732_v57  ;;  %v2105_v6 = vmul.f32 %v9509_v62, %v1731_v56  ;;  %v9523_v10 = vld [vmem:[%s9106_s25] ss:$0 sm:$0xff]  ;;  %v9571_v45 = vld [vmem:[%s9106_s25 + $0x9] ss:$0 sm:$0xff] }
  0x7e   : > { %1668 = vst.msk [vmem:[#allocation2 + $0x138] sm:$0xff] %vm1627_vm3, %v14548_v54  ;;  %1669 = vst.msk [vmem:[#allocation2 + $0x140] sm:$0xff] %vm1627_vm3, %v14548_v54  ;;  %v2106_v7 = vmul.f32 %v9509_v62, %v1732_v57  ;;  %v1790_v18 = vmul.f32 %v9523_v10, %v1731_v56  ;;  %v8831_v41 = vld [vmem:[%s14846_s8] sm:$0xff]   ;;  %v9574_v46 = vld [vmem:[%s9106_s25 + $0x8] ss:$0 sm:$0xff]  ;;  %s15502_s8 = sld [smem:[#allocation24_spill]] }
  0x7f   : > { %8535 = vmatmul.mubr.msk.bf16.gmra.mxu0 %vm1300_vm2, %v1272_v19  ;;  %1671 = vst.msk [vmem:[#allocation2 + $0x150] sm:$0xff] %vm1627_vm3, %v14548_v54  ;;  %1672 = vst.msk [vmem:[#allocation2 + $0x158] sm:$0xff] %vm1627_vm3, %v14548_v54  ;;  %v1956_v4 = vrot.slane %v1859_v60, 1  ;;  %v1957_v5 = vrot.slane %v1860_v61, 1  ;;  %v9577_v48 = vld [vmem:[%s9106_s25 + $0xa] ss:$0 sm:$0xff]  ;;  %8562 = vmatprep.subr.bf16.mxu1 %v8831_v41 }
  0x80   : > { %8538 = vmatprep.mubr.msk.bf16.mxu0 %vm1300_vm2, %v1273_v20  ;;  %1674 = vst.msk [vmem:[#allocation2 + $0x168] sm:$0xff] %vm1627_vm3, %v14548_v54  ;;  %1675 = vst.msk [vmem:[#allocation2 + $0x170] sm:$0xff] %vm1627_vm3, %v14548_v54  ;;  %v2201_v20 = vrot.slane %v2105_v6, 2  ;;  %v2202_v21 = vrot.slane %v2106_v7, 2  ;;  %8563 = vmatpush3.bf16.msra.mxu1 %v8831_v41  ;;  %v9614_v6 = vld [vmem:[%s9106_s25 + $0x5] ss:$0 sm:$0xff] }
  0x81   : > { %1677 = vst.msk [vmem:[#allocation2 + $0x180] sm:$0xff] %vm1627_vm3, %v14548_v54  ;;  %1678 = vst.msk [vmem:[#allocation2 + $0x188] sm:$0xff] %vm1627_vm3, %v14548_v54  ;;  %v1958_v19 = vsel %vm1955_vm5, %v1956_v4, %v1957_v5 }
  0x82   : > { %1680 = vst.msk [vmem:[#allocation2 + $0x198] sm:$0xff] %vm1627_vm3, %v14548_v54  ;;  %1681 = vst.msk [vmem:[#allocation2 + $0x1a0] sm:$0xff] %vm1627_vm3, %v14548_v54  ;;  %v2068_v33 = vadd.f32 %v1958_v19, %v1790_v18  ;;  %v2203_v34 = vsel %vm1350_vm1, %v2201_v20, %v2202_v21 }
  0x83   : > { %1637 = vst.msk [vmem:[#allocation2 + $0x40] sm:$0x3] %vm1630_vm4, %v14548_v54  ;;  %1631 = vst.msk [vmem:[#allocation2 + $0x10] sm:$0x3] %vm1630_vm4, %v14548_v54 }
  0x84   : > { %1634 = vst.msk [vmem:[#allocation2 + $0x28] sm:$0x3] %vm1630_vm4, %v14548_v54  ;;  %1640 = vst.msk [vmem:[#allocation2 + $0x58] sm:$0x3] %vm1630_vm4, %v14548_v54 }
  0x85   : > { %1643 = vst.msk [vmem:[#allocation2 + $0x70] sm:$0x3] %vm1630_vm4, %v14548_v54  ;;  %1646 = vst.msk [vmem:[#allocation2 + $0x88] sm:$0x3] %vm1630_vm4, %v14548_v54 }
  0x86   : > { %1649 = vst.msk [vmem:[#allocation2 + $0xa0] sm:$0x3] %vm1630_vm4, %v14548_v54  ;;  %1652 = vst.msk [vmem:[#allocation2 + $0xb8] sm:$0x3] %vm1630_vm4, %v14548_v54 }
  0x87   : > { %8539 = vmatmul.mubr.msk.bf16.gmra.mxu0 %vm1300_vm2, %v1274_v25  ;;  %1655 = vst.msk [vmem:[#allocation2 + $0xd0] sm:$0x3] %vm1630_vm4, %v14548_v54  ;;  %1658 = vst.msk [vmem:[#allocation2 + $0xe8] sm:$0x3] %vm1630_vm4, %v14548_v54  ;;  %v1791_v25 = vmul.f32 %v9523_v10, %v1732_v57 }
  0x88   : > { %8542 = vmatprep.mubr.msk.bf16.mxu0 %vm1300_vm2, %v1275_v26  ;;  %1661 = vst.msk [vmem:[#allocation2 + $0x100] sm:$0x3] %vm1630_vm4, %v14548_v54  ;;  %1664 = vst.msk [vmem:[#allocation2 + $0x118] sm:$0x3] %vm1630_vm4, %v14548_v54 }
  0x89   : > { %1667 = vst.msk [vmem:[#allocation2 + $0x130] sm:$0x3] %vm1630_vm4, %v14548_v54  ;;  %1670 = vst.msk [vmem:[#allocation2 + $0x148] sm:$0x3] %vm1630_vm4, %v14548_v54 }
  0x8a   : > { %1673 = vst.msk [vmem:[#allocation2 + $0x160] sm:$0x3] %vm1630_vm4, %v14548_v54  ;;  %1676 = vst.msk [vmem:[#allocation2 + $0x178] sm:$0x3] %vm1630_vm4, %v14548_v54  ;;  %v1733_v58 = vld [vmem:[#allocation2 + $0x10] sm:$0x3] }
  0x8b   : > { %1679 = vst.msk [vmem:[#allocation2 + $0x190] sm:$0x3] %vm1630_vm4, %v14548_v54  ;;  %1682 = vst.msk [vmem:[#allocation2 + $0x1a8] sm:$0x3] %vm1630_vm4, %v14548_v54  ;;  %v1861_v1 = vmul.f32 %v9501_v55, %v1733_v58  ;;  %v2107_v13 = vmul.f32 %v9509_v62, %v1733_v58 }
  0x8d   : > { %v1959_v12 = vrot.slane %v1861_v1, 1  ;;  %v2204_v28 = vrot.slane %v2107_v13, 2 }
  0x8f   : > { %8543 = vmatmul.mubr.msk.bf16.gmra.mxu0 %vm1300_vm2, %v1276_v31  ;;  %v1960_v27 = vsel %vm1955_vm5, %v1957_v5, %v1959_v12  ;;  %v2205_v40 = vsel %vm1350_vm1, %v2202_v21, %v2204_v28  ;;  %v9611_v5 = vld [vmem:[%s9106_s25 + $0x4] ss:$0 sm:$0xff] }
  0x90   : > { %8546 = vmatprep.mubr.msk.bf16.mxu0 %vm1300_vm2, %v1277_v32 }
  0x97   : > { %8547 = vmatmul.mubr.msk.bf16.gmra.mxu0 %vm1300_vm2, %v1278_v37 }
  0x98   : > { %8550 = vmatprep.mubr.msk.bf16.mxu0 %vm1300_vm2, %v1279_v38  ;;  %v2069_v38 = vadd.f32 %v1960_v27, %v1791_v25 }
  0x9a   : > { %v9591_v56 = vadd.f32 %v2205_v40, %v2069_v38 }
  0x9f   : > { %8551 = vmatmul.mubr.msk.bf16.gmra.mxu0 %vm1300_vm2, %v1280_v43 }
  0xa0   : > { %8554 = vmatprep.mubr.msk.bf16.mxu0 %vm1300_vm2, %v1281_v44 }
  0xa7   : > { %8555 = vmatmul.mubr.msk.bf16.gmra.mxu0 %vm1300_vm2, %v1282_v49 }
  0xa8   : > { %8558 = vmatprep.mubr.msk.bf16.mxu0 %vm1300_vm2, %v1283_v50  ;;  %v9579_v50 = vadd.f32 %v2203_v34, %v2068_v33 }
  0xaf   : > { %8559 = vmatmul.mubr.msk.bf16.gmra.mxu0 %vm1300_vm2, %v1284_v53 }
 0x137   : > { %v8532_v63 = vpop.f32.mrf.mxu0 }
 0x138   : > { %v1526_v2 = vmul.f32 %v8532_v63, %v9504_v59 }
 0x139   : > { %v1390_v3 = vpop.f32.mrf.mxu0 }
 0x13a   : > { %v9519_v8 = vadd.f32 %v9512_v0, %v1526_v2  ;;  %v1524_v9 = vmul.f32 %v9504_v59, %v1390_v3 }
 0x13b   : > { %v8533_v11 = vpop.f32.mrf.mxu0 }
 0x13c   : > { %14843 = vst [vmem:[#allocation43_spill] sm:$0xff] %v9519_v8  ;;  %v14552_v14 = vmax.f32 %v9519_v8, 0.0  ;;  %v9528_v15 = vadd.f32 %v9512_v0, %v1524_v9  ;;  %v1527_v16 = vmul.f32 %v8533_v11, %v9504_v59 }
 0x13d   : > { %v1393_v17 = vpop.f32.mrf.mxu0 }
 0x13e   : > { %14844 = vst [vmem:[#allocation44_spill] sm:$0xff] %v9528_v15  ;;  %1687 = vst.msk [vmem:[#allocation2 + $0x31] sm:$0xff] %vm1627_vm3, %v14552_v14  ;;  %v14554_v22 = vmax.f32 %v9528_v15, 0.0  ;;  %v9538_v23 = vadd.f32 %v9512_v0, %v1527_v16  ;;  %v1525_v24 = vmul.f32 %v9504_v59, %v1393_v17  ;;  %v9631_v16 = vld [vmem:[%s9106_s25 + $0x6] ss:$0 sm:$0xff] }
 0x13f   : > { %v8536_v26 = vpop.f32.mrf.mxu0 }
 0x140   : > { %14845 = vst [vmem:[#allocation45_spill] sm:$0xff] %v9538_v23  ;;  %1684 = vst.msk [vmem:[#allocation2 + $0x19] sm:$0xff] %vm1627_vm3, %v14554_v22  ;;  %v14555_v29 = vmax.f32 %v9538_v23, 0.0  ;;  %v9548_v30 = vadd.f32 %v9512_v0, %v1525_v24  ;;  %v1530_v31 = vmul.f32 %v8536_v26, %v9504_v59 }
 0x141   : > { %v1406_v32 = vpop.f32.mrf.mxu0 }
 0x142   : > { %14847 = vst [vmem:[#allocation46_spill] sm:$0xff] %v9548_v30  ;;  %1688 = vst.msk [vmem:[#allocation2 + $0x39] sm:$0xff] %vm1627_vm3, %v14555_v29  ;;  %v14553_v35 = vmax.f32 %v9548_v30, 0.0  ;;  %v9557_v36 = vadd.f32 %v9512_v0, %v1530_v31  ;;  %v1528_v37 = vmul.f32 %v9504_v59, %v1406_v32 }
 0x143   : > { %v8537_v39 = vpop.f32.mrf.mxu0 }
 0x144   : > { %14848 = vst [vmem:[#allocation47_spill] sm:$0xff] %v9557_v36  ;;  %1685 = vst.msk [vmem:[#allocation2 + $0x21] sm:$0xff] %vm1627_vm3, %v14553_v35  ;;  %v14550_v42 = vmax.f32 %v9557_v36, 0.0  ;;  %v9567_v43 = vadd.f32 %v9512_v0, %v1528_v37  ;;  %v1531_v44 = vmul.f32 %v8537_v39, %v9504_v59 }
 0x145   : > { %v1737_v47 = vld [vmem:[#allocation2 + $0x30] sm:$0xff]  ;;  %v1409_v49 = vpop.f32.mrf.mxu0 }
 0x146   : > { %14849 = vst [vmem:[#allocation48_spill] sm:$0xff] %v9567_v43  ;;  %v9582_v51 = vmul.f32 %v9501_v55, %v1737_v47  ;;  %v9585_v52 = vmul.f32 %v9509_v62, %v1737_v47  ;;  %1693 = vst.msk [vmem:[#allocation2 + $0x61] sm:$0xff] %vm1627_vm3, %v14550_v42  ;;  %v14551_v53 = vmax.f32 %v9567_v43, 0.0  ;;  %v9594_v58 = vadd.f32 %v9512_v0, %v1531_v44 }
 0x147   : > { %v1734_v57 = vld [vmem:[#allocation2 + $0x18] sm:$0xff]  ;;  %v9597_v60 = vmul.f32 %v9504_v59, %v1409_v49  ;;  %v9599_v61 = vpop.f32.mrf.mxu0  ;;  %v9602_v63 = vmul.f32 %v9574_v46, %v1737_v47  ;;  %v9605_v1 = vmul.f32 %v9571_v45, %v1737_v47  ;;  %v9620_v7 = vmul.f32 %v9577_v48, %v1737_v47 }
 0x148   : > { %14850 = vst [vmem:[#allocation49_spill] sm:$0xff] %v9585_v52  ;;  %14851 = vst [vmem:[#allocation50_spill] sm:$0xff] %v9594_v58  ;;  %v1862_v4 = vmul.f32 %v9501_v55, %v1734_v57  ;;  %v1792_v9 = vmul.f32 %v9523_v10, %v1734_v57  ;;  %v2108_v11 = vmul.f32 %v9509_v62, %v1734_v57 }
 0x149   : > { %1690 = vst.msk [vmem:[#allocation2 + $0x49] sm:$0xff] %vm1627_vm3, %v14551_v53  ;;  %v9625_v12 = vmul.f32 %v9611_v5, %v1734_v57  ;;  %v9628_v13 = vmul.f32 %v9614_v6, %v1734_v57  ;;  %v9633_v17 = vld [vmem:[#allocation2 + $0x38] sm:$0xff]  ;;  %v9635_v18 = vld [vmem:[#allocation2 + $0x40] sm:$0x3]  ;;  %v9637_v19 = vpop.f32.mrf.mxu0  ;;  %v9640_v21 = vmul.f32 %v9631_v16, %v1734_v57 }
 0x14a   : > { %v1961_v20 = vrot.slane %v1862_v4, 1  ;;  %v9644_v24 = vmul.f32 %v9501_v55, %v9633_v17  ;;  %v1867_v25 = vmul.f32 %v9501_v55, %v9635_v18  ;;  %v2206_v26 = vrot.slane %v2108_v11, 2 }
 0x14b   : > { %v1795_v27 = vmul.f32 %v9523_v10, %v9633_v17  ;;  %v9652_v28 = vmul.f32 %v9509_v62, %v9633_v17  ;;  %v2113_v31 = vmul.f32 %v9509_v62, %v9635_v18  ;;  %v1735_v32 = vld [vmem:[#allocation2 + $0x20] sm:$0xff]  ;;  %v1736_v33 = vld [vmem:[#allocation2 + $0x28] sm:$0x3]  ;;  %v8541_v34 = vpop.f32.mrf.mxu0  ;;  %v9659_v39 = vmul.f32 %v9614_v6, %v9635_v18 }
 0x14c   : > { %v14556_v37 = vrot.slane %v9644_v24, 1  ;;  %v1969_v38 = vrot.slane %v1867_v25, 1  ;;  %v9663_v40 = vmul.f32 %v9631_v16, %v9635_v18  ;;  %v1863_v49 = vmul.f32 %v9501_v55, %v1735_v32 }
 0x14d   : > { %14852 = vst [vmem:[#allocation51_spill] sm:$0xff] %v9652_v28  ;;  %v14557_v44 = vrot.slane %v9652_v28, 2  ;;  %v2214_v47 = vrot.slane %v2113_v31, 2  ;;  %v1425_v57 = vpop.f32.mrf.mxu0  ;;  %v1793_v25 = vmul.f32 %v9523_v10, %v1735_v32  ;;  %v1864_v54 = vmul.f32 %v9501_v55, %v1736_v33 }
 0x14e   : > { %v1970_v4 = vsel %vm1955_vm5, %v14556_v37, %v1969_v38  ;;  %v1962_v14 = vrot.slane %v1863_v49, 1  ;;  %v2109_v35 = vmul.f32 %v9509_v62, %v1735_v32  ;;  %v2110_v38 = vmul.f32 %v9509_v62, %v1736_v33 }
 0x14f   : > { %v2073_v42 = vadd.f32 %v1970_v4, %v1795_v27  ;;  %v8544_v31 = vpop.f32.mrf.mxu0  ;;  %v2215_v22 = vsel %vm1350_vm1, %v14557_v44, %v2214_v47  ;;  %v1964_v29 = vrot.slane %v1864_v54, 1  ;;  %v9681_v3 = vmul.f32 %v9611_v5, %v1735_v32  ;;  %v1743_v44 = vld [vmem:[#allocation2 + $0x60] sm:$0xff] }
 0x150   : > { %v1963_v2 = vsel %vm1955_vm5, %v1961_v20, %v1962_v14  ;;  %v2207_v37 = vrot.slane %v2109_v35, 2  ;;  %v2354_v27 = vmul.f32 %v9611_v5, %v9633_v17  ;;  %v9687_v49 = vmul.f32 %v9614_v6, %v1735_v32  ;;  %v9693_v41 = vld [vmem:[#allocation2 + $0x48] sm:$0xff] }
 0x151   : > { %v1438_v4 = vpop.f32.mrf.mxu0  ;;  %v1965_v53 = vsel %vm1955_vm5, %v1962_v14, %v1964_v29  ;;  %v2070_v11 = vadd.f32 %v1963_v2, %v1792_v9  ;;  %v2209_v47 = vrot.slane %v2110_v38, 2  ;;  %v9691_v54 = vmul.f32 %v9614_v6, %v1736_v33 }
 0x152   : > { %v9695_v36 = vadd.f32 %v2215_v22, %v2073_v42  ;;  %v2071_v35 = vadd.f32 %v1965_v53, %v1793_v25  ;;  %v2208_v20 = vsel %vm1350_vm1, %v2206_v26, %v2207_v37  ;;  %v9703_v14 = vmul.f32 %v9631_v16, %v1735_v32 }
 0x153   : > { %v8545_v8 = vpop.f32.mrf.mxu0  ;;  %v2210_v30 = vsel %vm1350_vm1, %v2207_v37, %v2209_v47  ;;  %v9700_v15 = vadd.f32 %v2208_v20, %v2070_v11  ;;  %v9706_v29 = vmul.f32 %v9631_v16, %v1736_v33  ;;  %v9709_v22 = vmul.f32 %v9501_v55, %v1743_v44 }
 0x154   : > { %14853 = vst [vmem:[#allocation52_spill] sm:$0xff] %v9695_v36  ;;  %v2316_v2 = vadd.f32 %v2210_v30, %v2071_v35  ;;  %v9712_v42 = vmul.f32 %v9509_v62, %v1743_v44  ;;  %v9716_v53 = vmul.f32 %v9501_v55, %v9693_v41  ;;  %v14563_v37 = vmax.f32 %v9594_v58, 0.0 }
 0x155   : > { %14854 = vst [vmem:[#allocation53_spill] sm:$0xff] %v9709_v22  ;;  %v1441_v9 = vpop.f32.mrf.mxu0  ;;  %v9723_v30 = vadd.f32 %v9512_v0, %v9597_v60  ;;  %v9731_v25 = vmul.f32 %v9509_v62, %v9693_v41  ;;  %v1532_v35 = vmul.f32 %v9504_v59, %v9637_v19  ;;  %v1535_v20 = vmul.f32 %v8541_v34, %v9504_v59 }
 0x156   : > { %14855 = vst [vmem:[#allocation54_spill] sm:$0xff] %v9712_v42  ;;  %14856 = vst [vmem:[#allocation55_spill] sm:$0xff] %v9716_v53  ;;  %v9725_v33 = vadd.f32 %v2354_v27, %v2316_v2  ;;  %v1534_v27 = vmul.f32 %v9599_v61, %v9504_v59  ;;  %v1533_v2 = vmul.f32 %v9504_v59, %v1425_v57 }
 0x157   : > { %14857 = vst [vmem:[#allocation56_spill] sm:$0xff] %v9723_v30  ;;  %14858 = vst [vmem:[#allocation57_spill] sm:$0xff] %v9731_v25  ;;  %v8548_v38 = vpop.f32.mrf.mxu0  ;;  %v14564_v60 = vmax.f32 %v9723_v30, 0.0  ;;  %v1538_v11 = vmul.f32 %v8544_v31, %v9504_v59  ;;  %v1536_v44 = vmul.f32 %v9504_v59, %v1438_v4  ;;  %v9753_v61 = vadd.f32 %v9512_v0, %v1532_v35 }
 0x158   : > { %1694 = vst.msk [vmem:[#allocation2 + $0x69] sm:$0xff] %vm1627_vm3, %v14563_v37  ;;  %v9750_v37 = vadd.f32 %v9512_v0, %v1534_v27  ;;  %v1539_v19 = vmul.f32 %v8545_v8, %v9504_v59  ;;  %v1537_v34 = vmul.f32 %v9504_v59, %v1441_v9  ;;  %v9758_v57 = vadd.f32 %v9512_v0, %v1535_v20 }
 0x159   : > { %v1454_v47 = vpop.f32.mrf.mxu0  ;;  %1691 = vst.msk [vmem:[#allocation2 + $0x51] sm:$0xff] %vm1627_vm3, %v14564_v60  ;;  %14860 = vst [vmem:[#allocation59_spill] sm:$0xff] %v9753_v61  ;;  %v9761_v31 = vadd.f32 %v9512_v0, %v1533_v2  ;;  %v9764_v4 = vadd.f32 %v9512_v0, %v1538_v11  ;;  %v9767_v60 = vadd.f32 %v9512_v0, %v1536_v44  ;;  %v14566_v32 = vmax.f32 %v9753_v61, 0.0 }
 0x15a   : > { %14859 = vst [vmem:[#allocation58_spill] sm:$0xff] %v9750_v37  ;;  %14861 = vst [vmem:[#allocation60_spill] sm:$0xff] %v9758_v57  ;;  %v14565_v35 = vmax.f32 %v9750_v37, 0.0  ;;  %v9772_v8 = vadd.f32 %v9512_v0, %v1539_v19  ;;  %v9775_v9 = vadd.f32 %v9512_v0, %v1537_v34  ;;  %v14567_v20 = vmax.f32 %v9758_v57, 0.0 }
 0x15b   : > { %14862 = vst [vmem:[#allocation61_spill] sm:$0xff] %v9761_v31  ;;  %14863 = vst [vmem:[#allocation62_spill] sm:$0xff] %v9764_v4  ;;  %v8549_v27 = vpop.f32.mrf.mxu0  ;;  %v9791_v2 = vmul.f32 %v8548_v38, %v9504_v59  ;;  %v14867_v43 = vmax.f32 %v9761_v31, 0.0  ;;  %v9806_v38 = vmul.f32 %v9504_v59, %v1454_v47 }
 0x15c   : > { %14864 = vst [vmem:[#allocation63_spill] sm:$0xff] %v9767_v60  ;;  %14865 = vst [vmem:[#allocation64_spill] sm:$0xff] %v9772_v8  ;;  %v9809_v34 = vmul.f32 %v8549_v27, %v9504_v59  ;;  %v14872_v47 = vmax.f32 %v9772_v8, 0.0  ;;  %v14873_v27 = vmax.f32 %v9775_v9, 0.0 }
 0x15d   : > { %14866 = vst [vmem:[#allocation65_spill] sm:$0xff] %v9775_v9  ;;  %v1457_v26 = vpop.f32.mrf.mxu0  ;;  %1699 = vst.msk [vmem:[#allocation2 + $0x91] sm:$0xff] %vm1627_vm3, %v14565_v35  ;;  %v14868_v35 = vmax.f32 %v9764_v4, 0.0 }
 0x15e   : > { %1696 = vst.msk [vmem:[#allocation2 + $0x79] sm:$0xff] %vm1627_vm3, %v14566_v32  ;;  %1700 = vst.msk [vmem:[#allocation2 + $0x99] sm:$0xff] %vm1627_vm3, %v14567_v20  ;;  %v14869_v32 = vmax.f32 %v9767_v60, 0.0  ;;  %v9812_v20 = vmul.f32 %v9504_v59, %v1457_v26 }
 0x15f   : > { %v1744_v11 = vld [vmem:[#allocation2 + $0x68] sm:$0xff]  ;;  %v1745_v44 = vld [vmem:[#allocation2 + $0x70] sm:$0x3]  ;;  %1697 = vst.msk [vmem:[#allocation2 + $0x81] sm:$0xff] %vm1627_vm3, %v14867_v43  ;;  %1705 = vst.msk [vmem:[#allocation2 + $0xc1] sm:$0xff] %vm1627_vm3, %v14868_v35  ;;  %v9816_v43 = vadd.f32 %v9625_v12, %v9579_v50  ;;  %v9833_v50 = vadd.f32 %v9681_v3, %v9591_v56  ;;  %v9918_v53 = vpop.f32.mrf.mxu0 }
 0x160   : > { %1702 = vst.msk [vmem:[#allocation2 + $0xa9] sm:$0xff] %vm1627_vm3, %v14869_v32  ;;  %v9819_v19 = vmul.f32 %v9501_v55, %v1744_v11  ;;  %v1873_v35 = vmul.f32 %v9501_v55, %v1745_v44  ;;  %v9823_v32 = vmul.f32 %v9509_v62, %v1744_v11  ;;  %1706 = vst.msk [vmem:[#allocation2 + $0xc9] sm:$0xff] %vm1627_vm3, %v14872_v47  ;;  %v9845_v47 = vld [vmem:[#allocation2 + $0x50] sm:$0xff]  ;;  %v1742_v9 = vld [vmem:[#allocation2 + $0x58] sm:$0x3] }
 0x161   : > { %1703 = vst.msk [vmem:[#allocation2 + $0xb1] sm:$0xff] %vm1627_vm3, %v14873_v27  ;;  %v2119_v12 = vmul.f32 %v9509_v62, %v1745_v44  ;;  %v9837_v26 = vmul.f32 %v9614_v6, %v1745_v44  ;;  %v9840_v4 = vmul.f32 %v9631_v16, %v1745_v44  ;;  %v9843_v60 = vmul.f32 %v9571_v45, %v1745_v44 }
 0x162   : > { %14870 = vst [vmem:[#allocation66_spill] sm:$0xff] %v9819_v19  ;;  %14871 = vst [vmem:[#allocation67_spill] sm:$0xff] %v9823_v32  ;;  %v1799_v27 = vmul.f32 %v9523_v10, %v1744_v11  ;;  %v14578_v8 = vrot.slane %v9819_v19, 1  ;;  %v1979_v56 = vrot.slane %v1873_v35, 1  ;;  %v9853_v57 = vmul.f32 %v9577_v48, %v1745_v44 }
 0x163   : > { %14874 = vst [vmem:[#allocation68_spill] sm:$0xff] %v9837_v26  ;;  %14875 = vst [vmem:[#allocation69_spill] sm:$0xff] %v9840_v4  ;;  %v2224_v37 = vrot.slane %v2119_v12, 2  ;;  %v9861_v11 = vmul.f32 %v9501_v55, %v9845_v47  ;;  %v1870_v35 = vmul.f32 %v9501_v55, %v1742_v9  ;;  %v1797_v31 = vmul.f32 %v9523_v10, %v9845_v47 }
 0x164   : > { %14876 = vst [vmem:[#allocation70_spill] sm:$0xff] %v9843_v60  ;;  %14877 = vst [vmem:[#allocation71_spill] sm:$0xff] %v9853_v57  ;;  %v1980_v30 = vsel %vm1955_vm5, %v14578_v8, %v1979_v56  ;;  %v9868_v44 = vmul.f32 %v9509_v62, %v9845_v47  ;;  %v2116_v61 = vmul.f32 %v9509_v62, %v1742_v9  ;;  %v1749_v23 = vld [vmem:[#allocation2 + $0x90] sm:$0xff] }
 0x165   : > { %14878 = vst [vmem:[#allocation72_spill] sm:$0xff] %v9861_v11  ;;  %v2077_v12 = vadd.f32 %v1980_v30, %v1799_v27  ;;  %v1974_v8 = vrot.slane %v1870_v35, 1  ;;  %v9873_v58 = vmul.f32 %v9614_v6, %v1742_v9  ;;  %v9876_v3 = vmul.f32 %v9631_v16, %v1742_v9  ;;  %v1746_v4 = vld [vmem:[#allocation2 + $0x78] sm:$0xff]  ;;  %v1751_v60 = vld [vmem:[#allocation2 + $0xa0] sm:$0x3] }
 0x166   : > { %14879 = vst [vmem:[#allocation73_spill] sm:$0xff] %v9868_v44  ;;  %v14882_v30 = vrot.slane %v9823_v32, 2  ;;  %v14589_v42 = vrot.slane %v9868_v44, 2  ;;  %v2219_v22 = vrot.slane %v2116_v61, 2  ;;  %v9883_v19 = vmul.f32 %v9571_v45, %v1742_v9  ;;  %v1750_v32 = vld [vmem:[#allocation2 + $0x98] sm:$0xff]  ;;  %v1747_v44 = vld [vmem:[#allocation2 + $0x80] sm:$0xff] }
 0x167   : > { %14880 = vst [vmem:[#allocation74_spill] sm:$0xff] %v9873_v58  ;;  %14881 = vst [vmem:[#allocation75_spill] sm:$0xff] %v9876_v3  ;;  %v14884_v35 = vrot.slane %v9861_v11, 1  ;;  %v9934_v25 = vmul.f32 %v9631_v16, %v1751_v60  ;;  %v9946_v11 = vpop.f32.mrf.mxu0  ;;  %v1801_v57 = vmul.f32 %v9523_v10, %v1747_v44  ;;  %v9951_v3 = vmul.f32 %v9501_v55, %v1747_v44  ;;  %v1756_v36 = vld [vmem:[#allocation2 + $0xc8] sm:$0xff] }
 0x168   : > { %v2225_v27 = vsel %vm1350_vm1, %v14882_v30, %v2224_v37  ;;  %v2220_v61 = vsel %vm1350_vm1, %v14589_v42, %v2219_v22  ;;  %v9896_v30 = vmul.f32 %v9577_v48, %v1742_v9  ;;  %v1803_v22 = vmul.f32 %v9523_v10, %v1750_v32 }
 0x169   : > { %v9885_v56 = vadd.f32 %v2225_v27, %v2077_v12  ;;  %v1975_v26 = vsel %vm1955_vm5, %v14884_v35, %v1974_v8  ;;  %v9899_v12 = vmul.f32 %v9501_v55, %v1749_v23  ;;  %v9903_v8 = vmul.f32 %v9509_v62, %v1749_v23  ;;  %14893 = vst [vmem:[#allocation85_spill] sm:$0xff] %v9934_v25  ;;  %v9973_v58 = vpop.f32.mrf.mxu0 }
 0x16a   : > { %v2075_v37 = vadd.f32 %v1975_v26, %v1797_v31  ;;  %v9906_v35 = vmul.f32 %v9501_v55, %v1746_v4  ;;  %v9909_v31 = vmul.f32 %v9509_v62, %v1746_v4  ;;  %v9915_v9 = vmul.f32 %v9501_v55, %v1750_v32  ;;  %14896 = vst [vmem:[#allocation88_spill] sm:$0xff] %v9951_v3 }
 0x16b   : > { %14883 = vst [vmem:[#allocation76_spill] sm:$0xff] %v9885_v56  ;;  %14885 = vst [vmem:[#allocation77_spill] sm:$0xff] %v9899_v12  ;;  %v1879_v42 = vmul.f32 %v9501_v55, %v1751_v60  ;;  %v9924_v4 = vmul.f32 %v9509_v62, %v1750_v32  ;;  %v2125_v56 = vmul.f32 %v9509_v62, %v1751_v60  ;;  %v1748_v32 = vld [vmem:[#allocation2 + $0x88] sm:$0x3] }
 0x16c   : > { %14886 = vst [vmem:[#allocation78_spill] sm:$0xff] %v9903_v8  ;;  %14887 = vst [vmem:[#allocation79_spill] sm:$0xff] %v9906_v35  ;;  %v9911_v26 = vadd.f32 %v2220_v61, %v2075_v37  ;;  %v14598_v37 = vrot.slane %v9915_v9, 1  ;;  %v9937_v27 = vmul.f32 %v9571_v45, %v1751_v60  ;;  %v9944_v35 = vmul.f32 %v9577_v48, %v1751_v60 }
 0x16d   : > { %14888 = vst [vmem:[#allocation80_spill] sm:$0xff] %v9909_v31  ;;  %14890 = vst [vmem:[#allocation82_spill] sm:$0xff] %v9915_v9  ;;  %v1989_v61 = vrot.slane %v1879_v42, 1  ;;  %v2234_v8 = vrot.slane %v2125_v56, 2  ;;  %v9956_v56 = vmul.f32 %v9509_v62, %v1747_v44  ;;  %v14898_v12 = vrot.slane %v9924_v4, 2 }
 0x16e   : > { %14889 = vst [vmem:[#allocation81_spill] sm:$0xff] %v9911_v26  ;;  %14891 = vst [vmem:[#allocation83_spill] sm:$0xff] %v9924_v4  ;;  %v9929_v26 = vmul.f32 %v9614_v6, %v1751_v60  ;;  %v2122_v60 = vmul.f32 %v9509_v62, %v1748_v32  ;;  %v9964_v31 = vmul.f32 %v9614_v6, %v1748_v32 }
 0x16f   : > { %14894 = vst [vmem:[#allocation86_spill] sm:$0xff] %v9937_v27  ;;  %v1990_v42 = vsel %vm1955_vm5, %v14598_v37, %v1989_v61  ;;  %14895 = vst [vmem:[#allocation87_spill] sm:$0xff] %v9944_v35  ;;  %v1876_v61 = vmul.f32 %v9501_v55, %v1748_v32  ;;  %v1755_v37 = vld [vmem:[#allocation2 + $0xc0] sm:$0xff]  ;;  %v9967_v25 = vmul.f32 %v9631_v16, %v1748_v32  ;;  %v1752_v35 = vld [vmem:[#allocation2 + $0xa8] sm:$0xff]  ;;  %v14905_v52 = vrot.slane %v9956_v56, 2 }
 0x170   : > { %14892 = vst [vmem:[#allocation84_spill] sm:$0xff] %v9929_v26  ;;  %v2081_v23 = vadd.f32 %v1990_v42, %v1803_v22  ;;  %14897 = vst [vmem:[#allocation89_spill] sm:$0xff] %v9956_v56  ;;  %v2235_v22 = vsel %vm1350_vm1, %v14898_v12, %v2234_v8  ;;  %v2229_v44 = vrot.slane %v2122_v60, 2  ;;  %v9971_v27 = vmul.f32 %v9571_v45, %v1748_v32 }
 0x171   : > { %14899 = vst [vmem:[#allocation90_spill] sm:$0xff] %v9964_v31  ;;  %14900 = vst [vmem:[#allocation91_spill] sm:$0xff] %v9967_v25  ;;  %v1984_v9 = vrot.slane %v1876_v61, 1  ;;  %v9980_v42 = vmul.f32 %v9501_v55, %v1755_v37  ;;  %v1757_v61 = vld [vmem:[#allocation2 + $0xd0] sm:$0x3]  ;;  %v14904_v26 = vrot.slane %v9951_v3, 1  ;;  %v9999_v3 = vmul.f32 %v9509_v62, %v1752_v35 }
 0x172   : > { %14901 = vst [vmem:[#allocation92_spill] sm:$0xff] %v9971_v27  ;;  %v9975_v4 = vadd.f32 %v2235_v22, %v2081_v23  ;;  %v2230_v28 = vsel %vm1350_vm1, %v14905_v52, %v2229_v44  ;;  %v9989_v23 = vmul.f32 %v9577_v48, %v1748_v32  ;;  %v9992_v22 = vmul.f32 %v9509_v62, %v1755_v37  ;;  %v1473_v37 = vpop.f32.mrf.mxu0 }
 0x173   : > { %14903 = vst [vmem:[#allocation94_spill] sm:$0xff] %v9980_v42  ;;  %v1985_v60 = vsel %vm1955_vm5, %v14904_v26, %v1984_v9  ;;  %14909 = vst [vmem:[#allocation98_spill] sm:$0xff] %v9999_v3  ;;  %v10004_v52 = vmul.f32 %v9501_v55, %v1756_v36  ;;  %v1885_v32 = vmul.f32 %v9501_v55, %v1757_v61  ;;  %v1753_v42 = vld [vmem:[#allocation2 + $0xb0] sm:$0xff] }
 0x174   : > { %14902 = vst [vmem:[#allocation93_spill] sm:$0xff] %v9975_v4  ;;  %14906 = vst [vmem:[#allocation95_spill] sm:$0xff] %v9989_v23  ;;  %v2079_v8 = vadd.f32 %v1985_v60, %v1801_v57  ;;  %v9996_v4 = vmul.f32 %v9501_v55, %v1752_v35  ;;  %v1807_v60 = vmul.f32 %v9523_v10, %v1756_v36  ;;  %v8556_v56 = vpop.f32.mrf.mxu0 }
 0x175   : > { %14907 = vst [vmem:[#allocation96_spill] sm:$0xff] %v9992_v22  ;;  %14910 = vst [vmem:[#allocation99_spill] sm:$0xff] %v10004_v52  ;;  %v10012_v12 = vmul.f32 %v9509_v62, %v1756_v36  ;;  %v14616_v35 = vrot.slane %v10004_v52, 1  ;;  %v1999_v26 = vrot.slane %v1885_v32, 1  ;;  %v2131_v9 = vmul.f32 %v9509_v62, %v1757_v61  ;;  %v1754_v36 = vld [vmem:[#allocation2 + $0xb8] sm:$0x3] }
 0x176   : > { %14908 = vst [vmem:[#allocation97_spill] sm:$0xff] %v9996_v4  ;;  %v10007_v44 = vadd.f32 %v2230_v28, %v2079_v8  ;;  %v10017_v22 = vmul.f32 %v9614_v6, %v1757_v61  ;;  %v10022_v8 = vmul.f32 %v9631_v16, %v1757_v61  ;;  %v10025_v57 = vmul.f32 %v9571_v45, %v1757_v61 }
 0x177   : > { %14912 = vst [vmem:[#allocation101_spill] sm:$0xff] %v10012_v12  ;;  %v2000_v32 = vsel %vm1955_vm5, %v14616_v35, %v1999_v26  ;;  %v2244_v4 = vrot.slane %v2131_v9, 2  ;;  %v10032_v25 = vmul.f32 %v9577_v48, %v1757_v61  ;;  %v1805_v31 = vmul.f32 %v9523_v10, %v1753_v42 }
 0x178   : > { %14911 = vst [vmem:[#allocation100_spill] sm:$0xff] %v10007_v44  ;;  %14913 = vst [vmem:[#allocation102_spill] sm:$0xff] %v10017_v22  ;;  %v2085_v3 = vadd.f32 %v2000_v32, %v1807_v60  ;;  %v10037_v27 = vmul.f32 %v9501_v55, %v1753_v42  ;;  %v1882_v52 = vmul.f32 %v9501_v55, %v1754_v36  ;;  %v14917_v61 = vrot.slane %v10012_v12, 2  ;;  %v1486_v22 = vpop.f32.mrf.mxu0 }
 0x179   : > { %14914 = vst [vmem:[#allocation103_spill] sm:$0xff] %v10022_v8  ;;  %14915 = vst [vmem:[#allocation104_spill] sm:$0xff] %v10025_v57  ;;  %v10042_v26 = vmul.f32 %v9509_v62, %v1753_v42  ;;  %v2128_v9 = vmul.f32 %v9509_v62, %v1754_v36  ;;  %v10050_v35 = vmul.f32 %v9614_v6, %v1754_v36 }
 0x17a   : > { %14916 = vst [vmem:[#allocation105_spill] sm:$0xff] %v10032_v25  ;;  %v2245_v60 = vsel %vm1350_vm1, %v14917_v61, %v2244_v4  ;;  %v10053_v28 = vmul.f32 %v9631_v16, %v1754_v36  ;;  %v1994_v44 = vrot.slane %v1882_v52, 1  ;;  %v10057_v42 = vmul.f32 %v9571_v45, %v1754_v36 }
 0x17b   : > { %v14621_v23 = vrot.slane %v10042_v26, 2  ;;  %v2239_v8 = vrot.slane %v2128_v9, 2  ;;  %v10059_v57 = vadd.f32 %v2245_v60, %v2085_v3  ;;  %v10065_v32 = vadd.f32 %v9512_v0, %v9791_v2 }
 0x17c   : > { %v14919_v12 = vrot.slane %v10037_v27, 1  ;;  %v10074_v25 = vmul.f32 %v9577_v48, %v1754_v36  ;;  %v10078_v3 = vadd.f32 %v9512_v0, %v9806_v38  ;;  %v10084_v61 = vadd.f32 %v9512_v0, %v9809_v34 }
 0x17d   : > { %14918 = vst [vmem:[#allocation106_spill] sm:$0xff] %v10065_v32  ;;  %v2240_v9 = vsel %vm1350_vm1, %v14621_v23, %v2239_v8  ;;  %v14622_v2 = vmax.f32 %v10065_v32, 0.0  ;;  %v1546_v8 = vmul.f32 %v9918_v53, %v9504_v59  ;;  %v1544_v38 = vmul.f32 %v9504_v59, %v9946_v11  ;;  %v8557_v23 = vpop.f32.mrf.mxu0 }
 0x17e   : > { %v1995_v52 = vsel %vm1955_vm5, %v14919_v12, %v1994_v44  ;;  %14920 = vst [vmem:[#allocation107_spill] sm:$0xff] %v10078_v3  ;;  %14921 = vst [vmem:[#allocation108_spill] sm:$0xff] %v10084_v61  ;;  %v10088_v12 = vadd.f32 %v9512_v0, %v9812_v20  ;;  %v14623_v44 = vmax.f32 %v10078_v3, 0.0  ;;  %v1547_v36 = vmul.f32 %v9973_v58, %v9504_v59 }
 0x17f   : > { %v2083_v4 = vadd.f32 %v1995_v52, %v1805_v31  ;;  %1711 = vst.msk [vmem:[#allocation2 + $0xf1] sm:$0xff] %vm1627_vm3, %v14622_v2  ;;  %v14624_v20 = vmax.f32 %v10084_v61, 0.0  ;;  %v1545_v60 = vmul.f32 %v9504_v59, %v1473_v37  ;;  %v10107_v53 = vadd.f32 %v9512_v0, %v1546_v8 }
 0x180   : > { %14922 = vst [vmem:[#allocation109_spill] sm:$0xff] %v10088_v12  ;;  %v14625_v34 = vmax.f32 %v10088_v12, 0.0  ;;  %1708 = vst.msk [vmem:[#allocation2 + $0xd9] sm:$0xff] %vm1627_vm3, %v14623_v44  ;;  %v10110_v58 = vadd.f32 %v9512_v0, %v1544_v38  ;;  %v10113_v11 = vadd.f32 %v9512_v0, %v1547_v36  ;;  %v1550_v31 = vmul.f32 %v8556_v56, %v9504_v59 }
 0x181   : > { %14923 = vst [vmem:[#allocation110_spill] sm:$0xff] %v10107_v53  ;;  %1712 = vst.msk [vmem:[#allocation2 + $0xf9] sm:$0xff] %vm1627_vm3, %v14624_v20  ;;  %v10123_v37 = vadd.f32 %v9512_v0, %v1545_v60  ;;  %v1548_v52 = vmul.f32 %v9504_v59, %v1486_v22  ;;  %v1551_v8 = vmul.f32 %v8557_v23, %v9504_v59  ;;  %v14927_v38 = vrot.slane %v9687_v49, 1 }
 0x182   : > { %14924 = vst [vmem:[#allocation111_spill] sm:$0xff] %v10110_v58  ;;  %14925 = vst [vmem:[#allocation112_spill] sm:$0xff] %v10113_v11  ;;  %v14928_v36 = vrot.slane %v9628_v13, 1  ;;  %v14627_v2 = vmax.f32 %v10107_v53, 0.0  ;;  %v14630_v44 = vmax.f32 %v10110_v58, 0.0  ;;  %v14631_v20 = vmax.f32 %v10113_v11, 0.0 }
 0x183   : > { %1709 = vst.msk [vmem:[#allocation2 + $0xe1] sm:$0xff] %vm1627_vm3, %v14625_v34  ;;  %14926 = vst [vmem:[#allocation113_spill] sm:$0xff] %v10123_v37  ;;  %v10136_v34 = vadd.f32 %v9512_v0, %v1550_v31  ;;  %v14628_v60 = vmax.f32 %v10123_v37, 0.0  ;;  %v10140_v22 = vadd.f32 %v9512_v0, %v1548_v52  ;;  %v10143_v59 = vadd.f32 %v9512_v0, %v1551_v8 }
 0x184   : > { %v2518_v56 = vsel %vm1955_vm5, %v14928_v36, %v14927_v38  ;;  %v14932_v13 = vrot.slane %v9691_v54, 1  ;;  %v14933_v23 = vmov %v14927_v38  ;;  %v10150_v36 = vadd.f32 %v2240_v9, %v2083_v4  ;;  %1717 = vst.msk [vmem:[#allocation2 + $0x121] sm:$0xff] %vm1627_vm3, %v14627_v2  ;;  %1714 = vst.msk [vmem:[#allocation2 + $0x109] sm:$0xff] %vm1627_vm3, %v14630_v44 }
 0x185   : > { %14929 = vst [vmem:[#allocation114_spill] sm:$0xff] %v10136_v34  ;;  %14930 = vst [vmem:[#allocation115_spill] sm:$0xff] %v10140_v22  ;;  %v14626_v0 = vmax.f32 %v10136_v34, 0.0  ;;  %v2628_v49 = vadd.f32 %v2518_v56, %v9816_v43  ;;  %v14629_v4 = vmax.f32 %v10140_v22, 0.0  ;;  %v14632_v9 = vmax.f32 %v10143_v59, 0.0 }
 0x186   : > { %14931 = vst [vmem:[#allocation116_spill] sm:$0xff] %v10143_v59  ;;  %v2520_v38 = vsel %vm1955_vm5, %v14933_v23, %v14932_v13  ;;  %1718 = vst.msk [vmem:[#allocation2 + $0x129] sm:$0xff] %vm1627_vm3, %v14631_v20  ;;  %v2761_v31 = vrot.slane %v9640_v21, 2  ;;  %v2762_v52 = vrot.slane %v9703_v14, 2  ;;  %v1761_v8 = vld [vmem:[#allocation2 + $0xf0] sm:$0xff]  ;;  %v10176_v43 = vmul.f32 %v9574_v46, %v9633_v17 }
 0x187   : > { %v2629_v54 = vadd.f32 %v2520_v38, %v9833_v50  ;;  %1715 = vst.msk [vmem:[#allocation2 + $0x111] sm:$0xff] %vm1627_vm3, %v14628_v60  ;;  %1723 = vst.msk [vmem:[#allocation2 + $0x151] sm:$0xff] %vm1627_vm3, %v14626_v0  ;;  %v10180_v50 = vmul.f32 %v9571_v45, %v9633_v17  ;;  %v10184_v56 = vmul.f32 %v9571_v45, %v9635_v18  ;;  %v1758_v23 = vld [vmem:[#allocation2 + $0xd8] sm:$0xff] }
 0x188   : > { %v10188_v14 = vmul.f32 %v9501_v55, %v1761_v8  ;;  %v10191_v13 = vmul.f32 %v9509_v62, %v1761_v8  ;;  %1720 = vst.msk [vmem:[#allocation2 + $0x139] sm:$0xff] %vm1627_vm3, %v14629_v4  ;;  %1724 = vst.msk [vmem:[#allocation2 + $0x159] sm:$0xff] %vm1627_vm3, %v14632_v9  ;;  %v2763_v46 = vsel %vm1350_vm1, %v2761_v31, %v2762_v52  ;;  %v1762_v2 = vld [vmem:[#allocation2 + $0xf8] sm:$0xff]  ;;  %v1763_v60 = vld [vmem:[#allocation2 + $0x100] sm:$0x3]  ;;  %v14938_v4 = vrot.slane %v9706_v29, 2 }
 0x189   : > { %v10202_v38 = vmul.f32 %v9577_v48, %v9633_v17  ;;  %v10205_v0 = vmul.f32 %v9501_v55, %v1758_v23  ;;  %v10208_v8 = vmul.f32 %v9509_v62, %v1758_v23  ;;  %v10213_v20 = vadd.f32 %v2763_v46, %v2628_v49 }
 0x18a   : > { %14934 = vst [vmem:[#allocation117_spill] sm:$0xff] %v10188_v14  ;;  %14935 = vst [vmem:[#allocation118_spill] sm:$0xff] %v10191_v13  ;;  %v2765_v44 = vsel %vm1350_vm1, %v2762_v52, %v14938_v4  ;;  %v10218_v21 = vmul.f32 %v9501_v55, %v1762_v2  ;;  %v1811_v22 = vmul.f32 %v9523_v10, %v1762_v2 }
 0x18b   : > { %14936 = vst [vmem:[#allocation119_spill] sm:$0xff] %v10205_v0  ;;  %14937 = vst [vmem:[#allocation120_spill] sm:$0xff] %v10208_v8  ;;  %v10220_v34 = vadd.f32 %v2765_v44, %v2629_v54  ;;  %v1891_v59 = vmul.f32 %v9501_v55, %v1763_v60  ;;  %v10226_v29 = vmul.f32 %v9509_v62, %v1762_v2  ;;  %v1759_v44 = vld [vmem:[#allocation2 + $0xe0] sm:$0xff]  ;;  %v1760_v54 = vld [vmem:[#allocation2 + $0xe8] sm:$0x3] }
 0x18c   : > { %14939 = vst [vmem:[#allocation121_spill] sm:$0xff] %v10218_v21  ;;  %v2137_v4 = vmul.f32 %v9509_v62, %v1763_v60  ;;  %v10231_v52 = vmul.f32 %v9614_v6, %v1763_v60  ;;  %v10234_v46 = vmul.f32 %v9631_v16, %v1763_v60  ;;  %v10239_v2 = vmul.f32 %v9571_v45, %v1763_v60  ;;  %v1767_v61 = vld [vmem:[#allocation2 + $0x120] sm:$0xff]  ;;  %v1764_v14 = vld [vmem:[#allocation2 + $0x108] sm:$0xff] }
 0x18d   : > { %14940 = vst [vmem:[#allocation122_spill] sm:$0xff] %v10226_v29  ;;  %v2009_v31 = vrot.slane %v1891_v59, 1  ;;  %v10244_v58 = vmul.f32 %v9577_v48, %v1763_v60  ;;  %v14943_v11 = vrot.slane %v10218_v21, 1  ;;  %v1809_v9 = vmul.f32 %v9523_v10, %v1759_v44  ;;  %v1769_v8 = vld [vmem:[#allocation2 + $0x130] sm:$0x3] }
 0x18e   : > { %14941 = vst [vmem:[#allocation123_spill] sm:$0xff] %v10231_v52  ;;  %14942 = vst [vmem:[#allocation124_spill] sm:$0xff] %v10234_v46  ;;  %v2254_v53 = vrot.slane %v2137_v4, 2  ;;  %v10251_v59 = vmul.f32 %v9501_v55, %v1759_v44  ;;  %v1888_v23 = vmul.f32 %v9501_v55, %v1760_v54  ;;  %v10256_v49 = vmul.f32 %v9509_v62, %v1759_v44 }
 0x18f   : > { %v2010_v32 = vsel %vm1955_vm5, %v14943_v11, %v2009_v31  ;;  %v2134_v60 = vmul.f32 %v9509_v62, %v1760_v54  ;;  %v10261_v11 = vmul.f32 %v9614_v6, %v1760_v54  ;;  %v10264_v31 = vmul.f32 %v9631_v16, %v1760_v54 }
 0x190   : > { %14944 = vst [vmem:[#allocation125_spill] sm:$0xff] %v10251_v59  ;;  %v2089_v12 = vadd.f32 %v2010_v32, %v1811_v22  ;;  %14945 = vst [vmem:[#allocation126_spill] sm:$0xff] %v10256_v49  ;;  %v2004_v3 = vrot.slane %v1888_v23, 1  ;;  %v14946_v13 = vrot.slane %v10226_v29, 2  ;;  %v14651_v22 = vrot.slane %v10256_v49, 2  ;;  %v1768_v29 = vld [vmem:[#allocation2 + $0x128] sm:$0xff] }
 0x191   : > { %v2249_v44 = vrot.slane %v2134_v60, 2  ;;  %v10271_v4 = vmul.f32 %v9571_v45, %v1760_v54  ;;  %v14948_v23 = vrot.slane %v10251_v59, 1  ;;  %v10284_v60 = vmul.f32 %v9577_v48, %v1760_v54  ;;  %v1770_v59 = vld [vmem:[#allocation2 + $0x138] sm:$0xff] }
 0x192   : > { %v2255_v32 = vsel %vm1350_vm1, %v14946_v13, %v2254_v53  ;;  %v10303_v54 = vmul.f32 %v9501_v55, %v1768_v29  ;;  %v10323_v46 = vmul.f32 %v9571_v45, %v1769_v8 }
 0x193   : > { %v10273_v37 = vadd.f32 %v2255_v32, %v2089_v12  ;;  %v2005_v21 = vsel %vm1955_vm5, %v14948_v23, %v2004_v3  ;;  %v2250_v13 = vsel %vm1350_vm1, %v14651_v22, %v2249_v44  ;;  %v10287_v12 = vmul.f32 %v9501_v55, %v1767_v61 }
 0x194   : > { %v2087_v53 = vadd.f32 %v2005_v21, %v1809_v9  ;;  %v10291_v3 = vmul.f32 %v9509_v62, %v1767_v61  ;;  %v10294_v23 = vmul.f32 %v9501_v55, %v1764_v14  ;;  %v10297_v9 = vmul.f32 %v9509_v62, %v1764_v14  ;;  %14954 = vst [vmem:[#allocation133_spill] sm:$0xff] %v10303_v54 }
 0x195   : > { %14947 = vst [vmem:[#allocation127_spill] sm:$0xff] %v10273_v37  ;;  %14949 = vst [vmem:[#allocation128_spill] sm:$0xff] %v10287_v12  ;;  %v1815_v44 = vmul.f32 %v9523_v10, %v1768_v29  ;;  %v1897_v22 = vmul.f32 %v9501_v55, %v1769_v8  ;;  %v10310_v32 = vmul.f32 %v9509_v62, %v1768_v29  ;;  %v14660_v14 = vrot.slane %v10303_v54, 1  ;;  %v1766_v29 = vld [vmem:[#allocation2 + $0x118] sm:$0x3] }
 0x196   : > { %14950 = vst [vmem:[#allocation129_spill] sm:$0xff] %v10291_v3  ;;  %14951 = vst [vmem:[#allocation130_spill] sm:$0xff] %v10294_v23  ;;  %v10299_v21 = vadd.f32 %v2250_v13, %v2087_v53  ;;  %v2143_v13 = vmul.f32 %v9509_v62, %v1769_v8  ;;  %v10315_v37 = vmul.f32 %v9614_v6, %v1769_v8 }
 0x197   : > { %14952 = vst [vmem:[#allocation131_spill] sm:$0xff] %v10297_v9  ;;  %14955 = vst [vmem:[#allocation134_spill] sm:$0xff] %v10310_v32  ;;  %v2019_v53 = vrot.slane %v1897_v22, 1  ;;  %v10320_v61 = vmul.f32 %v9631_v16, %v1769_v8  ;;  %v10330_v23 = vmul.f32 %v9577_v48, %v1769_v8  ;;  %v1894_v54 = vmul.f32 %v9501_v55, %v1766_v29  ;;  %v1773_v8 = vld [vmem:[#allocation2 + $0x150] sm:$0xff] }
 0x198   : > { %14953 = vst [vmem:[#allocation132_spill] sm:$0xff] %v10299_v21  ;;  %14956 = vst [vmem:[#allocation135_spill] sm:$0xff] %v10315_v37  ;;  %v1765_v21 = vld [vmem:[#allocation2 + $0x110] sm:$0xff]  ;;  %v2264_v3 = vrot.slane %v2143_v13, 2  ;;  %v2140_v13 = vmul.f32 %v9509_v62, %v1766_v29  ;;  %v10351_v52 = vmul.f32 %v9631_v16, %v1766_v29  ;;  %v1774_v37 = vld [vmem:[#allocation2 + $0x158] sm:$0xff] }
 0x199   : > { %14957 = vst [vmem:[#allocation136_spill] sm:$0xff] %v10320_v61  ;;  %14958 = vst [vmem:[#allocation137_spill] sm:$0xff] %v10323_v46  ;;  %v2020_v22 = vsel %vm1955_vm5, %v14660_v14, %v2019_v53  ;;  %v1813_v9 = vmul.f32 %v9523_v10, %v1765_v21  ;;  %v10335_v0 = vmul.f32 %v9501_v55, %v1765_v21  ;;  %v2014_v55 = vrot.slane %v1894_v54, 1  ;;  %v10362_v10 = vld [vmem:[%s9106_s25 + $0x1] ss:$0 sm:$0xff] }
 0x19a   : > { %14959 = vst [vmem:[#allocation138_spill] sm:$0xff] %v10330_v23  ;;  %v2093_v49 = vadd.f32 %v2020_v22, %v1815_v44  ;;  %v10340_v53 = vmul.f32 %v9509_v62, %v1765_v21  ;;  %v14962_v44 = vrot.slane %v10310_v32, 2  ;;  %v10348_v14 = vmul.f32 %v9614_v6, %v1766_v29  ;;  %14964 = vst [vmem:[#allocation142_spill] sm:$0xff] %v10351_v52  ;;  %v1775_v54 = vld [vmem:[#allocation2 + $0x160] sm:$0x3] }
 0x19b   : > { %14960 = vst [vmem:[#allocation139_spill] sm:$0xff] %v10335_v0  ;;  %v2259_v12 = vrot.slane %v2140_v13, 2  ;;  %v10355_v62 = vmul.f32 %v9571_v45, %v1766_v29  ;;  %v10365_v61 = vmul.f32 %v10362_v10, %v1773_v8  ;;  %v14968_v21 = vrot.slane %v10335_v0, 1 }
 0x19c   : > { %14961 = vst [vmem:[#allocation140_spill] sm:$0xff] %v10340_v53  ;;  %v2265_v22 = vsel %vm1350_vm1, %v14962_v44, %v2264_v3  ;;  %14963 = vst [vmem:[#allocation141_spill] sm:$0xff] %v10348_v14  ;;  %v14969_v46 = vrot.slane %v10340_v53, 2  ;;  %v10377_v44 = vld [vmem:[%s9106_s25 + $0x2] ss:$0 sm:$0xff]  ;;  %v10384_v0 = vmul.f32 %v10362_v10, %v1770_v59  ;;  %v10423_v14 = vmul.f32 %v9577_v48, %v1775_v54 }
 0x19d   : > { %14965 = vst [vmem:[#allocation143_spill] sm:$0xff] %v10355_v62  ;;  %v10357_v32 = vadd.f32 %v2265_v22, %v2093_v49  ;;  %14967 = vst [vmem:[#allocation145_spill] sm:$0xff] %v10365_v61  ;;  %v2015_v13 = vsel %vm1955_vm5, %v14968_v21, %v2014_v55  ;;  %v10374_v22 = vmul.f32 %v9577_v48, %v1766_v29  ;;  %v1489_v21 = vpop.f32.mrf.mxu0  ;;  %v3077_v62 = vrot.slane %v10180_v50, 1 }
 0x19e   : > { %v2260_v49 = vsel %vm1350_vm1, %v14969_v46, %v2259_v12  ;;  %v10380_v3 = vmul.f32 %v10377_v44, %v1773_v8  ;;  %14971 = vst [vmem:[#allocation147_spill] sm:$0xff] %v10384_v0  ;;  %v10387_v55 = vmul.f32 %v10377_v44, %v1770_v59  ;;  %v10392_v29 = vmul.f32 %v10362_v10, %v1774_v37 }
 0x19f   : > { %14966 = vst [vmem:[#allocation144_spill] sm:$0xff] %v10357_v32  ;;  %v2091_v32 = vadd.f32 %v2015_v13, %v1813_v9  ;;  %v1903_v8 = vmul.f32 %v10362_v10, %v1775_v54  ;;  %v10399_v13 = vld [vmem:[%s9106_s25] ss:$0 sm:$0xff]  ;;  %v10403_v59 = vmul.f32 %v10377_v44, %v1774_v37  ;;  %v2149_v12 = vmul.f32 %v10377_v44, %v1775_v54 }
 0x1a0   : > { %14970 = vst [vmem:[#allocation146_spill] sm:$0xff] %v10380_v3  ;;  %14972 = vst [vmem:[#allocation148_spill] sm:$0xff] %v10387_v55  ;;  %v1819_v23 = vmul.f32 %v10399_v13, %v1774_v37  ;;  %v14675_v46 = vrot.slane %v10392_v29, 1  ;;  %v10408_v3 = vmul.f32 %v9614_v6, %v1775_v54  ;;  %v10413_v9 = vmul.f32 %v9631_v16, %v1775_v54  ;;  %v8560_v37 = vpop.f32.mrf.mxu0 }
 0x1a1   : > { %14973 = vst [vmem:[#allocation149_spill] sm:$0xff] %v10392_v29  ;;  %v10395_v53 = vadd.f32 %v2260_v49, %v2091_v32  ;;  %14975 = vst [vmem:[#allocation151_spill] sm:$0xff] %v10403_v59  ;;  %v2029_v61 = vrot.slane %v1903_v8, 1  ;;  %v10416_v0 = vmul.f32 %v9571_v45, %v1775_v54  ;;  %v2943_v55 = vadd.f32 %v9602_v63, %v10213_v20 }
 0x1a2   : > { %14976 = vst [vmem:[#allocation152_spill] sm:$0xff] %v10408_v3  ;;  %14977 = vst [vmem:[#allocation153_spill] sm:$0xff] %v10413_v9  ;;  %v2944_v45 = vadd.f32 %v10176_v43, %v10220_v34  ;;  %v3227_v54 = vmul.f32 %v9577_v48, %v9635_v18  ;;  %v3321_v63 = vrot.slane %v9620_v7, 2  ;;  %v3322_v20 = vrot.slane %v10202_v38, 2  ;;  %v10441_v34 = vld [vmem:[%s9096_s17] ss:$0 sm:$0xff]  ;;  %v1502_v50 = vpop.f32.mrf.mxu0 }
 0x1a3   : > { %14974 = vst [vmem:[#allocation150_spill] sm:$0xff] %v10395_v53  ;;  %14978 = vst [vmem:[#allocation154_spill] sm:$0xff] %v10416_v0  ;;  %v2030_v8 = vsel %vm1955_vm5, %v14675_v46, %v2029_v61  ;;  %v2274_v53 = vrot.slane %v2149_v12, 2  ;;  %v3079_v61 = vrot.slane %v10184_v56, 1  ;;  %v1549_v43 = vmul.f32 %v10441_v34, %v1489_v21  ;;  %v10451_v38 = vld [vmem:[%s9101_s21] ss:$0 sm:$0xff] }
 0x1a4   : > { %14979 = vst [vmem:[#allocation155_spill] sm:$0xff] %v10423_v14  ;;  %v2097_v32 = vadd.f32 %v2030_v8, %v1819_v23  ;;  %v14980_v23 = vrot.slane %v10403_v59, 2  ;;  %v14981_v8 = vrot.slane %v9605_v1, 1  ;;  %v3324_v18 = vrot.slane %v3227_v54, 2  ;;  %v10458_v1 = vld [vmem:[%s9111_s29] ss:$0 sm:$0xff] }
 0x1a5   : > { %v3080_v48 = vsel %vm1955_vm5, %v3077_v62, %v3079_v61  ;;  %v1554_v46 = vmul.f32 %v10441_v34, %v8560_v37  ;;  %v3323_v7 = vsel %vm1350_vm1, %v3321_v63, %v3322_v20  ;;  %v10454_v49 = vadd.f32 %v10451_v38, %v1549_v43  ;;  %v8879_v37 = vld [vmem:[#allocation2 + $0x30] sm:$0xff]  ;;  %v10581_v14 = vld [vmem:[%s9106_s25 + $0x4] ss:$0 sm:$0xff] }
 0x1a6   : > { %v2275_v12 = vsel %vm1350_vm1, %v14980_v23, %v2274_v53  ;;  %v3078_v56 = vsel %vm1955_vm5, %v14981_v8, %v3077_v62  ;;  %v3189_v23 = vadd.f32 %v3080_v48, %v2944_v45  ;;  %v3325_v21 = vsel %vm1350_vm1, %v3322_v20, %v3324_v18  ;;  %v10470_v20 = vld [vmem:[%s14839_s3] ss:$0 sm:$0xff] }
 0x1a7   : > { %v3188_v53 = vadd.f32 %v3078_v56, %v2943_v55  ;;  %14982 = vst [vmem:[#allocation156_spill] sm:$0xff] %v10454_v49  ;;  %v10461_v8 = vadd.f32 %v10451_v38, %v1554_v46  ;;  %v1552_v62 = vmul.f32 %v10441_v34, %v1502_v50  ;;  %v2353_v55 = vmul.f32 %v8879_v37, %v9611_v5 }
 0x1a8   : > { %v3434_v61 = vadd.f32 %v3325_v21, %v3189_v23  ;;  %v14677_v54 = vmax.f32 %v10454_v49, 0.0  ;;  %v2423_v63 = vmul.f32 %v8879_v37, %v9614_v6  ;;  %v10467_v43 = vadd.f32 %v2275_v12, %v2097_v32  ;;  %v10490_v23 = vld [vmem:[%s9106_s25 + $0x6] ss:$0 sm:$0xff] }
 0x1a9   : > { %14983 = vst [vmem:[#allocation157_spill] sm:$0xff] %v10461_v8  ;;  %v3433_v45 = vadd.f32 %v3323_v7, %v3188_v53  ;;  %v14676_v56 = vmax.f32 %v10461_v8, 0.0  ;;  %v10474_v46 = vadd.f32 %v10451_v38, %v1552_v62  ;;  %v2424_v5 = vmul.f32 %v9614_v6, %v9633_v17 }
 0x1aa   : > { %14984 = vst [vmem:[#allocation158_spill] sm:$0xff] %v10467_v43  ;;  %v3473_v48 = vmul.f32 %v10458_v1, %v3434_v61  ;;  %1721 = vst.msk [vmem:[#allocation2 + $0x141] sm:$0xff] %vm1627_vm3, %v14677_v54  ;;  %v2385_v32 = vadd.f32 %v2353_v55, %v9700_v15  ;;  %v2668_v12 = vmul.f32 %v8879_v37, %v9631_v16  ;;  %v2521_v6 = vrot.slane %v2423_v63, 1  ;;  %v10497_v16 = vld [vmem:[%s9106_s25 + $0x8] ss:$0 sm:$0xff] }
 0x1ab   : > { %14985 = vst [vmem:[#allocation159_spill] sm:$0xff] %v10474_v46  ;;  %v3472_v50 = vmul.f32 %v10458_v1, %v3433_v45  ;;  %1729 = vst.msk [vmem:[#allocation2 + $0x181] sm:$0xff] %vm1627_vm3, %v14676_v56  ;;  %v14678_v18 = vmax.f32 %v10474_v46, 0.0  ;;  %v2522_v53 = vrot.slane %v2424_v5, 1  ;;  %v2669_v7 = vmul.f32 %v10490_v23, %v9633_v17  ;;  %v10511_v5 = vld [vmem:[%s9106_s25 + $0x9] ss:$0 sm:$0xff] }
 0x1ac   : > { %v3512_v15 = vadd.f32 %v10470_v20, %v3473_v48  ;;  %v2766_v62 = vrot.slane %v2668_v12, 2  ;;  %v10501_v55 = vmul.f32 %v10497_v16, %v9693_v41  ;;  %v14986_v61 = vrot.slane %v9659_v39, 1 }
 0x1ad   : > { %v3511_v21 = vadd.f32 %v10470_v20, %v3472_v50  ;;  %1726 = vst.msk [vmem:[#allocation2 + $0x169] sm:$0xff] %vm1627_vm3, %v14678_v18  ;;  %v2523_v45 = vsel %vm1955_vm5, %v2521_v6, %v2522_v53  ;;  %v2767_v63 = vrot.slane %v2669_v7, 2  ;;  %v10515_v50 = vmul.f32 %v10511_v5, %v9693_v41  ;;  %v8561_v18 = vpop.f32.mrf.mxu0 }
 0x1ae   : > { %v2525_v17 = vsel %vm1955_vm5, %v2522_v53, %v14986_v61  ;;  %v3544_v12 = vmax.f32 %v3512_v15, 0.0  ;;  %v2630_v56 = vadd.f32 %v2523_v45, %v2385_v32  ;;  %v14987_v39 = vrot.slane %v9663_v40, 2  ;;  %v10530_v15 = vld [vmem:[%s9106_s25 + $0xa] ss:$0 sm:$0xff] }
 0x1af   : > { %v3543_v48 = vmax.f32 %v3511_v21, 0.0  ;;  %v2631_v54 = vadd.f32 %v2525_v17, %v9725_v33  ;;  %v2768_v6 = vsel %vm1350_vm1, %v2766_v62, %v2767_v63  ;;  %v2914_v7 = vmul.f32 %v10497_v16, %v9845_v47 }
 0x1b0   : > { %v2770_v53 = vsel %vm1350_vm1, %v2767_v63, %v14987_v39  ;;  %v2984_v61 = vmul.f32 %v10511_v5, %v9845_v47  ;;  %3576 = vst.msk [vmem:[#allocation3 + $0x8] sm:$0xff] %vm1627_vm3, %v3544_v12  ;;  %v2875_v32 = vadd.f32 %v2768_v6, %v2630_v56  ;;  %v3081_v21 = vrot.slane %v10515_v50, 1  ;;  %v10548_v39 = vld [vmem:[%s9106_s25 + $0x5] ss:$0 sm:$0xff] }
 0x1b1   : > { %3575 = vst.msk [vmem:[#allocation3] sm:$0xff] %vm1627_vm3, %v3543_v48  ;;  %v2876_v33 = vadd.f32 %v2770_v53, %v2631_v54  ;;  %v3228_v40 = vmul.f32 %v10530_v15, %v9693_v41  ;;  %v1771_v62 = vld [vmem:[#allocation2 + $0x140] sm:$0xff]  ;;  %v1772_v45 = vld [vmem:[#allocation2 + $0x148] sm:$0x3]  ;;  %v3229_v63 = vmul.f32 %v10530_v15, %v9845_v47  ;;  %v3329_v48 = vrot.slane %v9896_v30, 2 }
 0x1b2   : > { %v3082_v17 = vrot.slane %v2984_v61, 1  ;;  %v1555_v12 = vmul.f32 %v10441_v34, %v8561_v18  ;;  %v10539_v56 = vmul.f32 %v10362_v10, %v1771_v62  ;;  %v1900_v54 = vmul.f32 %v10362_v10, %v1772_v45  ;;  %v1779_v61 = vld [vmem:[#allocation2 + $0x180] sm:$0xff] }
 0x1b3   : > { %v10543_v50 = vmul.f32 %v10377_v44, %v1771_v62  ;;  %v1794_v41 = vmul.f32 %v8879_v37, %v10399_v13  ;;  %v2146_v6 = vmul.f32 %v10377_v44, %v1772_v45  ;;  %v10551_v53 = vmul.f32 %v10548_v39, %v1772_v45 }
 0x1b4   : > { %14988 = vst [vmem:[#allocation160_spill] sm:$0xff] %v10539_v56  ;;  %v10554_v30 = vmul.f32 %v10490_v23, %v1772_v45  ;;  %v10557_v18 = vmul.f32 %v10511_v5, %v1772_v45  ;;  %v1817_v52 = vmul.f32 %v10399_v13, %v1771_v62  ;;  %v14686_v29 = vrot.slane %v10539_v56, 1 }
 0x1b5   : > { %14989 = vst [vmem:[#allocation161_spill] sm:$0xff] %v10551_v53  ;;  %v2024_v37 = vrot.slane %v1900_v54, 1  ;;  %v2269_v46 = vrot.slane %v2146_v6, 2  ;;  %v10565_v59 = vmul.f32 %v10530_v15, %v1772_v45  ;;  %v10572_v3 = vmul.f32 %v10548_v39, %v1779_v61  ;;  %v1776_v6 = vld [vmem:[#allocation2 + $0x168] sm:$0xff] }
 0x1b6   : > { %14990 = vst [vmem:[#allocation162_spill] sm:$0xff] %v10554_v30  ;;  %v10575_v54 = vmul.f32 %v10490_v23, %v1779_v61  ;;  %v14993_v43 = vrot.slane %v10543_v50, 2  ;;  %v10592_v53 = vmul.f32 %v10497_v16, %v1779_v61  ;;  %v2946_v30 = vadd.f32 %v2914_v7, %v2876_v33 }
 0x1b7   : > { %v2025_v9 = vsel %vm1955_vm5, %v14686_v29, %v2024_v37  ;;  %14991 = vst [vmem:[#allocation163_spill] sm:$0xff] %v10572_v3  ;;  %v3608_v49 = vld [vmem:[#allocation3 + $0x8] sm:$0xff]  ;;  %v10584_v37 = vmul.f32 %v10581_v14, %v1779_v61  ;;  %v10587_v29 = vmul.f32 %v10511_v5, %v1779_v61  ;;  %v3083_v56 = vsel %vm1955_vm5, %v3081_v21, %v3082_v17  ;;  %v15004_v21 = vld [vmem:[#allocation51_spill] sm:$0xff] }
 0x1b8   : > { %14992 = vst [vmem:[#allocation164_spill] sm:$0xff] %v10575_v54  ;;  %v3607_v8 = vld [vmem:[#allocation3] sm:$0xff]  ;;  %v2095_v0 = vadd.f32 %v2025_v9, %v1817_v52  ;;  %v2270_v45 = vsel %vm1350_vm1, %v14993_v43, %v2269_v46  ;;  %14996 = vst [vmem:[#allocation167_spill] sm:$0xff] %v10592_v53  ;;  %v10598_v43 = vmul.f32 %v10530_v15, %v1779_v61  ;;  %v3326_v9 = vrot.slane %v3228_v40, 2 }
 0x1b9   : > { %14994 = vst [vmem:[#allocation165_spill] sm:$0xff] %v10584_v37  ;;  %14995 = vst [vmem:[#allocation166_spill] sm:$0xff] %v10587_v29  ;;  %v3639_v62 = vpack.c.bf16 %v3608_v49, %v3607_v8  ;;  %v10601_v46 = vmul.f32 %v10362_v10, %v1776_v6  ;;  %v10605_v49 = vmul.f32 %v10377_v44, %v1776_v6  ;;  %v3327_v37 = vrot.slane %v3229_v63, 2  ;;  %v15006_v40 = vld [vmem:[#allocation49_spill] sm:$0xff] }
 0x1ba   : > { %v10594_v52 = vadd.f32 %v2270_v45, %v2095_v0  ;;  %14997 = vst [vmem:[#allocation168_spill] sm:$0xff] %v10598_v43  ;;  %v2945_v8 = vadd.f32 %v10501_v55, %v2875_v32  ;;  %v15000_v45 = vrot.slane %v9883_v19, 1  ;;  %v15002_v6 = vrot.slane %v9644_v24, 1  ;;  %v10629_v24 = vld [vmem:[#allocation2 + $0x48] sm:$0xff] }
 0x1bb   : > { %14998 = vst [vmem:[#allocation169_spill] sm:$0xff] %v10601_v46  ;;  %8564 = vmatprep.mubr.msk.bf16.mxu1 %vm1627_vm3, %v3639_v62  ;;  %14999 = vst [vmem:[#allocation170_spill] sm:$0xff] %v10605_v49  ;;  %v10614_v62 = vadd.f32 %v10451_v38, %v1555_v12  ;;  %v15003_v55 = vrot.slane %v9582_v51, 1  ;;  %v3328_v32 = vsel %vm1350_vm1, %v3326_v9, %v3327_v37  ;;  %v15007_v63 = vrot.slane %v15006_v40, 2  ;;  %v15025_v49 = vld [vmem:[#allocation70_spill] sm:$0xff] }
 0x1bc   : > { %v3085_v61 = vsel %vm1955_vm5, %v3082_v17, %v15000_v45  ;;  %v3190_v54 = vadd.f32 %v3083_v56, %v2945_v8  ;;  %v3330_v33 = vsel %vm1350_vm1, %v3327_v37, %v3329_v48  ;;  %v15005_v17 = vrot.slane %v15004_v21, 2 }
 0x1bd   : > { %v3191_v3 = vadd.f32 %v3085_v61, %v2946_v30  ;;  %15001 = vst [vmem:[#allocation171_spill] sm:$0xff] %v10614_v62  ;;  %v1968_v7 = vsel %vm1955_vm5, %v15003_v55, %v15002_v6  ;;  %v14692_v8 = vmax.f32 %v10614_v62, 0.0  ;;  %v2355_v51 = vmul.f32 %v10629_v24, %v10581_v14  ;;  %v15008_v55 = vld [vmem:[#allocation52_spill] sm:$0xff] }
 0x1be   : > { %v2072_v19 = vadd.f32 %v1968_v7, %v1794_v41  ;;  %v2213_v56 = vsel %vm1350_vm1, %v15007_v63, %v15005_v17  ;;  %v3435_v30 = vadd.f32 %v3328_v32, %v3190_v54  ;;  %v2356_v48 = vmul.f32 %v10581_v14, %v9845_v47 }
 0x1bf   : > { %v3436_v12 = vadd.f32 %v3330_v33, %v3191_v3  ;;  %v2426_v41 = vmul.f32 %v10629_v24, %v10548_v39  ;;  %v2427_v37 = vmul.f32 %v10548_v39, %v9845_v47  ;;  %1730 = vst.msk [vmem:[#allocation2 + $0x189] sm:$0xff] %vm1627_vm3, %v14692_v8  ;;  %v2671_v9 = vmul.f32 %v10629_v24, %v10490_v23 }
 0x1c0   : > { %v2317_v45 = vadd.f32 %v2213_v56, %v2072_v19  ;;  %v3474_v54 = vmul.f32 %v10458_v1, %v3435_v30  ;;  %v2672_v61 = vmul.f32 %v10490_v23, %v9845_v47  ;;  %v2388_v7 = vadd.f32 %v2356_v48, %v15008_v55  ;;  %v15009_v56 = vld [vmem:[#allocation74_spill] sm:$0xff] }
 0x1c1   : > { %v3475_v3 = vmul.f32 %v10458_v1, %v3436_v12  ;;  %v2526_v32 = vrot.slane %v2426_v41, 1  ;;  %v2527_v33 = vrot.slane %v2427_v37, 1  ;;  %v15010_v30 = vrot.slane %v15009_v56, 1  ;;  %v10656_v47 = vld [vmem:[#allocation2 + $0x60] sm:$0xff]  ;;  %v1505_v56 = vpop.f32.mrf.mxu0 }
 0x1c2   : > { %v3513_v19 = vadd.f32 %v10470_v20, %v3474_v54  ;;  %v2387_v17 = vadd.f32 %v2355_v51, %v2317_v45  ;;  %v2772_v40 = vrot.slane %v2672_v61, 2  ;;  %v2771_v8 = vrot.slane %v2671_v9, 2  ;;  %v15011_v51 = vld [vmem:[#allocation75_spill] sm:$0xff] }
 0x1c3   : > { %v3514_v21 = vadd.f32 %v10470_v20, %v3475_v3  ;;  %v2528_v63 = vsel %vm1955_vm5, %v2526_v32, %v2527_v33  ;;  %v2530_v12 = vsel %vm1955_vm5, %v2527_v33, %v15010_v30  ;;  %v2915_v48 = vmul.f32 %v10656_v47, %v10497_v16  ;;  %v10666_v33 = vld [vmem:[#allocation2 + $0x68] sm:$0xff] }
 0x1c4   : > { %v3545_v41 = vmax.f32 %v3513_v19, 0.0  ;;  %v2632_v55 = vadd.f32 %v2528_v63, %v2387_v17  ;;  %v2633_v54 = vadd.f32 %v2530_v12, %v2388_v7  ;;  %v2773_v3 = vsel %vm1350_vm1, %v2771_v8, %v2772_v40 }
 0x1c5   : > { %v3546_v37 = vmax.f32 %v3514_v21, 0.0  ;;  %v15012_v45 = vrot.slane %v15011_v51, 2  ;;  %v2986_v32 = vmul.f32 %v10656_v47, %v10511_v5  ;;  %v2987_v9 = vmul.f32 %v10666_v33, %v10511_v5  ;;  %v15013_v51 = vld [vmem:[#allocation71_spill] sm:$0xff] }
 0x1c6   : > { %3577 = vst.msk [vmem:[#allocation3 + $0x10] sm:$0xff] %vm1627_vm3, %v3545_v41  ;;  %v2877_v7 = vadd.f32 %v2773_v3, %v2632_v55  ;;  %v2916_v8 = vmul.f32 %v10666_v33, %v10497_v16  ;;  %v3231_v21 = vmul.f32 %v10656_v47, %v10530_v15  ;;  %v1780_v17 = vld [vmem:[#allocation2 + $0x188] sm:$0xff]  ;;  %v3232_v12 = vmul.f32 %v10666_v33, %v10530_v15 }
 0x1c7   : > { %v2775_v61 = vsel %vm1350_vm1, %v2772_v40, %v15012_v45  ;;  %3578 = vst.msk [vmem:[#allocation3 + $0x18] sm:$0xff] %vm1627_vm3, %v3546_v37  ;;  %v1781_v40 = vld [vmem:[#allocation2 + $0x190] sm:$0x3]  ;;  %v3086_v63 = vrot.slane %v2986_v32, 1  ;;  %v3087_v30 = vrot.slane %v2987_v9, 1  ;;  %v3334_v45 = vrot.slane %v15013_v51, 2 }
 0x1c8   : > { %v2878_v19 = vadd.f32 %v2775_v61, %v2633_v54  ;;  %v10680_v41 = vmul.f32 %v10548_v39, %v1780_v17  ;;  %v2467_v37 = vmul.f32 %v10548_v39, %v1781_v40  ;;  %v10684_v55 = vmul.f32 %v10490_v23, %v1780_v17 }
 0x1c9   : > { %v1553_v54 = vmul.f32 %v10441_v34, %v1505_v56  ;;  %v10688_v3 = vmul.f32 %v10581_v14, %v1780_v17  ;;  %v2712_v61 = vmul.f32 %v10490_v23, %v1781_v40  ;;  %v10692_v32 = vmul.f32 %v10511_v5, %v1780_v17 }
 0x1ca   : > { %15014 = vst [vmem:[#allocation51_spill] sm:$0xff] %v10680_v41  ;;  %15015 = vst [vmem:[#allocation49_spill] sm:$0xff] %v10684_v55  ;;  %v10695_v9 = vmul.f32 %v10511_v5, %v1781_v40  ;;  %v14698_v51 = vrot.slane %v10680_v41, 1  ;;  %v2594_v6 = vrot.slane %v2467_v37, 1  ;;  %v10700_v62 = vmul.f32 %v10497_v16, %v1780_v17 }
 0x1cb   : > { %15016 = vst [vmem:[#allocation52_spill] sm:$0xff] %v10688_v3  ;;  %15017 = vst [vmem:[#allocation74_spill] sm:$0xff] %v10692_v32  ;;  %v2839_v34 = vrot.slane %v2712_v61, 2  ;;  %v10705_v3 = vmul.f32 %v10530_v15, %v1780_v17  ;;  %v10713_v37 = vmul.f32 %v10530_v15, %v1781_v40  ;;  %v2947_v0 = vadd.f32 %v2915_v48, %v2877_v7 }
 0x1cc   : > { %15018 = vst [vmem:[#allocation75_spill] sm:$0xff] %v10695_v9  ;;  %15019 = vst [vmem:[#allocation71_spill] sm:$0xff] %v10700_v62  ;;  %v10710_v53 = vsel %vm1955_vm5, %v14698_v51, %v2594_v6  ;;  %v2948_v46 = vadd.f32 %v2916_v8, %v2878_v19  ;;  %v15023_v61 = vrot.slane %v10684_v55, 2  ;;  %v3088_v17 = vsel %vm1955_vm5, %v3086_v63, %v3087_v30  ;;  %v15028_v19 = vld [vmem:[#allocation72_spill] sm:$0xff] }
 0x1cd   : > { %15020 = vst [vmem:[#allocation172_spill] sm:$0xff] %v10705_v3  ;;  %15021 = vst [vmem:[#allocation173_spill] sm:$0xff] %v10710_v53  ;;  %v3609_v43 = vld [vmem:[#allocation3 + $0x10] sm:$0xff]  ;;  %v15026_v9 = vrot.slane %v15025_v49, 1  ;;  %v3331_v6 = vrot.slane %v3231_v21, 2  ;;  %v3192_v53 = vadd.f32 %v3088_v17, %v2947_v0  ;;  %v3332_v3 = vrot.slane %v3232_v12, 2 }
 0x1ce   : > { %15022 = vst [vmem:[#allocation174_spill] sm:$0xff] %v10713_v37  ;;  %v3610_v62 = vld [vmem:[#allocation3 + $0x18] sm:$0xff]  ;;  %v10718_v56 = vsel %vm1350_vm1, %v15023_v61, %v2839_v34  ;;  %v10725_v48 = vadd.f32 %v10451_v38, %v1553_v54  ;;  %v1796_v7 = vmul.f32 %v10629_v24, %v10399_v13  ;;  %v15029_v8 = vrot.slane %v15028_v19, 1  ;;  %v15032_v49 = vld [vmem:[#allocation73_spill] sm:$0xff] }
 0x1cf   : > { %15024 = vst [vmem:[#allocation175_spill] sm:$0xff] %v10718_v56  ;;  %v3090_v41 = vsel %vm1955_vm5, %v3087_v30, %v15026_v9  ;;  %v3640_v51 = vpack.c.bf16 %v3610_v62, %v3609_v43  ;;  %v15030_v34 = vld [vmem:[#allocation55_spill] sm:$0xff]  ;;  %v15033_v56 = vrot.slane %v15032_v49, 2  ;;  %v15034_v30 = vld [vmem:[#allocation57_spill] sm:$0xff]  ;;  %v3333_v38 = vsel %vm1350_vm1, %v3331_v6, %v3332_v3 }
 0x1d0   : > { %v3193_v40 = vadd.f32 %v3090_v41, %v2948_v46  ;;  %15027 = vst [vmem:[#allocation70_spill] sm:$0xff] %v10725_v48  ;;  %v15031_v61 = vrot.slane %v15030_v34, 1  ;;  %v15035_v21 = vrot.slane %v15034_v30, 2  ;;  %v3335_v46 = vsel %vm1350_vm1, %v3332_v3, %v3334_v45  ;;  %v15036_v9 = vld [vmem:[#allocation81_spill] sm:$0xff] }
 0x1d1   : > { %8565 = vmatmul.mubr.msk.bf16.vlgmr.msra.gmra.mxu1 %vm1627_vm3, %v3640_v51  ;;  %v2357_v0 = vmul.f32 %v10656_v47, %v10581_v14  ;;  %v2358_v62 = vmul.f32 %v10666_v33, %v10581_v14  ;;  %v3437_v24 = vadd.f32 %v3333_v38, %v3192_v53  ;;  %v14699_v41 = vmax.f32 %v10725_v48, 0.0  ;;  %v15037_v38 = vld [vmem:[#allocation68_spill] sm:$0xff] }
 0x1d2   : > { %v1973_v63 = vsel %vm1955_vm5, %v15031_v61, %v15029_v8  ;;  %v2218_v43 = vsel %vm1350_vm1, %v15035_v21, %v15033_v56  ;;  %v3438_v12 = vadd.f32 %v3335_v46, %v3193_v40  ;;  %v2429_v51 = vmul.f32 %v10656_v47, %v10548_v39 }
 0x1d3   : > { %v2074_v54 = vadd.f32 %v1973_v63, %v1796_v7  ;;  %v2390_v17 = vadd.f32 %v2358_v62, %v15036_v9  ;;  %v2430_v56 = vmul.f32 %v10666_v33, %v10548_v39  ;;  %v2674_v45 = vmul.f32 %v10656_v47, %v10490_v23  ;;  %1727 = vst.msk [vmem:[#allocation2 + $0x171] sm:$0xff] %vm1627_vm3, %v14699_v41  ;;  %v10768_v62 = vld [vmem:[#allocation2 + $0x78] sm:$0xff] }
 0x1d4   : > { %v3476_v3 = vmul.f32 %v10458_v1, %v3437_v24  ;;  %v3477_v6 = vmul.f32 %v10458_v1, %v3438_v12  ;;  %v2675_v40 = vmul.f32 %v10666_v33, %v10490_v23  ;;  %v2531_v19 = vrot.slane %v2429_v51, 1 }
 0x1d5   : > { %v2319_v53 = vadd.f32 %v2218_v43, %v2074_v54  ;;  %v2532_v8 = vrot.slane %v2430_v56, 1  ;;  %v2776_v34 = vrot.slane %v2674_v45, 2  ;;  %v15038_v46 = vrot.slane %v15037_v38, 1  ;;  %v15039_v56 = vld [vmem:[#allocation69_spill] sm:$0xff] }
 0x1d6   : > { %v3515_v61 = vadd.f32 %v10470_v20, %v3476_v3  ;;  %v3516_v63 = vadd.f32 %v10470_v20, %v3477_v6  ;;  %v2777_v30 = vrot.slane %v2675_v40, 2  ;;  %v2917_v33 = vmul.f32 %v10768_v62, %v10497_v16  ;;  %v8890_v6 = vld [vmem:[#allocation2 + $0x80] sm:$0xff] }
 0x1d7   : > { %v2389_v49 = vadd.f32 %v2357_v0, %v2319_v53  ;;  %v2533_v21 = vsel %vm1955_vm5, %v2531_v19, %v2532_v8  ;;  %v2535_v43 = vsel %vm1955_vm5, %v2532_v8, %v15038_v46  ;;  %v2989_v24 = vmul.f32 %v10768_v62, %v10511_v5 }
 0x1d8   : > { %v3547_v12 = vmax.f32 %v3515_v61, 0.0  ;;  %v3548_v54 = vmax.f32 %v3516_v63, 0.0  ;;  %v2635_v51 = vadd.f32 %v2535_v43, %v2390_v17  ;;  %v2778_v0 = vsel %vm1350_vm1, %v2776_v34, %v2777_v30 }
 0x1d9   : > { %v2634_v9 = vadd.f32 %v2533_v21, %v2389_v49  ;;  %v15040_v45 = vrot.slane %v15039_v56, 2  ;;  %v2918_v53 = vmul.f32 %v8890_v6, %v10497_v16  ;;  %v2990_v40 = vmul.f32 %v8890_v6, %v10511_v5  ;;  %v15041_v21 = vld [vmem:[#allocation95_spill] sm:$0xff] }
 0x1da   : > { %3579 = vst.msk [vmem:[#allocation3 + $0x20] sm:$0xff] %vm1627_vm3, %v3547_v12  ;;  %3580 = vst.msk [vmem:[#allocation3 + $0x28] sm:$0xff] %vm1627_vm3, %v3548_v54  ;;  %v3091_v61 = vrot.slane %v2989_v24, 1  ;;  %v3234_v17 = vmul.f32 %v10768_v62, %v10530_v15  ;;  %v1777_v34 = vld [vmem:[#allocation2 + $0x170] sm:$0xff]  ;;  %v1778_v63 = vld [vmem:[#allocation2 + $0x178] sm:$0x3]  ;;  %v1798_v46 = vmul.f32 %v10656_v47, %v10399_v13 }
 0x1db   : > { %v2780_v3 = vsel %vm1350_vm1, %v2777_v30, %v15040_v45  ;;  %v2879_v19 = vadd.f32 %v2778_v0, %v2634_v9  ;;  %v3092_v49 = vrot.slane %v2990_v40, 1  ;;  %v3235_v30 = vmul.f32 %v8890_v6, %v10530_v15  ;;  %v15043_v54 = vld [vmem:[#allocation66_spill] sm:$0xff] }
 0x1dc   : > { %v2880_v8 = vadd.f32 %v2780_v3, %v2635_v51  ;;  %v3339_v38 = vrot.slane %v15041_v21, 2  ;;  %v10789_v43 = vmul.f32 %v10362_v10, %v1777_v34  ;;  %v1906_v12 = vmul.f32 %v10362_v10, %v1778_v63  ;;  %v15045_v51 = vld [vmem:[#allocation53_spill] sm:$0xff] }
 0x1dd   : > { %v10793_v24 = vmul.f32 %v10377_v44, %v1777_v34  ;;  %v15044_v9 = vrot.slane %v15043_v54, 1  ;;  %v15046_v0 = vrot.slane %v15045_v51, 1  ;;  %v2152_v45 = vmul.f32 %v10377_v44, %v1778_v63 }
 0x1de   : > { %15042 = vst [vmem:[#allocation72_spill] sm:$0xff] %v10789_v43  ;;  %v10802_v3 = vmul.f32 %v10548_v39, %v1778_v63  ;;  %v10805_v47 = vmul.f32 %v10490_v23, %v1778_v63  ;;  %v10808_v40 = vmul.f32 %v10511_v5, %v1778_v63  ;;  %v1821_v10 = vmul.f32 %v10399_v13, %v1777_v34 }
 0x1df   : > { %v1978_v56 = vsel %vm1955_vm5, %v15046_v0, %v15044_v9  ;;  %v2032_v21 = vrot.slane %v10789_v43, 1  ;;  %v2034_v54 = vrot.slane %v1906_v12, 1  ;;  %v2279_v41 = vrot.slane %v2152_v45, 2  ;;  %v15049_v9 = vld [vmem:[#allocation92_spill] sm:$0xff] }
 0x1e0   : > { %15047 = vst [vmem:[#allocation55_spill] sm:$0xff] %v10802_v3  ;;  %15048 = vst [vmem:[#allocation73_spill] sm:$0xff] %v10805_v47  ;;  %v10816_v0 = vmul.f32 %v10530_v15, %v1778_v63  ;;  %v3144_v48 = vrot.slane %v10808_v40, 1  ;;  %v2949_v34 = vadd.f32 %v2917_v33, %v2879_v19  ;;  %v2950_v55 = vadd.f32 %v2918_v53, %v2880_v8  ;;  %v15052_v19 = vld [vmem:[#allocation67_spill] sm:$0xff]  ;;  %v15054_v8 = vld [vmem:[#allocation54_spill] sm:$0xff] }
 0x1e1   : > { %v2035_v7 = vsel %vm1955_vm5, %v2032_v21, %v2034_v54  ;;  %v3611_v37 = vld [vmem:[#allocation3 + $0x20] sm:$0xff]  ;;  %v3612_v12 = vld [vmem:[#allocation3 + $0x28] sm:$0xff]  ;;  %v3093_v45 = vsel %vm1955_vm5, %v3091_v61, %v3092_v49  ;;  %v15050_v51 = vrot.slane %v15049_v9, 1  ;;  %v3336_v63 = vrot.slane %v3234_v17, 2 }
 0x1e2   : > { %v10822_v29 = vadd.f32 %v2035_v7, %v1821_v10  ;;  %v3641_v47 = vpack.c.bf16 %v3612_v12, %v3611_v37  ;;  %v3194_v3 = vadd.f32 %v3093_v45, %v2949_v34  ;;  %v3337_v32 = vrot.slane %v3235_v30, 2  ;;  %v15056_v9 = vld [vmem:[#allocation76_spill] sm:$0xff] }
 0x1e3   : > { %v3095_v44 = vsel %vm1955_vm5, %v3092_v49, %v15050_v51  ;;  %v15051_v54 = vrot.slane %v10793_v24, 2  ;;  %v2076_v53 = vadd.f32 %v1978_v56, %v1798_v46  ;;  %v15053_v7 = vrot.slane %v15052_v19, 2  ;;  %v8892_v19 = vld [vmem:[#allocation2 + $0x98] sm:$0xff] }
 0x1e4   : > { %v3195_v43 = vadd.f32 %v3095_v44, %v2950_v55  ;;  %v15055_v10 = vrot.slane %v15054_v8, 2  ;;  %v2359_v49 = vmul.f32 %v10768_v62, %v10581_v14  ;;  %8568 = vmatprep.mubr.msk.bf16.mxu1 %vm1627_vm3, %v3641_v47  ;;  %v3338_v55 = vsel %vm1350_vm1, %v3336_v63, %v3337_v32 }
 0x1e5   : > { %v10831_v33 = vsel %vm1350_vm1, %v15051_v54, %v2279_v41  ;;  %v3340_v37 = vsel %vm1350_vm1, %v3337_v32, %v3339_v38  ;;  %v2360_v17 = vmul.f32 %v8890_v6, %v10581_v14  ;;  %v2432_v41 = vmul.f32 %v10768_v62, %v10548_v39 }
 0x1e6   : > { %v2223_v61 = vsel %vm1350_vm1, %v15055_v10, %v15053_v7  ;;  %v3439_v30 = vadd.f32 %v3338_v55, %v3194_v3  ;;  %v3440_v46 = vadd.f32 %v3340_v37, %v3195_v43  ;;  %v2433_v51 = vmul.f32 %v8890_v6, %v10548_v39  ;;  %v10853_v43 = vld [vmem:[#allocation2 + $0x90] sm:$0xff] }
 0x1e7   : > { %v2321_v56 = vadd.f32 %v2223_v61, %v2076_v53  ;;  %v2392_v44 = vadd.f32 %v2360_v17, %v15056_v9  ;;  %v2536_v34 = vrot.slane %v2432_v41, 1  ;;  %v2677_v47 = vmul.f32 %v10768_v62, %v10490_v23  ;;  %v15057_v61 = vld [vmem:[#allocation90_spill] sm:$0xff] }
 0x1e8   : > { %v2678_v12 = vmul.f32 %v8890_v6, %v10490_v23  ;;  %v3478_v32 = vmul.f32 %v10458_v1, %v3439_v30  ;;  %v3479_v38 = vmul.f32 %v10458_v1, %v3440_v46  ;;  %v2537_v63 = vrot.slane %v2433_v51, 1  ;;  %v15059_v30 = vld [vmem:[#allocation91_spill] sm:$0xff] }
 0x1e9   : > { %v2391_v45 = vadd.f32 %v2359_v49, %v2321_v56  ;;  %v2781_v54 = vrot.slane %v2677_v47, 2  ;;  %v2919_v53 = vmul.f32 %v10853_v43, %v10497_v16  ;;  %v2920_v7 = vmul.f32 %v8892_v19, %v10497_v16 }
 0x1ea   : > { %v2782_v3 = vrot.slane %v2678_v12, 2  ;;  %v3517_v8 = vadd.f32 %v10470_v20, %v3478_v32  ;;  %v3518_v6 = vadd.f32 %v10470_v20, %v3479_v38  ;;  %v2538_v10 = vsel %vm1955_vm5, %v2536_v34, %v2537_v63 }
 0x1eb   : > { %v15058_v55 = vrot.slane %v15057_v61, 1  ;;  %v2636_v37 = vadd.f32 %v2538_v10, %v2391_v45  ;;  %v15060_v46 = vrot.slane %v15059_v30, 2  ;;  %v2992_v47 = vmul.f32 %v10853_v43, %v10511_v5  ;;  %v15064_v30 = vld [vmem:[#allocation88_spill] sm:$0xff] }
 0x1ec   : > { %v2783_v41 = vsel %vm1350_vm1, %v2781_v54, %v2782_v3  ;;  %v3549_v51 = vmax.f32 %v3517_v8, 0.0  ;;  %v3550_v9 = vmax.f32 %v3518_v6, 0.0  ;;  %v2993_v12 = vmul.f32 %v8892_v19, %v10511_v5  ;;  %v15061_v54 = vld [vmem:[#allocation87_spill] sm:$0xff] }
 0x1ed   : > { %v2540_v49 = vsel %vm1955_vm5, %v2537_v63, %v15058_v55  ;;  %v2785_v56 = vsel %vm1350_vm1, %v2782_v3, %v15060_v46  ;;  %v2881_v34 = vadd.f32 %v2783_v41, %v2636_v37  ;;  %v3237_v38 = vmul.f32 %v10853_v43, %v10530_v15  ;;  %v15062_v37 = vld [vmem:[#allocation86_spill] sm:$0xff] }
 0x1ee   : > { %v2637_v17 = vadd.f32 %v2540_v49, %v2392_v44  ;;  %v3238_v44 = vmul.f32 %v8892_v19, %v10530_v15  ;;  %3581 = vst.msk [vmem:[#allocation3 + $0x30] sm:$0xff] %vm1627_vm3, %v3549_v51  ;;  %3582 = vst.msk [vmem:[#allocation3 + $0x38] sm:$0xff] %vm1627_vm3, %v3550_v9  ;;  %v3096_v45 = vrot.slane %v2992_v47, 1  ;;  %v3097_v63 = vrot.slane %v2993_v12, 1  ;;  %v15068_v47 = vld [vmem:[#allocation89_spill] sm:$0xff] }
 0x1ef   : > { %v3344_v3 = vrot.slane %v15061_v54, 2  ;;  %v1800_v8 = vmul.f32 %v10768_v62, %v10399_v13  ;;  %v2951_v6 = vadd.f32 %v2919_v53, %v2881_v34  ;;  %v3341_v61 = vrot.slane %v3237_v38, 2  ;;  %v15070_v54 = vld [vmem:[#allocation80_spill] sm:$0xff] }
 0x1f0   : > { %v2882_v32 = vadd.f32 %v2785_v56, %v2637_v17  ;;  %v3342_v55 = vrot.slane %v3238_v44, 2  ;;  %v3098_v49 = vsel %vm1955_vm5, %v3096_v45, %v3097_v63  ;;  %v15063_v17 = vrot.slane %v15062_v37, 1  ;;  %v15066_v56 = vld [vmem:[#allocation79_spill] sm:$0xff] }
 0x1f1   : > { %v15065_v46 = vrot.slane %v15064_v30, 1  ;;  %v15067_v51 = vrot.slane %v15066_v56, 1  ;;  %v15069_v12 = vrot.slane %v15068_v47, 2  ;;  %v15071_v62 = vrot.slane %v15070_v54, 2 }
 0x1f2   : > { %v2952_v10 = vadd.f32 %v2920_v7, %v2882_v32  ;;  %v3100_v41 = vsel %vm1955_vm5, %v3097_v63, %v15063_v17  ;;  %v3196_v7 = vadd.f32 %v3098_v49, %v2951_v6  ;;  %v3343_v32 = vsel %vm1350_vm1, %v3341_v61, %v3342_v55  ;;  %v15072_v61 = vld [vmem:[#allocation100_spill] sm:$0xff] }
 0x1f3   : > { %v1983_v9 = vsel %vm1955_vm5, %v15067_v51, %v15065_v46  ;;  %v2228_v53 = vsel %vm1350_vm1, %v15071_v62, %v15069_v12  ;;  %v3345_v38 = vsel %vm1350_vm1, %v3342_v55, %v3344_v3  ;;  %v2361_v45 = vmul.f32 %v10853_v43, %v10581_v14 }
 0x1f4   : > { %v3197_v34 = vadd.f32 %v3100_v41, %v2952_v10  ;;  %v2078_v44 = vadd.f32 %v1983_v9, %v1800_v8  ;;  %v2362_v63 = vmul.f32 %v8892_v19, %v10581_v14  ;;  %v2435_v37 = vmul.f32 %v10853_v43, %v10548_v39 }
 0x1f5   : > { %v3441_v17 = vadd.f32 %v3343_v32, %v3196_v7  ;;  %v2436_v46 = vmul.f32 %v8892_v19, %v10548_v39  ;;  %v2680_v6 = vmul.f32 %v10853_v43, %v10490_v23  ;;  %v2681_v8 = vmul.f32 %v8892_v19, %v10490_v23  ;;  %v3613_v55 = vld [vmem:[#allocation3 + $0x30] sm:$0xff]  ;;  %v3614_v41 = vld [vmem:[#allocation3 + $0x38] sm:$0xff] }
 0x1f6   : > { %v3442_v30 = vadd.f32 %v3345_v38, %v3197_v34  ;;  %v2323_v10 = vadd.f32 %v2228_v53, %v2078_v44  ;;  %v2394_v49 = vadd.f32 %v2362_v63, %v15072_v61  ;;  %v2541_v3 = vrot.slane %v2435_v37, 1  ;;  %v10907_v7 = vld [vmem:[#allocation2 + $0xa8] sm:$0xff] }
 0x1f7   : > { %v3480_v56 = vmul.f32 %v10458_v1, %v3441_v17  ;;  %v2542_v9 = vrot.slane %v2436_v46, 1  ;;  %v2786_v47 = vrot.slane %v2680_v6, 2  ;;  %v3642_v12 = vpack.c.bf16 %v3614_v41, %v3613_v55  ;;  %v15073_v38 = vld [vmem:[#allocation84_spill] sm:$0xff] }
 0x1f8   : > { %v3481_v51 = vmul.f32 %v10458_v1, %v3442_v30  ;;  %v2393_v54 = vadd.f32 %v2361_v45, %v2323_v10  ;;  %v2787_v62 = vrot.slane %v2681_v8, 2  ;;  %v2921_v53 = vmul.f32 %v10907_v7, %v10497_v16  ;;  %v15075_v30 = vld [vmem:[#allocation85_spill] sm:$0xff] }
 0x1f9   : > { %v3519_v34 = vadd.f32 %v10470_v20, %v3480_v56  ;;  %v2543_v32 = vsel %vm1955_vm5, %v2541_v3, %v2542_v9  ;;  %v15074_v44 = vrot.slane %v15073_v38, 1  ;;  %8569 = vmatmul.mubr.msk.bf16.gmra.mxu1 %vm1627_vm3, %v3642_v12  ;;  %v15076_v46 = vrot.slane %v15075_v30, 2  ;;  %v8894_v8 = vld [vmem:[#allocation2 + $0xb0] sm:$0xff]  ;;  %v15081_v30 = vld [vmem:[#allocation83_spill] sm:$0xff] }
 0x1fa   : > { %v3520_v19 = vadd.f32 %v10470_v20, %v3481_v51  ;;  %v2638_v37 = vadd.f32 %v2543_v32, %v2393_v54  ;;  %v2788_v17 = vsel %vm1350_vm1, %v2786_v47, %v2787_v62  ;;  %v2922_v55 = vmul.f32 %v8894_v8, %v10497_v16 }
 0x1fb   : > { %v2545_v63 = vsel %vm1955_vm5, %v2542_v9, %v15074_v44  ;;  %v2790_v6 = vsel %vm1350_vm1, %v2787_v62, %v15076_v46  ;;  %v3551_v10 = vmax.f32 %v3519_v34, 0.0  ;;  %v2995_v3 = vmul.f32 %v10907_v7, %v10511_v5  ;;  %v15077_v44 = vld [vmem:[#allocation82_spill] sm:$0xff] }
 0x1fc   : > { %v2639_v45 = vadd.f32 %v2545_v63, %v2394_v49  ;;  %v3552_v61 = vmax.f32 %v3520_v19, 0.0  ;;  %v2883_v41 = vadd.f32 %v2788_v17, %v2638_v37  ;;  %v2996_v51 = vmul.f32 %v8894_v8, %v10511_v5  ;;  %v15079_v37 = vld [vmem:[#allocation77_spill] sm:$0xff] }
 0x1fd   : > { %v3240_v49 = vmul.f32 %v10907_v7, %v10530_v15  ;;  %3583 = vst.msk [vmem:[#allocation3 + $0x40] sm:$0xff] %vm1627_vm3, %v3551_v10  ;;  %v3101_v9 = vrot.slane %v2995_v3, 1  ;;  %v3241_v47 = vmul.f32 %v8894_v8, %v10530_v15  ;;  %v3349_v12 = vrot.slane %v10074_v25, 2 }
 0x1fe   : > { %v2884_v56 = vadd.f32 %v2790_v6, %v2639_v45  ;;  %3584 = vst.msk [vmem:[#allocation3 + $0x48] sm:$0xff] %vm1627_vm3, %v3552_v61  ;;  %v1802_v54 = vmul.f32 %v10853_v43, %v10399_v13  ;;  %v2953_v62 = vadd.f32 %v2921_v53, %v2883_v41  ;;  %v3102_v19 = vrot.slane %v2996_v51, 1  ;;  %v15083_v6 = vld [vmem:[#allocation78_spill] sm:$0xff] }
 0x1ff   : > { %v3346_v32 = vrot.slane %v3240_v49, 2  ;;  %v3347_v38 = vrot.slane %v3241_v47, 2  ;;  %v15078_v63 = vrot.slane %v15077_v44, 1  ;;  %v15080_v45 = vrot.slane %v15079_v37, 1 }
 0x200   : > { %v2954_v34 = vadd.f32 %v2922_v55, %v2884_v56  ;;  %v15082_v46 = vrot.slane %v15081_v30, 2  ;;  %v15084_v10 = vrot.slane %v15083_v6, 2  ;;  %v2363_v43 = vmul.f32 %v10907_v7, %v10581_v14 }
 0x201   : > { %v1988_v17 = vsel %vm1955_vm5, %v15080_v45, %v15078_v63  ;;  %v3103_v53 = vsel %vm1955_vm5, %v3101_v9, %v3102_v19  ;;  %v15085_v61 = vrot.slane %v10057_v42, 1  ;;  %v2364_v41 = vmul.f32 %v8894_v8, %v10581_v14  ;;  %v15086_v63 = vld [vmem:[#allocation93_spill] sm:$0xff] }
 0x202   : > { %v2233_v25 = vsel %vm1350_vm1, %v15084_v10, %v15082_v46  ;;  %v2080_v3 = vadd.f32 %v1988_v17, %v1802_v54  ;;  %v3198_v56 = vadd.f32 %v3103_v53, %v2953_v62  ;;  %v3348_v49 = vsel %vm1350_vm1, %v3346_v32, %v3347_v38 }
 0x203   : > { %v3105_v55 = vsel %vm1955_vm5, %v3102_v19, %v15085_v61  ;;  %v3350_v47 = vsel %vm1350_vm1, %v3347_v38, %v3349_v12  ;;  %v2396_v37 = vadd.f32 %v2364_v41, %v15086_v63  ;;  %v2438_v45 = vmul.f32 %v10907_v7, %v10548_v39  ;;  %v10960_v38 = vld [vmem:[#allocation2 + $0xc0] sm:$0xff] }
 0x204   : > { %v3199_v51 = vadd.f32 %v3105_v55, %v2954_v34  ;;  %v2325_v44 = vadd.f32 %v2233_v25, %v2080_v3  ;;  %v2439_v9 = vmul.f32 %v8894_v8, %v10548_v39  ;;  %v3443_v42 = vadd.f32 %v3348_v49, %v3198_v56  ;;  %v3615_v34 = vld [vmem:[#allocation3 + $0x40] sm:$0xff]  ;;  %v8896_v3 = vld [vmem:[#allocation2 + $0xc8] sm:$0xff] }
 0x205   : > { %v2683_v54 = vmul.f32 %v10907_v7, %v10490_v23  ;;  %v2684_v62 = vmul.f32 %v8894_v8, %v10490_v23  ;;  %v3616_v19 = vld [vmem:[#allocation3 + $0x48] sm:$0xff]  ;;  %v2546_v17 = vrot.slane %v2438_v45, 1  ;;  %v2923_v46 = vmul.f32 %v10960_v38, %v10497_v16 }
 0x206   : > { %v3444_v30 = vadd.f32 %v3350_v47, %v3199_v51  ;;  %v2395_v32 = vadd.f32 %v2363_v43, %v2325_v44  ;;  %v2547_v12 = vrot.slane %v2439_v9, 1  ;;  %v3643_v6 = vpack.c.bf16 %v3616_v19, %v3615_v34 }
 0x207   : > { %v3482_v10 = vmul.f32 %v10458_v1, %v3443_v42  ;;  %v2791_v53 = vrot.slane %v2683_v54, 2  ;;  %v15087_v8 = vrot.slane %v10050_v35, 1  ;;  %v2792_v43 = vrot.slane %v2684_v62, 2 }
 0x208   : > { %v3483_v25 = vmul.f32 %v10458_v1, %v3444_v30  ;;  %v2548_v61 = vsel %vm1955_vm5, %v2546_v17, %v2547_v12  ;;  %v2924_v41 = vmul.f32 %v8896_v3, %v10497_v16  ;;  %8572 = vmatprep.mubr.msk.bf16.mxu1 %vm1627_vm3, %v3643_v6  ;;  %v15088_v63 = vrot.slane %v10053_v28, 2 }
 0x209   : > { %v2550_v55 = vsel %vm1955_vm5, %v2547_v12, %v15087_v8  ;;  %v3521_v56 = vadd.f32 %v10470_v20, %v3482_v10  ;;  %v2640_v49 = vadd.f32 %v2548_v61, %v2395_v32  ;;  %v2793_v44 = vsel %vm1350_vm1, %v2791_v53, %v2792_v43  ;;  %v15089_v12 = vld [vmem:[#allocation105_spill] sm:$0xff]  ;;  %v15090_v53 = vld [vmem:[#allocation104_spill] sm:$0xff] }
 0x20a   : > { %v3522_v51 = vadd.f32 %v10470_v20, %v3483_v25  ;;  %v2641_v47 = vadd.f32 %v2550_v55, %v2396_v37  ;;  %v2795_v35 = vsel %vm1350_vm1, %v2792_v43, %v15088_v63  ;;  %v2998_v45 = vmul.f32 %v10960_v38, %v10511_v5  ;;  %v15096_v63 = vld [vmem:[#allocation98_spill] sm:$0xff] }
 0x20b   : > { %v2999_v9 = vmul.f32 %v8896_v3, %v10511_v5  ;;  %v3553_v42 = vmax.f32 %v3521_v56, 0.0  ;;  %v2885_v54 = vadd.f32 %v2793_v44, %v2640_v49  ;;  %v3243_v37 = vmul.f32 %v10960_v38, %v10530_v15 }
 0x20c   : > { %v3554_v30 = vmax.f32 %v3522_v51, 0.0  ;;  %v2886_v62 = vadd.f32 %v2795_v35, %v2641_v47  ;;  %v3106_v34 = vrot.slane %v2998_v45, 1  ;;  %v3244_v32 = vmul.f32 %v8896_v3, %v10530_v15  ;;  %v15093_v47 = vld [vmem:[#allocation97_spill] sm:$0xff] }
 0x20d   : > { %v3107_v19 = vrot.slane %v2999_v9, 1  ;;  %3585 = vst.msk [vmem:[#allocation3 + $0x50] sm:$0xff] %vm1627_vm3, %v3553_v42  ;;  %v2955_v28 = vadd.f32 %v2923_v46, %v2885_v54  ;;  %v3354_v6 = vrot.slane %v15089_v12, 2  ;;  %v1804_v10 = vmul.f32 %v10907_v7, %v10399_v13 }
 0x20e   : > { %3586 = vst.msk [vmem:[#allocation3 + $0x58] sm:$0xff] %vm1627_vm3, %v3554_v30  ;;  %v2956_v17 = vadd.f32 %v2924_v41, %v2886_v62  ;;  %v15091_v61 = vrot.slane %v15090_v53, 1  ;;  %v3351_v55 = vrot.slane %v3243_v37, 2  ;;  %v3352_v43 = vrot.slane %v3244_v32, 2 }
 0x20f   : > { %v3108_v25 = vsel %vm1955_vm5, %v3106_v34, %v3107_v19  ;;  %v15092_v49 = vrot.slane %v10037_v27, 1  ;;  %v15094_v46 = vrot.slane %v15093_v47, 1  ;;  %v15095_v44 = vrot.slane %v10042_v26, 2 }
 0x210   : > { %v3110_v8 = vsel %vm1955_vm5, %v3107_v19, %v15091_v61  ;;  %v3200_v56 = vadd.f32 %v3108_v25, %v2955_v28  ;;  %v15097_v13 = vrot.slane %v15096_v63, 2  ;;  %v3353_v35 = vsel %vm1350_vm1, %v3351_v55, %v3352_v43 }
 0x211   : > { %v3201_v51 = vadd.f32 %v3110_v8, %v2956_v17  ;;  %v1993_v41 = vsel %vm1955_vm5, %v15094_v46, %v15092_v49  ;;  %v3355_v45 = vsel %vm1350_vm1, %v3352_v43, %v3354_v6  ;;  %v2365_v42 = vmul.f32 %v10960_v38, %v10581_v14 }
 0x212   : > { %v2238_v7 = vsel %vm1350_vm1, %v15097_v13, %v15095_v44  ;;  %v2082_v9 = vadd.f32 %v1993_v41, %v1804_v10  ;;  %v3445_v30 = vadd.f32 %v3353_v35, %v3200_v56  ;;  %v2366_v54 = vmul.f32 %v8896_v3, %v10581_v14  ;;  %v15100_v41 = vld [vmem:[#allocation103_spill] sm:$0xff] }
 0x213   : > { %v3446_v27 = vadd.f32 %v3355_v45, %v3201_v51  ;;  %v2441_v62 = vmul.f32 %v10960_v38, %v10548_v39  ;;  %v2442_v34 = vmul.f32 %v8896_v3, %v10548_v39  ;;  %v2686_v19 = vmul.f32 %v10960_v38, %v10490_v23  ;;  %v11019_v51 = vld [vmem:[#allocation2 + $0xd8] sm:$0xff]  ;;  %v8898_v45 = vld [vmem:[#allocation2 + $0xe0] sm:$0xff] }
 0x214   : > { %v2327_v26 = vadd.f32 %v2238_v7, %v2082_v9  ;;  %v2687_v37 = vmul.f32 %v8896_v3, %v10490_v23  ;;  %v3484_v32 = vmul.f32 %v10458_v1, %v3445_v30  ;;  %v2398_v17 = vadd.f32 %v2366_v54, %v10150_v36  ;;  %v3617_v6 = vld [vmem:[#allocation3 + $0x50] sm:$0xff] }
 0x215   : > { %v3485_v28 = vmul.f32 %v10458_v1, %v3446_v27  ;;  %v2551_v12 = vrot.slane %v2441_v62, 1  ;;  %v3618_v10 = vld [vmem:[#allocation3 + $0x58] sm:$0xff]  ;;  %v2552_v53 = vrot.slane %v2442_v34, 1  ;;  %v2796_v61 = vrot.slane %v2686_v19, 2  ;;  %v15098_v3 = vld [vmem:[#allocation102_spill] sm:$0xff] }
 0x216   : > { %v2397_v25 = vadd.f32 %v2365_v42, %v2327_v26  ;;  %v2797_v8 = vrot.slane %v2687_v37, 2  ;;  %v3644_v55 = vpack.c.bf16 %v3618_v10, %v3617_v6  ;;  %v3523_v43 = vadd.f32 %v10470_v20, %v3484_v32  ;;  %v8832_v54 = vld [vmem:[%s9136_s24] sm:$0xff]  }
 0x217   : > { %v3524_v56 = vadd.f32 %v10470_v20, %v3485_v28  ;;  %v2925_v1 = vmul.f32 %v11019_v51, %v10497_v16  ;;  %v2553_v36 = vsel %vm1955_vm5, %v2551_v12, %v2552_v53  ;;  %v15099_v49 = vrot.slane %v15098_v3, 1  ;;  %8596 = vmatprep.subr.bf16.mxu1 %v8832_v54 }
 0x218   : > { %v2798_v46 = vsel %vm1350_vm1, %v2796_v61, %v2797_v8  ;;  %v15101_v44 = vrot.slane %v15100_v41, 2  ;;  %8573 = vmatmul.mubr.msk.bf16.gmra.mxu1 %vm1627_vm3, %v3644_v55  ;;  %v3555_v20 = vmax.f32 %v3523_v43, 0.0  ;;  %v2642_v7 = vadd.f32 %v2553_v36, %v2397_v25 }
 0x219   : > { %v2555_v47 = vsel %vm1955_vm5, %v2552_v53, %v15099_v49  ;;  %v3556_v13 = vmax.f32 %v3524_v56, 0.0  ;;  %v2926_v9 = vmul.f32 %v8898_v45, %v10497_v16  ;;  %v3001_v42 = vmul.f32 %v11019_v51, %v10511_v5  ;;  %v15102_v53 = vld [vmem:[#allocation99_spill] sm:$0xff]  ;;  %8597 = vmatpush3.bf16.msra.mxu1 %v8832_v54  ;;  %v15107_v49 = vld [vmem:[#allocation101_spill] sm:$0xff] }
 0x21a   : > { %v2800_v63 = vsel %vm1350_vm1, %v2797_v8, %v15101_v44  ;;  %v2643_v35 = vadd.f32 %v2555_v47, %v2398_v17  ;;  %v3002_v30 = vmul.f32 %v8898_v45, %v10511_v5  ;;  %v3246_v27 = vmul.f32 %v11019_v51, %v10530_v15  ;;  %3587 = vst.msk [vmem:[#allocation3 + $0x60] sm:$0xff] %vm1627_vm3, %v3555_v20  ;;  %v11044_v17 = vld [vmem:[%s9106_s25] ss:$0 sm:$0xff]  ;;  %v15109_v47 = vld [vmem:[#allocation96_spill] sm:$0xff] }
 0x21b   : > { %3588 = vst.msk [vmem:[#allocation3 + $0x68] sm:$0xff] %vm1627_vm3, %v3556_v13  ;;  %v2887_v62 = vadd.f32 %v2798_v46, %v2642_v7  ;;  %v3247_v34 = vmul.f32 %v8898_v45, %v10530_v15  ;;  %v3359_v19 = vrot.slane %v10284_v60, 2  ;;  %v3111_v37 = vrot.slane %v3001_v42, 1  ;;  %v15104_v8 = vld [vmem:[#allocation94_spill] sm:$0xff] }
 0x21c   : > { %v2888_v26 = vadd.f32 %v2800_v63, %v2643_v35  ;;  %v3112_v32 = vrot.slane %v3002_v30, 1  ;;  %v3356_v28 = vrot.slane %v3246_v27, 2  ;;  %v1806_v12 = vmul.f32 %v11044_v17, %v10960_v38 }
 0x21d   : > { %v2957_v6 = vadd.f32 %v2925_v1, %v2887_v62  ;;  %v3357_v25 = vrot.slane %v3247_v34, 2  ;;  %v15103_v61 = vrot.slane %v15102_v53, 1  ;;  %v15105_v55 = vrot.slane %v15104_v8, 1 }
 0x21e   : > { %v2958_v10 = vadd.f32 %v2926_v9, %v2888_v26  ;;  %v3113_v60 = vsel %vm1955_vm5, %v3111_v37, %v3112_v32  ;;  %v15106_v56 = vrot.slane %v10271_v4, 1  ;;  %v15108_v38 = vrot.slane %v15107_v49, 2 }
 0x21f   : > { %v1998_v43 = vsel %vm1955_vm5, %v15105_v55, %v15103_v61  ;;  %v15110_v1 = vrot.slane %v15109_v47, 2  ;;  %v3202_v41 = vadd.f32 %v3113_v60, %v2957_v6  ;;  %v3358_v63 = vsel %vm1350_vm1, %v3356_v28, %v3357_v25  ;;  %v11075_v28 = vld [vmem:[%s9111_s29] ss:$0 sm:$0xff]  ;;  %v11079_v61 = vld [vmem:[#allocation2 + $0xf0] sm:$0xff]  ;;  %v8902_v55 = vld [vmem:[#allocation2 + $0xf8] sm:$0xff] }
 0x220   : > { %v3115_v36 = vsel %vm1955_vm5, %v3112_v32, %v15106_v56  ;;  %v2084_v3 = vadd.f32 %v1998_v43, %v1806_v12  ;;  %v3360_v20 = vsel %vm1350_vm1, %v3357_v25, %v3359_v19  ;;  %v2367_v4 = vmul.f32 %v11019_v51, %v10581_v14 }
 0x221   : > { %v2243_v46 = vsel %vm1350_vm1, %v15110_v1, %v15108_v38  ;;  %v3203_v44 = vadd.f32 %v3115_v36, %v2958_v10  ;;  %v2368_v7 = vmul.f32 %v8898_v45, %v10581_v14  ;;  %v2444_v35 = vmul.f32 %v11019_v51, %v10548_v39  ;;  %v3619_v54 = vld [vmem:[#allocation3 + $0x60] sm:$0xff] }
 0x222   : > { %v2329_v13 = vadd.f32 %v2243_v46, %v2084_v3  ;;  %v3447_v9 = vadd.f32 %v3358_v63, %v3202_v41  ;;  %v2445_v30 = vmul.f32 %v8898_v45, %v10548_v39  ;;  %v2689_v27 = vmul.f32 %v11019_v51, %v10490_v23  ;;  %v3620_v62 = vld [vmem:[#allocation3 + $0x68] sm:$0xff] }
 0x223   : > { %v3448_v42 = vadd.f32 %v3360_v20, %v3203_v44  ;;  %v2400_v34 = vadd.f32 %v2368_v7, %v10059_v57  ;;  %v2556_v19 = vrot.slane %v2444_v35, 1  ;;  %v2690_v37 = vmul.f32 %v8898_v45, %v10490_v23  ;;  %v11086_v23 = vld [vmem:[%s14839_s3] ss:$0 sm:$0xff]  ;;  %s15499_s3 = sld [smem:[#allocation22_spill]] }
 0x224   : > { %v2399_v26 = vadd.f32 %v2367_v4, %v2329_v13  ;;  %v3645_v32 = vpack.c.bf16 %v3620_v62, %v3619_v54  ;;  %v3486_v12 = vmul.f32 %v11075_v28, %v3447_v9  ;;  %v2557_v10 = vrot.slane %v2445_v30, 1  ;;  %v15114_v62 = vld [vmem:[#allocation125_spill] sm:$0xff] }
 0x225   : > { %v3487_v6 = vmul.f32 %v11075_v28, %v3448_v42  ;;  %v2801_v25 = vrot.slane %v2689_v27, 2  ;;  %v2802_v53 = vrot.slane %v2690_v37, 2  ;;  %v2927_v8 = vmul.f32 %v11079_v61, %v10497_v16  ;;  %v15118_v37 = vld [vmem:[#allocation126_spill] sm:$0xff] }
 0x226   : > { %v2928_v57 = vmul.f32 %v8902_v55, %v10497_v16  ;;  %8576 = vmatprep.mubr.msk.bf16.mxu1 %vm1627_vm3, %v3645_v32  ;;  %v3525_v45 = vadd.f32 %v11086_v23, %v3486_v12  ;;  %v2558_v60 = vsel %vm1955_vm5, %v2556_v19, %v2557_v10  ;;  %v15111_v56 = vrot.slane %v10261_v11, 1 }
 0x227   : > { %v3526_v43 = vadd.f32 %v11086_v23, %v3487_v6  ;;  %v2644_v3 = vadd.f32 %v2558_v60, %v2399_v26  ;;  %v2803_v38 = vsel %vm1350_vm1, %v2801_v25, %v2802_v53  ;;  %v15112_v16 = vrot.slane %v10264_v31, 2 }
 0x228   : > { %v2560_v36 = vsel %vm1955_vm5, %v2557_v10, %v15111_v56  ;;  %v3557_v1 = vmax.f32 %v3525_v45, 0.0  ;;  %v3004_v41 = vmul.f32 %v11079_v61, %v10511_v5  ;;  %v3005_v44 = vmul.f32 %v8902_v55, %v10511_v5 }
 0x229   : > { %v2645_v49 = vadd.f32 %v2560_v36, %v2400_v34  ;;  %v2805_v47 = vsel %vm1350_vm1, %v2802_v53, %v15112_v16  ;;  %v3558_v46 = vmax.f32 %v3526_v43, 0.0  ;;  %v2889_v63 = vadd.f32 %v2803_v38, %v2644_v3  ;;  %v15116_v34 = vld [vmem:[#allocation119_spill] sm:$0xff]  ;;  %v15122_v16 = vld [vmem:[#allocation132_spill] sm:$0xff] }
 0x22a   : > { %v3249_v11 = vmul.f32 %v11079_v61, %v10530_v15  ;;  %v3250_v13 = vmul.f32 %v8902_v55, %v10530_v15  ;;  %3589 = vst.msk [vmem:[#allocation3 + $0x70] sm:$0xff] %vm1627_vm3, %v3557_v1  ;;  %v3116_v31 = vrot.slane %v3004_v41, 1  ;;  %v3117_v4 = vrot.slane %v3005_v44, 1  ;;  %v11132_v3 = vld [vmem:[%s9106_s25 + $0x6] ss:$0 sm:$0xff] }
 0x22b   : > { %v2890_v20 = vadd.f32 %v2805_v47, %v2645_v49  ;;  %3590 = vst.msk [vmem:[#allocation3 + $0x78] sm:$0xff] %vm1627_vm3, %v3558_v46  ;;  %v3364_v7 = vrot.slane %v10244_v58, 2  ;;  %v1808_v35 = vmul.f32 %v11044_v17, %v11019_v51  ;;  %v2959_v9 = vadd.f32 %v2927_v8, %v2889_v63  ;;  %v15120_v51 = vld [vmem:[#allocation120_spill] sm:$0xff] }
 0x22c   : > { %v3361_v42 = vrot.slane %v3249_v11, 2  ;;  %v3362_v30 = vrot.slane %v3250_v13, 2  ;;  %v3118_v27 = vsel %vm1955_vm5, %v3116_v31, %v3117_v4  ;;  %v15113_v15 = vrot.slane %v10239_v2, 1 }
 0x22d   : > { %v2960_v5 = vadd.f32 %v2928_v57, %v2890_v20  ;;  %v15115_v26 = vrot.slane %v15114_v62, 1  ;;  %v15117_v19 = vrot.slane %v15116_v34, 1  ;;  %v15119_v32 = vrot.slane %v15118_v37, 2 }
 0x22e   : > { %v3120_v54 = vsel %vm1955_vm5, %v3117_v4, %v15113_v15  ;;  %v15121_v12 = vrot.slane %v15120_v51, 2  ;;  %v3204_v10 = vadd.f32 %v3118_v27, %v2959_v9  ;;  %v3363_v53 = vsel %vm1350_vm1, %v3361_v42, %v3362_v30  ;;  %v11141_v4 = vld [vmem:[%s9106_s25 + $0x8] ss:$0 sm:$0xff] }
 0x22f   : > { %v2003_v58 = vsel %vm1955_vm5, %v15117_v19, %v15115_v26  ;;  %v3205_v25 = vadd.f32 %v3120_v54, %v2960_v5  ;;  %v3365_v2 = vsel %vm1350_vm1, %v3362_v30, %v3364_v7  ;;  %v2369_v57 = vmul.f32 %v11079_v61, %v10581_v14  ;;  %v11143_v7 = vld [vmem:[#allocation2 + $0x108] sm:$0xff] }
 0x230   : > { %v2248_v6 = vsel %vm1350_vm1, %v15121_v12, %v15119_v32  ;;  %v2086_v8 = vadd.f32 %v2003_v58, %v1808_v35  ;;  %v2370_v45 = vmul.f32 %v8902_v55, %v10581_v14  ;;  %v2447_v43 = vmul.f32 %v11079_v61, %v10548_v39  ;;  %v15123_v42 = vld [vmem:[#allocation123_spill] sm:$0xff]  ;;  %v15125_v26 = vld [vmem:[#allocation124_spill] sm:$0xff] }
 0x231   : > { %v3449_v60 = vadd.f32 %v3363_v53, %v3204_v10  ;;  %v3450_v56 = vadd.f32 %v3365_v2, %v3205_v25  ;;  %v2448_v36 = vmul.f32 %v8902_v55, %v10548_v39  ;;  %v2692_v49 = vmul.f32 %v11132_v3, %v11079_v61  ;;  %v3621_v14 = vld [vmem:[#allocation3 + $0x70] sm:$0xff]  ;;  %v8907_v32 = vld [vmem:[#allocation2 + $0x110] sm:$0xff]  ;;  %v11160_v12 = vld [vmem:[%s9106_s25 + $0x9] ss:$0 sm:$0xff] }
 0x232   : > { %v2331_v38 = vadd.f32 %v2248_v6, %v2086_v8  ;;  %v2402_v47 = vadd.f32 %v2370_v45, %v15122_v16  ;;  %v2561_v1 = vrot.slane %v2447_v43, 1  ;;  %v2693_v46 = vmul.f32 %v11132_v3, %v8902_v55  ;;  %v3622_v41 = vld [vmem:[#allocation3 + $0x78] sm:$0xff] }
 0x233   : > { %v3488_v44 = vmul.f32 %v11075_v28, %v3449_v60  ;;  %v3489_v63 = vmul.f32 %v11075_v28, %v3450_v56  ;;  %v2562_v20 = vrot.slane %v2448_v36, 1  ;;  %v2806_v39 = vrot.slane %v2692_v49, 2  ;;  %v11166_v2 = vld [vmem:[%s9106_s25 + $0xa] ss:$0 sm:$0xff] }
 0x234   : > { %v3646_v11 = vpack.c.bf16 %v3622_v41, %v3621_v14  ;;  %v2401_v13 = vadd.f32 %v2369_v57, %v2331_v38  ;;  %v2807_v31 = vrot.slane %v2693_v46, 2  ;;  %v2929_v35 = vmul.f32 %v11143_v7, %v11141_v4  ;;  %v15129_v46 = vld [vmem:[#allocation117_spill] sm:$0xff] }
 0x235   : > { %v3527_v55 = vadd.f32 %v11086_v23, %v3488_v44  ;;  %v3528_v9 = vadd.f32 %v11086_v23, %v3489_v63  ;;  %v2563_v5 = vsel %vm1955_vm5, %v2561_v1, %v2562_v20  ;;  %v15124_v30 = vrot.slane %v15123_v42, 1  ;;  %v15131_v44 = vld [vmem:[#allocation122_spill] sm:$0xff] }
 0x236   : > { %8577 = vmatmul.mubr.msk.bf16.gmra.mxu1 %vm1627_vm3, %v3646_v11  ;;  %v2646_v15 = vadd.f32 %v2563_v5, %v2401_v13  ;;  %v2808_v62 = vsel %vm1350_vm1, %v2806_v39, %v2807_v31  ;;  %v15126_v34 = vrot.slane %v15125_v26, 2  ;;  %v2930_v51 = vmul.f32 %v8907_v32, %v11141_v4  ;;  %v11187_v11 = vld [vmem:[%s9106_s25 + $0x4] ss:$0 sm:$0xff] }
 0x237   : > { %v2565_v27 = vsel %vm1955_vm5, %v2562_v20, %v15124_v30  ;;  %v3559_v58 = vmax.f32 %v3527_v55, 0.0  ;;  %v3560_v37 = vmax.f32 %v3528_v9, 0.0  ;;  %v3007_v6 = vmul.f32 %v11160_v12, %v11143_v7  ;;  %v15133_v20 = vld [vmem:[#allocation118_spill] sm:$0xff] }
 0x238   : > { %v2647_v54 = vadd.f32 %v2565_v27, %v2402_v47  ;;  %v2810_v19 = vsel %vm1350_vm1, %v2807_v31, %v15126_v34  ;;  %v2891_v10 = vadd.f32 %v2808_v62, %v2646_v15  ;;  %v3008_v53 = vmul.f32 %v11160_v12, %v8907_v32  ;;  %v15127_v47 = vld [vmem:[#allocation121_spill] sm:$0xff]  ;;  %v15135_v31 = vld [vmem:[#allocation143_spill] sm:$0xff] }
 0x239   : > { %v3252_v8 = vmul.f32 %v11166_v2, %v11143_v7  ;;  %3591 = vst.msk [vmem:[#allocation3 + $0x80] sm:$0xff] %vm1627_vm3, %v3559_v58  ;;  %3592 = vst.msk [vmem:[#allocation3 + $0x88] sm:$0xff] %vm1627_vm3, %v3560_v37  ;;  %v3121_v57 = vrot.slane %v3007_v6, 1  ;;  %v3253_v45 = vmul.f32 %v11166_v2, %v8907_v32  ;;  %v3369_v43 = vrot.slane %v10374_v22, 2  ;;  %v15137_v62 = vld [vmem:[#allocation127_spill] sm:$0xff] }
 0x23a   : > { %v2892_v25 = vadd.f32 %v2810_v19, %v2647_v54  ;;  %v1810_v60 = vmul.f32 %v11079_v61, %v11044_v17  ;;  %v2961_v56 = vadd.f32 %v2929_v35, %v2891_v10  ;;  %v3122_v49 = vrot.slane %v3008_v53, 1  ;;  %v11200_v34 = vld [vmem:[%s9106_s25 + $0x5] ss:$0 sm:$0xff] }
 0x23b   : > { %v3366_v38 = vrot.slane %v3252_v8, 2  ;;  %v3367_v16 = vrot.slane %v3253_v45, 2  ;;  %v15128_v1 = vrot.slane %v15127_v47, 1  ;;  %v15130_v14 = vrot.slane %v15129_v46, 1  ;;  %v15138_v47 = vld [vmem:[#allocation141_spill] sm:$0xff] }
 0x23c   : > { %v2962_v36 = vadd.f32 %v2930_v51, %v2892_v25  ;;  %v15132_v63 = vrot.slane %v15131_v44, 2  ;;  %v15134_v39 = vrot.slane %v15133_v20, 2  ;;  %v2371_v61 = vmul.f32 %v11187_v11, %v11143_v7 }
 0x23d   : > { %v2008_v41 = vsel %vm1955_vm5, %v15130_v14, %v15128_v1  ;;  %v3123_v13 = vsel %vm1955_vm5, %v3121_v57, %v3122_v49  ;;  %v15136_v35 = vrot.slane %v15135_v31, 1  ;;  %v2372_v5 = vmul.f32 %v11187_v11, %v8907_v32  ;;  %v8913_v14 = vld [vmem:[#allocation2 + $0x128] sm:$0xff] }
 0x23e   : > { %v2253_v22 = vsel %vm1350_vm1, %v15134_v39, %v15132_v63  ;;  %v2088_v9 = vadd.f32 %v2008_v41, %v1810_v60  ;;  %v3206_v42 = vadd.f32 %v3123_v13, %v2961_v56  ;;  %v3368_v27 = vsel %vm1350_vm1, %v3366_v38, %v3367_v16 }
 0x23f   : > { %v3125_v55 = vsel %vm1955_vm5, %v3122_v49, %v15136_v35  ;;  %v3370_v15 = vsel %vm1350_vm1, %v3367_v16, %v3369_v43  ;;  %v2404_v26 = vadd.f32 %v2372_v5, %v15137_v62  ;;  %v2450_v19 = vmul.f32 %v11200_v34, %v11143_v7  ;;  %v11208_v43 = vld [vmem:[#allocation2 + $0x120] sm:$0xff] }
 0x240   : > { %v3207_v30 = vadd.f32 %v3125_v55, %v2962_v36  ;;  %v2333_v54 = vadd.f32 %v2253_v22, %v2088_v9  ;;  %v2451_v58 = vmul.f32 %v11200_v34, %v8907_v32  ;;  %v3451_v37 = vadd.f32 %v3368_v27, %v3206_v42  ;;  %v3623_v25 = vld [vmem:[#allocation3 + $0x80] sm:$0xff]  ;;  %v3624_v53 = vld [vmem:[#allocation3 + $0x88] sm:$0xff] }
 0x241   : > { %v2695_v6 = vmul.f32 %v11143_v7, %v11132_v3  ;;  %v2696_v10 = vmul.f32 %v8907_v32, %v11132_v3  ;;  %v2566_v57 = vrot.slane %v2450_v19, 1  ;;  %v2931_v60 = vmul.f32 %v11208_v43, %v11141_v4 }
 0x242   : > { %v3452_v51 = vadd.f32 %v3370_v15, %v3207_v30  ;;  %v2403_v8 = vadd.f32 %v2371_v61, %v2333_v54  ;;  %v2567_v45 = vrot.slane %v2451_v58, 1  ;;  %v3647_v56 = vpack.c.bf16 %v3624_v53, %v3623_v25  ;;  %v15140_v61 = vld [vmem:[#allocation142_spill] sm:$0xff] }
 0x243   : > { %v3490_v36 = vmul.f32 %v11075_v28, %v3451_v37  ;;  %v2811_v38 = vrot.slane %v2695_v6, 2  ;;  %v15139_v32 = vrot.slane %v15138_v47, 1  ;;  %v2812_v46 = vrot.slane %v2696_v10, 2  ;;  %v15142_v58 = vld [vmem:[#allocation138_spill] sm:$0xff]  ;;  %v15143_v10 = vld [vmem:[#allocation137_spill] sm:$0xff]  ;;  %v15149_v47 = vld [vmem:[#allocation140_spill] sm:$0xff] }
 0x244   : > { %v3491_v49 = vmul.f32 %v11075_v28, %v3452_v51  ;;  %v2568_v16 = vsel %vm1955_vm5, %v2566_v57, %v2567_v45  ;;  %v2932_v41 = vmul.f32 %v8913_v14, %v11141_v4  ;;  %8580 = vmatprep.mubr.msk.bf16.mxu1 %vm1627_vm3, %v3647_v56  ;;  %v15141_v13 = vrot.slane %v15140_v61, 2 }
 0x245   : > { %v2570_v1 = vsel %vm1955_vm5, %v2567_v45, %v15139_v32  ;;  %v3529_v44 = vadd.f32 %v11086_v23, %v3490_v36  ;;  %v2648_v20 = vadd.f32 %v2568_v16, %v2403_v8  ;;  %v2813_v22 = vsel %vm1350_vm1, %v2811_v38, %v2812_v46  ;;  %v15145_v36 = vld [vmem:[#allocation139_spill] sm:$0xff]  ;;  %v15147_v38 = vld [vmem:[#allocation130_spill] sm:$0xff] }
 0x246   : > { %v3530_v63 = vadd.f32 %v11086_v23, %v3491_v49  ;;  %v2649_v39 = vadd.f32 %v2570_v1, %v2404_v26  ;;  %v2815_v31 = vsel %vm1350_vm1, %v2812_v46, %v15141_v13  ;;  %v3010_v35 = vmul.f32 %v11208_v43, %v11160_v12  ;;  %v15151_v1 = vld [vmem:[#allocation131_spill] sm:$0xff] }
 0x247   : > { %v3011_v55 = vmul.f32 %v8913_v14, %v11160_v12  ;;  %v3561_v9 = vmax.f32 %v3529_v44, 0.0  ;;  %v2893_v42 = vadd.f32 %v2813_v22, %v2648_v20  ;;  %v3255_v54 = vmul.f32 %v11208_v43, %v11166_v2 }
 0x248   : > { %v3562_v5 = vmax.f32 %v3530_v63, 0.0  ;;  %v2894_v30 = vadd.f32 %v2815_v31, %v2649_v39  ;;  %v3126_v27 = vrot.slane %v3010_v35, 1  ;;  %v3256_v62 = vmul.f32 %v8913_v14, %v11166_v2 }
 0x249   : > { %v3127_v15 = vrot.slane %v3011_v55, 1  ;;  %3593 = vst.msk [vmem:[#allocation3 + $0x90] sm:$0xff] %vm1627_vm3, %v3561_v9  ;;  %v2963_v26 = vadd.f32 %v2931_v60, %v2893_v42  ;;  %v3374_v37 = vrot.slane %v15142_v58, 2  ;;  %v1812_v51 = vmul.f32 %v11143_v7, %v11044_v17 }
 0x24a   : > { %3594 = vst.msk [vmem:[#allocation3 + $0x98] sm:$0xff] %vm1627_vm3, %v3562_v5  ;;  %v2964_v19 = vadd.f32 %v2932_v41, %v2894_v30  ;;  %v15144_v25 = vrot.slane %v15143_v10, 1  ;;  %v3371_v8 = vrot.slane %v3255_v54, 2  ;;  %v3372_v57 = vrot.slane %v3256_v62, 2  ;;  %v15153_v30 = vld [vmem:[#allocation150_spill] sm:$0xff] }
 0x24b   : > { %v3128_v6 = vsel %vm1955_vm5, %v3126_v27, %v3127_v15  ;;  %v15146_v49 = vrot.slane %v15145_v36, 1  ;;  %v15148_v60 = vrot.slane %v15147_v38, 1  ;;  %v15150_v32 = vrot.slane %v15149_v47, 2  ;;  %v15156_v36 = vld [vmem:[#allocation136_spill] sm:$0xff] }
 0x24c   : > { %v3130_v53 = vsel %vm1955_vm5, %v3127_v15, %v15144_v25  ;;  %v3208_v45 = vadd.f32 %v3128_v6, %v2963_v26  ;;  %v15152_v7 = vrot.slane %v15151_v1, 2  ;;  %v3373_v41 = vsel %vm1350_vm1, %v3371_v8, %v3372_v57  ;;  %v11267_v25 = vld [vmem:[#allocation2 + $0x138] sm:$0xff]  ;;  %v15154_v8 = vld [vmem:[#allocation135_spill] sm:$0xff] }
 0x24d   : > { %v3209_v56 = vadd.f32 %v3130_v53, %v2964_v19  ;;  %v2013_v16 = vsel %vm1955_vm5, %v15148_v60, %v15146_v49  ;;  %v3375_v44 = vsel %vm1350_vm1, %v3372_v57, %v3374_v37  ;;  %v2373_v20 = vmul.f32 %v11208_v43, %v11187_v11  ;;  %v8915_v1 = vld [vmem:[#allocation2 + $0x140] sm:$0xff] }
 0x24e   : > { %v2258_v46 = vsel %vm1350_vm1, %v15152_v7, %v15150_v32  ;;  %v2090_v63 = vadd.f32 %v2013_v16, %v1812_v51  ;;  %v3453_v39 = vadd.f32 %v3373_v41, %v3208_v45  ;;  %v2374_v61 = vmul.f32 %v8913_v14, %v11187_v11 }
 0x24f   : > { %v3454_v22 = vadd.f32 %v3375_v44, %v3209_v56  ;;  %v2453_v13 = vmul.f32 %v11208_v43, %v11200_v34  ;;  %v2454_v35 = vmul.f32 %v8913_v14, %v11200_v34  ;;  %v2698_v55 = vmul.f32 %v11208_v43, %v11132_v3 }
 0x250   : > { %v2335_v31 = vadd.f32 %v2258_v46, %v2090_v63  ;;  %v2699_v9 = vmul.f32 %v8913_v14, %v11132_v3  ;;  %v3492_v5 = vmul.f32 %v11075_v28, %v3453_v39  ;;  %v2406_v27 = vadd.f32 %v2374_v61, %v15153_v30  ;;  %v3625_v54 = vld [vmem:[#allocation3 + $0x90] sm:$0xff] }
 0x251   : > { %v3493_v42 = vmul.f32 %v11075_v28, %v3454_v22  ;;  %v2571_v15 = vrot.slane %v2453_v13, 1  ;;  %v3626_v62 = vld [vmem:[#allocation3 + $0x98] sm:$0xff]  ;;  %v2572_v19 = vrot.slane %v2454_v35, 1  ;;  %v2816_v58 = vrot.slane %v2698_v55, 2 }
 0x252   : > { %v2405_v26 = vadd.f32 %v2373_v20, %v2335_v31  ;;  %v2817_v37 = vrot.slane %v2699_v9, 2  ;;  %v3648_v51 = vpack.c.bf16 %v3626_v62, %v3625_v54  ;;  %v3531_v6 = vadd.f32 %v11086_v23, %v3492_v5 }
 0x253   : > { %v3532_v10 = vadd.f32 %v11086_v23, %v3493_v42  ;;  %v2933_v14 = vmul.f32 %v11267_v25, %v11141_v4  ;;  %v2573_v53 = vsel %vm1955_vm5, %v2571_v15, %v2572_v19  ;;  %v15155_v57 = vrot.slane %v15154_v8, 1  ;;  %v15158_v42 = vld [vmem:[#allocation133_spill] sm:$0xff] }
 0x254   : > { %v2818_v56 = vsel %vm1350_vm1, %v2816_v58, %v2817_v37  ;;  %v15157_v49 = vrot.slane %v15156_v36, 2  ;;  %8581 = vmatmul.mubr.msk.bf16.gmra.mxu1 %vm1627_vm3, %v3648_v51  ;;  %v3563_v60 = vmax.f32 %v3531_v6, 0.0  ;;  %v2650_v47 = vadd.f32 %v2573_v53, %v2405_v26  ;;  %v15163_v58 = vld [vmem:[#allocation134_spill] sm:$0xff]  ;;  %v15165_v51 = vld [vmem:[#allocation129_spill] sm:$0xff] }
 0x255   : > { %v2575_v45 = vsel %vm1955_vm5, %v2572_v19, %v15155_v57  ;;  %v3564_v16 = vmax.f32 %v3532_v10, 0.0  ;;  %v2934_v7 = vmul.f32 %v8915_v1, %v11141_v4  ;;  %v3013_v46 = vmul.f32 %v11267_v25, %v11160_v12 }
 0x256   : > { %v2820_v38 = vsel %vm1350_vm1, %v2817_v37, %v15157_v49  ;;  %v2651_v32 = vadd.f32 %v2575_v45, %v2406_v27  ;;  %v3014_v41 = vmul.f32 %v8915_v1, %v11160_v12  ;;  %v3258_v44 = vmul.f32 %v11267_v25, %v11166_v2  ;;  %3595 = vst.msk [vmem:[#allocation3 + $0xa0] sm:$0xff] %vm1627_vm3, %v3563_v60  ;;  %v15160_v27 = vld [vmem:[#allocation128_spill] sm:$0xff] }
 0x257   : > { %3596 = vst.msk [vmem:[#allocation3 + $0xa8] sm:$0xff] %vm1627_vm3, %v3564_v16  ;;  %v2895_v63 = vadd.f32 %v2818_v56, %v2650_v47  ;;  %v3259_v39 = vmul.f32 %v8915_v1, %v11166_v2  ;;  %v3379_v22 = vrot.slane %v10565_v59, 2  ;;  %v3131_v61 = vrot.slane %v3013_v46, 1 }
 0x258   : > { %v2896_v20 = vadd.f32 %v2820_v38, %v2651_v32  ;;  %v3132_v13 = vrot.slane %v3014_v41, 1  ;;  %v3376_v31 = vrot.slane %v3258_v44, 2  ;;  %v1814_v35 = vmul.f32 %v11208_v43, %v11044_v17 }
 0x259   : > { %v2965_v55 = vadd.f32 %v2933_v14, %v2895_v63  ;;  %v3377_v5 = vrot.slane %v3259_v39, 2  ;;  %v15159_v30 = vrot.slane %v15158_v42, 1  ;;  %v15161_v15 = vrot.slane %v15160_v27, 1 }
 0x25a   : > { %v2966_v9 = vadd.f32 %v2934_v7, %v2896_v20  ;;  %v3133_v62 = vsel %vm1955_vm5, %v3131_v61, %v3132_v13  ;;  %v15162_v26 = vrot.slane %v10557_v18, 1  ;;  %v15164_v37 = vrot.slane %v15163_v58, 2  ;;  %v15167_v7 = vld [vmem:[#allocation144_spill] sm:$0xff] }
 0x25b   : > { %v2018_v54 = vsel %vm1955_vm5, %v15161_v15, %v15159_v30  ;;  %v15166_v43 = vrot.slane %v15165_v51, 2  ;;  %v3210_v10 = vadd.f32 %v3133_v62, %v2965_v55  ;;  %v3378_v53 = vsel %vm1350_vm1, %v3376_v31, %v3377_v5  ;;  %v11320_v31 = vld [vmem:[#allocation2 + $0x150] sm:$0xff]  ;;  %v8917_v55 = vld [vmem:[#allocation2 + $0x158] sm:$0xff] }
 0x25c   : > { %v3135_v59 = vsel %vm1955_vm5, %v3132_v13, %v15162_v26  ;;  %v2092_v19 = vadd.f32 %v2018_v54, %v1814_v35  ;;  %v3380_v8 = vsel %vm1350_vm1, %v3377_v5, %v3379_v22  ;;  %v2375_v45 = vmul.f32 %v11267_v25, %v11187_v11  ;;  %v15168_v30 = vld [vmem:[#allocation161_spill] sm:$0xff] }
 0x25d   : > { %v2263_v6 = vsel %vm1350_vm1, %v15166_v43, %v15164_v37  ;;  %v3211_v14 = vadd.f32 %v3135_v59, %v2966_v9  ;;  %v2376_v18 = vmul.f32 %v8915_v1, %v11187_v11  ;;  %v2456_v56 = vmul.f32 %v11267_v25, %v11200_v34  ;;  %v3627_v16 = vld [vmem:[#allocation3 + $0xa0] sm:$0xff]  ;;  %v15170_v59 = vld [vmem:[#allocation162_spill] sm:$0xff] }
 0x25e   : > { %v2337_v57 = vadd.f32 %v2263_v6, %v2092_v19  ;;  %v3455_v36 = vadd.f32 %v3378_v53, %v3210_v10  ;;  %v2457_v38 = vmul.f32 %v8915_v1, %v11200_v34  ;;  %v2701_v60 = vmul.f32 %v11267_v25, %v11132_v3  ;;  %v3628_v47 = vld [vmem:[#allocation3 + $0xa8] sm:$0xff] }
 0x25f   : > { %v3456_v49 = vadd.f32 %v3380_v8, %v3211_v14  ;;  %v2408_v46 = vadd.f32 %v2376_v18, %v15167_v7  ;;  %v2576_v41 = vrot.slane %v2456_v56, 1  ;;  %v2702_v44 = vmul.f32 %v8915_v1, %v11132_v3  ;;  %v15172_v18 = vld [vmem:[#allocation155_spill] sm:$0xff] }
 0x260   : > { %v2407_v32 = vadd.f32 %v2375_v45, %v2337_v57  ;;  %v3649_v63 = vpack.c.bf16 %v3628_v47, %v3627_v16  ;;  %v3494_v20 = vmul.f32 %v11075_v28, %v3455_v36  ;;  %v2577_v22 = vrot.slane %v2457_v38, 1 }
 0x261   : > { %v3495_v39 = vmul.f32 %v11075_v28, %v3456_v49  ;;  %v2821_v61 = vrot.slane %v2701_v60, 2  ;;  %v2822_v13 = vrot.slane %v2702_v44, 2  ;;  %v2935_v35 = vmul.f32 %v11320_v31, %v11141_v4 }
 0x262   : > { %v2936_v9 = vmul.f32 %v8917_v55, %v11141_v4  ;;  %8584 = vmatprep.mubr.msk.bf16.mxu1 %vm1627_vm3, %v3649_v63  ;;  %v3533_v1 = vadd.f32 %v11086_v23, %v3494_v20  ;;  %v2578_v42 = vsel %vm1955_vm5, %v2576_v41, %v2577_v22  ;;  %v15169_v27 = vrot.slane %v15168_v30, 1  ;;  %v15175_v41 = vld [vmem:[#allocation160_spill] sm:$0xff]  ;;  %v15177_v63 = vld [vmem:[#allocation147_spill] sm:$0xff] }
 0x263   : > { %v3534_v5 = vadd.f32 %v11086_v23, %v3495_v39  ;;  %v2652_v54 = vadd.f32 %v2578_v42, %v2407_v32  ;;  %v2823_v26 = vsel %vm1350_vm1, %v2821_v61, %v2822_v13  ;;  %v15171_v19 = vrot.slane %v15170_v59, 2  ;;  %v15173_v32 = vld [vmem:[#allocation154_spill] sm:$0xff]  ;;  %v15180_v61 = vld [vmem:[#allocation148_spill] sm:$0xff] }
 0x264   : > { %v2580_v15 = vsel %vm1955_vm5, %v2577_v22, %v15169_v27  ;;  %v3565_v37 = vmax.f32 %v3533_v1, 0.0  ;;  %v3016_v43 = vmul.f32 %v11320_v31, %v11160_v12  ;;  %v3017_v6 = vmul.f32 %v8917_v55, %v11160_v12 }
 0x265   : > { %v2653_v62 = vadd.f32 %v2580_v15, %v2408_v46  ;;  %v2825_v58 = vsel %vm1350_vm1, %v2822_v13, %v15171_v19  ;;  %v3566_v51 = vmax.f32 %v3534_v5, 0.0  ;;  %v2897_v10 = vadd.f32 %v2823_v26, %v2652_v54 }
 0x266   : > { %v3261_v53 = vmul.f32 %v11320_v31, %v11166_v2  ;;  %v3262_v8 = vmul.f32 %v8917_v55, %v11166_v2  ;;  %3597 = vst.msk [vmem:[#allocation3 + $0xb0] sm:$0xff] %vm1627_vm3, %v3565_v37  ;;  %v3136_v57 = vrot.slane %v3016_v43, 1  ;;  %v3137_v45 = vrot.slane %v3017_v6, 1 }
 0x267   : > { %v2898_v14 = vadd.f32 %v2825_v58, %v2653_v62  ;;  %3598 = vst.msk [vmem:[#allocation3 + $0xb8] sm:$0xff] %vm1627_vm3, %v3566_v51  ;;  %v3384_v56 = vrot.slane %v15172_v18, 2  ;;  %v1816_v36 = vmul.f32 %v11267_v25, %v11044_v17  ;;  %v2967_v49 = vadd.f32 %v2935_v35, %v2897_v10  ;;  %v11375_v18 = vld [vmem:[#allocation2 + $0x168] sm:$0xff] }
 0x268   : > { %v3381_v60 = vrot.slane %v3261_v53, 2  ;;  %v3382_v16 = vrot.slane %v3262_v8, 2  ;;  %v3138_v47 = vsel %vm1955_vm5, %v3136_v57, %v3137_v45  ;;  %v15174_v7 = vrot.slane %v15173_v32, 1 }
 0x269   : > { %v2968_v38 = vadd.f32 %v2936_v9, %v2898_v14  ;;  %v15176_v44 = vrot.slane %v15175_v41, 1  ;;  %v15178_v20 = vrot.slane %v15177_v63, 1  ;;  %v15179_v22 = vrot.slane %v10543_v50, 2 }
 0x26a   : > { %v3140_v46 = vsel %vm1955_vm5, %v3137_v45, %v15174_v7  ;;  %v15181_v25 = vrot.slane %v15180_v61, 2  ;;  %v3212_v35 = vadd.f32 %v3138_v47, %v2967_v49  ;;  %v3383_v1 = vsel %vm1350_vm1, %v3381_v60, %v3382_v16  ;;  %v15182_v49 = vld [vmem:[#allocation152_spill] sm:$0xff]  ;;  %v15184_v7 = vld [vmem:[#allocation153_spill] sm:$0xff] }
 0x26b   : > { %v2023_v39 = vsel %vm1955_vm5, %v15178_v20, %v15176_v44  ;;  %v3213_v9 = vadd.f32 %v3140_v46, %v2968_v38  ;;  %v3385_v5 = vsel %vm1350_vm1, %v3382_v16, %v3384_v56  ;;  %v2377_v30 = vmul.f32 %v11320_v31, %v11187_v11  ;;  %v8919_v20 = vld [vmem:[#allocation2 + $0x170] sm:$0xff] }
 0x26c   : > { %v2268_v13 = vsel %vm1350_vm1, %v15181_v25, %v15179_v22  ;;  %v2094_v42 = vadd.f32 %v2023_v39, %v1816_v36  ;;  %v2378_v27 = vmul.f32 %v8917_v55, %v11187_v11  ;;  %v2459_v15 = vmul.f32 %v11320_v31, %v11200_v34 }
 0x26d   : > { %v3457_v50 = vadd.f32 %v3383_v1, %v3212_v35  ;;  %v3458_v54 = vadd.f32 %v3385_v5, %v3213_v9  ;;  %v2460_v62 = vmul.f32 %v8917_v55, %v11200_v34  ;;  %v2704_v26 = vmul.f32 %v11320_v31, %v11132_v3  ;;  %v3629_v51 = vld [vmem:[#allocation3 + $0xb0] sm:$0xff] }
 0x26e   : > { %v2339_v59 = vadd.f32 %v2268_v13, %v2094_v42  ;;  %v2410_v19 = vadd.f32 %v2378_v27, %v10594_v52  ;;  %v2581_v58 = vrot.slane %v2459_v15, 1  ;;  %v2705_v37 = vmul.f32 %v8917_v55, %v11132_v3  ;;  %v3630_v43 = vld [vmem:[#allocation3 + $0xb8] sm:$0xff] }
 0x26f   : > { %v3496_v6 = vmul.f32 %v11075_v28, %v3457_v50  ;;  %v3497_v10 = vmul.f32 %v11075_v28, %v3458_v54  ;;  %v2582_v14 = vrot.slane %v2460_v62, 1  ;;  %v2826_v53 = vrot.slane %v2704_v26, 2  ;;  %v15186_v62 = vld [vmem:[#allocation149_spill] sm:$0xff] }
 0x270   : > { %v3650_v8 = vpack.c.bf16 %v3630_v43, %v3629_v51  ;;  %v2409_v57 = vadd.f32 %v2377_v30, %v2339_v59  ;;  %v2827_v45 = vrot.slane %v2705_v37, 2  ;;  %v2937_v56 = vmul.f32 %v11375_v18, %v11141_v4  ;;  %v15188_v59 = vld [vmem:[#allocation145_spill] sm:$0xff]  ;;  %v15190_v37 = vld [vmem:[#allocation151_spill] sm:$0xff]  ;;  %v15192_v43 = vld [vmem:[#allocation146_spill] sm:$0xff] }
 0x271   : > { %v3535_v52 = vadd.f32 %v11086_v23, %v3496_v6  ;;  %v3536_v55 = vadd.f32 %v11086_v23, %v3497_v10  ;;  %v2583_v36 = vsel %vm1955_vm5, %v2581_v58, %v2582_v14  ;;  %v15183_v38 = vrot.slane %v15182_v49, 1 }
 0x272   : > { %8585 = vmatmul.mubr.msk.bf16.gmra.mxu1 %vm1627_vm3, %v3650_v8  ;;  %v2654_v16 = vadd.f32 %v2583_v36, %v2409_v57  ;;  %v2828_v32 = vsel %vm1350_vm1, %v2826_v53, %v2827_v45  ;;  %v15185_v46 = vrot.slane %v15184_v7, 2  ;;  %v2938_v39 = vmul.f32 %v8919_v20, %v11141_v4  ;;  %v15194_v36 = vld [vmem:[#allocation158_spill] sm:$0xff] }
 0x273   : > { %v2585_v60 = vsel %vm1955_vm5, %v2582_v14, %v15183_v38  ;;  %v3567_v44 = vmax.f32 %v3535_v52, 0.0  ;;  %v3568_v63 = vmax.f32 %v3536_v55, 0.0  ;;  %v3019_v22 = vmul.f32 %v11375_v18, %v11160_v12 }
 0x274   : > { %v2655_v47 = vadd.f32 %v2585_v60, %v2410_v19  ;;  %v2830_v41 = vsel %vm1350_vm1, %v2827_v45, %v15185_v46  ;;  %v2899_v61 = vadd.f32 %v2828_v32, %v2654_v16  ;;  %v3020_v13 = vmul.f32 %v8919_v20, %v11160_v12 }
 0x275   : > { %v3264_v35 = vmul.f32 %v11375_v18, %v11166_v2  ;;  %3599 = vst.msk [vmem:[#allocation3 + $0xc0] sm:$0xff] %vm1627_vm3, %v3567_v44  ;;  %3600 = vst.msk [vmem:[#allocation3 + $0xc8] sm:$0xff] %vm1627_vm3, %v3568_v63  ;;  %v3141_v9 = vrot.slane %v3019_v22, 1  ;;  %v3265_v1 = vmul.f32 %v8919_v20, %v11166_v2  ;;  %v3389_v5 = vrot.slane %v10816_v0, 2  ;;  %v15195_v22 = vld [vmem:[#allocation74_spill] sm:$0xff] }
 0x276   : > { %v2900_v25 = vadd.f32 %v2830_v41, %v2655_v47  ;;  %v1818_v42 = vmul.f32 %v11320_v31, %v11044_v17  ;;  %v2969_v30 = vadd.f32 %v2937_v56, %v2899_v61  ;;  %v3142_v15 = vrot.slane %v3020_v13, 1 }
 0x277   : > { %v3386_v50 = vrot.slane %v3264_v35, 2  ;;  %v3387_v54 = vrot.slane %v3265_v1, 2  ;;  %v15187_v26 = vrot.slane %v15186_v62, 1  ;;  %v15189_v19 = vrot.slane %v15188_v59, 1 }
 0x278   : > { %v2970_v27 = vadd.f32 %v2938_v39, %v2900_v25  ;;  %v15191_v51 = vrot.slane %v15190_v37, 2  ;;  %v15193_v6 = vrot.slane %v15192_v43, 2  ;;  %v2379_v31 = vmul.f32 %v11375_v18, %v11187_v11  ;;  %v15197_v25 = vld [vmem:[#allocation166_spill] sm:$0xff] }
 0x279   : > { %v2028_v58 = vsel %vm1955_vm5, %v15189_v19, %v15187_v26  ;;  %v3143_v10 = vsel %vm1955_vm5, %v3141_v9, %v3142_v15  ;;  %v3145_v14 = vsel %vm1955_vm5, %v3142_v15, %v3144_v48  ;;  %v2380_v8 = vmul.f32 %v8919_v20, %v11187_v11  ;;  %v15203_v26 = vld [vmem:[#allocation168_spill] sm:$0xff] }
 0x27a   : > { %v2273_v0 = vsel %vm1350_vm1, %v15193_v6, %v15191_v51  ;;  %v2096_v53 = vadd.f32 %v2028_v58, %v1818_v42  ;;  %v3214_v57 = vadd.f32 %v3143_v10, %v2969_v30  ;;  %v3215_v45 = vadd.f32 %v3145_v14, %v2970_v27  ;;  %v15204_v19 = vld [vmem:[#allocation172_spill] sm:$0xff] }
 0x27b   : > { %v3388_v56 = vsel %vm1350_vm1, %v3386_v50, %v3387_v54  ;;  %v3390_v52 = vsel %vm1350_vm1, %v3387_v54, %v3389_v5  ;;  %v2412_v49 = vadd.f32 %v2380_v8, %v15194_v36  ;;  %v2462_v38 = vmul.f32 %v11375_v18, %v11200_v34  ;;  %v15201_v50 = vld [vmem:[#allocation73_spill] sm:$0xff]  ;;  %v1783_v8 = vld [vmem:[#allocation2 + $0x1a0] sm:$0xff] }
 0x27c   : > { %v2341_v55 = vadd.f32 %v2273_v0, %v2096_v53  ;;  %v2463_v60 = vmul.f32 %v8919_v20, %v11200_v34  ;;  %v3459_v40 = vadd.f32 %v3388_v56, %v3214_v57  ;;  %v3460_v16 = vadd.f32 %v3390_v52, %v3215_v45  ;;  %v3631_v32 = vld [vmem:[#allocation3 + $0xc0] sm:$0xff]  ;;  %v3632_v7 = vld [vmem:[#allocation3 + $0xc8] sm:$0xff]  ;;  %v15205_v0 = vld [vmem:[#allocation75_spill] sm:$0xff] }
 0x27d   : > { %v2707_v48 = vmul.f32 %v11375_v18, %v11132_v3  ;;  %v2708_v11 = vmul.f32 %v8919_v20, %v11132_v3  ;;  %v2344_v47 = vadd.f32 %v10831_v33, %v10822_v29  ;;  %v2586_v41 = vrot.slane %v2462_v38, 1  ;;  %v15199_v20 = vld [vmem:[#allocation55_spill] sm:$0xff]  ;;  %v15209_v56 = vld [vmem:[#allocation169_spill] sm:$0xff] }
 0x27e   : > { %v2411_v46 = vadd.f32 %v2379_v31, %v2341_v55  ;;  %v2587_v44 = vrot.slane %v2463_v60, 1  ;;  %v3651_v63 = vpack.c.bf16 %v3632_v7, %v3631_v32  ;;  %v3498_v39 = vmul.f32 %v11075_v28, %v3459_v40  ;;  %v15211_v36 = vld [vmem:[#allocation167_spill] sm:$0xff]  ;;  %v15213_v40 = vld [vmem:[#allocation174_spill] sm:$0xff] }
 0x27f   : > { %v3499_v34 = vmul.f32 %v11075_v28, %v3460_v16  ;;  %v15196_v61 = vrot.slane %v15195_v22, 1  ;;  %v15198_v13 = vrot.slane %v15197_v25, 1  ;;  %v15200_v29 = vrot.slane %v15199_v20, 1  ;;  %v15212_v38 = vld [vmem:[#allocation71_spill] sm:$0xff]  ;;  %v15223_v25 = vld [vmem:[#allocation49_spill] sm:$0xff] }
 0x280   : > { %v2588_v3 = vsel %vm1955_vm5, %v2586_v41, %v2587_v44  ;;  %v2831_v9 = vrot.slane %v2707_v48, 2  ;;  %v2832_v1 = vrot.slane %v2708_v11, 2  ;;  %8588 = vmatprep.mubr.msk.bf16.mxu1 %vm1627_vm3, %v3651_v63  ;;  %v3537_v5 = vadd.f32 %v11086_v23, %v3498_v39  ;;  %v1782_v11 = vld [vmem:[#allocation2 + $0x198] sm:$0xff]  ;;  %v15219_v63 = vld [vmem:[#allocation51_spill] sm:$0xff] }
 0x281   : > { %v3148_v35 = vsel %vm1955_vm5, %v15198_v13, %v15196_v61  ;;  %v2590_v33 = vsel %vm1955_vm5, %v2587_v44, %v15200_v29  ;;  %v3538_v42 = vadd.f32 %v11086_v23, %v3499_v34  ;;  %v2656_v30 = vadd.f32 %v2588_v3, %v2411_v46  ;;  %v15221_v34 = vld [vmem:[#allocation163_spill] sm:$0xff]  ;;  %v15225_v3 = vld [vmem:[#allocation164_spill] sm:$0xff] }
 0x282   : > { %v2657_v27 = vadd.f32 %v2590_v33, %v2412_v49  ;;  %v2833_v15 = vsel %vm1350_vm1, %v2831_v9, %v2832_v1  ;;  %v15202_v54 = vrot.slane %v15201_v50, 2  ;;  %v3391_v59 = vrot.slane %v15203_v26, 2  ;;  %v15227_v9 = vld [vmem:[#allocation173_spill] sm:$0xff] }
 0x283   : > { %v3392_v58 = vrot.slane %v15204_v19, 2  ;;  %v3569_v37 = vmax.f32 %v3537_v5, 0.0  ;;  %v3570_v51 = vmax.f32 %v3538_v42, 0.0  ;;  %v2901_v43 = vadd.f32 %v2833_v15, %v2656_v30 }
 0x284   : > { %v2835_v62 = vsel %vm1350_vm1, %v2832_v1, %v15202_v54  ;;  %v15206_v31 = vrot.slane %v15205_v0, 1  ;;  %v15207_v10 = vmov %v15196_v61  ;;  %v1820_v57 = vmul.f32 %v11375_v18, %v11044_v17  ;;  %v1784_v17 = vld [vmem:[#allocation2 + $0x1a8] sm:$0x3]  ;;  %v15215_v18 = vld [vmem:[#allocation52_spill] sm:$0xff] }
 0x285   : > { %v2902_v6 = vadd.f32 %v2835_v62, %v2657_v27  ;;  %v3393_v53 = vsel %vm1350_vm1, %v3391_v59, %v3392_v58  ;;  %v15210_v52 = vrot.slane %v15209_v56, 1  ;;  %3601 = vst.msk [vmem:[#allocation3 + $0xd0] sm:$0xff] %vm1627_vm3, %v3569_v37  ;;  %3602 = vst.msk [vmem:[#allocation3 + $0xd8] sm:$0xff] %vm1627_vm3, %v3570_v51  ;;  %v2971_v49 = vadd.f32 %v15211_v36, %v2901_v43  ;;  %v15228_v54 = vld [vmem:[#allocation175_spill] sm:$0xff]  ;;  %v15229_v59 = vld [vmem:[#allocation165_spill] sm:$0xff] }
 0x286   : > { %v3150_v14 = vsel %vm1955_vm5, %v15207_v10, %v15206_v31  ;;  %v15214_v16 = vrot.slane %v15213_v40, 2  ;;  %v2414_v32 = vadd.f32 %v15215_v18, %v2344_v47  ;;  %v15216_v46 = vrot.slane %v10793_v24, 2 }
 0x287   : > { %v2033_v55 = vsel %vm1955_vm5, %v15210_v52, %v2032_v21  ;;  %v2972_v60 = vadd.f32 %v15212_v38, %v2902_v6  ;;  %v15217_v21 = vld [vmem:[#allocation170_spill] sm:$0xff]  ;;  %v15220_v39 = vrot.slane %v15219_v63, 1  ;;  %v15222_v22 = vrot.slane %v15221_v34, 1 }
 0x288   : > { %v3395_v48 = vsel %vm1350_vm1, %v3392_v58, %v15214_v16  ;;  %v2098_v7 = vadd.f32 %v2033_v55, %v1820_v57  ;;  %v15218_v41 = vrot.slane %v15217_v21, 2  ;;  %v15224_v13 = vrot.slane %v15223_v25, 2 }
 0x289   : > { %v2593_v61 = vsel %vm1955_vm5, %v15222_v22, %v15220_v39  ;;  %v15226_v20 = vrot.slane %v15225_v3, 2  ;;  %v3216_v47 = vadd.f32 %v3148_v35, %v2971_v49  ;;  %v3217_v33 = vadd.f32 %v3150_v14, %v2972_v60  ;;  %v11516_v3 = vld [vmem:[%s15230_s14] ss:$0 sm:$0xff] }
 0x28a   : > { %v2278_v44 = vsel %vm1350_vm1, %v15218_v41, %v15216_v46  ;;  %v2659_v24 = vadd.f32 %v15227_v9, %v2414_v32  ;;  %v2942_v1 = vmul.f32 %v11141_v4, %v1783_v8  ;;  %v3025_v42 = vmul.f32 %v11160_v12, %v1782_v11 }
 0x28b   : > { %v2838_v29 = vsel %vm1350_vm1, %v15226_v20, %v15224_v13  ;;  %v2343_v5 = vadd.f32 %v2278_v44, %v2098_v7  ;;  %v3026_v30 = vmul.f32 %v11160_v12, %v1783_v8  ;;  %v3027_v27 = vmul.f32 %v11160_v12, %v1784_v17 }
 0x28c   : > { %v3461_v15 = vadd.f32 %v3393_v53, %v3216_v47  ;;  %v3462_v50 = vadd.f32 %v3395_v48, %v3217_v33  ;;  %v2904_v62 = vadd.f32 %v15228_v54, %v2659_v24  ;;  %v3270_v26 = vmul.f32 %v11166_v2, %v1782_v11  ;;  %v3633_v31 = vld [vmem:[#allocation3 + $0xd0] sm:$0xff]  ;;  %v3634_v12 = vld [vmem:[#allocation3 + $0xd8] sm:$0xff] }
 0x28d   : > { %v2413_v35 = vadd.f32 %v15229_v59, %v2343_v5  ;;  %v3151_v19 = vrot.slane %v3025_v42, 1  ;;  %v3152_v58 = vrot.slane %v3026_v30, 1  ;;  %v3154_v37 = vrot.slane %v3027_v27, 1  ;;  %v11522_v47 = vld [vmem:[%s9131_s19] ss:$0 sm:$0xff]  ;;  %v15231_v27 = vld [vmem:[#allocation45_spill] sm:$0xff] }
 0x28e   : > { %v3500_v51 = vmul.f32 %v11075_v28, %v3461_v15  ;;  %v3501_v43 = vmul.f32 %v11075_v28, %v3462_v50  ;;  %v2974_v6 = vadd.f32 %v2942_v1, %v2904_v62  ;;  %v3271_v0 = vmul.f32 %v11166_v2, %v1783_v8  ;;  %v15233_v54 = vld [vmem:[#allocation44_spill] sm:$0xff]  ;;  %v15235_v59 = vld [vmem:[#allocation46_spill] sm:$0xff] }
 0x28f   : > { %v2658_v10 = vadd.f32 %v2593_v61, %v2413_v35  ;;  %v2941_v14 = vmul.f32 %v11141_v4, %v1782_v11  ;;  %v3155_v53 = vsel %vm1955_vm5, %v3152_v58, %v3154_v37  ;;  %v3272_v57 = vmul.f32 %v11166_v2, %v1784_v17 }
 0x290   : > { %v3652_v45 = vpack.c.bf16 %v3634_v12, %v3633_v31  ;;  %v3539_v56 = vadd.f32 %v11086_v23, %v3500_v51  ;;  %v3540_v52 = vadd.f32 %v11086_v23, %v3501_v43  ;;  %v3219_v55 = vadd.f32 %v3155_v53, %v2974_v6 }
 0x291   : > { %v2903_v36 = vadd.f32 %v2838_v29, %v2658_v10  ;;  %v3396_v49 = vrot.slane %v3270_v26, 2  ;;  %v3397_v38 = vrot.slane %v3271_v0, 2  ;;  %v3399_v60 = vrot.slane %v3272_v57, 2  ;;  %v8566_v13 = vpop.f32.mrf.mxu1 }
 0x292   : > { %8589 = vmatmul.mubr.msk.bf16.gmra.mxu1 %vm1627_vm3, %v3652_v45  ;;  %v3571_v8 = vmax.f32 %v3539_v56, 0.0  ;;  %v3572_v40 = vmax.f32 %v3540_v52, 0.0  ;;  %v3153_v4 = vsel %vm1955_vm5, %v3151_v19, %v3152_v58  ;;  %v3881_v20 = vmul.f32 %v8566_v13, %v11516_v3  ;;  %v15237_v58 = vld [vmem:[#allocation43_spill] sm:$0xff] }
 0x293   : > { %v2973_v16 = vadd.f32 %v2941_v14, %v2903_v36  ;;  %v3400_v48 = vsel %vm1350_vm1, %v3397_v38, %v3399_v60  ;;  %v3398_v2 = vsel %vm1350_vm1, %v3396_v49, %v3397_v38  ;;  %v15232_v15 = vmax.f32 %v15231_v27, 0.0  ;;  %v15239_v49 = vld [vmem:[#allocation50_spill] sm:$0xff] }
 0x294   : > { %3603 = vst.msk [vmem:[#allocation3 + $0xe0] sm:$0xff] %vm1627_vm3, %v3571_v8  ;;  %3604 = vst.msk [vmem:[#allocation3 + $0xe8] sm:$0xff] %vm1627_vm3, %v3572_v40  ;;  %v3464_v11 = vadd.f32 %v3400_v48, %v3219_v55  ;;  %v3920_v42 = vadd.f32 %v11522_v47, %v3881_v20  ;;  %v15234_v62 = vmax.f32 %v15233_v54, 0.0  ;;  %v15236_v35 = vmax.f32 %v15235_v59, 0.0  ;;  %v15241_v8 = vld [vmem:[#allocation48_spill] sm:$0xff] }
 0x295   : > { %v3218_v17 = vadd.f32 %v3153_v4, %v2973_v16  ;;  %v15238_v37 = vmax.f32 %v15237_v58, 0.0  ;;  %v15240_v38 = vmax.f32 %v15239_v49, 0.0  ;;  %v15242_v40 = vmax.f32 %v15241_v8, 0.0  ;;  %v15243_v16 = vld [vmem:[#allocation56_spill] sm:$0xff]  ;;  %v15262_v49 = vld [vmem:[#allocation62_spill] sm:$0xff] }
 0x296   : > { %v3503_v18 = vmul.f32 %v11075_v28, %v3464_v11  ;;  %v15244_v48 = vmax.f32 %v15243_v16, 0.0  ;;  %v15245_v11 = vld [vmem:[#allocation47_spill] sm:$0xff] }
 0x297   : > { %v3463_v32 = vadd.f32 %v3398_v2, %v3218_v17  ;;  %v3952_v51 = vadd.f32 %v3920_v42, %v15238_v37  ;;  %v15246_v17 = vmax.f32 %v15245_v11, 0.0 }
 0x298   : > { %v3542_v7 = vadd.f32 %v11086_v23, %v3503_v18 }
 0x299   : > { %v3502_v46 = vmul.f32 %v11075_v28, %v3463_v32  ;;  %v3745_v28 = vpop.f32.mrf.mxu1 }
 0x29a   : > { %v3574_v21 = vmax.f32 %v3542_v7, 0.0 }
 0x29b   : > { %v3635_v41 = vld [vmem:[#allocation3 + $0xe0] sm:$0xff]  ;;  %v3636_v44 = vld [vmem:[#allocation3 + $0xe8] sm:$0xff]  ;;  %v3541_v63 = vadd.f32 %v11086_v23, %v3502_v46  ;;  %v3879_v23 = vmul.f32 %v11516_v3, %v3745_v28  ;;  %v8567_v29 = vpop.f32.mrf.mxu1 }
 0x29c   : > { %v3653_v39 = vpack.c.bf16 %v3636_v44, %v3635_v41  ;;  %3606 = vst.msk [vmem:[#allocation3 + $0xf8] sm:$0xff] %vm1627_vm3, %v3574_v21  ;;  %v3882_v33 = vmul.f32 %v8567_v29, %v11516_v3 }
 0x29d   : > { %v3573_v34 = vmax.f32 %v3541_v63, 0.0  ;;  %v3748_v9 = vpop.f32.mrf.mxu1  ;;  %v3918_v24 = vadd.f32 %v11522_v47, %v3879_v23  ;;  %v15247_v23 = vld [vmem:[#allocation60_spill] sm:$0xff] }
 0x29e   : > { %8592 = vmatprep.mubr.msk.bf16.mxu1 %vm1627_vm3, %v3653_v39  ;;  %v3921_v1 = vadd.f32 %v11522_v47, %v3882_v33  ;;  %v3880_v5 = vmul.f32 %v11516_v3, %v3748_v9  ;;  %v15248_v20 = vmax.f32 %v15247_v23, 0.0  ;;  %v15249_v33 = vld [vmem:[#allocation59_spill] sm:$0xff]  ;;  %v15270_v23 = vld [vmem:[#allocation106_spill] sm:$0xff] }
 0x29f   : > { %3605 = vst.msk [vmem:[#allocation3 + $0xf0] sm:$0xff] %vm1627_vm3, %v3573_v34  ;;  %v3950_v26 = vadd.f32 %v3918_v24, %v15234_v62  ;;  %v15250_v9 = vmax.f32 %v15249_v33, 0.0  ;;  %v15255_v62 = vmov 0.0  }
 0x2a0   : > { %v3919_v30 = vadd.f32 %v11522_v47, %v3880_v5  ;;  %v3953_v50 = vadd.f32 %v3921_v1, %v15232_v15  ;;  %v15251_v1 = vld [vmem:[#allocation61_spill] sm:$0xff]  ;;  %4333 = vst.msk [vmem:[#allocation4 + $0x30] sm:$0xff] %vm4325_vm6, %v15255_v62  ;;  %4334 = vst.msk [vmem:[#allocation4 + $0x38] sm:$0xff] %vm4325_vm6, %v15255_v62 }
 0x2a1   : > { %v15252_v5 = vmax.f32 %v15251_v1, 0.0  ;;  %4326 = vst.msk [vmem:[#allocation4] sm:$0xff] %vm4325_vm6, %v15255_v62  ;;  %4327 = vst.msk [vmem:[#allocation4 + $0x8] sm:$0xff] %vm4325_vm6, %v15255_v62 }
 0x2a2   : > { %v3951_v19 = vadd.f32 %v3919_v30, %v15236_v35  ;;  %v3983_v6 = vpack.c.bf16 %v3953_v50, %v3952_v51  ;;  %v15253_v30 = vld [vmem:[#allocation58_spill] sm:$0xff]  ;;  %4330 = vst.msk [vmem:[#allocation4 + $0x18] sm:$0xff] %vm4325_vm6, %v15255_v62  ;;  %4331 = vst.msk [vmem:[#allocation4 + $0x20] sm:$0xff] %vm4325_vm6, %v15255_v62 }
 0x2a3   : > { %v3638_v22 = vld [vmem:[#allocation3 + $0xf8] sm:$0xff]  ;;  %v15254_v27 = vmax.f32 %v15253_v30, 0.0  ;;  %4336 = vst.msk [vmem:[#allocation4 + $0x48] sm:$0xff] %vm4325_vm6, %v15255_v62  ;;  %4337 = vst.msk [vmem:[#allocation4 + $0x50] sm:$0xff] %vm4325_vm6, %v15255_v62 }
 0x2a4   : > { %v3982_v43 = vpack.c.bf16 %v3951_v19, %v3950_v26  ;;  %4339 = vst.msk [vmem:[#allocation4 + $0x60] sm:$0xff] %vm4325_vm6, %v15255_v62  ;;  %4340 = vst.msk [vmem:[#allocation4 + $0x68] sm:$0xff] %vm4325_vm6, %v15255_v62 }
 0x2a5   : > { %4342 = vst.msk [vmem:[#allocation4 + $0x78] sm:$0xff] %vm4325_vm6, %v15255_v62  ;;  %4343 = vst.msk [vmem:[#allocation4 + $0x80] sm:$0xff] %vm4325_vm6, %v15255_v62 }
 0x2a6   : > { %v3637_v61 = vld [vmem:[#allocation3 + $0xf0] sm:$0xff]  ;;  %4345 = vst.msk [vmem:[#allocation4 + $0x90] sm:$0xff] %vm4325_vm6, %v15255_v62  ;;  %4346 = vst.msk [vmem:[#allocation4 + $0x98] sm:$0xff] %vm4325_vm6, %v15255_v62 }
 0x2a7   : > { %v3654_v25 = vpack.c.bf16 %v3638_v22, %v3637_v61  ;;  %4348 = vst.msk [vmem:[#allocation4 + $0xa8] sm:$0xff] %vm4325_vm6, %v15255_v62  ;;  %4349 = vst.msk [vmem:[#allocation4 + $0xb0] sm:$0xff] %vm4325_vm6, %v15255_v62 }
 0x2a8   : > { %4351 = vst.msk [vmem:[#allocation4 + $0xc0] sm:$0xff] %vm4325_vm6, %v15255_v62  ;;  %4352 = vst.msk [vmem:[#allocation4 + $0xc8] sm:$0xff] %vm4325_vm6, %v15255_v62 }
 0x2a9   : > { %8593 = vmatmul.mubr.msk.bf16.gmra.mxu1 %vm1627_vm3, %v3654_v25  ;;  %4354 = vst.msk [vmem:[#allocation4 + $0xd8] sm:$0xff] %vm4325_vm6, %v15255_v62  ;;  %4355 = vst.msk [vmem:[#allocation4 + $0xe0] sm:$0xff] %vm4325_vm6, %v15255_v62 }
 0x2aa   : > { %8598 = vmatprep.mubr.msk.bf16.mxu1 %vm1627_vm3, %v3982_v43  ;;  %4357 = vst.msk [vmem:[#allocation4 + $0xf0] sm:$0xff] %vm4325_vm6, %v15255_v62  ;;  %4358 = vst.msk [vmem:[#allocation4 + $0xf8] sm:$0xff] %vm4325_vm6, %v15255_v62 }
 0x2ab   : > { %4360 = vst.msk [vmem:[#allocation4 + $0x108] sm:$0xff] %vm4325_vm6, %v15255_v62  ;;  %4361 = vst.msk [vmem:[#allocation4 + $0x110] sm:$0xff] %vm4325_vm6, %v15255_v62 }
 0x2ac   : > { %4363 = vst.msk [vmem:[#allocation4 + $0x120] sm:$0xff] %vm4325_vm6, %v15255_v62  ;;  %4364 = vst.msk [vmem:[#allocation4 + $0x128] sm:$0xff] %vm4325_vm6, %v15255_v62 }
 0x2ad   : > { %4366 = vst.msk [vmem:[#allocation4 + $0x138] sm:$0xff] %vm4325_vm6, %v15255_v62  ;;  %4367 = vst.msk [vmem:[#allocation4 + $0x140] sm:$0xff] %vm4325_vm6, %v15255_v62 }
 0x2ae   : > { %4369 = vst.msk [vmem:[#allocation4 + $0x150] sm:$0xff] %vm4325_vm6, %v15255_v62  ;;  %4370 = vst.msk [vmem:[#allocation4 + $0x158] sm:$0xff] %vm4325_vm6, %v15255_v62 }
 0x2af   : > { %4372 = vst.msk [vmem:[#allocation4 + $0x168] sm:$0xff] %vm4325_vm6, %v15255_v62  ;;  %4373 = vst.msk [vmem:[#allocation4 + $0x170] sm:$0xff] %vm4325_vm6, %v15255_v62 }
 0x2b0   : > { %4375 = vst.msk [vmem:[#allocation4 + $0x180] sm:$0xff] %vm4325_vm6, %v15255_v62  ;;  %4376 = vst.msk [vmem:[#allocation4 + $0x188] sm:$0xff] %vm4325_vm6, %v15255_v62 }
 0x2b1   : > { %8599 = vmatmul.mubr.msk.bf16.vlgmr.msra.gmra.mxu1 %vm1627_vm3, %v3983_v6  ;;  %4378 = vst.msk [vmem:[#allocation4 + $0x198] sm:$0xff] %vm4325_vm6, %v15255_v62  ;;  %4379 = vst.msk [vmem:[#allocation4 + $0x1a0] sm:$0xff] %vm4325_vm6, %v15255_v62 }
 0x2b2   : > { %4335 = vst.msk [vmem:[#allocation4 + $0x40] sm:$0x3] %vm4328_vm7, %v15255_v62  ;;  %4329 = vst.msk [vmem:[#allocation4 + $0x10] sm:$0x3] %vm4328_vm7, %v15255_v62 }
 0x2b3   : > { %4332 = vst.msk [vmem:[#allocation4 + $0x28] sm:$0x3] %vm4328_vm7, %v15255_v62  ;;  %4338 = vst.msk [vmem:[#allocation4 + $0x58] sm:$0x3] %vm4328_vm7, %v15255_v62 }
 0x2b4   : > { %4341 = vst.msk [vmem:[#allocation4 + $0x70] sm:$0x3] %vm4328_vm7, %v15255_v62  ;;  %4344 = vst.msk [vmem:[#allocation4 + $0x88] sm:$0x3] %vm4328_vm7, %v15255_v62 }
 0x2b5   : > { %4347 = vst.msk [vmem:[#allocation4 + $0xa0] sm:$0x3] %vm4328_vm7, %v15255_v62  ;;  %4350 = vst.msk [vmem:[#allocation4 + $0xb8] sm:$0x3] %vm4328_vm7, %v15255_v62 }
 0x2b6   : > { %4353 = vst.msk [vmem:[#allocation4 + $0xd0] sm:$0x3] %vm4328_vm7, %v15255_v62  ;;  %4356 = vst.msk [vmem:[#allocation4 + $0xe8] sm:$0x3] %vm4328_vm7, %v15255_v62 }
 0x2b7   : > { %4359 = vst.msk [vmem:[#allocation4 + $0x100] sm:$0x3] %vm4328_vm7, %v15255_v62  ;;  %4362 = vst.msk [vmem:[#allocation4 + $0x118] sm:$0x3] %vm4328_vm7, %v15255_v62 }
 0x2b8   : > { %4365 = vst.msk [vmem:[#allocation4 + $0x130] sm:$0x3] %vm4328_vm7, %v15255_v62  ;;  %4368 = vst.msk [vmem:[#allocation4 + $0x148] sm:$0x3] %vm4328_vm7, %v15255_v62 }
 0x2b9   : > { %v8570_v0 = vpop.f32.mrf.mxu1  ;;  %4371 = vst.msk [vmem:[#allocation4 + $0x160] sm:$0x3] %vm4328_vm7, %v15255_v62  ;;  %4374 = vst.msk [vmem:[#allocation4 + $0x178] sm:$0x3] %vm4328_vm7, %v15255_v62 }
 0x2ba   : > { %v3885_v10 = vmul.f32 %v8570_v0, %v11516_v3  ;;  %4377 = vst.msk [vmem:[#allocation4 + $0x190] sm:$0x3] %vm4328_vm7, %v15255_v62  ;;  %4380 = vst.msk [vmem:[#allocation4 + $0x1a8] sm:$0x3] %vm4328_vm7, %v15255_v62 }
 0x2bb   : > { %v3761_v31 = vpop.f32.mrf.mxu1 }
 0x2bc   : > { %v3883_v12 = vmul.f32 %v11516_v3, %v3761_v31  ;;  %v3924_v55 = vadd.f32 %v11522_v47, %v3885_v10  ;;  %v15256_v10 = vld [vmem:[#allocation64_spill] sm:$0xff] }
 0x2bd   : > { %v8571_v14 = vpop.f32.mrf.mxu1 }
 0x2be   : > { %v3886_v53 = vmul.f32 %v8571_v14, %v11516_v3  ;;  %v3922_v45 = vadd.f32 %v11522_v47, %v3883_v12  ;;  %v3956_v18 = vadd.f32 %v3924_v55, %v15246_v17  ;;  %v15257_v14 = vmax.f32 %v15256_v10, 0.0  ;;  %v15278_v10 = vld [vmem:[#allocation110_spill] sm:$0xff] }
 0x2bf   : > { %v3764_v57 = vpop.f32.mrf.mxu1 }
 0x2c0   : > { %v3925_v56 = vadd.f32 %v11522_v47, %v3886_v53  ;;  %v3884_v52 = vmul.f32 %v11516_v3, %v3764_v57  ;;  %v3954_v4 = vadd.f32 %v3922_v45, %v15242_v40  ;;  %v15258_v57 = vld [vmem:[#allocation63_spill] sm:$0xff] }
 0x2c1   : > { %v15259_v45 = vmax.f32 %v15258_v57, 0.0 }
 0x2c2   : > { %v3923_v36 = vadd.f32 %v11522_v47, %v3884_v52  ;;  %v3957_v60 = vadd.f32 %v3925_v56, %v15240_v38  ;;  %v15260_v52 = vld [vmem:[#allocation65_spill] sm:$0xff]  ;;  %v15263_v38 = vmax.f32 %v15262_v49, 0.0 }
 0x2c3   : > { %v15261_v55 = vmax.f32 %v15260_v52, 0.0 }
 0x2c4   : > { %v3955_v2 = vadd.f32 %v3923_v36, %v15244_v48  ;;  %v3985_v7 = vpack.c.bf16 %v3957_v60, %v3956_v18 }
 0x2c6   : > { %v3984_v32 = vpack.c.bf16 %v3955_v2, %v3954_v4 }
 0x2c8   : > { %8602 = vmatprep.mubr.msk.bf16.mxu1 %vm1627_vm3, %v3984_v32 }
 0x2c9   : > { %8603 = vmatmul.mubr.msk.bf16.gmra.mxu1 %vm1627_vm3, %v3985_v7 }
 0x2d8   : > { %v8574_v46 = vpop.f32.mrf.mxu1 }
 0x2d9   : > { %v3889_v44 = vmul.f32 %v8574_v46, %v11516_v3 }
 0x2da   : > { %v3777_v21 = vpop.f32.mrf.mxu1 }
 0x2db   : > { %v3887_v41 = vmul.f32 %v11516_v3, %v3777_v21  ;;  %v3928_v13 = vadd.f32 %v11522_v47, %v3889_v44  ;;  %v15264_v44 = vld [vmem:[#allocation108_spill] sm:$0xff] }
 0x2dc   : > { %v8575_v63 = vpop.f32.mrf.mxu1 }
 0x2dd   : > { %v3890_v39 = vmul.f32 %v8575_v63, %v11516_v3  ;;  %v3926_v22 = vadd.f32 %v11522_v47, %v3887_v41  ;;  %v3960_v15 = vadd.f32 %v3928_v13, %v15254_v27  ;;  %v15265_v63 = vmax.f32 %v15264_v44, 0.0  ;;  %v15286_v44 = vld [vmem:[#allocation114_spill] sm:$0xff] }
 0x2de   : > { %v3780_v34 = vpop.f32.mrf.mxu1 }
 0x2df   : > { %v3929_v61 = vadd.f32 %v11522_v47, %v3890_v39  ;;  %v3888_v25 = vmul.f32 %v11516_v3, %v3780_v34  ;;  %v3958_v24 = vadd.f32 %v3926_v22, %v15250_v9  ;;  %v15266_v34 = vld [vmem:[#allocation107_spill] sm:$0xff] }
 0x2e0   : > { %v15267_v22 = vmax.f32 %v15266_v34, 0.0 }
 0x2e1   : > { %v3927_v28 = vadd.f32 %v11522_v47, %v3888_v25  ;;  %v3961_v29 = vadd.f32 %v3929_v61, %v15248_v20  ;;  %v15268_v25 = vld [vmem:[#allocation109_spill] sm:$0xff]  ;;  %v15271_v20 = vmax.f32 %v15270_v23, 0.0 }
 0x2e2   : > { %v15269_v13 = vmax.f32 %v15268_v25, 0.0 }
 0x2e3   : > { %v3959_v42 = vadd.f32 %v3927_v28, %v15252_v5  ;;  %v3987_v54 = vpack.c.bf16 %v3961_v29, %v3960_v15 }
 0x2e5   : > { %v3986_v50 = vpack.c.bf16 %v3959_v42, %v3958_v24 }
 0x2e7   : > { %8606 = vmatprep.mubr.msk.bf16.mxu1 %vm1627_vm3, %v3986_v50 }
 0x2e8   : > { %8607 = vmatmul.mubr.msk.bf16.gmra.mxu1 %vm1627_vm3, %v3987_v54 }
 0x2f6   : > { %v8578_v26 = vpop.f32.mrf.mxu1 }
 0x2f7   : > { %v3893_v19 = vmul.f32 %v8578_v26, %v11516_v3 }
 0x2f8   : > { %v3793_v59 = vpop.f32.mrf.mxu1 }
 0x2f9   : > { %v3891_v35 = vmul.f32 %v11516_v3, %v3793_v59  ;;  %v3932_v31 = vadd.f32 %v11522_v47, %v3893_v19  ;;  %v15272_v19 = vld [vmem:[#allocation112_spill] sm:$0xff] }
 0x2fa   : > { %v8579_v58 = vpop.f32.mrf.mxu1 }
 0x2fb   : > { %v3894_v37 = vmul.f32 %v8579_v58, %v11516_v3  ;;  %v3930_v43 = vadd.f32 %v11522_v47, %v3891_v35  ;;  %v3964_v60 = vadd.f32 %v3932_v31, %v15263_v38  ;;  %v15273_v58 = vmax.f32 %v15272_v19, 0.0  ;;  %v15294_v19 = vld [vmem:[#allocation157_spill] sm:$0xff] }
 0x2fc   : > { %v3796_v51 = vpop.f32.mrf.mxu1 }
 0x2fd   : > { %v3933_v6 = vadd.f32 %v11522_v47, %v3894_v37  ;;  %v3892_v0 = vmul.f32 %v11516_v3, %v3796_v51  ;;  %v3962_v56 = vadd.f32 %v3930_v43, %v15259_v45  ;;  %v15274_v51 = vld [vmem:[#allocation111_spill] sm:$0xff] }
 0x2fe   : > { %v15275_v43 = vmax.f32 %v15274_v51, 0.0  ;;  %v11773_v51 = vld [vmem:[%s9141_s30] ss:$0 sm:$0xff] }
 0x2ff   : > { %v3931_v12 = vadd.f32 %v11522_v47, %v3892_v0  ;;  %v3965_v53 = vadd.f32 %v3933_v6, %v15257_v14  ;;  %v15276_v0 = vld [vmem:[#allocation113_spill] sm:$0xff]  ;;  %v15279_v14 = vmax.f32 %v15278_v10, 0.0 }
 0x300   : > { %v15277_v31 = vmax.f32 %v15276_v0, 0.0  ;;  %v11776_v0 = vld [vmem:[%s14838_s6] ss:$0 sm:$0xff] }
 0x301   : > { %v3963_v36 = vadd.f32 %v3931_v12, %v15261_v55  ;;  %v3989_v40 = vpack.c.bf16 %v3965_v53, %v3964_v60 }
 0x303   : > { %v3988_v8 = vpack.c.bf16 %v3963_v36, %v3962_v56 }
 0x305   : > { %8610 = vmatprep.mubr.msk.bf16.mxu1 %vm1627_vm3, %v3988_v8 }
 0x306   : > { %8611 = vmatmul.mubr.msk.bf16.gmra.mxu1 %vm1627_vm3, %v3989_v40 }
 0x314   : > { %v8582_v4 = vpop.f32.mrf.mxu1 }
 0x315   : > { %v3897_v2 = vmul.f32 %v8582_v4, %v11516_v3 }
 0x316   : > { %v3809_v16 = vpop.f32.mrf.mxu1 }
 0x317   : > { %v3895_v48 = vmul.f32 %v11516_v3, %v3809_v16  ;;  %v3936_v21 = vadd.f32 %v11522_v47, %v3897_v2  ;;  %v15280_v2 = vld [vmem:[#allocation116_spill] sm:$0xff] }
 0x318   : > { %v8583_v11 = vpop.f32.mrf.mxu1 }
 0x319   : > { %v3898_v17 = vmul.f32 %v8583_v11, %v11516_v3  ;;  %v3934_v32 = vadd.f32 %v11522_v47, %v3895_v48  ;;  %v3968_v29 = vadd.f32 %v3936_v21, %v15271_v20  ;;  %v15281_v11 = vmax.f32 %v15280_v2, 0.0 }
 0x31a   : > { %v3812_v18 = vpop.f32.mrf.mxu1 }
 0x31b   : > { %v3937_v7 = vadd.f32 %v11522_v47, %v3898_v17  ;;  %v3896_v46 = vmul.f32 %v11516_v3, %v3812_v18  ;;  %v3966_v61 = vadd.f32 %v3934_v32, %v15267_v22  ;;  %v15282_v18 = vld [vmem:[#allocation115_spill] sm:$0xff] }
 0x31c   : > { %v15283_v32 = vmax.f32 %v15282_v18, 0.0 }
 0x31d   : > { %v3935_v41 = vadd.f32 %v11522_v47, %v3896_v46  ;;  %v3969_v39 = vadd.f32 %v3937_v7, %v15265_v63  ;;  %v15284_v46 = vld [vmem:[#allocation156_spill] sm:$0xff]  ;;  %v15287_v63 = vmax.f32 %v15286_v44, 0.0 }
 0x31e   : > { %v15285_v21 = vmax.f32 %v15284_v46, 0.0 }
 0x31f   : > { %v3967_v28 = vadd.f32 %v3935_v41, %v15269_v13  ;;  %v3991_v9 = vpack.c.bf16 %v3969_v39, %v3968_v29 }
 0x321   : > { %v3990_v33 = vpack.c.bf16 %v3967_v28, %v3966_v61 }
 0x323   : > { %8614 = vmatprep.mubr.msk.bf16.mxu1 %vm1627_vm3, %v3990_v33 }
 0x324   : > { %8615 = vmatmul.mubr.msk.bf16.gmra.mxu1 %vm1627_vm3, %v3991_v9 }
 0x332   : > { %v8586_v24 = vpop.f32.mrf.mxu1 }
 0x333   : > { %v3901_v42 = vmul.f32 %v8586_v24, %v11516_v3 }
 0x334   : > { %v3825_v1 = vpop.f32.mrf.mxu1 }
 0x335   : > { %v3899_v5 = vmul.f32 %v11516_v3, %v3825_v1  ;;  %v3940_v59 = vadd.f32 %v11522_v47, %v3901_v42  ;;  %v15288_v42 = vld [vmem:[#allocation171_spill] sm:$0xff] }
 0x336   : > { %v8587_v30 = vpop.f32.mrf.mxu1 }
 0x337   : > { %v3902_v27 = vmul.f32 %v8587_v30, %v11516_v3  ;;  %v3938_v50 = vadd.f32 %v11522_v47, %v3899_v5  ;;  %v3972_v53 = vadd.f32 %v3940_v59, %v15279_v14  ;;  %v15289_v30 = vmax.f32 %v15288_v42, 0.0 }
 0x338   : > { %v3828_v15 = vpop.f32.mrf.mxu1 }
 0x339   : > { %v3941_v54 = vadd.f32 %v11522_v47, %v3902_v27  ;;  %v3900_v26 = vmul.f32 %v11516_v3, %v3828_v15  ;;  %v3970_v6 = vadd.f32 %v3938_v50, %v15275_v43  ;;  %v15290_v15 = vld [vmem:[#allocation159_spill] sm:$0xff] }
 0x33a   : > { %v15291_v50 = vmax.f32 %v15290_v15, 0.0 }
 0x33b   : > { %v3939_v35 = vadd.f32 %v11522_v47, %v3900_v26  ;;  %v3973_v37 = vadd.f32 %v3941_v54, %v15273_v58  ;;  %v15292_v26 = vld [vmem:[#allocation70_spill] sm:$0xff]  ;;  %v15295_v58 = vmax.f32 %v15294_v19, 0.0 }
 0x33c   : > { %v15293_v59 = vmax.f32 %v15292_v26, 0.0 }
 0x33d   : > { %v3971_v12 = vadd.f32 %v3939_v35, %v15277_v31  ;;  %v3993_v45 = vpack.c.bf16 %v3973_v37, %v3972_v53 }
 0x33f   : > { %v3992_v57 = vpack.c.bf16 %v3971_v12, %v3970_v6 }
 0x341   : > { %8618 = vmatprep.mubr.msk.bf16.mxu1 %vm1627_vm3, %v3992_v57 }
 0x342   : > { %8619 = vmatmul.mubr.msk.bf16.gmra.mxu1 %vm1627_vm3, %v3993_v45 }
 0x352   : > { %v8590_v56 = vpop.f32.mrf.mxu1 }
 0x353   : > { %v3905_v36 = vmul.f32 %v8590_v56, %v11516_v3 }
 0x354   : > { %v3841_v52 = vpop.f32.mrf.mxu1 }
 0x355   : > { %v3903_v55 = vmul.f32 %v11516_v3, %v3841_v52  ;;  %v3944_v16 = vadd.f32 %v11522_v47, %v3905_v36 }
 0x356   : > { %v8591_v49 = vpop.f32.mrf.mxu1 }
 0x357   : > { %v3906_v38 = vmul.f32 %v8591_v49, %v11516_v3  ;;  %v3942_v8 = vadd.f32 %v11522_v47, %v3903_v55  ;;  %v3976_v39 = vadd.f32 %v3944_v16, %v15287_v63 }
 0x358   : > { %v3844_v60 = vpop.f32.mrf.mxu1 }
 0x359   : > { %v3945_v40 = vadd.f32 %v11522_v47, %v3906_v38  ;;  %v3904_v4 = vmul.f32 %v11516_v3, %v3844_v60  ;;  %v3974_v7 = vadd.f32 %v3942_v8, %v15283_v32 }
 0x35b   : > { %v3943_v48 = vadd.f32 %v11522_v47, %v3904_v4  ;;  %v3977_v17 = vadd.f32 %v3945_v40, %v15281_v11 }
 0x35d   : > { %v3975_v41 = vadd.f32 %v3943_v48, %v15285_v21  ;;  %v3995_v22 = vpack.c.bf16 %v3977_v17, %v3976_v39 }
 0x35f   : > { %v3994_v34 = vpack.c.bf16 %v3975_v41, %v3974_v7 }
 0x361   : > { %8622 = vmatprep.mubr.msk.bf16.mxu1 %vm1627_vm3, %v3994_v34 }
 0x362   : > { %8623 = vmatmul.mubr.msk.bf16.gmra.mxu1 %vm1627_vm3, %v3995_v22  ;;  %v11807_v22 = vld [vmem:[%s14837_s12 + $0x1] ss:$0 sm:$0xff] }
 0x369   : > { %v8594_v61 = vpop.f32.mrf.mxu1 }
 0x36a   : > { %v3909_v28 = vmul.f32 %v8594_v61, %v11516_v3 }
 0x36b   : > { %v3857_v25 = vpop.f32.mrf.mxu1 }
 0x36c   : > { %v3907_v13 = vmul.f32 %v11516_v3, %v3857_v25  ;;  %v3948_v1 = vadd.f32 %v11522_v47, %v3909_v28 }
 0x36d   : > { %v8595_v23 = vpop.f32.mrf.mxu1 }
 0x36e   : > { %v3910_v20 = vmul.f32 %v8595_v23, %v11516_v3  ;;  %v3946_v33 = vadd.f32 %v11522_v47, %v3907_v13  ;;  %v3980_v37 = vadd.f32 %v3948_v1, %v15295_v58  ;;  %v11815_v23 = vld [vmem:[%s14837_s12 + $0x2] ss:$0 sm:$0xff] }
 0x36f   : > { %v3860_v29 = vpop.f32.mrf.mxu1 }
 0x370   : > { %v3949_v9 = vadd.f32 %v11522_v47, %v3910_v20  ;;  %v3908_v24 = vmul.f32 %v11516_v3, %v3860_v29  ;;  %v3978_v54 = vadd.f32 %v3946_v33, %v15291_v50 }
 0x371   : > { %v8600_v6 = vpop.f32.mrf.mxu1 }
 0x372   : > { %v3947_v5 = vadd.f32 %v11522_v47, %v3908_v24  ;;  %v3981_v27 = vadd.f32 %v3949_v9, %v15289_v30  ;;  %v4224_v47 = vmul.f32 %v8600_v6, %v11773_v51  ;;  %v11827_v24 = vld [vmem:[%s14837_s12 + $0x5] ss:$0 sm:$0xff]  ;;  %v11832_v30 = vld [vmem:[%s14837_s12] ss:$0 sm:$0xff] }
 0x373   : > { %v4088_v31 = vpop.f32.mrf.mxu1 }
 0x374   : > { %v3979_v35 = vadd.f32 %v3947_v5, %v15293_v59  ;;  %v3997_v3 = vpack.c.bf16 %v3981_v27, %v3980_v37  ;;  %v4263_v12 = vadd.f32 %v11776_v0, %v4224_v47  ;;  %v4222_v10 = vmul.f32 %v11773_v51, %v4088_v31  ;;  %v11848_v59 = vld [vmem:[%s14837_s12 + $0x6] ss:$0 sm:$0xff] }
 0x375   : > { %v8601_v14 = vpop.f32.mrf.mxu1 }
 0x376   : > { %v3996_v43 = vpack.c.bf16 %v3979_v35, %v3978_v54  ;;  %v4295_v53 = vmax.f32 %v4263_v12, 0.0  ;;  %v4261_v57 = vadd.f32 %v11776_v0, %v4222_v10  ;;  %v4225_v45 = vmul.f32 %v8601_v14, %v11773_v51 }
 0x377   : > { %v4091_v56 = vpop.f32.mrf.mxu1 }
 0x378   : > { %8626 = vmatprep.mubr.msk.bf16.mxu1 %vm1627_vm3, %v3996_v43  ;;  %4385 = vst.msk [vmem:[#allocation4 + $0x31] sm:$0xff] %vm4325_vm6, %v4295_v53  ;;  %v4293_v52 = vmax.f32 %v4261_v57, 0.0  ;;  %v4264_v55 = vadd.f32 %v11776_v0, %v4225_v45  ;;  %v4223_v36 = vmul.f32 %v11773_v51, %v4091_v56 }
 0x379   : > { %8627 = vmatmul.mubr.msk.bf16.gmra.mxu1 %vm1627_vm3, %v3997_v3 }
 0x37a   : > { %4382 = vst.msk [vmem:[#allocation4 + $0x19] sm:$0xff] %vm4325_vm6, %v4293_v52  ;;  %v4296_v49 = vmax.f32 %v4264_v55, 0.0  ;;  %v4262_v38 = vadd.f32 %v11776_v0, %v4223_v36 }
 0x37c   : > { %4386 = vst.msk [vmem:[#allocation4 + $0x39] sm:$0xff] %vm4325_vm6, %v4296_v49  ;;  %v4294_v60 = vmax.f32 %v4262_v38, 0.0 }
 0x37e   : > { %4383 = vst.msk [vmem:[#allocation4 + $0x21] sm:$0xff] %vm4325_vm6, %v4294_v60 }
 0x381   : > { %v4432_v61 = vld [vmem:[#allocation4 + $0x18] sm:$0xff] }
 0x382   : > { %v11818_v20 = vmul.f32 %v11807_v22, %v4432_v61  ;;  %v11821_v29 = vmul.f32 %v11815_v23, %v4432_v61  ;;  %v11845_v26 = vmul.f32 %v11832_v30, %v4432_v61 }
 0x383   : > { %v4437_v25 = vld [vmem:[#allocation4 + $0x40] sm:$0x3] }
 0x384   : > { %15297 = vst [vmem:[#allocation81_spill] sm:$0xff] %v11818_v20  ;;  %15298 = vst [vmem:[#allocation68_spill] sm:$0xff] %v11821_v29  ;;  %v11824_v33 = vmul.f32 %v11807_v22, %v4437_v25  ;;  %v11835_v27 = vmul.f32 %v11815_v23, %v4437_v25  ;;  %v11838_v15 = vmul.f32 %v11827_v24, %v4437_v25 }
 0x385   : > { %v11804_v39 = vld [vmem:[#allocation4 + $0x20] sm:$0xff]  ;;  %v4434_v34 = vld [vmem:[#allocation4 + $0x28] sm:$0x3]  ;;  %15303 = vst [vmem:[#allocation92_spill] sm:$0xff] %v11845_v26  ;;  %v11857_v6 = vmul.f32 %v11848_v59, %v4437_v25 }
 0x386   : > { %v11811_v13 = vmul.f32 %v11807_v22, %v11804_v39  ;;  %v4562_v28 = vmul.f32 %v11807_v22, %v4434_v34  ;;  %15299 = vst [vmem:[#allocation69_spill] sm:$0xff] %v11824_v33  ;;  %15300 = vst [vmem:[#allocation95_spill] sm:$0xff] %v11835_v27  ;;  %v11842_v50 = vmul.f32 %v11815_v23, %v11804_v39 }
 0x387   : > { %15301 = vst [vmem:[#allocation66_spill] sm:$0xff] %v11838_v15  ;;  %v4807_v35 = vmul.f32 %v11815_v23, %v4434_v34  ;;  %15304 = vst [vmem:[#allocation67_spill] sm:$0xff] %v11857_v6  ;;  %v4491_v56 = vmul.f32 %v11832_v30, %v11804_v39 }
 0x388   : > { %15296 = vst [vmem:[#allocation57_spill] sm:$0xff] %v11811_v13  ;;  %v14710_v1 = vrot.slane %v11811_v13, 1  ;;  %v4661_v5 = vrot.slane %v4562_v28, 1  ;;  %15302 = vst [vmem:[#allocation53_spill] sm:$0xff] %v11842_v50  ;;  %v14709_v52 = vrot.slane %v11842_v50, 2 }
 0x389   : > { %v8604_v8 = vpop.f32.mrf.mxu1  ;;  %v4906_v36 = vrot.slane %v4807_v35, 2 }
 0x38a   : > { %v4228_v40 = vmul.f32 %v8604_v8, %v11773_v51  ;;  %v4662_v31 = vsel %vm1955_vm5, %v14710_v1, %v4661_v5  ;;  %v11913_v5 = vmul.f32 %v11848_v59, %v11804_v39 }
 0x38b   : > { %v4104_v4 = vpop.f32.mrf.mxu1 }
 0x38c   : > { %v4267_v16 = vadd.f32 %v11776_v0, %v4228_v40  ;;  %v4226_v48 = vmul.f32 %v11773_v51, %v4104_v4  ;;  %v4768_v4 = vadd.f32 %v4662_v31, %v4491_v56  ;;  %15314 = vst [vmem:[#allocation80_spill] sm:$0xff] %v11913_v5 }
 0x38d   : > { %v8605_v2 = vpop.f32.mrf.mxu1 }
 0x38e   : > { %v4299_v11 = vmax.f32 %v4267_v16, 0.0  ;;  %v4265_v17 = vadd.f32 %v11776_v0, %v4226_v48  ;;  %v4229_v18 = vmul.f32 %v8605_v2, %v11773_v51  ;;  %v11875_v16 = vmul.f32 %v11827_v24, %v11804_v39 }
 0x38f   : > { %v4107_v32 = vpop.f32.mrf.mxu1 }
 0x390   : > { %4391 = vst.msk [vmem:[#allocation4 + $0x61] sm:$0xff] %vm4325_vm6, %v4299_v11  ;;  %v4297_v7 = vmax.f32 %v4265_v17, 0.0  ;;  %v4268_v46 = vadd.f32 %v11776_v0, %v4229_v18  ;;  %v4227_v21 = vmul.f32 %v11773_v51, %v4107_v32  ;;  %15305 = vst [vmem:[#allocation54_spill] sm:$0xff] %v11875_v16 }
 0x392   : > { %4388 = vst.msk [vmem:[#allocation4 + $0x49] sm:$0xff] %vm4325_vm6, %v4297_v7  ;;  %v4300_v41 = vmax.f32 %v4268_v46, 0.0  ;;  %v4266_v44 = vadd.f32 %v11776_v0, %v4227_v21 }
 0x394   : > { %4392 = vst.msk [vmem:[#allocation4 + $0x69] sm:$0xff] %vm4325_vm6, %v4300_v41  ;;  %v4298_v63 = vmax.f32 %v4266_v44, 0.0  ;;  %v4907_v44 = vsel %vm1350_vm1, %v14709_v52, %v4906_v36 }
 0x395   : > { %v11908_v28 = vadd.f32 %v4907_v44, %v4768_v4 }
 0x396   : > { %4389 = vst.msk [vmem:[#allocation4 + $0x51] sm:$0xff] %vm4325_vm6, %v4298_v63  ;;  %v11902_v63 = vmul.f32 %v11827_v24, %v4434_v34 }
 0x397   : > { %15313 = vst [vmem:[#allocation89_spill] sm:$0xff] %v11908_v28 }
 0x398   : > { %15311 = vst [vmem:[#allocation88_spill] sm:$0xff] %v11902_v63 }
 0x39b   : > { %v4443_v12 = vld [vmem:[#allocation4 + $0x70] sm:$0x3]  ;;  %v4442_v32 = vld [vmem:[#allocation4 + $0x68] sm:$0xff] }
 0x39c   : > { %v4571_v48 = vmul.f32 %v11807_v22, %v4443_v12  ;;  %v11879_v2 = vmul.f32 %v11815_v23, %v4443_v12  ;;  %v11882_v11 = vmul.f32 %v11827_v24, %v4443_v12  ;;  %v11887_v7 = vmul.f32 %v11848_v59, %v4443_v12 }
 0x39d   : > { %v4440_v49 = vld [vmem:[#allocation4 + $0x58] sm:$0x3]  ;;  %v11919_v35 = vmul.f32 %v11807_v22, %v4442_v32  ;;  %v11936_v56 = vmul.f32 %v11832_v30, %v4442_v32 }
 0x39e   : > { %15306 = vst [vmem:[#allocation76_spill] sm:$0xff] %v11882_v11  ;;  %15307 = vst [vmem:[#allocation90_spill] sm:$0xff] %v11887_v7  ;;  %v11890_v46 = vmul.f32 %v11807_v22, %v4440_v49  ;;  %v11893_v21 = vmul.f32 %v11815_v23, %v4440_v49  ;;  %v11896_v41 = vmul.f32 %v11827_v24, %v4440_v49 }
 0x39f   : > { %v11905_v61 = vmul.f32 %v11848_v59, %v4440_v49  ;;  %15315 = vst [vmem:[#allocation100_spill] sm:$0xff] %v11919_v35 }
 0x3a0   : > { %15308 = vst [vmem:[#allocation91_spill] sm:$0xff] %v11890_v46  ;;  %15309 = vst [vmem:[#allocation87_spill] sm:$0xff] %v11893_v21 }
 0x3a1   : > { %15310 = vst [vmem:[#allocation86_spill] sm:$0xff] %v11896_v41  ;;  %15312 = vst [vmem:[#allocation79_spill] sm:$0xff] %v11905_v61 }
 0x3a8   : > { %v8608_v9 = vpop.f32.mrf.mxu1 }
 0x3a9   : > { %v4232_v42 = vmul.f32 %v8608_v9, %v11773_v51 }
 0x3aa   : > { %v4120_v54 = vpop.f32.mrf.mxu1 }
 0x3ab   : > { %v4271_v19 = vadd.f32 %v11776_v0, %v4232_v42  ;;  %v4230_v58 = vmul.f32 %v11773_v51, %v4120_v54  ;;  %v4676_v42 = vrot.slane %v4571_v48, 1 }
 0x3ac   : > { %v8609_v47 = vpop.f32.mrf.mxu1 }
 0x3ad   : > { %v4303_v10 = vmax.f32 %v4271_v19, 0.0  ;;  %v4269_v14 = vadd.f32 %v11776_v0, %v4230_v58  ;;  %v4233_v53 = vmul.f32 %v8609_v47, %v11773_v51  ;;  %v11922_v19 = vmul.f32 %v11815_v23, %v4442_v32 }
 0x3ae   : > { %v4123_v55 = vpop.f32.mrf.mxu1 }
 0x3af   : > { %4397 = vst.msk [vmem:[#allocation4 + $0x91] sm:$0xff] %vm4325_vm6, %v4303_v10  ;;  %v4301_v38 = vmax.f32 %v4269_v14, 0.0  ;;  %v4272_v60 = vadd.f32 %v11776_v0, %v4233_v53  ;;  %v4231_v8 = vmul.f32 %v11773_v51, %v4123_v55  ;;  %15316 = vst [vmem:[#allocation84_spill] sm:$0xff] %v11922_v19  ;;  %v11939_v55 = vld [vmem:[%s14837_s12 + $0x4] ss:$0 sm:$0xff] }
 0x3b1   : > { %4394 = vst.msk [vmem:[#allocation4 + $0x79] sm:$0xff] %vm4325_vm6, %v4301_v38  ;;  %v4304_v17 = vmax.f32 %v4272_v60, 0.0  ;;  %v4270_v18 = vadd.f32 %v11776_v0, %v4231_v8  ;;  %v14711_v8 = vrot.slane %v11919_v35, 1 }
 0x3b3   : > { %4398 = vst.msk [vmem:[#allocation4 + $0x99] sm:$0xff] %vm4325_vm6, %v4304_v17  ;;  %v4302_v25 = vmax.f32 %v4270_v18, 0.0  ;;  %v4677_v3 = vsel %vm1955_vm5, %v14711_v8, %v4676_v42 }
 0x3b5   : > { %4395 = vst.msk [vmem:[#allocation4 + $0x81] sm:$0xff] %vm4325_vm6, %v4302_v25 }
 0x3b6   : > { %v11928_v12 = vld [vmem:[#allocation4 + $0x90] sm:$0xff] }
 0x3b7   : > { %15317 = vst [vmem:[#allocation85_spill] sm:$0xff] %v11928_v12  ;;  %v4575_v14 = vmul.f32 %v11807_v22, %v11928_v12  ;;  %v4820_v53 = vmul.f32 %v11815_v23, %v11928_v12  ;;  %v4500_v49 = vmul.f32 %v11832_v30, %v11928_v12  ;;  %v11947_v38 = vmul.f32 %v11827_v24, %v11928_v12 }
 0x3b8   : > { %v11941_v36 = vld [vmem:[#allocation4 + $0x78] sm:$0xff]  ;;  %v11951_v60 = vmul.f32 %v11848_v59, %v11928_v12  ;;  %v11956_v17 = vmul.f32 %v11939_v55, %v11928_v12 }
 0x3b9   : > { %15318 = vst [vmem:[#allocation82_spill] sm:$0xff] %v11941_v36  ;;  %v4683_v4 = vrot.slane %v4575_v14, 1  ;;  %v4928_v48 = vrot.slane %v4820_v53, 2  ;;  %v11965_v25 = vmul.f32 %v11832_v30, %v11941_v36  ;;  %v4572_v9 = vmul.f32 %v11807_v22, %v11941_v36 }
 0x3ba   : > { %v11959_v32 = vld [vmem:[#allocation4 + $0x98] sm:$0xff]  ;;  %v11961_v44 = vld [vmem:[#allocation4 + $0xa0] sm:$0x3]  ;;  %v11971_v14 = vmul.f32 %v11815_v23, %v11941_v36 }
 0x3bb   : > { %v4577_v43 = vmul.f32 %v11807_v22, %v11961_v44  ;;  %v4822_v52 = vmul.f32 %v11815_v23, %v11961_v44  ;;  %v11980_v37 = vmul.f32 %v11827_v24, %v11961_v44  ;;  %v11985_v40 = vmul.f32 %v11848_v59, %v11961_v44 }
 0x3bc   : > { %v11987_v45 = vld [vmem:[#allocation4 + $0x80] sm:$0xff]  ;;  %v4446_v10 = vld [vmem:[#allocation4 + $0x88] sm:$0x3]  ;;  %v4576_v31 = vmul.f32 %v11807_v22, %v11959_v32  ;;  %v4821_v57 = vmul.f32 %v11815_v23, %v11959_v32  ;;  %v4501_v39 = vmul.f32 %v11832_v30, %v11959_v32  ;;  %v5059_v47 = vmul.f32 %v11939_v55, %v11959_v32 }
 0x3bd   : > { %v4686_v58 = vrot.slane %v4577_v43, 1  ;;  %v4931_v34 = vrot.slane %v4822_v52, 2  ;;  %v4574_v1 = vmul.f32 %v11807_v22, %v4446_v10  ;;  %v4819_v18 = vmul.f32 %v11815_v23, %v4446_v10 }
 0x3be   : > { %v12003_v54 = vmul.f32 %v11827_v24, %v4446_v10  ;;  %v12006_v53 = vmul.f32 %v11848_v59, %v4446_v10  ;;  %v5241_v42 = vrot.slane %v11980_v37, 1  ;;  %v4684_v43 = vrot.slane %v4576_v31, 1 }
 0x3bf   : > { %v4929_v52 = vrot.slane %v4821_v57, 2  ;;  %v4573_v8 = vmul.f32 %v11807_v22, %v11987_v45  ;;  %v5486_v62 = vrot.slane %v11985_v40, 2  ;;  %v4681_v16 = vrot.slane %v4574_v1, 1 }
 0x3c0   : > { %v4926_v5 = vrot.slane %v4819_v18, 2  ;;  %v4499_v63 = vmul.f32 %v11832_v30, %v11987_v45  ;;  %v4687_v10 = vsel %vm1955_vm5, %v4684_v43, %v4686_v58  ;;  %v4685_v37 = vsel %vm1955_vm5, %v4683_v4, %v4684_v43 }
 0x3c1   : > { %v4932_v57 = vsel %vm1350_vm1, %v4929_v52, %v4931_v34  ;;  %v4930_v26 = vsel %vm1350_vm1, %v4928_v48, %v4929_v52  ;;  %v4679_v20 = vrot.slane %v4573_v8, 1  ;;  %v4818_v1 = vmul.f32 %v11815_v23, %v11987_v45 }
 0x3c2   : > { %v4778_v18 = vadd.f32 %v4687_v10, %v4501_v39  ;;  %v5133_v29 = vmul.f32 %v11827_v24, %v11959_v32  ;;  %v5378_v58 = vmul.f32 %v11848_v59, %v11959_v32  ;;  %v4777_v4 = vadd.f32 %v4685_v37, %v4500_v49 }
 0x3c3   : > { %v4682_v43 = vsel %vm1955_vm5, %v4679_v20, %v4681_v16  ;;  %v4924_v34 = vrot.slane %v4818_v1, 2  ;;  %v4678_v13 = vrot.slane %v4572_v9, 1  ;;  %v4923_v28 = vrot.slane %v11971_v14, 2 }
 0x3c4   : > { %v4776_v52 = vadd.f32 %v4682_v43, %v4499_v63  ;;  %v5239_v6 = vrot.slane %v5133_v29, 1  ;;  %v5484_v10 = vrot.slane %v5378_v58, 2  ;;  %v12035_v1 = vadd.f32 %v4932_v57, %v4778_v18 }
 0x3c5   : > { %v4927_v39 = vsel %vm1350_vm1, %v4924_v34, %v4926_v5  ;;  %v4680_v15 = vsel %vm1955_vm5, %v4678_v13, %v4679_v20  ;;  %v4925_v63 = vsel %vm1350_vm1, %v4923_v28, %v4924_v34  ;;  %v4481_v28 = vld [vmem:[#allocation4 + $0x1a0] sm:$0xff]  ;;  %v15319_v18 = vrot.slane %v11947_v38, 1 }
 0x3c6   : > { %v8612_v31 = vpop.f32.mrf.mxu1  ;;  %v5021_v9 = vadd.f32 %v4927_v39, %v4776_v52  ;;  %v4775_v29 = vadd.f32 %v4680_v15, %v11965_v25  ;;  %v5487_v58 = vsel %vm1350_vm1, %v5484_v10, %v5486_v62  ;;  %v15320_v62 = vrot.slane %v11879_v2, 2  ;;  %v12076_v52 = vld [vmem:[%s14837_s12 + $0x9] ss:$0 sm:$0xff] }
 0x3c7   : > { %v4236_v40 = vmul.f32 %v8612_v31, %v11773_v51  ;;  %v15321_v43 = vrot.slane %v11922_v19, 2  ;;  %v12062_v34 = vmul.f32 %v11827_v24, %v11987_v45 }
 0x3c8   : > { %v4136_v50 = vpop.f32.mrf.mxu1  ;;  %v5091_v14 = vadd.f32 %v5059_v47, %v5021_v9  ;;  %v5020_v57 = vadd.f32 %v4925_v63, %v4775_v29  ;;  %v5240_v47 = vsel %vm1955_vm5, %v15319_v18, %v5239_v6  ;;  %v12098_v29 = vld [vmem:[%s14837_s12 + $0xa] ss:$0 sm:$0xff]  ;;  %v12127_v18 = vmul.f32 %v12076_v52, %v11961_v44 }
 0x3c9   : > { %v4275_v8 = vadd.f32 %v11776_v0, %v4236_v40  ;;  %v4234_v48 = vmul.f32 %v11773_v51, %v4136_v50  ;;  %v12037_v50 = vadd.f32 %v4930_v26, %v4777_v4  ;;  %v5242_v40 = vsel %vm1955_vm5, %v5239_v6, %v5241_v42  ;;  %v4482_v4 = vld [vmem:[#allocation4 + $0x1a8] sm:$0x3]  ;;  %15322 = vst [vmem:[#allocation77_spill] sm:$0xff] %v12062_v34  ;;  %v12066_v6 = vld [vmem:[%s14837_s12 + $0x8] ss:$0 sm:$0xff] }
 0x3ca   : > { %v8613_v31 = vpop.f32.mrf.mxu1  ;;  %v4774_v26 = vadd.f32 %v4677_v3, %v11936_v56  ;;  %v5336_v25 = vadd.f32 %v5242_v40, %v5091_v14  ;;  %v5090_v42 = vadd.f32 %v11956_v17, %v5020_v57  ;;  %v4922_v3 = vsel %vm1350_vm1, %v15321_v43, %v15320_v62  ;;  %v4480_v63 = vld [vmem:[#allocation4 + $0x198] sm:$0xff] }
 0x3cb   : > { %v4307_v61 = vmax.f32 %v4275_v8, 0.0  ;;  %v4273_v49 = vadd.f32 %v11776_v0, %v4234_v48  ;;  %v4237_v16 = vmul.f32 %v8613_v31, %v11773_v51  ;;  %v5057_v56 = vmul.f32 %v11939_v55, %v11987_v45 }
 0x3cc   : > { %v4139_v37 = vpop.f32.mrf.mxu1  ;;  %v15323_v17 = vrot.slane %v11951_v60, 2  ;;  %v5019_v8 = vadd.f32 %v4922_v3, %v4774_v26  ;;  %v12073_v48 = vmul.f32 %v11848_v59, %v11987_v45  ;;  %v12079_v31 = vmul.f32 %v12066_v6, %v4481_v28 }
 0x3cd   : > { %4403 = vst.msk [vmem:[#allocation4 + $0xc1] sm:$0xff] %vm4325_vm6, %v4307_v61  ;;  %v4305_v13 = vmax.f32 %v4273_v49, 0.0  ;;  %v4276_v20 = vadd.f32 %v11776_v0, %v4237_v16  ;;  %v4235_v5 = vmul.f32 %v11773_v51, %v4139_v37  ;;  %v12081_v39 = vadd.f32 %v5487_v58, %v5336_v25 }
 0x3ce   : > { %v5485_v2 = vsel %vm1350_vm1, %v15323_v17, %v5484_v10  ;;  %15324 = vst [vmem:[#allocation83_spill] sm:$0xff] %v12079_v31  ;;  %v5335_v49 = vadd.f32 %v5240_v47, %v5090_v42  ;;  %v14723_v16 = vrot.slane %v12062_v34, 1  ;;  %v12086_v60 = vmul.f32 %v12076_v52, %v4481_v28 }
 0x3cf   : > { %4400 = vst.msk [vmem:[#allocation4 + $0xa9] sm:$0xff] %vm4325_vm6, %v4305_v13  ;;  %v4308_v15 = vmax.f32 %v4276_v20, 0.0  ;;  %v4274_v61 = vadd.f32 %v11776_v0, %v4235_v5  ;;  %v5724_v10 = vmul.f32 %v12076_v52, %v4482_v4  ;;  %v12089_v9 = vadd.f32 %v5057_v56, %v5019_v8 }
 0x3d0   : > { %v12093_v45 = vmul.f32 %v12066_v6, %v11959_v32  ;;  %v12100_v13 = vadd.f32 %v5485_v2, %v5335_v49  ;;  %v15325_v20 = vrot.slane %v12003_v54, 1  ;;  %v12112_v40 = vmul.f32 %v12076_v52, %v11959_v32 }
 0x3d1   : > { %4404 = vst.msk [vmem:[#allocation4 + $0xc9] sm:$0xff] %vm4325_vm6, %v4308_v15  ;;  %v4306_v38 = vmax.f32 %v4274_v61, 0.0  ;;  %v5849_v58 = vrot.slane %v12086_v60, 1  ;;  %v5851_v57 = vrot.slane %v5724_v10, 1  ;;  %v12116_v26 = vmul.f32 %v12098_v29, %v4481_v28 }
 0x3d2   : > { %v12107_v5 = vsel %vm1955_vm5, %v14723_v16, %v15325_v20  ;;  %v5969_v15 = vmul.f32 %v12098_v29, %v4482_v4  ;;  %v12122_v61 = vmul.f32 %v12066_v6, %v4480_v63  ;;  %v5722_v25 = vmul.f32 %v12076_v52, %v4480_v63 }
 0x3d3   : > { %4401 = vst.msk [vmem:[#allocation4 + $0xb1] sm:$0xff] %vm4325_vm6, %v4306_v38  ;;  %v12131_v47 = vmul.f32 %v12098_v29, %v11959_v32  ;;  %v14726_v28 = vrot.slane %v12116_v26, 2  ;;  %v12147_v56 = vsel %vm1955_vm5, %v5849_v58, %v5851_v57  ;;  %v5967_v38 = vmul.f32 %v12098_v29, %v4480_v63 }
 0x3d4   : > { %v12095_v37 = vld [vmem:[#allocation4 + $0xc0] sm:$0xff]  ;;  %15326 = vst [vmem:[#allocation78_spill] sm:$0xff] %v12122_v61  ;;  %v6096_v42 = vrot.slane %v5969_v15, 2  ;;  %15327 = vst [vmem:[#allocation93_spill] sm:$0xff] %v12147_v56  ;;  %v5848_v32 = vrot.slane %v5722_v25, 1 }
 0x3d5   : > { %v12136_v4 = vmul.f32 %v11939_v55, %v12095_v37  ;;  %v12140_v62 = vmul.f32 %v11827_v24, %v12095_v37 }
 0x3d6   : > { %v12119_v54 = vld [vmem:[#allocation4 + $0xa8] sm:$0xff]  ;;  %v12173_v57 = vsel %vm1350_vm1, %v14726_v28, %v6096_v42  ;;  %v12207_v19 = vsel %vm1955_vm5, %v5848_v32, %v5849_v58 }
 0x3d7   : > { %v4502_v17 = vmul.f32 %v11832_v30, %v12119_v54  ;;  %v4578_v60 = vmul.f32 %v11807_v22, %v12119_v54  ;;  %15330 = vst [vmem:[#allocation97_spill] sm:$0xff] %v12173_v57  ;;  %v4823_v25 = vmul.f32 %v11815_v23, %v12119_v54  ;;  %v5248_v32 = vrot.slane %v12140_v62, 1 }
 0x3d8   : > { %v12142_v43 = vld [vmem:[#allocation4 + $0xc8] sm:$0xff]  ;;  %v12144_v3 = vld [vmem:[#allocation4 + $0xd0] sm:$0x3] }
 0x3d9   : > { %v12154_v2 = vmul.f32 %v11807_v22, %v12144_v3  ;;  %v12158_v8 = vmul.f32 %v11815_v23, %v12144_v3  ;;  %v5140_v49 = vmul.f32 %v11827_v24, %v12144_v3  ;;  %v5385_v10 = vmul.f32 %v11848_v59, %v12144_v3 }
 0x3da   : > { %v12166_v63 = vld [vmem:[#allocation4 + $0xb0] sm:$0xff]  ;;  %v12168_v20 = vld [vmem:[#allocation4 + $0xb8] sm:$0x3]  ;;  %v12177_v15 = vmul.f32 %v11827_v24, %v12142_v43  ;;  %v5063_v41 = vmul.f32 %v11939_v55, %v12142_v43  ;;  %v5384_v27 = vmul.f32 %v11848_v59, %v12142_v43  ;;  %v4688_v35 = vrot.slane %v4578_v60, 1 }
 0x3db   : > { %15328 = vst [vmem:[#allocation105_spill] sm:$0xff] %v12154_v2  ;;  %15329 = vst [vmem:[#allocation104_spill] sm:$0xff] %v12158_v8  ;;  %v5251_v14 = vrot.slane %v5140_v49, 1  ;;  %v4580_v42 = vmul.f32 %v11807_v22, %v12168_v20  ;;  %v4825_v28 = vmul.f32 %v11815_v23, %v12168_v20  ;;  %v5137_v33 = vmul.f32 %v11827_v24, %v12168_v20 }
 0x3dc   : > { %v12194_v7 = vmul.f32 %v11848_v59, %v12168_v20  ;;  %v4579_v16 = vmul.f32 %v11807_v22, %v12166_v63  ;;  %v4824_v2 = vmul.f32 %v11815_v23, %v12166_v63  ;;  %v5249_v11 = vrot.slane %v12177_v15, 1 }
 0x3dd   : > { %v5496_v21 = vrot.slane %v5385_v10, 2  ;;  %v4691_v46 = vrot.slane %v4580_v42, 1  ;;  %v4936_v57 = vrot.slane %v4825_v28, 2  ;;  %v4503_v56 = vmul.f32 %v11832_v30, %v12166_v63 }
 0x3de   : > { %v5246_v61 = vrot.slane %v5137_v33, 1  ;;  %v4689_v31 = vrot.slane %v4579_v16, 1  ;;  %v4934_v12 = vrot.slane %v4824_v2, 2  ;;  %v5494_v34 = vrot.slane %v5384_v27, 2 }
 0x3df   : > { %v5491_v49 = vrot.slane %v12194_v7, 2  ;;  %v5252_v8 = vsel %vm1955_vm5, %v5249_v11, %v5251_v14  ;;  %v6093_v15 = vrot.slane %v5967_v38, 2  ;;  %v4933_v42 = vrot.slane %v4823_v25, 2 }
 0x3e0   : > { %v4692_v10 = vsel %vm1955_vm5, %v4689_v31, %v4691_v46  ;;  %v4937_v28 = vsel %vm1350_vm1, %v4934_v12, %v4936_v57  ;;  %v5497_v27 = vsel %vm1350_vm1, %v5494_v34, %v5496_v21  ;;  %v4690_v7 = vsel %vm1955_vm5, %v4688_v35, %v4689_v31 }
 0x3e1   : > { %v4780_v16 = vadd.f32 %v4692_v10, %v4503_v56  ;;  %v4779_v14 = vadd.f32 %v4690_v7, %v4502_v17  ;;  %v4935_v58 = vsel %vm1350_vm1, %v4933_v42, %v4934_v12  ;;  %v5383_v46 = vmul.f32 %v11848_v59, %v12095_v37 }
 0x3e2   : > { %v15331_v35 = vrot.slane %v12116_v26, 2  ;;  %v5136_v62 = vmul.f32 %v11827_v24, %v12166_v63  ;;  %v12231_v56 = vmul.f32 %v11848_v59, %v12166_v63 }
 0x3e3   : > { %v5025_v57 = vadd.f32 %v4937_v28, %v4780_v16  ;;  %v5024_v12 = vadd.f32 %v4935_v58, %v4779_v14  ;;  %v5250_v58 = vsel %vm1955_vm5, %v5248_v32, %v5249_v11  ;;  %v12251_v11 = vmul.f32 %v12076_v52, %v12142_v43 }
 0x3e4   : > { %v8616_v36 = vpop.f32.mrf.mxu1  ;;  %v12225_v31 = vsel %vm1350_vm1, %v6093_v15, %v15331_v35  ;;  %v5244_v16 = vrot.slane %v5136_v62, 1  ;;  %v5621_v35 = vmul.f32 %v12066_v6, %v12142_v43  ;;  %v12258_v32 = vmul.f32 %v12098_v29, %v12142_v43 }
 0x3e5   : > { %v4240_v33 = vmul.f32 %v8616_v36, %v11773_v51  ;;  %v5061_v36 = vmul.f32 %v11939_v55, %v12166_v63  ;;  %v5095_v28 = vadd.f32 %v5063_v41, %v5025_v57  ;;  %v5094_v26 = vadd.f32 %v12136_v4, %v5024_v12 }
 0x3e6   : > { %v4152_v2 = vpop.f32.mrf.mxu1  ;;  %v5247_v41 = vsel %vm1955_vm5, %v5244_v16, %v5246_v61  ;;  %v5489_v4 = vrot.slane %v12231_v56, 2  ;;  %v14741_v12 = vrot.slane %v12251_v11, 1  ;;  %v5060_v56 = vmul.f32 %v11939_v55, %v12119_v54 }
 0x3e7   : > { %v4279_v60 = vadd.f32 %v11776_v0, %v4240_v33  ;;  %v4238_v38 = vmul.f32 %v11773_v51, %v4152_v2  ;;  %v5493_v33 = vrot.slane %v5383_v46, 2  ;;  %v5093_v15 = vadd.f32 %v5061_v36, %v12035_v1 }
 0x3e8   : > { %v8617_v21 = vpop.f32.mrf.mxu1  ;;  %v5339_v57 = vadd.f32 %v5250_v58, %v5094_v26  ;;  %v5380_v43 = vmul.f32 %v11848_v59, %v12119_v54 }
 0x3e9   : > { %v4311_v17 = vmax.f32 %v4279_v60, 0.0  ;;  %v4277_v25 = vadd.f32 %v11776_v0, %v4238_v38  ;;  %v4241_v10 = vmul.f32 %v8617_v21, %v11773_v51  ;;  %v5340_v60 = vadd.f32 %v5252_v8, %v5095_v28 }
 0x3ea   : > { %v4155_v42 = vpop.f32.mrf.mxu1  ;;  %v5495_v38 = vsel %vm1350_vm1, %v5493_v33, %v5494_v34  ;;  %v5338_v36 = vadd.f32 %v5247_v41, %v5093_v15  ;;  %v5492_v21 = vsel %vm1350_vm1, %v5489_v4, %v5491_v49  ;;  %v5697_v34 = vmul.f32 %v12076_v52, %v12144_v3 }
 0x3eb   : > { %4409 = vst.msk [vmem:[#allocation4 + $0xf1] sm:$0xff] %vm4325_vm6, %v4311_v17  ;;  %v4309_v7 = vmax.f32 %v4277_v25, 0.0  ;;  %v4280_v2 = vadd.f32 %v11776_v0, %v4241_v10  ;;  %v4239_v14 = vmul.f32 %v11773_v51, %v4155_v42  ;;  %v5942_v49 = vmul.f32 %v12098_v29, %v12144_v3 }
 0x3ec   : > { %v5583_v8 = vadd.f32 %v5492_v21, %v5338_v36  ;;  %v5806_v62 = vrot.slane %v5697_v34, 1  ;;  %v5135_v17 = vmul.f32 %v11827_v24, %v12119_v54  ;;  %v6049_v10 = vrot.slane %v12258_v32, 2  ;;  %v12305_v32 = vld [vmem:[%s15332_s23] ss:$0 sm:$0xff] }
 0x3ed   : > { %4406 = vst.msk [vmem:[#allocation4 + $0xd9] sm:$0xff] %vm4325_vm6, %v4309_v7  ;;  %v4312_v1 = vmax.f32 %v4280_v2, 0.0  ;;  %v4278_v46 = vadd.f32 %v11776_v0, %v4239_v14  ;;  %v6051_v28 = vrot.slane %v5942_v49, 2  ;;  %v5585_v42 = vadd.f32 %v5497_v27, %v5340_v60 }
 0x3ee   : > { %v5653_v25 = vadd.f32 %v5621_v35, %v5583_v8  ;;  %v5584_v3 = vadd.f32 %v5495_v38, %v5339_v57  ;;  %v5807_v26 = vsel %vm1955_vm5, %v14741_v12, %v5806_v62  ;;  %v5243_v33 = vrot.slane %v5135_v17, 1 }
 0x3ef   : > { %4410 = vst.msk [vmem:[#allocation4 + $0xf9] sm:$0xff] %vm4325_vm6, %v4312_v1  ;;  %v4310_v61 = vmax.f32 %v4278_v46, 0.0  ;;  %v5092_v7 = vadd.f32 %v5060_v56, %v12037_v50  ;;  %v12277_v2 = vmul.f32 %v12066_v6, %v12095_v37  ;;  %v5695_v14 = vmul.f32 %v12076_v52, %v12095_v37 }
 0x3f0   : > { %v5898_v15 = vadd.f32 %v5807_v26, %v5653_v25  ;;  %v6052_v41 = vsel %vm1350_vm1, %v6049_v10, %v6051_v28  ;;  %v5245_v27 = vsel %vm1955_vm5, %v5243_v33, %v5244_v16  ;;  %v5488_v60 = vrot.slane %v5380_v43, 2 }
 0x3f1   : > { %4407 = vst.msk [vmem:[#allocation4 + $0xe1] sm:$0xff] %vm4325_vm6, %v4310_v61  ;;  %v5940_v38 = vmul.f32 %v12098_v29, %v12095_v37  ;;  %v5619_v57 = vmul.f32 %v12066_v6, %v12166_v63  ;;  %v5337_v35 = vadd.f32 %v5245_v27, %v5092_v7  ;;  %v12293_v16 = vmul.f32 %v12076_v52, %v12166_v63 }
 0x3f2   : > { %v6143_v46 = vadd.f32 %v6052_v41, %v5898_v15  ;;  %v5490_v34 = vsel %vm1350_vm1, %v5488_v60, %v5489_v4  ;;  %v5803_v49 = vrot.slane %v5695_v14, 1 }
 0x3f3   : > { %v6048_v28 = vrot.slane %v5940_v38, 2 }
 0x3f4   : > { %v4456_v58 = vld [vmem:[#allocation4 + $0xd8] sm:$0xff]  ;;  %v6182_v15 = vmul.f32 %v12305_v32, %v6143_v46  ;;  %v12332_v46 = vld [vmem:[%s15337_s2] ss:$0 sm:$0xff] }
 0x3f5   : > { %v5698_v1 = vmul.f32 %v12076_v52, %v4456_v58  ;;  %v5943_v50 = vmul.f32 %v12098_v29, %v4456_v58  ;;  %v5622_v21 = vmul.f32 %v12066_v6, %v4456_v58 }
 0x3f6   : > { %v4461_v36 = vld [vmem:[#allocation4 + $0x100] sm:$0x3]  ;;  %v6221_v12 = vadd.f32 %v12332_v46, %v6182_v15 }
 0x3f7   : > { %v12296_v37 = vmul.f32 %v11807_v22, %v4461_v36  ;;  %v12299_v61 = vmul.f32 %v11815_v23, %v4461_v36  ;;  %v12302_v8 = vmul.f32 %v11827_v24, %v4461_v36  ;;  %v12308_v62 = vmul.f32 %v11848_v59, %v4461_v36 }
 0x3f8   : > { %v4457_v4 = vld [vmem:[#allocation4 + $0xe0] sm:$0xff]  ;;  %v4458_v56 = vld [vmem:[#allocation4 + $0xe8] sm:$0x3]  ;;  %v5654_v17 = vadd.f32 %v5622_v21, %v5584_v3  ;;  %v5808_v25 = vrot.slane %v5698_v1, 1  ;;  %v6053_v33 = vrot.slane %v5943_v50, 2 }
 0x3f9   : > { %15333 = vst [vmem:[#allocation98_spill] sm:$0xff] %v12296_v37  ;;  %15334 = vst [vmem:[#allocation102_spill] sm:$0xff] %v12299_v61  ;;  %v12312_v26 = vmul.f32 %v11807_v22, %v4458_v56  ;;  %v12318_v58 = vmul.f32 %v11815_v23, %v4458_v56  ;;  %v5623_v3 = vmul.f32 %v12066_v6, %v4457_v4 }
 0x3fa   : > { %15335 = vst [vmem:[#allocation103_spill] sm:$0xff] %v12302_v8  ;;  %15336 = vst [vmem:[#allocation99_spill] sm:$0xff] %v12308_v62  ;;  %v12322_v41 = vmul.f32 %v11827_v24, %v4458_v56  ;;  %v5699_v27 = vmul.f32 %v12076_v52, %v4457_v4  ;;  %v5700_v60 = vmul.f32 %v12076_v52, %v4458_v56 }
 0x3fb   : > { %15338 = vst [vmem:[#allocation94_spill] sm:$0xff] %v12312_v26  ;;  %15339 = vst [vmem:[#allocation101_spill] sm:$0xff] %v12318_v58  ;;  %v5944_v38 = vmul.f32 %v12098_v29, %v4457_v4  ;;  %v12329_v50 = vmul.f32 %v11848_v59, %v4458_v56  ;;  %v5655_v36 = vadd.f32 %v5623_v3, %v5585_v42  ;;  %v15342_v4 = vrot.slane %v12251_v11, 1 }
 0x3fc   : > { %15340 = vst [vmem:[#allocation96_spill] sm:$0xff] %v12322_v41  ;;  %v5945_v21 = vmul.f32 %v12098_v29, %v4458_v56  ;;  %v5809_v14 = vrot.slane %v5699_v27, 1  ;;  %v5811_v7 = vrot.slane %v5700_v60, 1  ;;  %v5582_v61 = vadd.f32 %v5490_v34, %v5337_v35 }
 0x3fd   : > { %15341 = vst [vmem:[#allocation125_spill] sm:$0xff] %v12329_v50  ;;  %v6054_v43 = vrot.slane %v5944_v38, 2  ;;  %v5805_v1 = vsel %vm1955_vm5, %v5803_v49, %v15342_v4  ;;  %v6050_v26 = vsel %vm1350_vm1, %v6048_v28, %v6049_v10  ;;  %v6253_v35 = vmax.f32 %v6221_v12, 0.0 }
 0x3fe   : > { %v6056_v62 = vrot.slane %v5945_v21, 2  ;;  %v5812_v42 = vsel %vm1955_vm5, %v5809_v14, %v5811_v7  ;;  %v5810_v56 = vsel %vm1955_vm5, %v5808_v25, %v5809_v14  ;;  %v5652_v10 = vadd.f32 %v12277_v2, %v5582_v61 }
 0x3ff   : > { %v6055_v3 = vsel %vm1350_vm1, %v6053_v33, %v6054_v43  ;;  %v5900_v60 = vadd.f32 %v5812_v42, %v5655_v36  ;;  %v5899_v38 = vadd.f32 %v5810_v56, %v5654_v17  ;;  %6285 = vst.msk [vmem:[#allocation5 + $0x68] sm:$0xff] %vm4325_vm6, %v6253_v35  ;;  %v5694_v25 = vmul.f32 %v12076_v52, %v12168_v20 }
 0x400   : > { %v6057_v15 = vsel %vm1350_vm1, %v6054_v43, %v6056_v62  ;;  %v5799_v62 = vrot.slane %v12293_v16, 1  ;;  %v5897_v33 = vadd.f32 %v5805_v1, %v5652_v10  ;;  %v5938_v61 = vmul.f32 %v12098_v29, %v12166_v63 }
 0x401   : > { %v6145_v28 = vadd.f32 %v6057_v15, %v5900_v60  ;;  %v6144_v7 = vadd.f32 %v6055_v3, %v5899_v38  ;;  %v5939_v56 = vmul.f32 %v12098_v29, %v12168_v20  ;;  %v5618_v20 = vmul.f32 %v12066_v6, %v12119_v54 }
 0x402   : > { %v8620_v8 = vpop.f32.mrf.mxu1  ;;  %v6142_v21 = vadd.f32 %v6050_v26, %v5897_v33  ;;  %v6044_v26 = vrot.slane %v5938_v61, 2  ;;  %v5937_v10 = vmul.f32 %v12098_v29, %v12119_v54 }
 0x403   : > { %v4244_v50 = vmul.f32 %v8620_v8, %v11773_v51  ;;  %v5651_v8 = vadd.f32 %v5619_v57, %v12081_v39  ;;  %v6184_v2 = vmul.f32 %v12305_v32, %v6145_v28  ;;  %v6183_v39 = vmul.f32 %v12305_v32, %v6144_v7 }
 0x404   : > { %v4168_v27 = vpop.f32.mrf.mxu1  ;;  %v5801_v57 = vrot.slane %v5694_v25, 1  ;;  %v6046_v38 = vrot.slane %v5939_v56, 2  ;;  %v15344_v28 = vrot.slane %v12073_v48, 2 }
 0x405   : > { %v4283_v11 = vadd.f32 %v11776_v0, %v4244_v50  ;;  %v4242_v34 = vmul.f32 %v11773_v51, %v4168_v27  ;;  %v6223_v4 = vadd.f32 %v12332_v46, %v6184_v2  ;;  %v6222_v1 = vadd.f32 %v12332_v46, %v6183_v39 }
 0x406   : > { %v8621_v49 = vpop.f32.mrf.mxu1  ;;  %v5802_v42 = vsel %vm1955_vm5, %v5799_v62, %v5801_v57  ;;  %v6181_v27 = vmul.f32 %v12305_v32, %v6142_v21  ;;  %v6043_v39 = vrot.slane %v5937_v10, 2  ;;  %v5936_v57 = vmul.f32 %v12098_v29, %v11961_v44 }
 0x407   : > { %v4315_v17 = vmax.f32 %v4283_v11, 0.0  ;;  %v4281_v12 = vadd.f32 %v11776_v0, %v4242_v34  ;;  %v4245_v43 = vmul.f32 %v8621_v49, %v11773_v51  ;;  %v5896_v60 = vadd.f32 %v5802_v42, %v5651_v8 }
 0x408   : > { %v4171_v14 = vpop.f32.mrf.mxu1  ;;  %v6255_v15 = vmax.f32 %v6223_v4, 0.0  ;;  %v6220_v11 = vadd.f32 %v12332_v46, %v6181_v27  ;;  %v5692_v34 = vmul.f32 %v12076_v52, %v12119_v54  ;;  %v5334_v8 = vadd.f32 %v12107_v5, %v12089_v9 }
 0x409   : > { %4415 = vst.msk [vmem:[#allocation4 + $0x121] sm:$0xff] %vm4325_vm6, %v4315_v17  ;;  %v4313_v50 = vmax.f32 %v4281_v12, 0.0  ;;  %v4284_v16 = vadd.f32 %v11776_v0, %v4245_v43  ;;  %v4243_v36 = vmul.f32 %v11773_v51, %v4171_v14  ;;  %v6254_v51 = vmax.f32 %v6222_v1, 0.0 }
 0x40a   : > { %6287 = vst.msk [vmem:[#allocation5 + $0x78] sm:$0xff] %vm4325_vm6, %v6255_v15  ;;  %v15343_v49 = vrot.slane %v12006_v53, 2  ;;  %v6252_v25 = vmax.f32 %v6220_v11, 0.0  ;;  %v5650_v12 = vadd.f32 %v5618_v20, %v12100_v13  ;;  %v5798_v43 = vrot.slane %v5692_v34, 1 }
 0x40b   : > { %4412 = vst.msk [vmem:[#allocation4 + $0x109] sm:$0xff] %vm4325_vm6, %v4313_v50  ;;  %v4316_v63 = vmax.f32 %v4284_v16, 0.0  ;;  %v4282_v3 = vadd.f32 %v11776_v0, %v4243_v36  ;;  %6286 = vst.msk [vmem:[#allocation5 + $0x70] sm:$0xff] %vm4325_vm6, %v6254_v51  ;;  %v6047_v0 = vsel %vm1350_vm1, %v6044_v26, %v6046_v38  ;;  %v5794_v54 = vrot.slane %v12112_v40, 1  ;;  %v4441_v36 = vld [vmem:[#allocation4 + $0x60] sm:$0xff] }
 0x40c   : > { %v5482_v7 = vsel %vm1350_vm1, %v15344_v28, %v15343_v49  ;;  %v6141_v17 = vadd.f32 %v6047_v0, %v5896_v60  ;;  %v5796_v9 = vrot.slane %v12127_v18, 1  ;;  %6284 = vst.msk [vmem:[#allocation5 + $0x60] sm:$0xff] %vm4325_vm6, %v6252_v25  ;;  %v5800_v2 = vsel %vm1955_vm5, %v5798_v43, %v5799_v62  ;;  %v12530_v40 = vld [vmem:[%s14837_s12 + $0x5] ss:$0 sm:$0xff] }
 0x40d   : > { %4416 = vst.msk [vmem:[#allocation4 + $0x129] sm:$0xff] %vm4325_vm6, %v4316_v63  ;;  %v4314_v35 = vmax.f32 %v4282_v3, 0.0  ;;  %v5579_v14 = vadd.f32 %v5482_v7, %v5334_v8  ;;  %v5895_v61 = vadd.f32 %v5800_v2, %v5650_v12  ;;  %v6039_v16 = vrot.slane %v12131_v47, 2  ;;  %15367 = vst [vmem:[#allocation142_spill] sm:$0xff] %v12530_v40 }
 0x40e   : > { %v6180_v53 = vmul.f32 %v12305_v32, %v6141_v17  ;;  %v6045_v21 = vsel %vm1350_vm1, %v6043_v39, %v6044_v26  ;;  %v5797_v62 = vsel %vm1955_vm5, %v5794_v54, %v5796_v9  ;;  %v6041_v4 = vrot.slane %v5936_v57, 2 }
 0x40f   : > { %4413 = vst.msk [vmem:[#allocation4 + $0x111] sm:$0xff] %vm4325_vm6, %v4314_v35  ;;  %v5649_v50 = vadd.f32 %v12093_v45, %v5579_v14  ;;  %v6140_v42 = vadd.f32 %v6045_v21, %v5895_v61  ;;  %v4496_v11 = vmul.f32 %v11832_v30, %v4441_v36  ;;  %v4814_v21 = vmul.f32 %v11815_v23, %v4441_v36 }
 0x410   : > { %v4465_v5 = vld [vmem:[#allocation4 + $0x120] sm:$0xff]  ;;  %v6219_v18 = vadd.f32 %v12332_v46, %v6180_v53 }
 0x411   : > { %v5894_v56 = vadd.f32 %v5797_v62, %v5649_v50  ;;  %v4512_v63 = vmul.f32 %v11832_v30, %v4465_v5  ;;  %v4593_v45 = vmul.f32 %v11807_v22, %v4465_v5  ;;  %v4838_v15 = vmul.f32 %v11815_v23, %v4465_v5 }
 0x412   : > { %v6251_v26 = vmax.f32 %v6219_v18, 0.0  ;;  %v6179_v38 = vmul.f32 %v12305_v32, %v6140_v42  ;;  %v4569_v18 = vmul.f32 %v11807_v22, %v4441_v36 }
 0x413   : > { %v4713_v39 = vrot.slane %v4593_v45, 1  ;;  %v4958_v57 = vrot.slane %v4838_v15, 2  ;;  %v12456_v45 = vld [vmem:[%s9141_s30] ss:$0 sm:$0xff] }
 0x414   : > { %v12406_v1 = vld [vmem:[#allocation4 + $0x128] sm:$0xff]  ;;  %v4467_v44 = vld [vmem:[#allocation4 + $0x130] sm:$0x3]  ;;  %6283 = vst.msk [vmem:[#allocation5 + $0x58] sm:$0xff] %vm4325_vm6, %v6251_v26  ;;  %v6218_v7 = vadd.f32 %v12332_v46, %v6179_v38  ;;  %v4673_v26 = vrot.slane %v4569_v18, 1  ;;  %v15353_v18 = vld [vmem:[#allocation84_spill] sm:$0xff] }
 0x415   : > { %v4595_v3 = vmul.f32 %v11807_v22, %v4467_v44  ;;  %v4840_v27 = vmul.f32 %v11815_v23, %v4467_v44  ;;  %v12413_v60 = vmul.f32 %v11827_v24, %v4467_v44  ;;  %v4594_v35 = vmul.f32 %v11807_v22, %v12406_v1 }
 0x416   : > { %v4464_v51 = vld [vmem:[#allocation4 + $0x118] sm:$0x3]  ;;  %v12421_v34 = vmul.f32 %v11848_v59, %v4467_v44  ;;  %v4513_v10 = vmul.f32 %v11832_v30, %v12406_v1  ;;  %v4839_v12 = vmul.f32 %v11815_v23, %v12406_v1  ;;  %v6042_v30 = vsel %vm1350_vm1, %v6039_v16, %v6041_v4 }
 0x417   : > { %15345 = vst [vmem:[#allocation119_spill] sm:$0xff] %v12413_v60  ;;  %v4716_v20 = vrot.slane %v4595_v3, 1  ;;  %v12424_v0 = vmul.f32 %v11807_v22, %v4464_v51  ;;  %v4961_v8 = vrot.slane %v4840_v27, 2  ;;  %v12430_v28 = vmul.f32 %v11815_v23, %v4464_v51  ;;  %v15349_v22 = vld [vmem:[#allocation82_spill] sm:$0xff] }
 0x418   : > { %15346 = vst [vmem:[#allocation126_spill] sm:$0xff] %v12421_v34  ;;  %v12435_v25 = vmul.f32 %v11827_v24, %v4464_v51  ;;  %v4714_v17 = vrot.slane %v4594_v35, 1  ;;  %v12444_v14 = vmul.f32 %v11848_v59, %v4464_v51  ;;  %v6250_v9 = vmax.f32 %v6218_v7, 0.0 }
 0x419   : > { %v4711_v43 = vrot.slane %v12424_v0, 1  ;;  %v6139_v5 = vadd.f32 %v6042_v30, %v5894_v56  ;;  %v4959_v2 = vrot.slane %v4839_v12, 2  ;;  %v4956_v62 = vrot.slane %v12430_v28, 2  ;;  %v15351_v30 = vld [vmem:[#allocation100_spill] sm:$0xff] }
 0x41a   : > { %15347 = vst [vmem:[#allocation120_spill] sm:$0xff] %v12435_v25  ;;  %15348 = vst [vmem:[#allocation132_spill] sm:$0xff] %v12444_v14  ;;  %v4717_v53 = vsel %vm1955_vm5, %v4714_v17, %v4716_v20  ;;  %v4715_v42 = vsel %vm1955_vm5, %v4713_v39, %v4714_v17  ;;  %v5056_v23 = vmul.f32 %v11939_v55, %v15349_v22  ;;  %v12469_v20 = vld [vmem:[%s14838_s6] ss:$0 sm:$0xff]  ;;  %v4918_v7 = vrot.slane %v4814_v21, 2  ;;  %s15501_s6 = sld [smem:[#allocation28_spill]] }
 0x41b   : > { %6282 = vst.msk [vmem:[#allocation5 + $0x50] sm:$0xff] %vm4325_vm6, %v6250_v9  ;;  %v4790_v61 = vadd.f32 %v4717_v53, %v4513_v10  ;;  %v6178_v50 = vmul.f32 %v12305_v32, %v6139_v5  ;;  %v4962_v44 = vsel %vm1350_vm1, %v4959_v2, %v4961_v8  ;;  %v4960_v56 = vsel %vm1350_vm1, %v4958_v57, %v4959_v2  ;;  %v4463_v2 = vld [vmem:[#allocation4 + $0x110] sm:$0xff] }
 0x41c   : > { %v4789_v15 = vadd.f32 %v4715_v42, %v4512_v63  ;;  %v5129_v38 = vmul.f32 %v11827_v24, %v15349_v22  ;;  %v5374_v35 = vmul.f32 %v11848_v59, %v15349_v22  ;;  %v15352_v9 = vrot.slane %v15351_v30, 1 }
 0x41d   : > { %v6217_v27 = vadd.f32 %v12332_v46, %v6178_v50  ;;  %v12462_v51 = vadd.f32 %v4962_v44, %v4790_v61  ;;  %v15354_v21 = vrot.slane %v15353_v18, 2  ;;  %v15355_v44 = vld [vmem:[#allocation77_spill] sm:$0xff] }
 0x41e   : > { %v12473_v12 = vadd.f32 %v4960_v56, %v4789_v15  ;;  %v4675_v5 = vsel %vm1955_vm5, %v4673_v26, %v15352_v9  ;;  %v5233_v53 = vrot.slane %v5129_v38, 1  ;;  %v5478_v24 = vrot.slane %v5374_v35, 2  ;;  %v15358_v15 = vld [vmem:[#allocation85_spill] sm:$0xff]  ;;  %v12510_v9 = vld [vmem:[%s14837_s12 + $0x2] ss:$0 sm:$0xff] }
 0x41f   : > { %v6249_v63 = vmax.f32 %v6217_v27, 0.0  ;;  %v4773_v61 = vadd.f32 %v4675_v5, %v4496_v11  ;;  %v15356_v42 = vrot.slane %v15355_v44, 1  ;;  %v5689_v22 = vmul.f32 %v12076_v52, %v15358_v15  ;;  %15362 = vst [vmem:[#allocation122_spill] sm:$0xff] %v12510_v9  ;;  %v12551_v44 = vld [vmem:[%s14837_s12 + $0x6] ss:$0 sm:$0xff] }
 0x420   : > { %15350 = vst [vmem:[#allocation123_spill] sm:$0xff] %v12473_v12  ;;  %v12497_v35 = vmul.f32 %v12066_v6, %v15358_v15  ;;  %v12513_v5 = vmul.f32 %v12510_v9, %v4463_v2  ;;  %15371 = vst [vmem:[#allocation130_spill] sm:$0xff] %v12551_v44  ;;  %v12832_v12 = vld [vmem:[%s14837_s12 + $0x8] ss:$0 sm:$0xff] }
 0x421   : > { %6281 = vst.msk [vmem:[#allocation5 + $0x48] sm:$0xff] %vm4325_vm6, %v6249_v63  ;;  %v5235_v56 = vsel %vm1955_vm5, %v5233_v53, %v15356_v42  ;;  %v12555_v42 = vmul.f32 %v12551_v44, %v12406_v1 }
 0x422   : > { %v8624_v4 = vpop.f32.mrf.mxu1  ;;  %15359 = vst [vmem:[#allocation124_spill] sm:$0xff] %v12497_v35  ;;  %15363 = vst [vmem:[#allocation118_spill] sm:$0xff] %v12513_v5  ;;  %v14745_v18 = vrot.slane %v12513_v5, 2 }
 0x423   : > { %v4248_v3 = vmul.f32 %v12456_v45, %v8624_v4  ;;  %v4920_v4 = vsel %vm1350_vm1, %v4918_v7, %v15354_v21  ;;  %15372 = vst [vmem:[#allocation140_spill] sm:$0xff] %v12555_v42 }
 0x424   : > { %v4184_v36 = vpop.f32.mrf.mxu1  ;;  %v5018_v38 = vadd.f32 %v4920_v4, %v4773_v61  ;;  %v12525_v61 = vld [vmem:[#allocation4 + $0x50] sm:$0xff]  ;;  %v12548_v4 = vmul.f32 %v11939_v55, %v12406_v1  ;;  %v12567_v0 = vsel %vm1350_vm1, %v14745_v18, %v4956_v62 }
 0x425   : > { %v4287_v10 = vadd.f32 %v12469_v20, %v4248_v3  ;;  %v4246_v8 = vmul.f32 %v12456_v45, %v4184_v36  ;;  %v15357_v3 = vrot.slane %v12073_v48, 2  ;;  %v5793_v48 = vrot.slane %v5689_v22, 1  ;;  %15366 = vst [vmem:[#allocation141_spill] sm:$0xff] %v12525_v61  ;;  %15375 = vst [vmem:[#allocation135_spill] sm:$0xff] %v12567_v0 }
 0x426   : > { %v8625_v17 = vpop.f32.mrf.mxu1  ;;  %v5088_v30 = vadd.f32 %v5056_v23, %v5018_v38  ;;  %15370 = vst [vmem:[#allocation139_spill] sm:$0xff] %v12548_v4  ;;  %v12580_v28 = vmul.f32 %v12510_v9, %v12525_v61 }
 0x427   : > { %v4319_v39 = vmax.f32 %v4287_v10, 0.0  ;;  %v4285_v59 = vadd.f32 %v12469_v20, %v4246_v8  ;;  %v4249_v57 = vmul.f32 %v12456_v45, %v8625_v17  ;;  %v5480_v27 = vsel %vm1350_vm1, %v5478_v24, %v15357_v3  ;;  %v12502_v8 = vld [vmem:[%s14837_s12 + $0x1] ss:$0 sm:$0xff] }
 0x428   : > { %v4187_v50 = vpop.f32.mrf.mxu1  ;;  %v5934_v10 = vmul.f32 %v12098_v29, %v15358_v15  ;;  %15360 = vst [vmem:[#allocation121_spill] sm:$0xff] %v12502_v8  ;;  %v12505_v63 = vmul.f32 %v12502_v8, %v4463_v2  ;;  %v12518_v53 = vsel %vm1955_vm5, %v5793_v48, %v5794_v54  ;;  %v12534_v54 = vmul.f32 %v12530_v40, %v12406_v1 }
 0x429   : > { %4421 = vst.msk [vmem:[#allocation4 + $0x151] sm:$0xff] %vm4325_vm6, %v4319_v39  ;;  %v4317_v11 = vmax.f32 %v4285_v59, 0.0  ;;  %v4288_v36 = vadd.f32 %v12469_v20, %v4249_v57  ;;  %v4247_v26 = vmul.f32 %v12456_v45, %v4187_v50  ;;  %15364 = vst [vmem:[#allocation143_spill] sm:$0xff] %v12518_v53  ;;  %v12521_v39 = vld [vmem:[%s14837_s12] ss:$0 sm:$0xff]  ;;  %v5333_v50 = vadd.f32 %v5235_v56, %v5088_v30 }
 0x42a   : > { %15361 = vst [vmem:[#allocation117_spill] sm:$0xff] %v12505_v63  ;;  %v6038_v24 = vrot.slane %v5934_v10, 2  ;;  %15365 = vst [vmem:[#allocation127_spill] sm:$0xff] %v12521_v39  ;;  %v4511_v59 = vmul.f32 %v12521_v39, %v4463_v2  ;;  %v14746_v57 = vrot.slane %v12505_v63, 1 }
 0x42b   : > { %4418 = vst.msk [vmem:[#allocation4 + $0x139] sm:$0xff] %vm4325_vm6, %v4317_v11  ;;  %v4320_v7 = vmax.f32 %v4288_v36, 0.0  ;;  %v4286_v17 = vadd.f32 %v12469_v20, %v4247_v26  ;;  %15368 = vst [vmem:[#allocation138_spill] sm:$0xff] %v12534_v54  ;;  %v12558_v47 = vadd.f32 %v5480_v27, %v5333_v50  ;;  %v12576_v27 = vmul.f32 %v12502_v8, %v12525_v61 }
 0x42c   : > { %v12539_v2 = vsel %vm1350_vm1, %v6038_v24, %v6039_v16  ;;  %v4712_v21 = vsel %vm1955_vm5, %v14746_v57, %v4711_v43  ;;  %15378 = vst [vmem:[#allocation128_spill] sm:$0xff] %v12580_v28 }
 0x42d   : > { %4422 = vst.msk [vmem:[#allocation4 + $0x159] sm:$0xff] %vm4325_vm6, %v4320_v7  ;;  %v4318_v23 = vmax.f32 %v4286_v17, 0.0  ;;  %15369 = vst [vmem:[#allocation137_spill] sm:$0xff] %v12539_v2  ;;  %v12560_v16 = vadd.f32 %v4712_v21, %v4511_v59 }
 0x42e   : > { %15373 = vst [vmem:[#allocation131_spill] sm:$0xff] %v12558_v47  ;;  %15377 = vst [vmem:[#allocation133_spill] sm:$0xff] %v12576_v27 }
 0x42f   : > { %4419 = vst.msk [vmem:[#allocation4 + $0x141] sm:$0xff] %vm4325_vm6, %v4318_v23  ;;  %15374 = vst [vmem:[#allocation150_spill] sm:$0xff] %v12560_v16 }
 0x430   : > { %v12570_v56 = vld [vmem:[#allocation4 + $0x150] sm:$0xff] }
 0x431   : > { %15376 = vst [vmem:[#allocation136_spill] sm:$0xff] %v12570_v56  ;;  %v4516_v62 = vmul.f32 %v12521_v39, %v12570_v56  ;;  %v4599_v15 = vmul.f32 %v12502_v8, %v12570_v56  ;;  %v4844_v22 = vmul.f32 %v12510_v9, %v12570_v56  ;;  %v12590_v11 = vmul.f32 %v11939_v55, %v12570_v56 }
 0x432   : > { %v12592_v36 = vld [vmem:[#allocation4 + $0x138] sm:$0xff]  ;;  %v12596_v26 = vmul.f32 %v12530_v40, %v12570_v56  ;;  %v12600_v38 = vmul.f32 %v12551_v44, %v12570_v56  ;;  %v12604_v48 = vmul.f32 %v12066_v6, %v12570_v56  ;;  %v12608_v10 = vmul.f32 %v12076_v52, %v12570_v56 }
 0x433   : > { %15379 = vst [vmem:[#allocation134_spill] sm:$0xff] %v12592_v36  ;;  %v4723_v7 = vrot.slane %v4599_v15, 1  ;;  %v4968_v17 = vrot.slane %v4844_v22, 2  ;;  %v12612_v30 = vmul.f32 %v12521_v39, %v12592_v36  ;;  %v12616_v24 = vmul.f32 %v12502_v8, %v12592_v36  ;;  %v12653_v15 = vld [vmem:[%s14837_s12 + $0x4] ss:$0 sm:$0xff] }
 0x434   : > { %15380 = vst [vmem:[#allocation129_spill] sm:$0xff] %v12604_v48  ;;  %15381 = vst [vmem:[#allocation144_spill] sm:$0xff] %v12608_v10  ;;  %v12618_v59 = vld [vmem:[#allocation4 + $0x158] sm:$0xff]  ;;  %v12620_v23 = vld [vmem:[#allocation4 + $0x160] sm:$0x3]  ;;  %v12624_v50 = vmul.f32 %v12510_v9, %v12592_v36  ;;  %v12630_v22 = vmul.f32 %v11939_v55, %v12592_v36 }
 0x435   : > { %v4601_v13 = vmul.f32 %v12502_v8, %v12620_v23  ;;  %v4846_v33 = vmul.f32 %v12510_v9, %v12620_v23  ;;  %v5158_v18 = vmul.f32 %v12530_v40, %v12620_v23  ;;  %v12640_v57 = vmul.f32 %v12551_v44, %v12620_v23  ;;  %15385 = vst [vmem:[#allocation154_spill] sm:$0xff] %v12653_v15 }
 0x436   : > { %15382 = vst [vmem:[#allocation161_spill] sm:$0xff] %v12630_v22  ;;  %v12642_v3 = vld [vmem:[#allocation4 + $0x140] sm:$0xff]  ;;  %v12644_v43 = vld [vmem:[#allocation4 + $0x148] sm:$0x3]  ;;  %v4517_v55 = vmul.f32 %v12521_v39, %v12618_v59  ;;  %v4600_v1 = vmul.f32 %v12502_v8, %v12618_v59  ;;  %v4845_v49 = vmul.f32 %v12510_v9, %v12618_v59  ;;  %v5075_v21 = vmul.f32 %v12653_v15, %v12618_v59 }
 0x437   : > { %15383 = vst [vmem:[#allocation162_spill] sm:$0xff] %v12642_v3  ;;  %15384 = vst [vmem:[#allocation155_spill] sm:$0xff] %v12644_v43  ;;  %v4726_v41 = vrot.slane %v4601_v13, 1  ;;  %v4971_v58 = vrot.slane %v4846_v33, 2  ;;  %v5281_v14 = vrot.slane %v5158_v18, 1  ;;  %v4598_v37 = vmul.f32 %v12502_v8, %v12644_v43 }
 0x438   : > { %v4843_v5 = vmul.f32 %v12510_v9, %v12644_v43  ;;  %v12663_v63 = vmul.f32 %v12530_v40, %v12644_v43  ;;  %v12667_v25 = vmul.f32 %v12551_v44, %v12644_v43  ;;  %v4724_v28 = vrot.slane %v4600_v1, 1 }
 0x439   : > { %v4721_v27 = vrot.slane %v4598_v37, 1  ;;  %v8628_v61 = vpop.f32.mrf.mxu1  ;;  %v4969_v13 = vrot.slane %v4845_v49, 2  ;;  %v4515_v33 = vmul.f32 %v12521_v39, %v12642_v3  ;;  %v4597_v18 = vmul.f32 %v12502_v8, %v12642_v3 }
 0x43a   : > { %v4966_v48 = vrot.slane %v4843_v5, 2  ;;  %v4252_v34 = vmul.f32 %v12456_v45, %v8628_v61  ;;  %v4727_v4 = vsel %vm1955_vm5, %v4724_v28, %v4726_v41  ;;  %v4725_v37 = vsel %vm1955_vm5, %v4723_v7, %v4724_v28 }
 0x43b   : > { %v4200_v2 = vpop.f32.mrf.mxu1  ;;  %v4794_v43 = vadd.f32 %v4727_v4, %v4517_v55  ;;  %v4972_v1 = vsel %vm1350_vm1, %v4969_v13, %v4971_v58  ;;  %v4970_v49 = vsel %vm1350_vm1, %v4968_v17, %v4969_v13  ;;  %v4793_v0 = vadd.f32 %v4725_v37, %v4516_v62 }
 0x43c   : > { %v4291_v54 = vadd.f32 %v12469_v20, %v4252_v34  ;;  %v4250_v60 = vmul.f32 %v12456_v45, %v4200_v2  ;;  %v4719_v5 = vrot.slane %v4597_v18, 1  ;;  %v4842_v41 = vmul.f32 %v12510_v9, %v12642_v3 }
 0x43d   : > { %v8629_v16 = vpop.f32.mrf.mxu1  ;;  %v12681_v42 = vadd.f32 %v4972_v1, %v4794_v43  ;;  %v5157_v61 = vmul.f32 %v12530_v40, %v12618_v59  ;;  %v5402_v58 = vmul.f32 %v12551_v44, %v12618_v59  ;;  %v12691_v2 = vadd.f32 %v4970_v49, %v4793_v0 }
 0x43e   : > { %v4323_v4 = vmax.f32 %v4291_v54, 0.0  ;;  %v4289_v28 = vadd.f32 %v12469_v20, %v4250_v60  ;;  %v4253_v34 = vmul.f32 %v12456_v45, %v8629_v16  ;;  %v4722_v43 = vsel %vm1955_vm5, %v4719_v5, %v4721_v27 }
 0x43f   : > { %v4203_v62 = vpop.f32.mrf.mxu1  ;;  %v4964_v7 = vrot.slane %v4842_v41, 2  ;;  %v5279_v17 = vrot.slane %v5157_v61, 1  ;;  %v5524_v55 = vrot.slane %v5402_v58, 2  ;;  %v4792_v54 = vadd.f32 %v4722_v43, %v4515_v33 }
 0x440   : > { %4427 = vst.msk [vmem:[#allocation4 + $0x181] sm:$0xff] %vm4325_vm6, %v4323_v4  ;;  %v4321_v13 = vmax.f32 %v4289_v28, 0.0  ;;  %v4292_v18 = vadd.f32 %v12469_v20, %v4253_v34  ;;  %v4251_v1 = vmul.f32 %v12456_v45, %v4203_v62  ;;  %v5526_v0 = vrot.slane %v12640_v57, 2 }
 0x441   : > { %v4967_v60 = vsel %vm1350_vm1, %v4964_v7, %v4966_v48  ;;  %v5282_v16 = vsel %vm1955_vm5, %v5279_v17, %v5281_v14  ;;  %v4718_v37 = vrot.slane %v12616_v24, 1  ;;  %v4963_v61 = vrot.slane %v12624_v50, 2 }
 0x442   : > { %4424 = vst.msk [vmem:[#allocation4 + $0x169] sm:$0xff] %vm4325_vm6, %v4321_v13  ;;  %v4324_v27 = vmax.f32 %v4292_v18, 0.0  ;;  %v4290_v49 = vadd.f32 %v12469_v20, %v4251_v1  ;;  %v5037_v41 = vadd.f32 %v4967_v60, %v4792_v54  ;;  %v5527_v58 = vsel %vm1350_vm1, %v5524_v55, %v5526_v0 }
 0x443   : > { %v4720_v45 = vsel %vm1955_vm5, %v4718_v37, %v4719_v5  ;;  %v15386_v48 = vrot.slane %v12596_v26, 1  ;;  %v15387_v57 = vrot.slane %v12600_v38, 2  ;;  %v4965_v4 = vsel %vm1350_vm1, %v4963_v61, %v4964_v7 }
 0x444   : > { %4428 = vst.msk [vmem:[#allocation4 + $0x189] sm:$0xff] %vm4325_vm6, %v4324_v27  ;;  %v4322_v20 = vmax.f32 %v4290_v49, 0.0  ;;  %v5107_v33 = vadd.f32 %v5075_v21, %v5037_v41  ;;  %v4791_v50 = vadd.f32 %v4720_v45, %v12612_v30  ;;  %v5073_v5 = vmul.f32 %v12653_v15, %v12642_v3 }
 0x445   : > { %v12709_v14 = vsel %vm1955_vm5, %v15386_v48, %v5279_v17  ;;  %v12714_v24 = vsel %vm1350_vm1, %v15387_v57, %v5524_v55  ;;  %v12723_v26 = vmul.f32 %v12530_v40, %v12642_v3  ;;  %v12727_v38 = vmul.f32 %v12551_v44, %v12642_v3 }
 0x446   : > { %4425 = vst.msk [vmem:[#allocation4 + $0x171] sm:$0xff] %vm4325_vm6, %v4322_v20  ;;  %v5352_v21 = vadd.f32 %v5282_v16, %v5107_v33  ;;  %v5036_v34 = vadd.f32 %v4965_v4, %v4791_v50  ;;  %v12733_v30 = vmul.f32 %v12066_v6, %v12618_v59  ;;  %v12737_v62 = vmul.f32 %v12076_v52, %v12618_v59 }
 0x447   : > { %v4477_v43 = vld [vmem:[#allocation4 + $0x180] sm:$0xff]  ;;  %v12740_v7 = vadd.f32 %v5073_v5, %v12462_v51  ;;  %v12746_v13 = vmul.f32 %v12076_v52, %v12620_v23  ;;  %v12791_v5 = vld [vmem:[%s14837_s12 + $0x9] ss:$0 sm:$0xff] }
 0x448   : > { %15388 = vst [vmem:[#allocation160_spill] sm:$0xff] %v12733_v30  ;;  %v12749_v18 = vmul.f32 %v12653_v15, %v4477_v43  ;;  %v5162_v1 = vmul.f32 %v12530_v40, %v4477_v43  ;;  %v5407_v54 = vmul.f32 %v12551_v44, %v4477_v43  ;;  %v12754_v60 = vmul.f32 %v12066_v6, %v4477_v43 }
 0x449   : > { %v12756_v51 = vld [vmem:[#allocation4 + $0x168] sm:$0xff]  ;;  %v12759_v16 = vmul.f32 %v12076_v52, %v4477_v43  ;;  %v12762_v0 = vmul.f32 %v12098_v29, %v4477_v43  ;;  %v12764_v37 = vadd.f32 %v5527_v58, %v5352_v21  ;;  %v12767_v27 = vadd.f32 %v12590_v11, %v5036_v34 }
 0x44a   : > { %v5288_v49 = vrot.slane %v5162_v1, 1  ;;  %v4518_v41 = vmul.f32 %v12521_v39, %v12756_v51  ;;  %v4602_v6 = vmul.f32 %v12502_v8, %v12756_v51  ;;  %v4847_v52 = vmul.f32 %v12510_v9, %v12756_v51 }
 0x44b   : > { %v4478_v61 = vld [vmem:[#allocation4 + $0x188] sm:$0xff]  ;;  %v4479_v45 = vld [vmem:[#allocation4 + $0x190] sm:$0x3]  ;;  %v5533_v29 = vrot.slane %v5407_v54, 2  ;;  %v5076_v58 = vmul.f32 %v12653_v15, %v12756_v51  ;;  %v12779_v11 = vmul.f32 %v12530_v40, %v12756_v51  ;;  %v12783_v48 = vmul.f32 %v12551_v44, %v12756_v51 }
 0x44c   : > { %v5079_v57 = vmul.f32 %v12653_v15, %v4478_v61  ;;  %v5163_v20 = vmul.f32 %v12530_v40, %v4478_v61  ;;  %v5164_v33 = vmul.f32 %v12530_v40, %v4479_v45  ;;  %v5408_v50 = vmul.f32 %v12551_v44, %v4478_v61 }
 0x44d   : > { %v5409_v4 = vmul.f32 %v12551_v44, %v4479_v45  ;;  %v12794_v21 = vmul.f32 %v12791_v5, %v4479_v45  ;;  %v12796_v34 = vld [vmem:[#allocation4 + $0x170] sm:$0xff]  ;;  %v12798_v43 = vld [vmem:[#allocation4 + $0x178] sm:$0x3]  ;;  %v4728_v1 = vrot.slane %v4602_v6, 1  ;;  %v4973_v54 = vrot.slane %v4847_v52, 2 }
 0x44e   : > { %v5289_v55 = vrot.slane %v5163_v20, 1  ;;  %v5291_v28 = vrot.slane %v5164_v33, 1  ;;  %v4604_v17 = vmul.f32 %v12502_v8, %v12798_v43  ;;  %v4849_v3 = vmul.f32 %v12510_v9, %v12798_v43 }
 0x44f   : > { %v5536_v53 = vrot.slane %v5409_v4, 2  ;;  %v5846_v35 = vrot.slane %v12794_v21, 1  ;;  %v5161_v47 = vmul.f32 %v12530_v40, %v12798_v43  ;;  %v5406_v56 = vmul.f32 %v12551_v44, %v12798_v43 }
 0x450   : > { %v4731_v10 = vrot.slane %v4604_v17, 1  ;;  %v4976_v6 = vrot.slane %v4849_v3, 2  ;;  %v4519_v52 = vmul.f32 %v12521_v39, %v12796_v34  ;;  %v4603_v20 = vmul.f32 %v12502_v8, %v12796_v34 }
 0x451   : > { %v5286_v33 = vrot.slane %v5161_v47, 1  ;;  %v4848_v4 = vmul.f32 %v12510_v9, %v12796_v34  ;;  %v5292_v21 = vsel %vm1955_vm5, %v5289_v55, %v5291_v28  ;;  %v5534_v30 = vrot.slane %v5408_v50, 2 }
 0x452   : > { %v4729_v36 = vrot.slane %v4603_v20, 1  ;;  %v5290_v22 = vsel %vm1955_vm5, %v5288_v49, %v5289_v55  ;;  %v5077_v17 = vmul.f32 %v12653_v15, %v12796_v34  ;;  %v5160_v3 = vmul.f32 %v12530_v40, %v12796_v34 }
 0x453   : > { %v4974_v39 = vrot.slane %v4848_v4, 2  ;;  %v5537_v8 = vsel %vm1350_vm1, %v5534_v30, %v5536_v53  ;;  %v5535_v47 = vsel %vm1350_vm1, %v5533_v29, %v5534_v30  ;;  %v5405_v9 = vmul.f32 %v12551_v44, %v12796_v34 }
 0x454   : > { %v4732_v28 = vsel %vm1955_vm5, %v4729_v36, %v4731_v10  ;;  %v4730_v50 = vsel %vm1955_vm5, %v4728_v1, %v4729_v36  ;;  %v5109_v55 = vadd.f32 %v5077_v17, %v12681_v42  ;;  %v5284_v49 = vrot.slane %v5160_v3, 1  ;;  %v12838_v17 = vld [vmem:[%s14837_s12 + $0xa] ss:$0 sm:$0xff] }
 0x455   : > { %v4796_v20 = vadd.f32 %v4732_v28, %v4519_v52  ;;  %v4977_v15 = vsel %vm1350_vm1, %v4974_v39, %v4976_v6  ;;  %v4795_v40 = vadd.f32 %v4730_v50, %v4518_v41  ;;  %v4975_v4 = vsel %vm1350_vm1, %v4973_v54, %v4974_v39 }
 0x456   : > { %v5287_v53 = vsel %vm1955_vm5, %v5284_v49, %v5286_v33  ;;  %v5529_v30 = vrot.slane %v5405_v9, 2  ;;  %v5531_v29 = vrot.slane %v5406_v56, 2  ;;  %v5637_v10 = vmul.f32 %v12832_v12, %v4478_v61 }
 0x457   : > { %v5041_v44 = vadd.f32 %v4977_v15, %v4796_v20  ;;  %v5040_v36 = vadd.f32 %v4975_v4, %v4795_v40  ;;  %v5354_v1 = vadd.f32 %v5287_v53, %v5109_v55  ;;  %v5720_v42 = vmul.f32 %v12791_v5, %v4478_v61 }
 0x458   : > { %v5532_v52 = vsel %vm1350_vm1, %v5529_v30, %v5531_v29  ;;  %v5965_v41 = vmul.f32 %v12838_v17, %v4478_v61  ;;  %v5966_v39 = vmul.f32 %v12838_v17, %v4479_v45  ;;  %v5108_v9 = vadd.f32 %v5076_v58, %v12691_v2  ;;  %v15390_v29 = vld [vmem:[#allocation78_spill] sm:$0xff] }
 0x459   : > { %v5111_v56 = vadd.f32 %v5079_v57, %v5041_v44  ;;  %v5110_v54 = vadd.f32 %v12749_v18, %v5040_v36  ;;  %v5599_v6 = vadd.f32 %v5532_v52, %v5354_v1  ;;  %v5844_v33 = vrot.slane %v5720_v42, 1  ;;  %v15391_v1 = vld [vmem:[#allocation93_spill] sm:$0xff] }
 0x45a   : > { %v6089_v15 = vrot.slane %v5965_v41, 2  ;;  %v6091_v40 = vrot.slane %v5966_v39, 2  ;;  %v5283_v3 = vrot.slane %v12779_v11, 1  ;;  %v5528_v28 = vrot.slane %v12783_v48, 2 }
 0x45b   : > { %v5356_v50 = vadd.f32 %v5292_v21, %v5111_v56  ;;  %v5355_v55 = vadd.f32 %v5290_v22, %v5110_v54  ;;  %v5669_v20 = vadd.f32 %v5637_v10, %v5599_v6  ;;  %v5847_v61 = vsel %vm1955_vm5, %v5844_v33, %v5846_v35  ;;  %v15389_v21 = vld [vmem:[#allocation83_spill] sm:$0xff]  ;;  %v15392_v6 = vld [vmem:[#allocation97_spill] sm:$0xff] }
 0x45c   : > { %v6092_v45 = vsel %vm1350_vm1, %v6089_v15, %v6091_v40  ;;  %v5285_v2 = vsel %vm1955_vm5, %v5283_v3, %v5284_v49  ;;  %v5530_v44 = vsel %vm1350_vm1, %v5528_v28, %v5529_v30  ;;  %v5843_v18 = vrot.slane %v12759_v16, 1 }
 0x45d   : > { %v5601_v58 = vadd.f32 %v5537_v8, %v5356_v50  ;;  %v5600_v57 = vadd.f32 %v5535_v47, %v5355_v55  ;;  %v5914_v4 = vadd.f32 %v5847_v61, %v5669_v20  ;;  %v5353_v53 = vadd.f32 %v5285_v2, %v5108_v9 }
 0x45e   : > { %v5845_v11 = vsel %vm1955_vm5, %v5843_v18, %v5844_v33  ;;  %v6088_v48 = vrot.slane %v12762_v0, 2  ;;  %v5635_v22 = vmul.f32 %v12832_v12, %v12796_v34  ;;  %v5717_v35 = vmul.f32 %v12791_v5, %v12796_v34 }
 0x45f   : > { %v5671_v49 = vadd.f32 %v15389_v21, %v5601_v58  ;;  %v5670_v30 = vadd.f32 %v15390_v29, %v5600_v57  ;;  %v6159_v10 = vadd.f32 %v6092_v45, %v5914_v4  ;;  %v5598_v16 = vadd.f32 %v5530_v44, %v5353_v53 }
 0x460   : > { %v6090_v8 = vsel %vm1350_vm1, %v6088_v48, %v6089_v15  ;;  %v5667_v47 = vadd.f32 %v5635_v22, %v12764_v37  ;;  %v5718_v36 = vmul.f32 %v12791_v5, %v12798_v43  ;;  %v5839_v0 = vrot.slane %v5717_v35, 1 }
 0x461   : > { %v5916_v42 = vadd.f32 %v15391_v1, %v5671_v49  ;;  %v5915_v52 = vadd.f32 %v12207_v19, %v5670_v30  ;;  %v6198_v41 = vmul.f32 %v12305_v32, %v6159_v10  ;;  %v5668_v39 = vadd.f32 %v12754_v60, %v5598_v16 }
 0x462   : > { %v5841_v9 = vrot.slane %v5718_v36, 1  ;;  %v5962_v56 = vmul.f32 %v12838_v17, %v12796_v34  ;;  %v5963_v54 = vmul.f32 %v12838_v17, %v12798_v43  ;;  %v5351_v37 = vadd.f32 %v12709_v14, %v12767_v27 }
 0x463   : > { %v6161_v33 = vadd.f32 %v15392_v6, %v5916_v42  ;;  %v6160_v15 = vadd.f32 %v12225_v31, %v5915_v52  ;;  %v6237_v19 = vadd.f32 %v12332_v46, %v6198_v41  ;;  %v5913_v40 = vadd.f32 %v5845_v11, %v5668_v39  ;;  %v15397_v41 = vld [vmem:[#allocation123_spill] sm:$0xff]  ;;  %v15398_v39 = vld [vmem:[#allocation161_spill] sm:$0xff]  ;;  %v15401_v6 = vld [vmem:[#allocation160_spill] sm:$0xff] }
 0x464   : > { %v5842_v3 = vsel %vm1955_vm5, %v5839_v0, %v5841_v9  ;;  %v6084_v60 = vrot.slane %v5962_v56, 2  ;;  %v6086_v28 = vrot.slane %v5963_v54, 2  ;;  %v5596_v50 = vadd.f32 %v12714_v24, %v5351_v37  ;;  %v15399_v56 = vld [vmem:[#allocation134_spill] sm:$0xff] }
 0x465   : > { %v6200_v34 = vmul.f32 %v12305_v32, %v6161_v33  ;;  %v6199_v43 = vmul.f32 %v12305_v32, %v6160_v15  ;;  %v6269_v55 = vmax.f32 %v6237_v19, 0.0  ;;  %v6158_v20 = vadd.f32 %v6090_v8, %v5913_v40  ;;  %v15400_v54 = vld [vmem:[#allocation142_spill] sm:$0xff] }
 0x466   : > { %v5912_v14 = vadd.f32 %v5842_v3, %v5667_v47  ;;  %v6087_v27 = vsel %vm1350_vm1, %v6084_v60, %v6086_v28  ;;  %v5634_v31 = vmul.f32 %v12832_v12, %v12756_v51  ;;  %v5716_v61 = vmul.f32 %v12791_v5, %v12756_v51  ;;  %v15402_v3 = vld [vmem:[#allocation130_spill] sm:$0xff]  ;;  %v15403_v28 = vld [vmem:[#allocation144_spill] sm:$0xff] }
 0x467   : > { %v6239_v45 = vadd.f32 %v12332_v46, %v6200_v34  ;;  %v6238_v2 = vadd.f32 %v12332_v46, %v6199_v43  ;;  %6301 = vst.msk [vmem:[#allocation5 + $0xe8] sm:$0xff] %vm4325_vm6, %v6269_v55  ;;  %v6197_v24 = vmul.f32 %v12305_v32, %v6158_v20  ;;  %v5961_v44 = vmul.f32 %v12838_v17, %v12756_v51  ;;  %v15404_v34 = vld [vmem:[#allocation136_spill] sm:$0xff]  ;;  %v15405_v55 = vld [vmem:[#allocation131_spill] sm:$0xff] }
 0x468   : > { %v6157_v18 = vadd.f32 %v6087_v27, %v5912_v14  ;;  %v5666_v58 = vadd.f32 %v5634_v31, %v5596_v50  ;;  %v5838_v57 = vrot.slane %v5716_v61, 1  ;;  %v15393_v4 = vrot.slane %v12663_v63, 1  ;;  %v15406_v20 = vld [vmem:[#allocation124_spill] sm:$0xff] }
 0x469   : > { %v15394_v53 = vrot.slane %v12723_v26, 1  ;;  %v6271_v48 = vmax.f32 %v6239_v45, 0.0  ;;  %v6270_v22 = vmax.f32 %v6238_v2, 0.0  ;;  %v6236_v35 = vadd.f32 %v12332_v46, %v6197_v24  ;;  %v15410_v26 = vld [vmem:[#allocation150_spill] sm:$0xff] }
 0x46a   : > { %v6083_v21 = vrot.slane %v5961_v44, 2  ;;  %v6196_v49 = vmul.f32 %v12305_v32, %v6157_v18  ;;  %v5840_v29 = vsel %vm1955_vm5, %v5838_v57, %v5839_v0  ;;  %v15395_v30 = vrot.slane %v12667_v25, 2  ;;  %v6319_v57 = vld [vmem:[#allocation5 + $0x78] sm:$0xff] }
 0x46b   : > { %v5277_v11 = vsel %vm1955_vm5, %v15394_v53, %v15393_v4  ;;  %v15396_v10 = vrot.slane %v12727_v38, 2  ;;  %6303 = vst.msk [vmem:[#allocation5 + $0xf8] sm:$0xff] %vm4325_vm6, %v6271_v48  ;;  %6302 = vst.msk [vmem:[#allocation5 + $0xf0] sm:$0xff] %vm4325_vm6, %v6270_v22  ;;  %v6268_v16 = vmax.f32 %v6236_v35, 0.0  ;;  %v5911_v8 = vadd.f32 %v5840_v29, %v5666_v58  ;;  %v15411_v22 = vld [vmem:[#allocation135_spill] sm:$0xff]  ;;  %v15414_v38 = vld [vmem:[#allocation138_spill] sm:$0xff] }
 0x46c   : > { %v5350_v51 = vadd.f32 %v5277_v11, %v12740_v7  ;;  %v6085_v47 = vsel %vm1350_vm1, %v6083_v21, %v6084_v60  ;;  %v5834_v36 = vrot.slane %v12737_v62, 1  ;;  %v6235_v0 = vadd.f32 %v12332_v46, %v6196_v49  ;;  %v15409_v11 = vld [vmem:[#allocation143_spill] sm:$0xff]  ;;  %v12944_v49 = vld [vmem:[%s15332_s23] ss:$0 sm:$0xff] }
 0x46d   : > { %v5522_v63 = vsel %vm1350_vm1, %v15396_v10, %v15395_v30  ;;  %v5836_v7 = vrot.slane %v12746_v13, 1  ;;  %v5959_v25 = vmul.f32 %v12838_v17, %v12618_v59  ;;  %6300 = vst.msk [vmem:[#allocation5 + $0xe0] sm:$0xff] %vm4325_vm6, %v6268_v16  ;;  %v6156_v42 = vadd.f32 %v6085_v47, %v5911_v8  ;;  %v6318_v47 = vld [vmem:[#allocation5 + $0x70] sm:$0xff] }
 0x46e   : > { %v5595_v1 = vadd.f32 %v5522_v63, %v5350_v51  ;;  %v5960_v52 = vmul.f32 %v12838_v17, %v12620_v23  ;;  %v5104_v9 = vadd.f32 %v15398_v39, %v15397_v41  ;;  %v5153_v62 = vmul.f32 %v15400_v54, %v15399_v56 }
 0x46f   : > { %v6267_v37 = vmax.f32 %v6235_v0, 0.0  ;;  %v5837_v13 = vsel %vm1955_vm5, %v5834_v36, %v5836_v7  ;;  %v6079_v15 = vrot.slane %v5959_v25, 2  ;;  %v6195_v59 = vmul.f32 %v12305_v32, %v6156_v42  ;;  %v15418_v25 = vld [vmem:[#allocation126_spill] sm:$0xff] }
 0x470   : > { %v5665_v33 = vadd.f32 %v15401_v6, %v5595_v1  ;;  %v6081_v19 = vrot.slane %v5960_v52, 2  ;;  %v5273_v40 = vrot.slane %v5153_v62, 1  ;;  %v5398_v60 = vmul.f32 %v15402_v3, %v15399_v56  ;;  %v15417_v1 = vld [vmem:[#allocation139_spill] sm:$0xff]  ;;  %v15420_v52 = vld [vmem:[#allocation140_spill] sm:$0xff]  ;;  %v12964_v6 = vld [vmem:[%s15337_s2] ss:$0 sm:$0xff] }
 0x471   : > { %6299 = vst.msk [vmem:[#allocation5 + $0xd8] sm:$0xff] %vm4325_vm6, %v6267_v37  ;;  %v5833_v50 = vrot.slane %v15403_v28, 1  ;;  %v5958_v43 = vmul.f32 %v12838_v17, %v15404_v34  ;;  %v5648_v14 = vadd.f32 %v15406_v20, %v15405_v55  ;;  %v6234_v27 = vadd.f32 %v12332_v46, %v6195_v59  ;;  %v6333_v37 = vld [vmem:[#allocation5 + $0xe8] sm:$0xff] }
 0x472   : > { %v5910_v23 = vadd.f32 %v5837_v13, %v5665_v33  ;;  %v6082_v32 = vsel %vm1350_vm1, %v6079_v15, %v6081_v19  ;;  %v15407_v31 = vmov %v15394_v53  ;;  %v5518_v45 = vrot.slane %v5398_v60, 2  ;;  %v6335_v2 = vld [vmem:[#allocation5 + $0xf8] sm:$0xff]  ;;  %v6334_v21 = vld [vmem:[#allocation5 + $0xf0] sm:$0xff]  ;;  %v15424_v19 = vld [vmem:[#allocation155_spill] sm:$0xff] }
 0x473   : > { %v5275_v61 = vsel %vm1955_vm5, %v5273_v40, %v15407_v31  ;;  %v5835_v18 = vsel %vm1955_vm5, %v5833_v50, %v5834_v36  ;;  %v6078_v58 = vrot.slane %v5958_v43, 2  ;;  %8419 = vmatprep.subr.mxu0 %v6335_v2  ;;  %v6266_v4 = vmax.f32 %v6234_v27, 0.0  ;;  %v15416_v36 = vld [vmem:[#allocation137_spill] sm:$0xff]  ;;  %v6317_v60 = vld [vmem:[#allocation5 + $0x68] sm:$0xff] }
 0x474   : > { %v6155_v24 = vadd.f32 %v6082_v32, %v5910_v23  ;;  %v5349_v44 = vadd.f32 %v5275_v61, %v5104_v9  ;;  %v15408_v53 = vmov %v15396_v10  ;;  %v5893_v48 = vadd.f32 %v15409_v11, %v5648_v14  ;;  %8420 = vmatpush3.msra.mxu0 %v6319_v57  ;;  %v15412_v10 = vld [vmem:[#allocation119_spill] sm:$0xff]  ;;  %v15422_v9 = vld [vmem:[#allocation162_spill] sm:$0xff]  ;;  %v15423_v13 = vld [vmem:[#allocation129_spill] sm:$0xff] }
 0x475   : > { %v5520_v46 = vsel %vm1350_vm1, %v5518_v45, %v15408_v53  ;;  %v5033_v35 = vadd.f32 %v15411_v22, %v15410_v26  ;;  %v6080_v30 = vsel %vm1350_vm1, %v6078_v58, %v6079_v15  ;;  %v15413_v63 = vrot.slane %v15412_v10, 1  ;;  %8421 = vmatprep.subr.mxu0 %v6334_v21  ;;  %6298 = vst.msk [vmem:[#allocation5 + $0xd0] sm:$0xff] %vm4325_vm6, %v6266_v4  ;;  %v6332_v43 = vld [vmem:[#allocation5 + $0xe0] sm:$0xff]  ;;  %v15425_v58 = vld [vmem:[#allocation141_spill] sm:$0xff] }
 0x476   : > { %v6194_v29 = vmul.f32 %v12944_v49, %v6155_v24  ;;  %v5594_v51 = vadd.f32 %v5520_v46, %v5349_v44  ;;  %v15415_v16 = vrot.slane %v15414_v38, 1  ;;  %v6138_v0 = vadd.f32 %v15416_v36, %v5893_v48  ;;  %8422 = vmatpush3.msra.mxu0 %v6318_v47  ;;  %v6316_v32 = vld [vmem:[#allocation5 + $0x60] sm:$0xff]  ;;  %v15428_v46 = vld [vmem:[#allocation128_spill] sm:$0xff]  ;;  %v6315_v48 = vld [vmem:[#allocation5 + $0x58] sm:$0xff] }
 0x477   : > { %v5103_v7 = vadd.f32 %v15417_v1, %v5033_v35  ;;  %v15419_v42 = vrot.slane %v15418_v25, 2  ;;  %v15421_v41 = vrot.slane %v15420_v52, 2  ;;  %v5631_v62 = vmul.f32 %v12832_v12, %v15422_v9  ;;  %8423 = vmatprep.subr.mxu0 %v6333_v37  ;;  %v15426_v57 = vld [vmem:[#allocation127_spill] sm:$0xff]  ;;  %v8934_v37 = vld [vmem:[#allocation4 + $0x80] sm:$0xff] }
 0x478   : > { %v5272_v8 = vsel %vm1955_vm5, %v15415_v16, %v15413_v63  ;;  %v6233_v33 = vadd.f32 %v12964_v6, %v6194_v29  ;;  %v5664_v15 = vadd.f32 %v15423_v13, %v5594_v51  ;;  %v12970_v59 = vmul.f32 %v12791_v5, %v15422_v9  ;;  %8424 = vmatpush3.msra.mxu0 %v6317_v60  ;;  %v6331_v24 = vld [vmem:[#allocation5 + $0xd8] sm:$0xff]  ;;  %v15432_v25 = vld [vmem:[#allocation87_spill] sm:$0xff] }
 0x479   : > { %v5517_v39 = vsel %vm1350_vm1, %v15421_v41, %v15419_v42  ;;  %v5712_v40 = vmul.f32 %v12791_v5, %v15424_v19  ;;  %v6177_v23 = vmul.f32 %v12944_v49, %v6138_v0  ;;  %v5348_v28 = vadd.f32 %v5272_v8, %v5103_v7  ;;  %8425 = vmatprep.subr.mxu0 %v6332_v43  ;;  %v13001_v16 = vld [vmem:[#allocation4 + $0x68] sm:$0xff]  ;;  %v6314_v0 = vld [vmem:[#allocation5 + $0x50] sm:$0xff] }
 0x47a   : > { %v12977_v50 = vmul.f32 %v12838_v17, %v15422_v9  ;;  %v5957_v34 = vmul.f32 %v12838_v17, %v15424_v19  ;;  %v6265_v55 = vmax.f32 %v6233_v33, 0.0  ;;  %v5909_v20 = vadd.f32 %v5835_v18, %v5664_v15  ;;  %8426 = vmatpush3.msra.mxu0 %v6316_v32  ;;  %v15427_v18 = vld [vmem:[#allocation133_spill] sm:$0xff]  ;;  %v15431_v8 = vld [vmem:[#allocation154_spill] sm:$0xff] }
 0x47b   : > { %v5829_v14 = vrot.slane %v12970_v59, 1  ;;  %v5831_v27 = vrot.slane %v5712_v40, 1  ;;  %v6216_v31 = vadd.f32 %v12964_v6, %v6177_v23  ;;  %v5593_v61 = vadd.f32 %v5517_v39, %v5348_v28  ;;  %8427 = vmatprep.subr.mxu0 %v6331_v24  ;;  %v8935_v13 = vld [vmem:[#allocation4 + $0x88] sm:$0x3] }
 0x47c   : > { %v6074_v45 = vrot.slane %v12977_v50, 2  ;;  %v6076_v2 = vrot.slane %v5957_v34, 2  ;;  %6297 = vst.msk [vmem:[#allocation5 + $0xc8] sm:$0xff] %vm4325_vm6, %v6265_v55  ;;  %v6154_v44 = vadd.f32 %v6080_v30, %v5909_v20  ;;  %v4495_v4 = vmul.f32 %v15426_v57, %v15425_v58  ;;  %8428 = vmatpush3.msra.mxu0 %v6315_v48  ;;  %v6330_v29 = vld [vmem:[#allocation5 + $0xd0] sm:$0xff]  ;;  %v15429_v30 = vld [vmem:[#allocation91_spill] sm:$0xff]  ;;  %v13025_v19 = vld [vmem:[#allocation4 + $0x108] sm:$0xff] }
 0x47d   : > { %v4669_v53 = vrot.slane %v15427_v18, 1  ;;  %v4914_v11 = vrot.slane %v15428_v46, 2  ;;  %v6248_v26 = vmax.f32 %v6216_v31, 0.0  ;;  %v5663_v22 = vadd.f32 %v5631_v62, %v5593_v61  ;;  %8429 = vmatprep.subr.mxu0 %v6330_v29  ;;  %v15434_v34 = vld [vmem:[#allocation120_spill] sm:$0xff]  ;;  %v15439_v29 = vld [vmem:[#allocation121_spill] sm:$0xff] }
 0x47e   : > { %v5832_v35 = vsel %vm1955_vm5, %v5829_v14, %v5831_v27  ;;  %v6077_v21 = vsel %vm1350_vm1, %v6074_v45, %v6076_v2  ;;  %v6193_v51 = vmul.f32 %v12944_v49, %v6154_v44  ;;  %v15430_v10 = vrot.slane %v15429_v30, 1  ;;  %8430 = vmatpush3.msra.mxu0 %v6314_v0  ;;  %v6313_v44 = vld [vmem:[#allocation5 + $0x48] sm:$0xff] }
 0x47f   : > { %v5055_v47 = vmul.f32 %v13001_v16, %v15431_v8  ;;  %v13007_v36 = vmul.f32 %v13001_v16, %v15400_v54  ;;  %6280 = vst.msk [vmem:[#allocation5 + $0x40] sm:$0xff] %vm4325_vm6, %v6248_v26  ;;  %v5908_v1 = vadd.f32 %v5832_v35, %v5663_v22  ;;  %v15433_v42 = vrot.slane %v15432_v25, 2  ;;  %v15435_v58 = vld [vmem:[#allocation76_spill] sm:$0xff]  ;;  %v15437_v26 = vld [vmem:[#allocation90_spill] sm:$0xff] }
 0x480   : > { %v4672_v63 = vsel %vm1955_vm5, %v4669_v53, %v15430_v10  ;;  %v13017_v39 = vmul.f32 %v13001_v16, %v15402_v3  ;;  %v6232_v9 = vadd.f32 %v12964_v6, %v6193_v51  ;;  %v13022_v33 = vmul.f32 %v8934_v37, %v12791_v5  ;;  %v13056_v25 = vld [vmem:[#allocation4 + $0x120] sm:$0xff]  ;;  %v6337_v18 = vld [vmem:[%s15447_s16 + $0x8] sm:$0xff] }
 0x481   : > { %v4772_v7 = vadd.f32 %v4672_v63, %v4495_v4  ;;  %v4917_v41 = vsel %vm1350_vm1, %v4914_v11, %v15433_v42  ;;  %v5229_v62 = vrot.slane %v13007_v36, 1  ;;  %v5688_v15 = vmul.f32 %v8935_v13, %v12791_v5  ;;  %6416 = vmatprep.mubr.f32.mxu0 %v6337_v18 }
 0x482   : > { %v6153_v40 = vadd.f32 %v6077_v21, %v5908_v1  ;;  %v5474_v23 = vrot.slane %v13017_v39, 2  ;;  %v13029_v28 = vmul.f32 %v8934_v37, %v12838_v17  ;;  %v5266_v43 = vrot.slane %v15434_v34, 1 }
 0x483   : > { %v5017_v60 = vadd.f32 %v4917_v41, %v4772_v7  ;;  %v6264_v55 = vmax.f32 %v6232_v9, 0.0  ;;  %v5789_v20 = vrot.slane %v13022_v33, 1  ;;  %v5791_v27 = vrot.slane %v5688_v15, 1  ;;  %v6329_v32 = vld [vmem:[#allocation5 + $0xc8] sm:$0xff] }
 0x484   : > { %v6192_v31 = vmul.f32 %v12944_v49, %v6153_v40  ;;  %v5615_v2 = vmul.f32 %v8934_v37, %v12832_v12  ;;  %v5933_v24 = vmul.f32 %v8935_v13, %v12838_v17  ;;  %8431 = vmatprep.subr.mxu0 %v6329_v32  ;;  %v15436_v4 = vrot.slane %v15435_v58, 1  ;;  %v13066_v40 = vld [vmem:[#allocation4 + $0x48] sm:$0xff] }
 0x485   : > { %v5087_v61 = vadd.f32 %v5055_v47, %v5017_v60  ;;  %6296 = vst.msk [vmem:[#allocation5 + $0xc0] sm:$0xff] %vm4325_vm6, %v6264_v55  ;;  %v15438_v22 = vrot.slane %v15437_v26, 2  ;;  %v6034_v21 = vrot.slane %v13029_v28, 2  ;;  %v4590_v51 = vmul.f32 %v15439_v29, %v13025_v19  ;;  %8432 = vmatpush3.msra.mxu0 %v6313_v44  ;;  %v15440_v47 = vld [vmem:[#allocation122_spill] sm:$0xff]  ;;  %v15441_v55 = vld [vmem:[#allocation117_spill] sm:$0xff] }
 0x486   : > { %v5232_v48 = vsel %vm1955_vm5, %v5229_v62, %v15436_v4  ;;  %v6231_v30 = vadd.f32 %v12964_v6, %v6192_v31  ;;  %v6036_v63 = vrot.slane %v5933_v24, 2  ;;  %v4835_v0 = vmul.f32 %v15440_v47, %v13025_v19 }
 0x487   : > { %v5477_v35 = vsel %vm1350_vm1, %v5474_v23, %v15438_v22  ;;  %v5332_v10 = vadd.f32 %v5232_v48, %v5087_v61  ;;  %v5792_v1 = vsel %vm1955_vm5, %v5789_v20, %v5791_v27  ;;  %v4708_v7 = vrot.slane %v4590_v51, 1  ;;  %v15443_v48 = vld [vmem:[#allocation118_spill] sm:$0xff] }
 0x488   : > { %v5150_v42 = vmul.f32 %v13056_v25, %v15400_v54  ;;  %v5395_v41 = vmul.f32 %v13056_v25, %v15402_v3  ;;  %v6263_v9 = vmax.f32 %v6231_v30, 0.0  ;;  %v4510_v13 = vmul.f32 %v15426_v57, %v13025_v19 }
 0x489   : > { %v5577_v37 = vadd.f32 %v5477_v35, %v5332_v10  ;;  %v5070_v15 = vmul.f32 %v13056_v25, %v15431_v8  ;;  %v6037_v60 = vsel %vm1350_vm1, %v6034_v21, %v6036_v63  ;;  %v15442_v27 = vrot.slane %v15441_v55, 1 }
 0x48a   : > { %v4953_v31 = vrot.slane %v4835_v0, 2  ;;  %v5268_v61 = vrot.slane %v5150_v42, 1  ;;  %6295 = vst.msk [vmem:[#allocation5 + $0xb8] sm:$0xff] %vm4325_vm6, %v6263_v9  ;;  %v5513_v58 = vrot.slane %v5395_v41, 2  ;;  %v5710_v4 = vmul.f32 %v12791_v5, %v15399_v56 }
 0x48b   : > { %v4710_v32 = vsel %vm1955_vm5, %v4708_v7, %v15442_v27  ;;  %v5647_v24 = vadd.f32 %v5615_v2, %v5577_v37  ;;  %v15444_v26 = vrot.slane %v15443_v48, 2  ;;  %v15445_v35 = vrot.slane %v15414_v38, 1  ;;  %v6312_v38 = vld [vmem:[#allocation5 + $0x40] sm:$0xff] }
 0x48c   : > { %v4787_v44 = vadd.f32 %v4710_v32, %v4510_v13  ;;  %v5630_v30 = vmul.f32 %v12832_v12, %v15399_v56  ;;  %v5955_v10 = vmul.f32 %v12838_v17, %v15399_v56  ;;  %v6328_v2 = vld [vmem:[#allocation5 + $0xc0] sm:$0xff]  ;;  %v15446_v7 = vrot.slane %v15420_v52, 2  ;;  %v13096_v56 = vld [vmem:[#allocation4 + $0x60] sm:$0xff] }
 0x48d   : > { %v4955_v22 = vsel %vm1350_vm1, %v4953_v31, %v15444_v26  ;;  %v5270_v51 = vsel %vm1955_vm5, %v5268_v61, %v15445_v35  ;;  %v5892_v63 = vadd.f32 %v5792_v1, %v5647_v24  ;;  %v4566_v41 = vmul.f32 %v15439_v29, %v13066_v40  ;;  %8433 = vmatprep.subr.mxu0 %v6328_v2  ;;  %v8938_v2 = vld [vmem:[#allocation4 + $0x78] sm:$0xff] }
 0x48e   : > { %v5032_v0 = vadd.f32 %v4955_v22, %v4787_v44  ;;  %v5515_v42 = vsel %vm1350_vm1, %v5513_v58, %v15446_v7  ;;  %v5828_v9 = vrot.slane %v5710_v4, 1  ;;  %v4494_v37 = vmul.f32 %v15426_v57, %v13066_v40  ;;  %8434 = vmatpush3.msra.mxu0 %v6312_v38  ;;  %v13107_v58 = vld [vmem:[#allocation4 + $0xf8] sm:$0xff] }
 0x48f   : > { %v4811_v13 = vmul.f32 %v15440_v47, %v13066_v40  ;;  %v5126_v1 = vmul.f32 %v13096_v56, %v15400_v54  ;;  %v6137_v52 = vadd.f32 %v6037_v60, %v5892_v63  ;;  %v6073_v27 = vrot.slane %v5955_v10, 2 }
 0x490   : > { %v5102_v55 = vadd.f32 %v5070_v15, %v5032_v0  ;;  %v4668_v32 = vrot.slane %v4566_v41, 1  ;;  %v5830_v31 = vsel %vm1955_vm5, %v5828_v9, %v5829_v14  ;;  %v5054_v24 = vmul.f32 %v13096_v56, %v15431_v8 }
 0x491   : > { %v4913_v61 = vrot.slane %v4811_v13, 2  ;;  %v5371_v44 = vmul.f32 %v13096_v56, %v15402_v3  ;;  %v6176_v4 = vmul.f32 %v12944_v49, %v6137_v52  ;;  %v6075_v15 = vsel %vm1350_vm1, %v6073_v27, %v6074_v45  ;;  %v6327_v14 = vld [vmem:[#allocation5 + $0xb8] sm:$0xff] }
 0x492   : > { %v5347_v60 = vadd.f32 %v5270_v51, %v5102_v55  ;;  %v4670_v59 = vsel %vm1955_vm5, %v4668_v32, %v4669_v53  ;;  %v5228_v22 = vrot.slane %v5126_v1, 1  ;;  %8435 = vmatprep.subr.mxu0 %v6327_v14  ;;  %v5686_v50 = vmul.f32 %v8938_v2, %v12791_v5  ;;  %v15448_v13 = vld [vmem:[#allocation98_spill] sm:$0xff] }
 0x493   : > { %v4771_v48 = vadd.f32 %v4670_v59, %v4494_v37  ;;  %v4915_v26 = vsel %vm1350_vm1, %v4913_v61, %v4914_v11  ;;  %v5473_v35 = vrot.slane %v5371_v44, 2  ;;  %v6215_v10 = vadd.f32 %v12964_v6, %v6176_v4  ;;  %v15452_v59 = vld [vmem:[#allocation132_spill] sm:$0xff]  ;;  %v8940_v14 = vld [vmem:[#allocation4 + $0x128] sm:$0xff] }
 0x494   : > { %v5592_v51 = vadd.f32 %v5515_v42, %v5347_v60  ;;  %v5931_v45 = vmul.f32 %v8938_v2, %v12838_v17  ;;  %v5230_v53 = vsel %vm1955_vm5, %v5228_v22, %v5229_v62  ;;  %v5614_v46 = vmul.f32 %v8938_v2, %v12832_v12 }
 0x495   : > { %v5016_v63 = vadd.f32 %v4915_v26, %v4771_v48  ;;  %v13129_v11 = vmul.f32 %v15439_v29, %v13107_v58  ;;  %v6247_v0 = vmax.f32 %v6215_v10, 0.0  ;;  %v5475_v42 = vsel %vm1350_vm1, %v5473_v35, %v5474_v23  ;;  %v13178_v26 = vld [vmem:[#allocation4 + $0x38] sm:$0xff]  ;;  %v8941_v10 = vld [vmem:[#allocation4 + $0x130] sm:$0x3] }
 0x496   : > { %v5662_v7 = vadd.f32 %v5630_v30, %v5592_v51  ;;  %v4509_v41 = vmul.f32 %v15426_v57, %v13107_v58  ;;  %v5788_v36 = vrot.slane %v5686_v50, 1  ;;  %v13139_v9 = vmul.f32 %v15440_v47, %v13107_v58  ;;  %v13142_v30 = vld [vmem:[#allocation4 + $0x110] sm:$0xff] }
 0x497   : > { %v5086_v38 = vadd.f32 %v5054_v24, %v5016_v63  ;;  %v4704_v62 = vrot.slane %v13129_v11, 1  ;;  %6279 = vst.msk [vmem:[#allocation5 + $0x38] sm:$0xff] %vm4325_vm6, %v6247_v0  ;;  %v6033_v37 = vrot.slane %v5931_v45, 2  ;;  %v5069_v39 = vmul.f32 %v13142_v30, %v15431_v8  ;;  %v15450_v24 = vld [vmem:[#allocation102_spill] sm:$0xff] }
 0x498   : > { %v5907_v29 = vadd.f32 %v5830_v31, %v5662_v7  ;;  %v13148_v57 = vmul.f32 %v13142_v30, %v15400_v54  ;;  %v15449_v1 = vrot.slane %v15448_v13, 1  ;;  %v4949_v52 = vrot.slane %v13139_v9, 2 }
 0x499   : > { %v5331_v23 = vadd.f32 %v5230_v53, %v5086_v38  ;;  %v13158_v55 = vmul.f32 %v13142_v30, %v15402_v3  ;;  %v5790_v32 = vsel %vm1955_vm5, %v5788_v36, %v5789_v20  ;;  %v15451_v44 = vrot.slane %v15450_v24, 2 }
 0x49a   : > { %v4707_v47 = vsel %vm1955_vm5, %v4704_v62, %v15449_v1  ;;  %v6152_v27 = vadd.f32 %v6075_v15, %v5907_v29  ;;  %v5264_v31 = vrot.slane %v13148_v57, 1  ;;  %v5511_v3 = vrot.slane %v15452_v59, 2  ;;  %v13205_v29 = vld [vmem:[%s14837_s12] ss:$0 sm:$0xff] }
 0x49b   : > { %v4786_v54 = vadd.f32 %v4707_v47, %v4509_v41  ;;  %v5576_v61 = vadd.f32 %v5475_v42, %v5331_v23  ;;  %v4952_v4 = vsel %vm1350_vm1, %v4949_v52, %v15451_v44  ;;  %v5509_v60 = vrot.slane %v13158_v55, 2  ;;  %v13198_v42 = vld [vmem:[%s14837_s12 + $0x1] ss:$0 sm:$0xff] }
 0x49c   : > { %v6191_v15 = vmul.f32 %v12944_v49, %v6152_v27  ;;  %v6035_v33 = vsel %vm1350_vm1, %v6033_v37, %v6034_v21  ;;  %v13176_v48 = vmul.f32 %v8940_v14, %v12791_v5  ;;  %v5267_v35 = vsel %vm1955_vm5, %v5264_v31, %v5266_v43  ;;  %v13222_v27 = vld [vmem:[%s14837_s12 + $0x5] ss:$0 sm:$0xff] }
 0x49d   : > { %v5031_v20 = vadd.f32 %v4952_v4, %v4786_v54  ;;  %v5646_v22 = vadd.f32 %v5614_v46, %v5576_v61  ;;  %v5709_v28 = vmul.f32 %v8941_v10, %v12791_v5  ;;  %v13187_v21 = vmul.f32 %v8940_v14, %v12838_v17  ;;  %v13235_v4 = vld [vmem:[%s14837_s12 + $0x6] ss:$0 sm:$0xff] }
 0x49e   : > { %v6230_v51 = vadd.f32 %v12964_v6, %v6191_v15  ;;  %v5824_v50 = vrot.slane %v13176_v48, 1  ;;  %v5954_v45 = vmul.f32 %v8941_v10, %v12838_v17  ;;  %v6311_v34 = vld [vmem:[#allocation5 + $0x38] sm:$0xff]  ;;  %v5512_v43 = vsel %vm1350_vm1, %v5509_v60, %v5511_v3 }
 0x49f   : > { %v5101_v2 = vadd.f32 %v5069_v39, %v5031_v20  ;;  %v5891_v18 = vadd.f32 %v5790_v32, %v5646_v22  ;;  %v5629_v63 = vmul.f32 %v8940_v14, %v12832_v12  ;;  %v5826_v53 = vrot.slane %v5709_v28, 1  ;;  %8436 = vmatpush3.msra.mxu0 %v6311_v34  ;;  %v13210_v39 = vld [vmem:[%s14837_s12 + $0x2] ss:$0 sm:$0xff]  ;;  %v15453_v15 = vld [vmem:[#allocation69_spill] sm:$0xff] }
 0x4a0   : > { %v6262_v46 = vmax.f32 %v6230_v51, 0.0  ;;  %v6069_v7 = vrot.slane %v13187_v21, 2  ;;  %v13202_v41 = vmul.f32 %v13198_v42, %v13178_v26  ;;  %v6071_v36 = vrot.slane %v5954_v45, 2  ;;  %v13224_v32 = vld [vmem:[#allocation4 + $0x50] sm:$0xff] }
 0x4a1   : > { %v5346_v0 = vadd.f32 %v5267_v35, %v5101_v2  ;;  %v6136_v38 = vadd.f32 %v6035_v33, %v5891_v18  ;;  %v4493_v37 = vmul.f32 %v13205_v29, %v13178_v26  ;;  %v13214_v23 = vmul.f32 %v13210_v39, %v13178_v26  ;;  %v13257_v51 = vld [vmem:[#allocation4 + $0xf0] sm:$0xff] }
 0x4a2   : > { %6294 = vst.msk [vmem:[#allocation5 + $0xb0] sm:$0xff] %vm4325_vm6, %v6262_v46  ;;  %v5827_v1 = vsel %vm1955_vm5, %v5824_v50, %v5826_v53  ;;  %v4664_v47 = vrot.slane %v13202_v41, 1  ;;  %v13228_v54 = vmul.f32 %v13224_v32, %v13222_v27  ;;  %v5053_v44 = vmul.f32 %v13224_v32, %v15431_v8  ;;  %v15455_v45 = vld [vmem:[#allocation95_spill] sm:$0xff] }
 0x4a3   : > { %v5591_v13 = vadd.f32 %v5512_v43, %v5346_v0  ;;  %v6175_v61 = vmul.f32 %v12944_v49, %v6136_v38  ;;  %v4909_v24 = vrot.slane %v13214_v23, 2  ;;  %v13239_v59 = vmul.f32 %v13235_v4, %v13224_v32 }
 0x4a4   : > { %v15454_v33 = vrot.slane %v15453_v15, 1  ;;  %v5224_v14 = vrot.slane %v13228_v54, 1  ;;  %v13249_v22 = vmul.f32 %v13001_v16, %v12791_v5  ;;  %v6072_v35 = vsel %vm1350_vm1, %v6069_v7, %v6071_v36 }
 0x4a5   : > { %v5661_v3 = vadd.f32 %v5629_v63, %v5591_v13  ;;  %v6214_v8 = vadd.f32 %v12964_v6, %v6175_v61  ;;  %v5613_v28 = vmul.f32 %v13001_v16, %v12832_v12  ;;  %v15456_v34 = vrot.slane %v15455_v45, 2  ;;  %v8948_v63 = vld [vmem:[#allocation4 + $0x70] sm:$0x3] }
 0x4a6   : > { %v4667_v20 = vsel %vm1955_vm5, %v4664_v47, %v15454_v33  ;;  %v14782_v43 = vrot.slane %v13239_v59, 2  ;;  %v5685_v53 = vmul.f32 %v8948_v63, %v12791_v5  ;;  %v14781_v38 = vrot.slane %v13249_v22, 1  ;;  %v15457_v13 = vld [vmem:[#allocation86_spill] sm:$0xff] }
 0x4a7   : > { %v4770_v10 = vadd.f32 %v4667_v20, %v4493_v37  ;;  %v5906_v2 = vadd.f32 %v5827_v1, %v5661_v3  ;;  %v4912_v18 = vsel %vm1350_vm1, %v4909_v24, %v15456_v34  ;;  %v6246_v46 = vmax.f32 %v6214_v8, 0.0 }
 0x4a8   : > { %v13269_v36 = vmul.f32 %v13001_v16, %v12838_v17  ;;  %v15458_v1 = vrot.slane %v15457_v13, 1  ;;  %v5786_v3 = vrot.slane %v5685_v53, 1  ;;  %v5930_v15 = vmul.f32 %v8948_v63, %v12838_v17 }
 0x4a9   : > { %v5015_v0 = vadd.f32 %v4912_v18, %v4770_v10  ;;  %v6151_v37 = vadd.f32 %v6072_v35, %v5906_v2  ;;  %v6326_v33 = vld [vmem:[#allocation5 + $0xb0] sm:$0xff]  ;;  %6278 = vst.msk [vmem:[#allocation5 + $0x30] sm:$0xff] %vm4325_vm6, %v6246_v46  ;;  %v4587_v16 = vmul.f32 %v13198_v42, %v13257_v51  ;;  %v4832_v35 = vmul.f32 %v13210_v39, %v13257_v51  ;;  %v15459_v2 = vld [vmem:[#allocation79_spill] sm:$0xff] }
 0x4aa   : > { %v5227_v61 = vsel %vm1955_vm5, %v5224_v14, %v15458_v1  ;;  %v6029_v8 = vrot.slane %v13269_v36, 2  ;;  %8437 = vmatprep.subr.mxu0 %v6326_v33  ;;  %v15460_v45 = vrot.slane %v15459_v2, 2  ;;  %v6031_v18 = vrot.slane %v5930_v15, 2  ;;  %v13298_v1 = vld [vmem:[%s14837_s12 + $0x4] ss:$0 sm:$0xff] }
 0x4ab   : > { %v5085_v20 = vadd.f32 %v5053_v44, %v5015_v0  ;;  %v6190_v10 = vmul.f32 %v12944_v49, %v6151_v37  ;;  %v4508_v44 = vmul.f32 %v13205_v29, %v13257_v51  ;;  %v5787_v53 = vsel %vm1955_vm5, %v14781_v38, %v5786_v3 }
 0x4ac   : > { %v5472_v34 = vsel %vm1350_vm1, %v14782_v43, %v15460_v45  ;;  %v4703_v46 = vrot.slane %v4587_v16, 1  ;;  %v5147_v0 = vmul.f32 %v13222_v27, %v13025_v19  ;;  %v4948_v13 = vrot.slane %v4832_v35, 2 }
 0x4ad   : > { %v5330_v63 = vadd.f32 %v5227_v61, %v5085_v20  ;;  %v6229_v37 = vadd.f32 %v12964_v6, %v6190_v10  ;;  %v5068_v15 = vmul.f32 %v13298_v1, %v13025_v19  ;;  %v5392_v33 = vmul.f32 %v13235_v4, %v13025_v19  ;;  %v13304_v61 = vld [vmem:[#allocation4 + $0x30] sm:$0xff] }
 0x4ae   : > { %v6032_v3 = vsel %vm1350_vm1, %v6029_v8, %v6031_v18  ;;  %v4705_v16 = vsel %vm1955_vm5, %v4703_v46, %v4704_v62  ;;  %v5628_v35 = vmul.f32 %v13056_v25, %v12832_v12  ;;  %v5263_v45 = vrot.slane %v5147_v0, 1 }
 0x4af   : > { %v5575_v20 = vadd.f32 %v5472_v34, %v5330_v63  ;;  %v6261_v10 = vmax.f32 %v6229_v37, 0.0  ;;  %v4785_v2 = vadd.f32 %v4705_v16, %v4508_v44  ;;  %v5707_v38 = vmul.f32 %v13056_v25, %v12791_v5 }
 0x4b0   : > { %v4950_v34 = vsel %vm1350_vm1, %v4948_v13, %v4949_v52  ;;  %v5508_v63 = vrot.slane %v5392_v33, 2  ;;  %v5952_v11 = vmul.f32 %v13056_v25, %v12838_v17  ;;  %v6310_v18 = vld [vmem:[#allocation5 + $0x30] sm:$0xff]  ;;  %v5265_v44 = vsel %vm1955_vm5, %v5263_v45, %v5264_v31 }
 0x4b1   : > { %v5645_v43 = vadd.f32 %v5613_v28, %v5575_v20  ;;  %6293 = vst.msk [vmem:[#allocation5 + $0xa8] sm:$0xff] %vm4325_vm6, %v6261_v10  ;;  %v5030_v62 = vadd.f32 %v4950_v34, %v4785_v2  ;;  %v4492_v46 = vmul.f32 %v13205_v29, %v13304_v61  ;;  %v4563_v9 = vmul.f32 %v13198_v42, %v13304_v61 }
 0x4b2   : > { %8438 = vmatpush3.msra.mxu0 %v6310_v18  ;;  %v5510_v25 = vsel %vm1350_vm1, %v5508_v63, %v5509_v60  ;;  %v5823_v28 = vrot.slane %v5707_v38, 1  ;;  %v4808_v0 = vmul.f32 %v13210_v39, %v13304_v61  ;;  %v6068_v57 = vrot.slane %v5952_v11, 2  ;;  %v13366_v18 = vld [vmem:[#allocation4 + $0xe0] sm:$0xff] }
 0x4b3   : > { %v5890_v52 = vadd.f32 %v5787_v53, %v5645_v43  ;;  %v5100_v37 = vadd.f32 %v5068_v15, %v5030_v62  ;;  %v4663_v13 = vrot.slane %v4563_v9, 1  ;;  %v5123_v31 = vmul.f32 %v13222_v27, %v13066_v40 }
 0x4b4   : > { %v4908_v20 = vrot.slane %v4808_v0, 2  ;;  %v5052_v16 = vmul.f32 %v13298_v1, %v13066_v40  ;;  %v5368_v55 = vmul.f32 %v13235_v4, %v13066_v40  ;;  %v5825_v60 = vsel %vm1955_vm5, %v5823_v28, %v5824_v50 }
 0x4b5   : > { %v6135_v33 = vadd.f32 %v6032_v3, %v5890_v52  ;;  %v5345_v43 = vadd.f32 %v5265_v44, %v5100_v37  ;;  %v6070_v38 = vsel %vm1350_vm1, %v6068_v57, %v6069_v7  ;;  %v4665_v53 = vsel %vm1955_vm5, %v4663_v13, %v4664_v47 }
 0x4b6   : > { %v4769_v3 = vadd.f32 %v4665_v53, %v4492_v46  ;;  %v4910_v10 = vsel %vm1350_vm1, %v4908_v20, %v4909_v24  ;;  %v5223_v2 = vrot.slane %v5123_v31, 1  ;;  %v5468_v48 = vrot.slane %v5368_v55, 2  ;;  %v15465_v55 = vld [vmem:[#allocation99_spill] sm:$0xff] }
 0x4b7   : > { %v6174_v15 = vmul.f32 %v12944_v49, %v6135_v33  ;;  %v5590_v45 = vadd.f32 %v5510_v25, %v5345_v43  ;;  %v5683_v50 = vmul.f32 %v13096_v56, %v12791_v5  ;;  %v5928_v21 = vmul.f32 %v13096_v56, %v12838_v17  ;;  %v15463_v33 = vld [vmem:[#allocation94_spill] sm:$0xff] }
 0x4b8   : > { %v6325_v7 = vld [vmem:[#allocation5 + $0xa8] sm:$0xff]  ;;  %v5014_v47 = vadd.f32 %v4910_v10, %v4769_v3  ;;  %v5225_v34 = vsel %vm1955_vm5, %v5223_v2, %v5224_v14  ;;  %v5612_v23 = vmul.f32 %v13096_v56, %v12832_v12  ;;  %v15461_v63 = vrot.slane %v13239_v59, 2 }
 0x4b9   : > { %v6213_v41 = vadd.f32 %v12964_v6, %v6174_v15  ;;  %8439 = vmatprep.subr.mxu0 %v6325_v7  ;;  %v5660_v24 = vadd.f32 %v5628_v35, %v5590_v45  ;;  %v4507_v62 = vmul.f32 %v13366_v18, %v13205_v29  ;;  %v13372_v44 = vmul.f32 %v13366_v18, %v13198_v42  ;;  %v15466_v15 = vld [vmem:[#allocation101_spill] sm:$0xff] }
 0x4ba   : > { %v5470_v11 = vsel %vm1350_vm1, %v5468_v48, %v15461_v63  ;;  %v5084_v14 = vadd.f32 %v5052_v16, %v5014_v47  ;;  %v5783_v46 = vrot.slane %v5683_v50, 1  ;;  %v13376_v56 = vmul.f32 %v13366_v18, %v13210_v39  ;;  %v8951_v48 = vld [vmem:[#allocation4 + $0x118] sm:$0x3] }
 0x4bb   : > { %v6245_v54 = vmax.f32 %v6213_v41, 0.0  ;;  %v5905_v35 = vadd.f32 %v5825_v60, %v5660_v24  ;;  %v6028_v59 = vrot.slane %v5928_v21, 2  ;;  %v4699_v9 = vrot.slane %v13372_v44, 1 }
 0x4bc   : > { %v5067_v52 = vmul.f32 %v13298_v1, %v13107_v58  ;;  %v5329_v25 = vadd.f32 %v5225_v34, %v5084_v14  ;;  %v4944_v28 = vrot.slane %v13376_v56, 2  ;;  %v13385_v0 = vmul.f32 %v13222_v27, %v13107_v58 }
 0x4bd   : > { %6277 = vst.msk [vmem:[#allocation5 + $0x28] sm:$0xff] %vm4325_vm6, %v6245_v54  ;;  %v13389_v37 = vmul.f32 %v13235_v4, %v13107_v58  ;;  %v6150_v57 = vadd.f32 %v6070_v38, %v5905_v35  ;;  %v15462_v13 = vrot.slane %v13249_v22, 1  ;;  %v15464_v20 = vrot.slane %v15463_v33, 1  ;;  %v15470_v33 = vld [vmem:[#allocation89_spill] sm:$0xff] }
 0x4be   : > { %v5506_v43 = vrot.slane %v15465_v55, 2  ;;  %v5574_v60 = vadd.f32 %v5470_v11, %v5329_v25  ;;  %v15467_v3 = vrot.slane %v15466_v15, 2  ;;  %v5259_v22 = vrot.slane %v13385_v0, 1  ;;  %v13451_v55 = vld [vmem:[%s14837_s12 + $0x9] ss:$0 sm:$0xff] }
 0x4bf   : > { %v5785_v31 = vsel %vm1955_vm5, %v5783_v46, %v15462_v13  ;;  %v4702_v16 = vsel %vm1955_vm5, %v4699_v9, %v15464_v20  ;;  %v6189_v10 = vmul.f32 %v12944_v49, %v6150_v57  ;;  %v5504_v2 = vrot.slane %v13389_v37, 2 }
 0x4c0   : > { %v4784_v53 = vadd.f32 %v4702_v16, %v4507_v62  ;;  %v4947_v38 = vsel %vm1350_vm1, %v4944_v28, %v15467_v3  ;;  %v13410_v45 = vmul.f32 %v13142_v30, %v12791_v5  ;;  %v5706_v50 = vmul.f32 %v8951_v48, %v12791_v5 }
 0x4c1   : > { %v5644_v21 = vadd.f32 %v5612_v23, %v5574_v60  ;;  %v6030_v7 = vsel %vm1350_vm1, %v6028_v59, %v6029_v8  ;;  %v13418_v47 = vmul.f32 %v13142_v30, %v12838_v17  ;;  %v6228_v34 = vadd.f32 %v12964_v6, %v6189_v10  ;;  %v15468_v23 = vld [vmem:[#allocation103_spill] sm:$0xff] }
 0x4c2   : > { %v5029_v41 = vadd.f32 %v4947_v38, %v4784_v53  ;;  %v5627_v24 = vmul.f32 %v13142_v30, %v12832_v12  ;;  %v5819_v63 = vrot.slane %v13410_v45, 1  ;;  %v5821_v11 = vrot.slane %v5706_v50, 1  ;;  %v15471_v38 = vld [vmem:[#allocation66_spill] sm:$0xff] }
 0x4c3   : > { %v5889_v62 = vadd.f32 %v5785_v31, %v5644_v21  ;;  %v15469_v54 = vrot.slane %v15468_v23, 1  ;;  %v5951_v8 = vmul.f32 %v8951_v48, %v12838_v17  ;;  %v6260_v46 = vmax.f32 %v6228_v34, 0.0  ;;  %v8953_v21 = vld [vmem:[#allocation4 + $0x58] sm:$0x3] }
 0x4c4   : > { %v5099_v5 = vadd.f32 %v5067_v52, %v5029_v41  ;;  %v6309_v14 = vld [vmem:[#allocation5 + $0x28] sm:$0xff]  ;;  %v5507_v30 = vsel %vm1350_vm1, %v5504_v2, %v5506_v43  ;;  %v5051_v35 = vmul.f32 %v13298_v1, %v13178_v26  ;;  %v13437_v59 = vmul.f32 %v13222_v27, %v13178_v26 }
 0x4c5   : > { %v5262_v36 = vsel %vm1955_vm5, %v5259_v22, %v15469_v54  ;;  %8440 = vmatpush3.msra.mxu0 %v6309_v14  ;;  %v6134_v52 = vadd.f32 %v6030_v7, %v5889_v62  ;;  %v6064_v57 = vrot.slane %v13418_v47, 2  ;;  %v13442_v13 = vmul.f32 %v13235_v4, %v13178_v26  ;;  %6292 = vst.msk [vmem:[#allocation5 + $0xa0] sm:$0xff] %vm4325_vm6, %v6260_v46  ;;  %v15473_v23 = vld [vmem:[#allocation67_spill] sm:$0xff] }
 0x4c6   : > { %v5344_v25 = vadd.f32 %v5262_v36, %v5099_v5  ;;  %v5822_v31 = vsel %vm1955_vm5, %v5819_v63, %v5821_v11  ;;  %v5083_v20 = vadd.f32 %v5051_v35, %v15470_v33  ;;  %v5219_v16 = vrot.slane %v13437_v59, 1  ;;  %v13480_v35 = vld [vmem:[#allocation4 + $0xd8] sm:$0xff] }
 0x4c7   : > { %v13455_v43 = vmul.f32 %v13451_v55, %v13224_v32  ;;  %v6173_v60 = vmul.f32 %v12944_v49, %v6134_v52  ;;  %v6066_v15 = vrot.slane %v5951_v8, 2  ;;  %v5464_v3 = vrot.slane %v13442_v13, 2 }
 0x4c8   : > { %v5589_v53 = vadd.f32 %v5507_v30, %v5344_v25  ;;  %v15472_v10 = vrot.slane %v15471_v38, 1  ;;  %v5611_v50 = vmul.f32 %v13224_v32, %v12832_v12  ;;  %v5682_v7 = vmul.f32 %v8953_v21, %v13451_v55 }
 0x4c9   : > { %v13469_v41 = vmul.f32 %v13224_v32, %v12838_v17  ;;  %v6212_v34 = vadd.f32 %v12964_v6, %v6173_v60  ;;  %v5779_v5 = vrot.slane %v13455_v43, 1  ;;  %v15474_v54 = vrot.slane %v15473_v23, 2 }
 0x4ca   : > { %v5222_v48 = vsel %vm1955_vm5, %v5219_v16, %v15472_v10  ;;  %v5659_v11 = vadd.f32 %v5627_v24, %v5589_v53  ;;  %v5781_v12 = vrot.slane %v5682_v7, 1  ;;  %v5927_v8 = vmul.f32 %v8953_v21, %v12838_v17 }
 0x4cb   : > { %v5328_v62 = vadd.f32 %v5222_v48, %v5083_v20  ;;  %v5467_v36 = vsel %vm1350_vm1, %v5464_v3, %v15474_v54  ;;  %v6024_v14 = vrot.slane %v13469_v41, 2  ;;  %v6244_v46 = vmax.f32 %v6212_v34, 0.0 }
 0x4cc   : > { %v5904_v32 = vadd.f32 %v5822_v31, %v5659_v11  ;;  %v4584_v24 = vmul.f32 %v13480_v35, %v13198_v42  ;;  %v6067_v52 = vsel %vm1350_vm1, %v6064_v57, %v6066_v15  ;;  %v6026_v25 = vrot.slane %v5927_v8, 2  ;;  %v6324_v20 = vld [vmem:[#allocation5 + $0xa0] sm:$0xff] }
 0x4cd   : > { %v5573_v30 = vadd.f32 %v5467_v36, %v5328_v62  ;;  %v4506_v33 = vmul.f32 %v13480_v35, %v13205_v29  ;;  %v4829_v17 = vmul.f32 %v13480_v35, %v13210_v39  ;;  %6276 = vst.msk [vmem:[#allocation5 + $0x20] sm:$0xff] %vm4325_vm6, %v6244_v46  ;;  %v5144_v38 = vmul.f32 %v13222_v27, %v13257_v51 }
 0x4ce   : > { %v6149_v31 = vadd.f32 %v6067_v52, %v5904_v32  ;;  %v4698_v53 = vrot.slane %v4584_v24, 1  ;;  %8441 = vmatprep.subr.mxu0 %v6324_v20  ;;  %v5782_v15 = vsel %vm1955_vm5, %v5779_v5, %v5781_v12  ;;  %v5066_v48 = vmul.f32 %v13298_v1, %v13257_v51  ;;  %v13515_v32 = vld [vmem:[%s14837_s12 + $0xa] ss:$0 sm:$0xff]  ;;  %v15475_v24 = vld [vmem:[#allocation57_spill] sm:$0xff] }
 0x4cf   : > { %v5643_v60 = vadd.f32 %v5611_v50, %v5573_v30  ;;  %v4943_v10 = vrot.slane %v4829_v17, 2  ;;  %v5389_v21 = vmul.f32 %v13235_v4, %v13257_v51  ;;  %v6027_v34 = vsel %vm1350_vm1, %v6024_v14, %v6026_v25  ;;  %v15477_v25 = vld [vmem:[#allocation81_spill] sm:$0xff] }
 0x4d0   : > { %v6188_v50 = vmul.f32 %v12944_v49, %v6149_v31  ;;  %v4700_v11 = vsel %vm1955_vm5, %v4698_v53, %v4699_v9  ;;  %v5258_v54 = vrot.slane %v5144_v38, 1  ;;  %v5704_v36 = vmul.f32 %v13451_v55, %v13025_v19  ;;  %v13523_v9 = vld [vmem:[%s14837_s12 + $0x8] ss:$0 sm:$0xff] }
 0x4d1   : > { %v5888_v7 = vadd.f32 %v5782_v15, %v5643_v60  ;;  %v4783_v62 = vadd.f32 %v4700_v11, %v4506_v33  ;;  %v4945_v23 = vsel %vm1350_vm1, %v4943_v10, %v4944_v28  ;;  %v5503_v46 = vrot.slane %v5389_v21, 2  ;;  %v15479_v60 = vld [vmem:[#allocation92_spill] sm:$0xff] }
 0x4d2   : > { %v6227_v12 = vadd.f32 %v12964_v6, %v6188_v50  ;;  %v5949_v44 = vmul.f32 %v13515_v32, %v13025_v19  ;;  %v5260_v56 = vsel %vm1955_vm5, %v5258_v54, %v5259_v22  ;;  %v5626_v28 = vmul.f32 %v13523_v9, %v13025_v19  ;;  %v15480_v19 = vld [vmem:[#allocation53_spill] sm:$0xff]  ;;  %v15482_v50 = vld [vmem:[#allocation68_spill] sm:$0xff] }
 0x4d3   : > { %v6133_v8 = vadd.f32 %v6027_v34, %v5888_v7  ;;  %v5028_v30 = vadd.f32 %v4945_v23, %v4783_v62  ;;  %v15476_v52 = vrot.slane %v15475_v24, 1  ;;  %v15478_v33 = vrot.slane %v15477_v25, 1  ;;  %v8957_v25 = vld [vmem:[#allocation4 + $0xc8] sm:$0xff] }
 0x4d4   : > { %v6259_v20 = vmax.f32 %v6227_v12, 0.0  ;;  %v5505_v0 = vsel %vm1350_vm1, %v5503_v46, %v5504_v2  ;;  %v6308_v53 = vld [vmem:[#allocation5 + $0x20] sm:$0xff]  ;;  %v5818_v15 = vrot.slane %v5704_v36, 1  ;;  %v6063_v10 = vrot.slane %v5949_v44, 2 }
 0x4d5   : > { %v4660_v17 = vsel %vm1955_vm5, %v15478_v33, %v15476_v52  ;;  %v6172_v31 = vmul.f32 %v12944_v49, %v6133_v8  ;;  %v5098_v38 = vadd.f32 %v5066_v48, %v5028_v30  ;;  %v15481_v21 = vrot.slane %v15480_v19, 2  ;;  %8442 = vmatpush3.msra.mxu0 %v6308_v53 }
 0x4d6   : > { %v4767_v22 = vadd.f32 %v4660_v17, %v15479_v60  ;;  %v15483_v7 = vrot.slane %v15482_v50, 2  ;;  %6291 = vst.msk [vmem:[#allocation5 + $0x98] sm:$0xff] %vm4325_vm6, %v6259_v20  ;;  %v5050_v2 = vmul.f32 %v13298_v1, %v13304_v61  ;;  %v5120_v48 = vmul.f32 %v13222_v27, %v13304_v61 }
 0x4d7   : > { %v6211_v11 = vadd.f32 %v12964_v6, %v6172_v31  ;;  %v5343_v62 = vadd.f32 %v5260_v56, %v5098_v38  ;;  %v5820_v23 = vsel %vm1955_vm5, %v5818_v15, %v5819_v63  ;;  %v5365_v54 = vmul.f32 %v13235_v4, %v13304_v61  ;;  %v15486_v38 = vld [vmem:[#allocation104_spill] sm:$0xff] }
 0x4d8   : > { %v4905_v34 = vsel %vm1350_vm1, %v15483_v7, %v15481_v21  ;;  %v5680_v36 = vmul.f32 %v13451_v55, %v13066_v40  ;;  %v5218_v46 = vrot.slane %v5120_v48, 1  ;;  %v5925_v44 = vmul.f32 %v13515_v32, %v13066_v40  ;;  %v15488_v21 = vld [vmem:[#allocation125_spill] sm:$0xff] }
 0x4d9   : > { %v5012_v37 = vadd.f32 %v4905_v34, %v4767_v22  ;;  %v6243_v12 = vmax.f32 %v6211_v11, 0.0  ;;  %v5588_v30 = vadd.f32 %v5505_v0, %v5343_v62  ;;  %v6065_v56 = vsel %vm1350_vm1, %v6063_v10, %v6064_v57  ;;  %v8958_v62 = vld [vmem:[#allocation4 + $0x100] sm:$0x3] }
 0x4da   : > { %v5463_v45 = vrot.slane %v5365_v54, 2  ;;  %v5610_v63 = vmul.f32 %v13523_v9, %v13066_v40  ;;  %v5220_v24 = vsel %vm1955_vm5, %v5218_v46, %v5219_v16  ;;  %v5778_v52 = vrot.slane %v5680_v36, 1 }
 0x4db   : > { %v5082_v8 = vadd.f32 %v5050_v2, %v5012_v37  ;;  %6275 = vst.msk [vmem:[#allocation5 + $0x18] sm:$0xff] %vm4325_vm6, %v6243_v12  ;;  %v13567_v33 = vmul.f32 %v8957_v25, %v13198_v42  ;;  %v13570_v17 = vmul.f32 %v8957_v25, %v13210_v39  ;;  %v5658_v47 = vadd.f32 %v5626_v28, %v5588_v30  ;;  %v4430_v30 = vld [vmem:[#allocation4 + $0x8] sm:$0xff] }
 0x4dc   : > { %v6023_v20 = vrot.slane %v5925_v44, 2  ;;  %v4505_v31 = vmul.f32 %v8957_v25, %v13205_v29  ;;  %v5465_v40 = vsel %vm1350_vm1, %v5463_v45, %v5464_v3  ;;  %v5780_v59 = vsel %vm1955_vm5, %v5778_v52, %v5779_v5  ;;  %v15484_v3 = vld [vmem:[#allocation105_spill] sm:$0xff]  ;;  %v15489_v45 = vld [vmem:[#allocation96_spill] sm:$0xff] }
 0x4dd   : > { %v5327_v57 = vadd.f32 %v5220_v24, %v5082_v8  ;;  %v4694_v16 = vrot.slane %v13567_v33, 1  ;;  %v4939_v0 = vrot.slane %v13570_v17, 2  ;;  %v6323_v60 = vld [vmem:[#allocation5 + $0x98] sm:$0xff]  ;;  %v5903_v22 = vadd.f32 %v5820_v23, %v5658_v47  ;;  %v4431_v47 = vld [vmem:[#allocation4 + $0x10] sm:$0x3] }
 0x4de   : > { %v13583_v28 = vmul.f32 %v13366_v18, %v13222_v27  ;;  %v13587_v13 = vmul.f32 %v13366_v18, %v13235_v4  ;;  %8443 = vmatprep.subr.mxu0 %v6323_v60  ;;  %v15485_v43 = vrot.slane %v15484_v3, 1  ;;  %v15487_v15 = vrot.slane %v15486_v38, 2 }
 0x4df   : > { %v5572_v53 = vadd.f32 %v5465_v40, %v5327_v57  ;;  %v5065_v19 = vmul.f32 %v13366_v18, %v13298_v1  ;;  %v5501_v50 = vrot.slane %v15488_v21, 2  ;;  %v6148_v7 = vadd.f32 %v6065_v56, %v5903_v22  ;;  %v8959_v18 = vld [vmem:[#allocation4 + $0x28] sm:$0x3] }
 0x4e0   : > { %v4697_v5 = vsel %vm1955_vm5, %v4694_v16, %v15485_v43  ;;  %v4942_v10 = vsel %vm1350_vm1, %v4939_v0, %v15487_v15  ;;  %v5254_v37 = vrot.slane %v13583_v28, 1  ;;  %v5499_v2 = vrot.slane %v13587_v13, 2 }
 0x4e1   : > { %v5642_v34 = vadd.f32 %v5610_v63, %v5572_v53  ;;  %v4782_v11 = vadd.f32 %v4697_v5, %v4505_v31  ;;  %v13606_v48 = vmul.f32 %v13451_v55, %v13107_v58  ;;  %v5703_v23 = vmul.f32 %v8958_v62, %v13451_v55 }
 0x4e2   : > { %v13611_v54 = vmul.f32 %v13515_v32, %v13107_v58  ;;  %v5364_v36 = vmul.f32 %v8959_v18, %v13235_v4  ;;  %v6307_v12 = vld [vmem:[#allocation5 + $0x18] sm:$0xff]  ;;  %v6187_v8 = vmul.f32 %v12944_v49, %v6148_v7  ;;  %v6025_v56 = vsel %vm1350_vm1, %v6023_v20, %v6024_v14 }
 0x4e3   : > { %v5887_v46 = vadd.f32 %v5780_v59, %v5642_v34  ;;  %v5027_v44 = vadd.f32 %v4942_v10, %v4782_v11  ;;  %8444 = vmatpush3.msra.mxu0 %v6307_v12  ;;  %v15490_v63 = vrot.slane %v15489_v45, 1  ;;  %v5625_v52 = vmul.f32 %v13523_v9, %v13107_v58  ;;  %v15492_v34 = vld [vmem:[#allocation80_spill] sm:$0xff] }
 0x4e4   : > { %v5948_v25 = vmul.f32 %v8958_v62, %v13515_v32  ;;  %v6226_v57 = vadd.f32 %v12964_v6, %v6187_v8  ;;  %v5502_v41 = vsel %vm1350_vm1, %v5499_v2, %v5501_v50  ;;  %v5814_v14 = vrot.slane %v13606_v48, 1 }
 0x4e5   : > { %v5257_v24 = vsel %vm1955_vm5, %v5254_v37, %v15490_v63  ;;  %v6132_v31 = vadd.f32 %v6025_v56, %v5887_v46  ;;  %v5097_v40 = vadd.f32 %v5065_v19, %v5027_v44  ;;  %v5816_v20 = vrot.slane %v5703_v23, 1  ;;  %v8960_v44 = vld [vmem:[#allocation4 + $0x20] sm:$0xff] }
 0x4e6   : > { %v6059_v59 = vrot.slane %v13611_v54, 2  ;;  %v13633_v60 = vmul.f32 %v13198_v42, %v4430_v30  ;;  %v6258_v58 = vmax.f32 %v6226_v57, 0.0  ;;  %v4559_v3 = vmul.f32 %v13198_v42, %v4431_v47 }
 0x4e7   : > { %v6171_v22 = vmul.f32 %v12944_v49, %v6132_v31  ;;  %v5342_v53 = vadd.f32 %v5257_v24, %v5097_v40  ;;  %v6061_v43 = vrot.slane %v5948_v25, 2  ;;  %v4489_v5 = vmul.f32 %v13205_v29, %v4430_v30  ;;  %v15491_v49 = vld [vmem:[#allocation88_spill] sm:$0xff] }
 0x4e8   : > { %v13639_v38 = vmul.f32 %v13210_v39, %v4430_v30  ;;  %v4804_v15 = vmul.f32 %v13210_v39, %v4431_v47  ;;  %6290 = vst.msk [vmem:[#allocation5 + $0x90] sm:$0xff] %vm4325_vm6, %v6258_v58  ;;  %v4654_v21 = vrot.slane %v13633_v60, 1  ;;  %v4656_v50 = vrot.slane %v4559_v3, 1  ;;  %v8961_v31 = vld [vmem:[#allocation4 + $0xc0] sm:$0xff] }
 0x4e9   : > { %v6210_v10 = vadd.f32 %v12964_v6, %v6171_v22  ;;  %v5587_v19 = vadd.f32 %v5502_v41, %v5342_v53  ;;  %v5216_v7 = vrot.slane %v15491_v49, 1  ;;  %v5459_v11 = vrot.slane %v15492_v34, 2  ;;  %v8962_v58 = vld [vmem:[#allocation4 + $0x40] sm:$0x3] }
 0x4ea   : > { %v4899_v62 = vrot.slane %v13639_v38, 2  ;;  %v4901_v23 = vrot.slane %v4804_v15, 2  ;;  %v5461_v18 = vrot.slane %v5364_v36, 2  ;;  %v4657_v46 = vsel %vm1955_vm5, %v4654_v21, %v4656_v50 }
 0x4eb   : > { %v6242_v12 = vmax.f32 %v6210_v10, 0.0  ;;  %v5657_v8 = vadd.f32 %v5625_v52, %v5587_v19  ;;  %v5049_v6 = vmul.f32 %v8960_v44, %v13298_v1  ;;  %v5817_v30 = vsel %vm1955_vm5, %v5814_v14, %v5816_v20  ;;  %v15493_v52 = vld [vmem:[#allocation54_spill] sm:$0xff] }
 0x4ec   : > { %v4766_v56 = vadd.f32 %v4657_v46, %v4489_v5  ;;  %v4902_v45 = vsel %vm1350_vm1, %v4899_v62, %v4901_v23  ;;  %v6062_v63 = vsel %vm1350_vm1, %v6059_v59, %v6061_v43  ;;  %v15494_v25 = vrot.slane %v15493_v52, 1  ;;  %v13680_v19 = vld [vmem:[%s15332_s23] ss:$0 sm:$0xff] }
 0x4ed   : > { %6274 = vst.msk [vmem:[#allocation5 + $0x10] sm:$0xff] %vm4325_vm6, %v6242_v12  ;;  %v5902_v36 = vadd.f32 %v5817_v30, %v5657_v8  ;;  %v13667_v57 = vmul.f32 %v13451_v55, %v13178_v26  ;;  %v4581_v40 = vmul.f32 %v8961_v31, %v13198_v42  ;;  %v5462_v20 = vsel %vm1350_vm1, %v5459_v11, %v5461_v18  ;;  %v13694_v44 = vld [vmem:[%s15337_s2] ss:$0 sm:$0xff]  ;;  %s15498_s2 = sld [smem:[#allocation23_spill]] }
 0x4ee   : > { %v5011_v24 = vadd.f32 %v4902_v45, %v4766_v56  ;;  %v5217_v47 = vsel %vm1955_vm5, %v15494_v25, %v5216_v7  ;;  %v5679_v22 = vmul.f32 %v8962_v58, %v13451_v55  ;;  %v4826_v53 = vmul.f32 %v8961_v31, %v13210_v39  ;;  %v4429_v45 = vld [vmem:[#allocation4] sm:$0xff] }
 0x4ef   : > { %v6147_v41 = vadd.f32 %v6062_v63, %v5902_v36  ;;  %v6322_v3 = vld [vmem:[#allocation5 + $0x90] sm:$0xff]  ;;  %v5609_v5 = vmul.f32 %v13523_v9, %v13178_v26  ;;  %v4693_v15 = vrot.slane %v4581_v40, 1  ;;  %v5141_v10 = vmul.f32 %v13480_v35, %v13222_v27 }
 0x4f0   : > { %v5081_v43 = vadd.f32 %v5049_v6, %v5011_v24  ;;  %8445 = vmatprep.subr.mxu0 %v6322_v3  ;;  %v13685_v49 = vmul.f32 %v13515_v32, %v13178_v26  ;;  %v5924_v7 = vmul.f32 %v8962_v58, %v13515_v32  ;;  %v4504_v23 = vmul.f32 %v8961_v31, %v13205_v29 }
 0x4f1   : > { %v6186_v50 = vmul.f32 %v13680_v19, %v6147_v41  ;;  %v5774_v12 = vrot.slane %v13667_v57, 1  ;;  %v4695_v8 = vsel %vm1955_vm5, %v4693_v15, %v4694_v16  ;;  %v4938_v46 = vrot.slane %v4826_v53, 2  ;;  %v8965_v41 = vld [vmem:[#allocation4 + $0x18] sm:$0xff] }
 0x4f2   : > { %v5326_v18 = vadd.f32 %v5217_v47, %v5081_v43  ;;  %v5776_v30 = vrot.slane %v5679_v22, 1  ;;  %v4781_v56 = vadd.f32 %v4695_v8, %v4504_v23  ;;  %v5064_v26 = vmul.f32 %v13480_v35, %v13298_v1 }
 0x4f3   : > { %v6225_v6 = vadd.f32 %v13694_v44, %v6186_v50  ;;  %v4940_v24 = vsel %vm1350_vm1, %v4938_v46, %v4939_v0  ;;  %v5253_v33 = vrot.slane %v5141_v10, 1  ;;  %v5386_v16 = vmul.f32 %v13480_v35, %v13235_v4 }
 0x4f4   : > { %v6306_v36 = vld [vmem:[#allocation5 + $0x10] sm:$0xff]  ;;  %v5571_v63 = vadd.f32 %v5462_v20, %v5326_v18  ;;  %v6019_v47 = vrot.slane %v13685_v49, 2  ;;  %v6021_v31 = vrot.slane %v5924_v7, 2  ;;  %v5026_v40 = vadd.f32 %v4940_v24, %v4781_v56  ;;  %v6336_v49 = vld [vmem:[%s15447_s16] sm:$0xff] }
 0x4f5   : > { %8446 = vmatpush3.msra.mxu0 %v6306_v36  ;;  %v6257_v25 = vmax.f32 %v6225_v6, 0.0  ;;  %v5117_v58 = vmul.f32 %v8965_v41, %v13222_v27  ;;  %v5255_v17 = vsel %vm1955_vm5, %v5253_v33, %v5254_v37  ;;  %v4557_v0 = vmul.f32 %v13198_v42, %v4429_v45 }
 0x4f6   : > { %v5641_v22 = vadd.f32 %v5609_v5, %v5571_v63  ;;  %v5777_v35 = vsel %vm1955_vm5, %v5774_v12, %v5776_v30  ;;  %v5096_v20 = vadd.f32 %v5064_v26, %v5026_v40  ;;  %v4488_v53 = vmul.f32 %v13205_v29, %v4429_v45 }
 0x4f7   : > { %6289 = vst.msk [vmem:[#allocation5 + $0x88] sm:$0xff] %vm4325_vm6, %v6257_v25  ;;  %v4802_v3 = vmul.f32 %v13210_v39, %v4429_v45  ;;  %v5498_v27 = vrot.slane %v5386_v16, 2  ;;  %v5701_v28 = vmul.f32 %v13451_v55, %v13257_v51  ;;  %v4653_v5 = vrot.slane %v4557_v0, 1  ;;  %v6339_v0 = vld [vmem:[%s15447_s16 + $0x18] sm:$0xff] }
 0x4f8   : > { %v5886_v43 = vadd.f32 %v5777_v35, %v5641_v22  ;;  %v5048_v37 = vmul.f32 %v8965_v41, %v13298_v1  ;;  %v6022_v42 = vsel %vm1350_vm1, %v6019_v47, %v6021_v31  ;;  %v5341_v15 = vadd.f32 %v5255_v17, %v5096_v20  ;;  %v6340_v20 = vld [vmem:[%s15447_s16 + $0x20] sm:$0xff] }
 0x4f9   : > { %v4898_v10 = vrot.slane %v4802_v3, 2  ;;  %v5500_v29 = vsel %vm1350_vm1, %v5498_v27, %v5499_v2  ;;  %v5946_v39 = vmul.f32 %v13515_v32, %v13257_v51  ;;  %v4655_v7 = vsel %vm1955_vm5, %v4653_v5, %v4654_v21  ;;  %v6342_v3 = vld [vmem:[%s15447_s16 + $0x30] sm:$0xff]  ;;  %v6344_v27 = vld [vmem:[%s15447_s16 + $0x40] sm:$0xff] }
 0x4fa   : > { %v6131_v50 = vadd.f32 %v6022_v42, %v5886_v43  ;;  %v5586_v23 = vadd.f32 %v5500_v29, %v5341_v15  ;;  %v5624_v1 = vmul.f32 %v13523_v9, %v13257_v51  ;;  %v4765_v18 = vadd.f32 %v4655_v7, %v4488_v53  ;;  %v6343_v53 = vld [vmem:[%s15447_s16 + $0x38] sm:$0xff]  ;;  %v6345_v43 = vld [vmem:[%s15447_s16 + $0x48] sm:$0xff]  ;;  %v6346_v5 = vld [vmem:[%s15447_s16 + $0x50] sm:$0xff] }
 0x4fb   : > { %v4900_v8 = vsel %vm1350_vm1, %v4898_v10, %v4899_v62  ;;  %v5213_v46 = vrot.slane %v5117_v58, 1  ;;  %v5362_v13 = vmul.f32 %v8965_v41, %v13235_v4  ;;  %v5813_v6 = vrot.slane %v5701_v28, 1  ;;  %v6347_v28 = vld [vmem:[%s15447_s16 + $0x58] sm:$0xff]  ;;  %v6348_v42 = vld [vmem:[%s15447_s16 + $0x60] sm:$0xff]  ;;  %v6350_v10 = vld [vmem:[%s15447_s16 + $0x70] sm:$0xff] }
 0x4fc   : > { %v6170_v2 = vmul.f32 %v13680_v19, %v6131_v50  ;;  %v5656_v30 = vadd.f32 %v5624_v1, %v5586_v23  ;;  %v5010_v56 = vadd.f32 %v4900_v8, %v4765_v18  ;;  %v6058_v26 = vrot.slane %v5946_v39, 2  ;;  %v6351_v15 = vld [vmem:[%s15447_s16 + $0x78] sm:$0xff]  ;;  %v8834_v29 = vld [vmem:[%s15497_s22 + $0x10] sm:$0xff]   ;;  %v8835_v39 = vld [vmem:[%s15497_s22 + $0x8] sm:$0xff]  }
 0x4fd   : > { %v5815_v51 = vsel %vm1955_vm5, %v5813_v6, %v5814_v14  ;;  %v15495_v38 = vrot.slane %v15493_v52, 1  ;;  %v5458_v36 = vrot.slane %v5362_v13, 2  ;;  %v5677_v33 = vmul.f32 %v13451_v55, %v13304_v61  ;;  %v8833_v50 = vld [vmem:[%s15497_s22 + $0x18] sm:$0xff]   ;;  %v8836_v7 = vld [vmem:[%s15497_s22] sm:$0xff]  }
 0x4fe   : > { %v6321_v60 = vld [vmem:[#allocation5 + $0x88] sm:$0xff]  ;;  %v6209_v21 = vadd.f32 %v13694_v44, %v6170_v2  ;;  %v5901_v45 = vadd.f32 %v5815_v51, %v5656_v30  ;;  %v5080_v4 = vadd.f32 %v5048_v37, %v5010_v56  ;;  %v6060_v24 = vsel %vm1350_vm1, %v6058_v26, %v6059_v59 }
 0x4ff   : > { %v5215_v62 = vsel %vm1955_vm5, %v5213_v46, %v15495_v38  ;;  %8447 = vmatprep.subr.mxu0 %v6321_v60  ;;  %v5460_v14 = vsel %vm1350_vm1, %v5458_v36, %v5459_v11  ;;  %v5922_v52 = vmul.f32 %v13515_v32, %v13304_v61  ;;  %v5608_v54 = vmul.f32 %v13523_v9, %v13304_v61  ;;  %v6349_v37 = vld [vmem:[%s15447_s16 + $0x68] sm:$0xff] }
 0x500   : > { %v6241_v63 = vmax.f32 %v6209_v21, 0.0  ;;  %v6146_v48 = vadd.f32 %v6060_v24, %v5901_v45  ;;  %v5325_v16 = vadd.f32 %v5215_v62, %v5080_v4  ;;  %v5773_v59 = vrot.slane %v5677_v33, 1 }
 0x501   : > { %v6018_v41 = vrot.slane %v5922_v52, 2  ;;  %v15496_v35 = vmov 0.0  }
 0x502   : > { %6273 = vst.msk [vmem:[#allocation5 + $0x8] sm:$0xff] %vm4325_vm6, %v6241_v63  ;;  %v6185_v25 = vmul.f32 %v13680_v19, %v6146_v48  ;;  %v5570_v31 = vadd.f32 %v5460_v14, %v5325_v16  ;;  %v5775_v34 = vsel %vm1955_vm5, %v5773_v59, %v5774_v12 }
 0x503   : > { %v6020_v32 = vsel %vm1350_vm1, %v6018_v41, %v6019_v47  ;;  %6911 = vst.msk [vmem:[#allocation6 + $0x8] sm:$0x3] %vm6910_vm12, %v15496_v35  ;;  %6917 = vst.msk [vmem:[#allocation6 + $0x38] sm:$0x3] %vm6910_vm12, %v15496_v35 }
 0x504   : > { %v6224_v55 = vadd.f32 %v13694_v44, %v6185_v25  ;;  %v5640_v40 = vadd.f32 %v5608_v54, %v5570_v31  ;;  %6916 = vst.msk [vmem:[#allocation6 + $0x30] sm:$0xff] %vm6908_vm11, %v15496_v35  ;;  %6909 = vst.msk [vmem:[#allocation6] sm:$0xff] %vm6908_vm11, %v15496_v35 }
 0x505   : > { %6929 = vst.msk [vmem:[#allocation6 + $0x98] sm:$0x3] %vm6910_vm12, %v15496_v35  ;;  %6913 = vst.msk [vmem:[#allocation6 + $0x18] sm:$0x3] %vm6910_vm12, %v15496_v35 }
 0x506   : > { %v6256_v11 = vmax.f32 %v6224_v55, 0.0  ;;  %v5885_v58 = vadd.f32 %v5775_v34, %v5640_v40  ;;  %6912 = vst.msk [vmem:[#allocation6 + $0x10] sm:$0xff] %vm6908_vm11, %v15496_v35  ;;  %6914 = vst.msk [vmem:[#allocation6 + $0x20] sm:$0xff] %vm6908_vm11, %v15496_v35 }
 0x507   : > { %6915 = vst.msk [vmem:[#allocation6 + $0x28] sm:$0x3] %vm6910_vm12, %v15496_v35  ;;  %6919 = vst.msk [vmem:[#allocation6 + $0x48] sm:$0x3] %vm6910_vm12, %v15496_v35 }
 0x508   : > { %6288 = vst.msk [vmem:[#allocation5 + $0x80] sm:$0xff] %vm4325_vm6, %v6256_v11  ;;  %v6130_v61 = vadd.f32 %v6020_v32, %v5885_v58 }
 0x509   : > { %v6305_v22 = vld [vmem:[#allocation5 + $0x8] sm:$0xff]  ;;  %6918 = vst.msk [vmem:[#allocation6 + $0x40] sm:$0xff] %vm6908_vm11, %v15496_v35  ;;  %6920 = vst.msk [vmem:[#allocation6 + $0x50] sm:$0xff] %vm6908_vm11, %v15496_v35 }
 0x50a   : > { %8448 = vmatpush3.msra.mxu0 %v6305_v22  ;;  %v6169_v9 = vmul.f32 %v13680_v19, %v6130_v61  ;;  %v6338_v19 = vld [vmem:[%s15447_s16 + $0x10] sm:$0xff]  ;;  %6921 = vst.msk [vmem:[#allocation6 + $0x58] sm:$0x3] %vm6910_vm12, %v15496_v35  ;;  %6923 = vst.msk [vmem:[#allocation6 + $0x68] sm:$0x3] %vm6910_vm12, %v15496_v35 }
 0x50b   : > { %6922 = vst.msk [vmem:[#allocation6 + $0x60] sm:$0xff] %vm6908_vm11, %v15496_v35  ;;  %6924 = vst.msk [vmem:[#allocation6 + $0x70] sm:$0xff] %vm6908_vm11, %v15496_v35 }
 0x50c   : > { %v6208_v57 = vadd.f32 %v13694_v44, %v6169_v9  ;;  %v6341_v44 = vld [vmem:[%s15447_s16 + $0x28] sm:$0xff]  ;;  %6925 = vst.msk [vmem:[#allocation6 + $0x78] sm:$0x3] %vm6910_vm12, %v15496_v35  ;;  %6927 = vst.msk [vmem:[#allocation6 + $0x88] sm:$0x3] %vm6910_vm12, %v15496_v35 }
 0x50d   : > { %6926 = vst.msk [vmem:[#allocation6 + $0x80] sm:$0xff] %vm6908_vm11, %v15496_v35  ;;  %6928 = vst.msk [vmem:[#allocation6 + $0x90] sm:$0xff] %vm6908_vm11, %v15496_v35 }
 0x50e   : > { %v6240_v12 = vmax.f32 %v6208_v57, 0.0 }
 0x50f   : > { %v6320_v17 = vld [vmem:[#allocation5 + $0x80] sm:$0xff] }
 0x510   : > { %8449 = vmatprep.subr.mxu0 %v6320_v17  ;;  %6272 = vst.msk [vmem:[#allocation5] sm:$0xff] %vm4325_vm6, %v6240_v12 }
 0x517   : > { %v6304_v47 = vld [vmem:[#allocation5] sm:$0xff] }
 0x518   : > { %8450 = vmatpush3.msra.mxu0 %v6304_v47 }
 0x519   : > { %6417 = vmatmul.mubr.f32.vlgmr.msra.gmra.mxu0 %v6336_v49  ;;  %8630 = vmatprep.subr.bf16.mxu0 %v15496_v35 }
 0x51a   : > { %6421 = vmatprep.mubr.f32.mxu0 %v6339_v0  ;;  %8631 = vmatpush3.bf16.msra.mxu0 %v8833_v50  ;;  %v8841_v50 = vld [vmem:[%s15500_s5] sm:$0xff]  }
 0x51b   : > { %8632 = vmatprep.subr.bf16.mxu0 %v15496_v35 }
 0x51d   : > { %6422 = vmatmul.mubr.f32.gmra.mxu0 %v6338_v19 }
 0x51e   : > { %6426 = vmatprep.mubr.f32.mxu0 %v6341_v44  ;;  %8633 = vmatpush3.bf16.msra.mxu0 %v8834_v29  ;;  %v8837_v44 = vld [vmem:[%s15498_s2] sm:$0xff]   ;;  %v8842_v29 = vld [vmem:[%s15501_s6 + $0x8] ss:$0 sps:$4 sm:$0xff]   ;;  %s15513_s2 = sld [smem:[#allocation34_spill]] }
 0x51f   : > { %8634 = vmatprep.subr.bf16.mxu0 %v15496_v35  ;;  %8744 = vmatprep.subr.msk.bf16.mxu1 %vm6801_vm9, %v8842_v29 }
 0x521   : > { %6427 = vmatmul.mubr.f32.gmra.mxu0 %v6340_v20  ;;  %v6489_v20 = vld [vmem:[%s15499_s3] sm:$0x1]  ;;  %s15503_s3 = sld [smem:[#allocation26_spill]] }
 0x522   : > { %6431 = vmatprep.mubr.f32.mxu0 %v6343_v53  ;;  %8635 = vmatpush3.bf16.msra.mxu0 %v8835_v39  ;;  %v6803_v39 = vsel %vm6801_vm9, %v8842_v29, 0 }
 0x523   : > { %8636 = vmatprep.subr.bf16.mxu0 %v15496_v35  ;;  %8665 = vmatpush3.bf16.msra.mxu1 %v6803_v39 }
 0x524   : > { %v8847_v29 = vld [vmem:[%s15513_s2 + $0x8] sm:$0xff]   ;;  %v8848_v39 = vld [vmem:[%s15513_s2] sm:$0xff]  }
 0x525   : > { %6432 = vmatmul.mubr.f32.gmra.mxu0 %v6342_v3 }
 0x526   : > { %6436 = vmatprep.mubr.f32.mxu0 %v6345_v43  ;;  %8637 = vmatpush3.bf16.msra.mxu0 %v8836_v7  ;;  %v6561_v7 = vld [vmem:[%s15502_s8] sm:$0x1]  ;;  %s15504_s8 = sld [smem:[#allocation27_spill]] }
 0x527   : > { %8642 = vmatprep.subr.bf16.mxu0 %v15496_v35 }
 0x529   : > { %6437 = vmatmul.mubr.f32.gmra.mxu0 %v6344_v27 }
 0x52a   : > { %6441 = vmatprep.mubr.f32.mxu0 %v6347_v28 }
 0x52d   : > { %6442 = vmatmul.mubr.f32.gmra.mxu0 %v6346_v5 }
 0x52e   : > { %6446 = vmatprep.mubr.f32.mxu0 %v6349_v37 }
 0x531   : > { %6447 = vmatmul.mubr.f32.gmra.mxu0 %v6348_v42  ;;  %v8838_v42 = vld [vmem:[%s15500_s5 + $0x18] sm:$0xff]  }
 0x532   : > { %6451 = vmatprep.mubr.f32.mxu0 %v6351_v15  ;;  %v8839_v15 = vld [vmem:[%s15500_s5 + $0x10] sm:$0xff]  }
 0x535   : > { %6452 = vmatmul.mubr.f32.gmra.mxu0 %v6350_v10  ;;  %v8840_v10 = vld [vmem:[%s15500_s5 + $0x8] sm:$0xff]   ;;  %s15516_s5 = sld [smem:[#allocation31_spill]] }
 0x536   : > { %8638 = vmatprep.mubr.msk.bf16.mxu0 %vm9071_vm8, %v15496_v35 }
 0x5d9   : > { %v8451_v23 = vpop.f32.mrf.mxu0 }
 0x5db   : > { %v8452_v1 = vpop.f32.mrf.mxu0 }
 0x5dc   : > { %v13797_v60 = vadd.f32 %v8452_v1, %v8451_v23 }
 0x5dd   : > { %v8454_v18 = vpop.f32.mrf.mxu0 }
 0x5de   : > { %v6457_v45 = vsel %vm4325_vm6, %v13797_v60, 0.0 }
 0x5df   : > { %v8455_v8 = vpop.f32.mrf.mxu0 }
 0x5e0   : > { %v13795_v30 = vadd.f32 %v8455_v8, %v8454_v18 }
 0x5e1   : > { %v8457_v46 = vpop.f32.mrf.mxu0 }
 0x5e2   : > { %v6458_v26 = vsel %vm4325_vm6, %v13795_v30, 0.0 }
 0x5e3   : > { %v8458_v13 = vpop.f32.mrf.mxu0  ;;  %v6459_v63 = vadd.f32 %v6458_v26, %v6457_v45 }
 0x5e4   : > { %v13799_v21 = vadd.f32 %v8458_v13, %v8457_v46 }
 0x5e5   : > { %v8460_v2 = vpop.f32.mrf.mxu0 }
 0x5e6   : > { %v6460_v4 = vsel %vm4325_vm6, %v13799_v21, 0.0 }
 0x5e7   : > { %v8461_v6 = vpop.f32.mrf.mxu0  ;;  %v6461_v16 = vadd.f32 %v6460_v4, %v6459_v63 }
 0x5e8   : > { %v13803_v38 = vadd.f32 %v8461_v6, %v8460_v2 }
 0x5e9   : > { %v8463_v56 = vpop.f32.mrf.mxu0 }
 0x5ea   : > { %v6462_v33 = vsel %vm4325_vm6, %v13803_v38, 0.0 }
 0x5eb   : > { %v8464_v51 = vpop.f32.mrf.mxu0  ;;  %v6463_v25 = vadd.f32 %v6462_v33, %v6461_v16 }
 0x5ec   : > { %v13809_v36 = vadd.f32 %v8464_v51, %v8463_v56  ;;  %v6617_v56 = vlaneseq }
 0x5ed   : > { %v8466_v62 = vpop.f32.mrf.mxu0 }
 0x5ee   : > { %v6464_v52 = vsel %vm4325_vm6, %v13809_v36, 0.0  ;;  %v13842_v51 = vshrl.u32 %v6617_v56, 7 }
 0x5ef   : > { %v8467_v24 = vpop.f32.mrf.mxu0  ;;  %v6465_v55 = vadd.f32 %v6464_v52, %v6463_v25 }
 0x5f0   : > { %v13813_v48 = vadd.f32 %v8467_v24, %v8466_v62  ;;  %v14787_v26 = vsub.s32 0, %v13842_v51 }
 0x5f1   : > { %v8469_v14 = vpop.f32.mrf.mxu0 }
 0x5f2   : > { %v6466_v54 = vsel %vm4325_vm6, %v13813_v48, 0.0 }
 0x5f3   : > { %v8470_v31 = vpop.f32.mrf.mxu0  ;;  %v6467_v41 = vadd.f32 %v6466_v54, %v6465_v55  ;;  %v8304_v54 = vld [vmem:[%s15503_s3] ss:$0 sm:$0xff]  ;;  %s15514_s3 = sld [smem:[#allocation29_spill]] }
 0x5f4   : > { %v13819_v59 = vadd.f32 %v8470_v31, %v8469_v14 }
 0x5f5   : > { %v8472_v40 = vpop.f32.mrf.mxu0 }
 0x5f6   : > { %v6468_v34 = vsel %vm4325_vm6, %v13819_v59, 0.0 }
 0x5f7   : > { %v8473_v11 = vpop.f32.mrf.mxu0  ;;  %v6469_v32 = vadd.f32 %v6468_v34, %v6467_v41 }
 0x5f8   : > { %v13823_v58 = vadd.f32 %v8473_v11, %v8472_v40  ;;  %v8305_v11 = vld [vmem:[%s15504_s8] ss:$0 sm:$0xff]  ;;  %s15515_s8 = sld [smem:[#allocation30_spill]] }
 0x5fa   : > { %v6470_v22 = vsel %vm4325_vm6, %v13823_v58, 0.0 }
 0x5fb   : > { %v6471_v61 = vadd.f32 %v6470_v22, %v6469_v32 }
 0x5fd   : > { %v6472_v9 = vrot.slane %v6471_v61, 4 }
 0x5ff   : > { %v6473_v57 = vadd.f32 %v6472_v9, %v6471_v61 }
 0x601   : > { %v6474_v12 = vrot.slane %v6473_v57, 2 }
 0x603   : > { %v6475_v17 = vadd.f32 %v6474_v12, %v6473_v57 }
 0x605   : > { %v6476_v49 = vrot.slane %v6475_v17, 1 }
 0x607   : > { %v6477_v47 = vadd.f32 %v6476_v49, %v6475_v17 }
 0x609   : > { %v6479_v0 = vmul.f32 0.015625, %v6477_v47 }
 0x60b   : > { %v6480_v19 = vpack.c.bf16 %v6479_v0, %v6479_v0 }
 0x60d   : > { %8639 = vmatmul.mubr.msk.bf16.vlgmr.msra.gmra.mxu0 %vm4325_vm6, %v6480_v19 }
 0x60e   : > { %8644 = vmatprep.mubr.msk.bf16.mxu0 %vm9071_vm8, %v15496_v35  ;;  %8643 = vmatpush3.bf16.msra.mxu0 %v8837_v44 }
 0x60f   : > { %8648 = vmatprep.subr.bf16.mxu0 %v8838_v42 }
 0x6cd   : > { %v6551_v53 = vpop.f32.mrf.mxu0 }
 0x6ce   : > { %v6552_v3 = vadd.f32 %v6551_v53, %v6489_v20 }
 0x6cf   : > { %v8640_v43 = vpop.f32.mrf.mxu0 }
 0x6d0   : > { %v6557_v27 = vmax.f32 %v6552_v3, 0.0 }
 0x6d1   : > { %v6554_v28 = vpop.f32.mrf.mxu0 }
 0x6d2   : > { %v6558_v5 = vpack.c.bf16 %v6557_v27, %v6557_v27 }
 0x6d3   : > { %v8641_v37 = vpop.f32.mrf.mxu0 }
 0x6d4   : > { %8645 = vmatmul.mubr.msk.bf16.vlgmr.msra.gmra.mxu0 %vm1627_vm3, %v6558_v5 }
 0x6d5   : > { %8649 = vmatpush3.bf16.msra.mxu0 %v8838_v42  ;;  %v8844_v42 = vld [vmem:[%s15513_s2 + $0x20] ss:$0 sps:$4 sm:$0xff]  }
 0x6d6   : > { %8650 = vmatprep.subr.bf16.mxu0 %v8839_v15 }
 0x6d9   : > { %8651 = vmatpush3.bf16.msra.mxu0 %v8839_v15  ;;  %v7611_v15 = vsel %vm6801_vm9, %v8844_v42, 0 }
 0x6da   : > { %8652 = vmatprep.subr.bf16.mxu0 %v8840_v10 }
 0x6dd   : > { %8653 = vmatpush3.bf16.msra.mxu0 %v8840_v10  ;;  %v8845_v10 = vld [vmem:[%s15513_s2 + $0x18] sm:$0xff]  }
 0x6de   : > { %8654 = vmatprep.subr.bf16.mxu0 %v8841_v50 }
 0x6e1   : > { %8655 = vmatpush3.bf16.msra.mxu0 %v8841_v50  ;;  %v8846_v50 = vld [vmem:[%s15513_s2 + $0x10] sm:$0xff]   ;;  %s15526_s2 = sld [smem:[#allocation38_spill]] }
 0x6e2   : > { %8676 = vmatprep.subr.bf16.mxu0 %v15496_v35 }
 0x794   : > { %v6605_v23 = vpop.f32.mrf.mxu0 }
 0x795   : > { %v6606_v1 = vadd.f32 %v6605_v23, %v6561_v7  ;;  %v13946_v7 = vld [vmem:[%s15514_s3] ss:$0 sm:$0xff]  ;;  %s15517_s3 = sld [smem:[#allocation32_spill]] }
 0x796   : > { %v8646_v18 = vpop.f32.mrf.mxu0 }
 0x797   : > { %v8295_v8 = vmul.f32 -1.442695, %v6606_v1  ;;  %v13949_v1 = vld [vmem:[%s15515_s8] ss:$0 sm:$0xff]  ;;  %s15518_s8 = sld [smem:[#allocation33_spill]] }
 0x798   : > { %v6608_v46 = vpop.f32.mrf.mxu0 }
 0x799   : > { %8866 = vpow2.f32 %v8295_v8  ;;  %v13954_v8 = vld [vmem:[%s15516_s5 + $0x1] ss:$0 sm:$0xff] }
 0x79a   : > { %v8647_v13 = vpop.f32.mrf.mxu0  ;;  %v6946_v46 = vld [vmem:[#allocation6] sm:$0xff] }
 0x7a6   : > { %v8867_v2 = vpop.eup %8866 }
 0x7a7   : > { %v6614_v6 = vadd.f32 1.0, %v8867_v2  ;;  %v6947_v2 = vld [vmem:[#allocation6 + $0x8] sm:$0x3] }
 0x7a9   : > { %8868 = vrcp.f32 %v6614_v6 }
 0x7b6   : > { %v8869_v62 = vpop.eup %8868 }
 0x7b7   : > { %v6620_v45 = vrot.slane %v8869_v62, %v14787_v26  ;;  %v6992_v62 = vmul.f32 %v13954_v8, %v6946_v46 }
 0x7b9   : > { %v6621_v4 = vmul.f32 %v13797_v60, %v6620_v45  ;;  %v6622_v63 = vmul.f32 %v13795_v30, %v6620_v45  ;;  %v6623_v24 = vmul.f32 %v13799_v21, %v6620_v45  ;;  %v6624_v33 = vmul.f32 %v13803_v38, %v6620_v45  ;;  %v8843_v38 = vld [vmem:[%s15501_s6] sm:$0xff]  }
 0x7ba   : > { %v6625_v16 = vmul.f32 %v13809_v36, %v6620_v45  ;;  %v6626_v14 = vmul.f32 %v13813_v48, %v6620_v45  ;;  %v6627_v30 = vmul.f32 %v13819_v59, %v6620_v45  ;;  %v6628_v60 = vmul.f32 %v13823_v58, %v6620_v45  ;;  %8666 = vmatprep.subr.bf16.mxu1 %v8843_v38 }
 0x7bb   : > { %v6629_v52 = vpack.c.bf16 %v6622_v63, %v6621_v4  ;;  %v6630_v25 = vpack.c.bf16 %v6624_v33, %v6623_v24  ;;  %8667 = vmatpush3.bf16.msra.mxu1 %v8843_v38  ;;  %v13960_v63 = vld [vmem:[%s15516_s5 + $0x2] ss:$0 sm:$0xff]  ;;  %v6993_v33 = vmul.f32 %v13954_v8, %v6947_v2 }
 0x7bc   : > { %v6631_v31 = vpack.c.bf16 %v6626_v14, %v6625_v16  ;;  %v6632_v21 = vpack.c.bf16 %v6628_v60, %v6627_v30  ;;  %8716 = vmatprep.subr.bf16.mxu1 %v15496_v35  ;;  %v7024_v30 = vrot.slane %v6992_v62, 1  ;;  %v7069_v60 = vmul.f32 %v13960_v63, %v6946_v46  ;;  %v14017_v62 = vld [vmem:[%s15516_s5 + $0x6] ss:$0 sm:$0xff] }
 0x7bd   : > { %8656 = vmatprep.mubr.msk.bf16.mxu0 %vm4325_vm6, %v6629_v52 }
 0x7be   : > { %8657 = vmatmul.mubr.msk.bf16.vlgmr.msra.gmra.mxu0 %vm4325_vm6, %v6630_v25 }
 0x7bf   : > { %8660 = vmatprep.mubr.msk.bf16.mxu0 %vm4325_vm6, %v6631_v31  ;;  %8677 = vmatpush3.bf16.msra.mxu0 %v7611_v15 }
 0x7c0   : > { %8678 = vmatprep.subr.bf16.mxu0 %v15496_v35 }
 0x7c3   : > { %8679 = vmatpush3.bf16.msra.mxu0 %v8845_v10 }
 0x7c4   : > { %8680 = vmatprep.subr.bf16.mxu0 %v15496_v35 }
 0x7c6   : > { %8661 = vmatmul.mubr.msk.bf16.gmra.mxu0 %vm4325_vm6, %v6632_v21  ;;  %v7070_v21 = vmul.f32 %v13960_v63, %v6947_v2  ;;  %v14007_v2 = vld [vmem:[%s15516_s5 + $0x8] ss:$0 sm:$0xff] }
 0x7c7   : > { %8686 = vmatprep.mubr.msk.bf16.mxu0 %vm9071_vm8, %v15496_v35  ;;  %8681 = vmatpush3.bf16.msra.mxu0 %v8846_v50 }
 0x7c8   : > { %8682 = vmatprep.subr.bf16.mxu0 %v15496_v35 }
 0x7cb   : > { %8683 = vmatpush3.bf16.msra.mxu0 %v8847_v29 }
 0x7cc   : > { %8684 = vmatprep.subr.bf16.mxu0 %v15496_v35 }
 0x7cf   : > { %8685 = vmatpush3.bf16.msra.mxu0 %v8848_v39 }
 0x7d0   : > { %8690 = vmatprep.subr.bf16.mxu0 %v15496_v35 }
 0x87e   : > { %v8658_v36 = vpop.f32.mrf.mxu0 }
 0x87f   : > { %v6751_v34 = vmul.f32 %v8658_v36, %v8304_v54  ;;  %v13971_v36 = vld [vmem:[%s15516_s5] ss:$0 sm:$0xff] }
 0x880   : > { %v6711_v48 = vpop.f32.mrf.mxu0 }
 0x881   : > { %v6749_v40 = vmul.f32 %v8304_v54, %v6711_v48  ;;  %v13871_v57 = vadd.f32 %v8305_v11, %v6751_v34  ;;  %v7025_v48 = vrot.slane %v6993_v33, 1  ;;  %v6965_v34 = vld [vmem:[#allocation6 + $0x98] sm:$0x3] }
 0x882   : > { %v8659_v55 = vpop.f32.mrf.mxu0 }
 0x883   : > { %v6752_v59 = vmul.f32 %v8659_v55, %v8304_v54  ;;  %v13867_v61 = vadd.f32 %v8305_v11, %v6749_v40  ;;  %15508 = vst [vmem:[#allocation153_spill] sm:$0xff] %v13871_v57 }
 0x884   : > { %v6714_v41 = vpop.f32.mrf.mxu0 }
 0x885   : > { %v6750_v58 = vmul.f32 %v8304_v54, %v6714_v41  ;;  %v13865_v32 = vadd.f32 %v8305_v11, %v6752_v59  ;;  %15506 = vst [vmem:[#allocation148_spill] sm:$0xff] %v13867_v61  ;;  %v6964_v59 = vld [vmem:[#allocation6 + $0x90] sm:$0xff] }
 0x886   : > { %v8662_v22 = vpop.f32.mrf.mxu0 }
 0x887   : > { %15505 = vst [vmem:[#allocation147_spill] sm:$0xff] %v13865_v32  ;;  %v13869_v9 = vadd.f32 %v8305_v11, %v6750_v58  ;;  %v6773_v49 = vpack.c.bf16 %v13865_v32, %v13871_v57  ;;  %v6755_v44 = vmul.f32 %v8662_v22, %v8304_v54  ;;  %v13979_v58 = vld [vmem:[%s15516_s5 + $0x9] ss:$0 sm:$0xff]  ;;  %v6971_v22 = vmul.f32 %v13971_v36, %v6946_v46 }
 0x888   : > { %v6727_v12 = vpop.f32.mrf.mxu0 }
 0x889   : > { %15507 = vst [vmem:[#allocation152_spill] sm:$0xff] %v13869_v9  ;;  %v6772_v17 = vpack.c.bf16 %v13869_v9, %v13867_v61  ;;  %v6753_v0 = vmul.f32 %v8304_v54, %v6727_v12  ;;  %v13885_v28 = vadd.f32 %v8305_v11, %v6755_v44  ;;  %v7101_v12 = vrot.slane %v7069_v60, 2 }
 0x88a   : > { %v8663_v47 = vpop.f32.mrf.mxu0 }
 0x88b   : > { %v6756_v19 = vmul.f32 %v8663_v47, %v8304_v54  ;;  %8668 = vmatprep.mubr.msk.bf16.mxu1 %vm6788_vm10, %v6772_v17  ;;  %v13881_v43 = vadd.f32 %v8305_v11, %v6753_v0  ;;  %15512 = vst [vmem:[#allocation146_spill] sm:$0xff] %v13885_v28  ;;  %v7102_v17 = vrot.slane %v7070_v21, 2  ;;  %v7358_v0 = vmul.f32 %v13979_v58, %v6964_v59 }
 0x88c   : > { %v6730_v20 = vpop.f32.mrf.mxu0  ;;  %8669 = vmatmul.mubr.msk.bf16.vlgmr.msra.gmra.mxu1 %vm6788_vm10, %v6773_v49  ;;  %v7026_v49 = vsel %vm1955_vm5, %v7024_v30, %v7025_v48 }
 0x88d   : > { %v6754_v53 = vmul.f32 %v8304_v54, %v6730_v20  ;;  %v13879_v3 = vadd.f32 %v8305_v11, %v6756_v19  ;;  %15510 = vst [vmem:[#allocation145_spill] sm:$0xff] %v13881_v43  ;;  %v7359_v19 = vmul.f32 %v13979_v58, %v6965_v34  ;;  %v7103_v42 = vsel %vm1350_vm1, %v7101_v12, %v7102_v17  ;;  %v14044_v12 = vld [vmem:[%s15516_s5 + $0x4] ss:$0 sm:$0xff] }
 0x88e   : > { %v7397_v15 = vrot.slane %v7358_v0, 1 }
 0x88f   : > { %15509 = vst [vmem:[#allocation149_spill] sm:$0xff] %v13879_v3  ;;  %v13883_v27 = vadd.f32 %v8305_v11, %v6754_v53  ;;  %v6775_v37 = vpack.c.bf16 %v13879_v3, %v13885_v28  ;;  %v7398_v10 = vrot.slane %v7359_v19, 1 }
 0x891   : > { %15511 = vst [vmem:[#allocation151_spill] sm:$0xff] %v13883_v27  ;;  %v6774_v5 = vpack.c.bf16 %v13883_v27, %v13881_v43 }
 0x893   : > { %8672 = vmatprep.mubr.msk.bf16.mxu1 %vm6788_vm10, %v6774_v5  ;;  %v13990_v5 = vld [vmem:[%s15516_s5 + $0xa] ss:$0 sm:$0xff] }
 0x894   : > { %8673 = vmatmul.mubr.msk.bf16.gmra.mxu1 %vm6788_vm10, %v6775_v37  ;;  %v7056_v37 = vadd.f32 %v7026_v49, %v6971_v22  ;;  %v13994_v50 = vmul.f32 %v13990_v5, %v6964_v59  ;;  %v13997_v29 = vmul.f32 %v13990_v5, %v6965_v34 }
 0x895   : > { %8720 = vmatprep.mubr.msk.bf16.mxu1 %vm9071_vm8, %v15496_v35 }
 0x94c   : > { %v8670_v23 = vpop.f32.mrf.mxu1 }
 0x94d   : > { %v6879_v18 = vmul.f32 %v8670_v23, %v13946_v7 }
 0x94e   : > { %v6839_v13 = vpop.f32.mrf.mxu1 }
 0x94f   : > { %v6894_v6 = vadd.f32 %v13949_v1, %v6879_v18  ;;  %v6877_v56 = vmul.f32 %v13946_v7, %v6839_v13  ;;  %v14003_v18 = vld [vmem:[%s15516_s5 + $0x5] ss:$0 sm:$0xff]  ;;  %s15527_s5 = sld [smem:[#allocation37_spill]] }
 0x950   : > { %v8671_v45 = vpop.f32.mrf.mxu1 }
 0x951   : > { %v6902_v4 = vmax.f32 %v6894_v6, 0.0  ;;  %v6892_v24 = vadd.f32 %v13949_v1, %v6877_v56  ;;  %v6880_v16 = vmul.f32 %v8671_v45, %v13946_v7 }
 0x952   : > { %v6842_v14 = vpop.f32.mrf.mxu1 }
 0x953   : > { %6935 = vst.msk [vmem:[#allocation6 + $0x31] sm:$0xff] %vm6908_vm11, %v6902_v4  ;;  %v6900_v52 = vmax.f32 %v6892_v24, 0.0  ;;  %v6895_v25 = vadd.f32 %v13949_v1, %v6880_v16  ;;  %v6878_v31 = vmul.f32 %v13946_v7, %v6842_v14  ;;  %v7133_v4 = vadd.f32 %v7103_v42, %v7056_v37 }
 0x954   : > { %v8674_v38 = vpop.f32.mrf.mxu1  ;;  %v14020_v24 = vmul.f32 %v14007_v2, %v6964_v59  ;;  %v14025_v16 = vsel %vm1955_vm5, %v7397_v15, %v7398_v10 }
 0x955   : > { %6931 = vst.msk [vmem:[#allocation6 + $0x11] sm:$0xff] %vm6908_vm11, %v6900_v52  ;;  %v6903_v54 = vmax.f32 %v6895_v25, 0.0  ;;  %v6893_v55 = vadd.f32 %v13949_v1, %v6878_v31  ;;  %v6883_v40 = vmul.f32 %v8674_v38, %v13946_v7 }
 0x956   : > { %v6855_v53 = vpop.f32.mrf.mxu1 }
 0x957   : > { %6937 = vst.msk [vmem:[#allocation6 + $0x41] sm:$0xff] %vm6908_vm11, %v6903_v54  ;;  %v6901_v41 = vmax.f32 %v6893_v55, 0.0  ;;  %v6898_v11 = vadd.f32 %v13949_v1, %v6883_v40  ;;  %v6881_v46 = vmul.f32 %v13946_v7, %v6855_v53 }
 0x959   : > { %6933 = vst.msk [vmem:[#allocation6 + $0x21] sm:$0xff] %vm6908_vm11, %v6901_v41  ;;  %v6906_v47 = vmax.f32 %v6898_v11, 0.0  ;;  %v14031_v60 = vadd.f32 %v13949_v1, %v6881_v46 }
 0x95a   : > { %v13986_v44 = vld [vmem:[#allocation6 + $0x30] sm:$0xff]  ;;  %v6953_v20 = vld [vmem:[#allocation6 + $0x38] sm:$0x3] }
 0x95b   : > { %6943 = vst.msk [vmem:[#allocation6 + $0x71] sm:$0xff] %vm6908_vm11, %v6906_v47  ;;  %v6998_v39 = vmul.f32 %v13954_v8, %v13986_v44  ;;  %v6999_v23 = vmul.f32 %v13954_v8, %v6953_v20  ;;  %v14011_v6 = vmul.f32 %v13960_v63, %v13986_v44  ;;  %v14014_v56 = vmul.f32 %v13960_v63, %v6953_v20 }
 0x95c   : > { %v6948_v13 = vld [vmem:[#allocation6 + $0x10] sm:$0xff]  ;;  %v6949_v45 = vld [vmem:[#allocation6 + $0x18] sm:$0x3]  ;;  %v7172_v33 = vmul.f32 %v14003_v18, %v13986_v44  ;;  %v6974_v21 = vmul.f32 %v13971_v36, %v13986_v44  ;;  %v7173_v38 = vmul.f32 %v14003_v18, %v6953_v20  ;;  %v7249_v48 = vmul.f32 %v14017_v62, %v13986_v44 }
 0x95d   : > { %v7033_v25 = vrot.slane %v6998_v39, 1  ;;  %v7034_v31 = vrot.slane %v6999_v23, 1  ;;  %v6994_v30 = vmul.f32 %v13954_v8, %v6948_v13  ;;  %v6995_v54 = vmul.f32 %v13954_v8, %v6949_v45 }
 0x95e   : > { %v7110_v55 = vrot.slane %v14011_v6, 2  ;;  %v7111_v40 = vrot.slane %v14014_v56, 2  ;;  %v7250_v59 = vmul.f32 %v14017_v62, %v6953_v20  ;;  %v7168_v34 = vmul.f32 %v14003_v18, %v6948_v13 }
 0x95f   : > { %v7206_v41 = vrot.slane %v7172_v33, 1  ;;  %v7027_v11 = vrot.slane %v6994_v30, 1  ;;  %v7028_v22 = vrot.slane %v6995_v54, 1  ;;  %v7169_v17 = vmul.f32 %v14003_v18, %v6949_v45 }
 0x960   : > { %v7035_v49 = vsel %vm1955_vm5, %v7033_v25, %v7034_v31  ;;  %v7346_v47 = vmul.f32 %v13979_v58, %v13986_v44  ;;  %v7347_v0 = vmul.f32 %v13979_v58, %v6953_v20  ;;  %v7147_v19 = vmul.f32 %v14044_v12, %v6948_v13  ;;  %v14060_v31 = vld [vmem:[#allocation6 + $0x40] sm:$0xff] }
 0x961   : > { %v7071_v53 = vmul.f32 %v13960_v63, %v6948_v13  ;;  %v7072_v37 = vmul.f32 %v13960_v63, %v6949_v45  ;;  %v7200_v42 = vrot.slane %v7168_v34, 1  ;;  %v7201_v15 = vrot.slane %v7169_v17, 1 }
 0x962   : > { %v7207_v10 = vrot.slane %v7173_v38, 1  ;;  %v7283_v39 = vrot.slane %v7249_v48, 2  ;;  %v7423_v23 = vmul.f32 %v13990_v5, %v13986_v44  ;;  %v7424_v46 = vmul.f32 %v13990_v5, %v6953_v20  ;;  %v14063_v48 = vld [vmem:[#allocation6 + $0x48] sm:$0x3] }
 0x963   : > { %v7284_v6 = vrot.slane %v7250_v59, 2  ;;  %v7029_v56 = vsel %vm1955_vm5, %v7027_v11, %v7028_v22  ;;  %v7245_v33 = vmul.f32 %v14017_v62, %v6948_v13  ;;  %v7246_v25 = vmul.f32 %v14017_v62, %v6949_v45  ;;  %v8675_v59 = vpop.f32.mrf.mxu1 }
 0x964   : > { %v7059_v30 = vadd.f32 %v7035_v49, %v6974_v21  ;;  %v7379_v54 = vrot.slane %v7346_v47, 1  ;;  %v6972_v34 = vmul.f32 %v13971_v36, %v6948_v13  ;;  %v7155_v38 = vadd.f32 %v7147_v19, %v7133_v4 }
 0x965   : > { %v7380_v17 = vrot.slane %v7347_v0, 1  ;;  %v7104_v26 = vrot.slane %v7071_v53, 2  ;;  %v7105_v14 = vrot.slane %v7072_v37, 2  ;;  %v7202_v20 = vsel %vm1955_vm5, %v7200_v42, %v7201_v15 }
 0x966   : > { %v7456_v11 = vrot.slane %v7423_v23, 2  ;;  %v7457_v22 = vrot.slane %v7424_v46, 2  ;;  %v7057_v52 = vadd.f32 %v7029_v56, %v6972_v34  ;;  %v14068_v45 = vmul.f32 %v13954_v8, %v14060_v31  ;;  %v6950_v46 = vld [vmem:[#allocation6 + $0x20] sm:$0xff]  ;;  %v6951_v56 = vld [vmem:[#allocation6 + $0x28] sm:$0x3] }
 0x967   : > { %v7277_v21 = vrot.slane %v7245_v33, 2  ;;  %v7278_v49 = vrot.slane %v7246_v25, 2  ;;  %v14072_v13 = vmul.f32 %v13954_v8, %v14063_v48  ;;  %v14076_v4 = vmul.f32 %v13960_v63, %v14060_v31 }
 0x968   : > { %v7112_v47 = vsel %vm1350_vm1, %v7110_v55, %v7111_v40  ;;  %v14080_v0 = vsel %vm1955_vm5, %v7206_v41, %v7207_v10  ;;  %v7232_v19 = vadd.f32 %v7202_v20, %v7155_v38  ;;  %v14083_v53 = vmul.f32 %v8675_v59, %v13946_v7 }
 0x969   : > { %v14085_v37 = vadd.f32 %v7112_v47, %v7059_v30  ;;  %v14088_v42 = vsel %vm1350_vm1, %v7283_v39, %v7284_v6  ;;  %v14091_v15 = vsel %vm1955_vm5, %v7379_v54, %v7380_v17  ;;  %v7106_v23 = vsel %vm1350_vm1, %v7104_v26, %v7105_v14 }
 0x96a   : > { %v14095_v55 = vsel %vm1350_vm1, %v7456_v11, %v7457_v22  ;;  %v7134_v40 = vadd.f32 %v7106_v23, %v7057_v52  ;;  %v14099_v41 = vmul.f32 %v13971_v36, %v14060_v31  ;;  %v7279_v39 = vsel %vm1350_vm1, %v7277_v21, %v7278_v49 }
 0x96b   : > { %v14106_v33 = vmul.f32 %v13960_v63, %v14063_v48  ;;  %v7309_v14 = vadd.f32 %v7279_v39, %v7232_v19  ;;  %v14111_v52 = vmul.f32 %v14044_v12, %v14060_v31  ;;  %v14115_v25 = vmul.f32 %v14003_v18, %v14060_v31 }
 0x96c   : > { %v6996_v30 = vmul.f32 %v13954_v8, %v6950_v46  ;;  %v14120_v54 = vmul.f32 %v14003_v18, %v14063_v48  ;;  %v14124_v34 = vmul.f32 %v13979_v58, %v14060_v31  ;;  %v6997_v38 = vmul.f32 %v13954_v8, %v6951_v56 }
 0x96d   : > { %v7073_v17 = vmul.f32 %v13960_v63, %v6950_v46  ;;  %v14130_v20 = vmul.f32 %v13979_v58, %v14063_v48  ;;  %v14134_v59 = vmul.f32 %v13990_v5, %v14060_v31  ;;  %v7074_v22 = vmul.f32 %v13960_v63, %v6951_v56 }
 0x96e   : > { %v7030_v11 = vrot.slane %v6996_v30, 1  ;;  %v14139_v21 = vmul.f32 %v13990_v5, %v14063_v48  ;;  %v7031_v49 = vrot.slane %v6997_v38, 1  ;;  %v7148_v19 = vmul.f32 %v14044_v12, %v6950_v46 }
 0x96f   : > { %v7107_v47 = vrot.slane %v7073_v17, 2  ;;  %v6973_v23 = vmul.f32 %v13971_v36, %v6950_v46  ;;  %v7108_v39 = vrot.slane %v7074_v22, 2  ;;  %v7170_v26 = vmul.f32 %v14003_v18, %v6950_v46 }
 0x970   : > { %v7171_v10 = vmul.f32 %v14003_v18, %v6951_v56  ;;  %v7032_v6 = vsel %vm1955_vm5, %v7030_v11, %v7031_v49  ;;  %v7156_v30 = vadd.f32 %v7148_v19, %v7134_v40  ;;  %v7247_v3 = vmul.f32 %v14017_v62, %v6950_v46 }
 0x971   : > { %v7248_v27 = vmul.f32 %v14017_v62, %v6951_v56  ;;  %v7058_v28 = vadd.f32 %v7032_v6, %v6973_v23  ;;  %v7149_v38 = vmul.f32 %v14044_v12, %v13986_v44  ;;  %v7203_v17 = vrot.slane %v7170_v26, 1 }
 0x972   : > { %v7204_v43 = vrot.slane %v7171_v10, 1  ;;  %v7109_v32 = vsel %vm1350_vm1, %v7107_v47, %v7108_v39  ;;  %v7280_v22 = vrot.slane %v7247_v3, 2  ;;  %v7323_v57 = vmul.f32 %v14007_v2, %v6950_v46 }
 0x973   : > { %v7281_v9 = vrot.slane %v7248_v27, 2  ;;  %v7135_v61 = vadd.f32 %v7109_v32, %v7058_v28  ;;  %v7344_v40 = vmul.f32 %v13979_v58, %v6950_v46  ;;  %v7345_v49 = vmul.f32 %v13979_v58, %v6951_v56 }
 0x974   : > { %v7205_v11 = vsel %vm1955_vm5, %v7203_v17, %v7204_v43  ;;  %v7331_v6 = vadd.f32 %v7323_v57, %v7309_v14  ;;  %v7421_v23 = vmul.f32 %v13990_v5, %v6950_v46  ;;  %v7422_v26 = vmul.f32 %v13990_v5, %v6951_v56 }
 0x975   : > { %v7233_v19 = vadd.f32 %v7205_v11, %v7156_v30  ;;  %v7157_v10 = vadd.f32 %v7149_v38, %v7135_v61  ;;  %v7282_v47 = vsel %vm1350_vm1, %v7280_v22, %v7281_v9  ;;  %v7376_v3 = vrot.slane %v7344_v40, 1 }
 0x976   : > { %v7377_v27 = vrot.slane %v7345_v49, 1  ;;  %v7324_v32 = vmul.f32 %v14007_v2, %v13986_v44  ;;  %v7453_v43 = vrot.slane %v7421_v23, 2  ;;  %v7454_v28 = vrot.slane %v7422_v26, 2 }
 0x977   : > { %v7310_v39 = vadd.f32 %v7282_v47, %v7233_v19  ;;  %v14162_v30 = vmul.f32 %v14017_v62, %v14060_v31  ;;  %v7325_v57 = vmul.f32 %v14007_v2, %v14060_v31  ;;  %v7234_v61 = vadd.f32 %v14080_v0, %v7157_v10  ;;  %v14175_v31 = vld [vmem:[%s15517_s3] ss:$0 sm:$0xff]  ;;  %s15524_s3 = sld [smem:[#allocation36_spill]] }
 0x978   : > { %v7378_v9 = vsel %vm1955_vm5, %v7376_v3, %v7377_v27  ;;  %v7382_v46 = vrot.slane %v14124_v34, 1  ;;  %v7383_v56 = vrot.slane %v14130_v20, 1  ;;  %v7459_v38 = vrot.slane %v14134_v59, 2  ;;  %v14185_v59 = vld [vmem:[%s15518_s8] ss:$0 sm:$0xff]  ;;  %s15525_s8 = sld [smem:[#allocation35_spill]] }
 0x979   : > { %v7332_v14 = vadd.f32 %v7324_v32, %v7310_v39  ;;  %v7408_v44 = vadd.f32 %v7378_v9, %v7331_v6  ;;  %v7460_v17 = vrot.slane %v14139_v21, 2  ;;  %v7311_v22 = vadd.f32 %v14088_v42, %v7234_v61 }
 0x97a   : > { %v7455_v11 = vsel %vm1350_vm1, %v7453_v43, %v7454_v28  ;;  %v15519_v0 = vrot.slane %v14072_v13, 1  ;;  %v15520_v40 = vrot.slane %v14068_v45, 1  ;;  %v7114_v20 = vrot.slane %v14106_v33, 2  ;;  %v14191_v13 = vld [vmem:[#allocation6 + $0x70] sm:$0xff]  ;;  %v14193_v45 = vld [vmem:[#allocation6 + $0x78] sm:$0x3]  ;;  %v6858_v43 = vpop.f32.mrf.mxu1 }
 0x97b   : > { %v7409_v49 = vadd.f32 %v14091_v15, %v7332_v14  ;;  %v7485_v19 = vadd.f32 %v7455_v11, %v7408_v44  ;;  %v7209_v21 = vrot.slane %v14115_v25, 1  ;;  %v7210_v42 = vrot.slane %v14120_v54, 1 }
 0x97c   : > { %v7038_v34 = vsel %vm1955_vm5, %v15520_v40, %v15519_v0  ;;  %v7252_v6 = vmul.f32 %v14017_v62, %v14063_v48  ;;  %v7333_v23 = vadd.f32 %v7325_v57, %v7311_v22  ;;  %v7158_v33 = vadd.f32 %v14111_v52, %v14085_v37 }
 0x97d   : > { %v7384_v15 = vsel %vm1955_vm5, %v7382_v46, %v7383_v56  ;;  %v7486_v26 = vadd.f32 %v14095_v55, %v7409_v49  ;;  %v7500_v10 = vmul.f32 %v14175_v31, %v7485_v19  ;;  %v7060_v25 = vadd.f32 %v7038_v34, %v14099_v41 }
 0x97e   : > { %v7286_v54 = vrot.slane %v14162_v30, 2  ;;  %v7461_v48 = vsel %vm1350_vm1, %v7459_v38, %v7460_v17  ;;  %v7410_v47 = vadd.f32 %v7384_v15, %v7333_v23  ;;  %v7006_v37 = vmul.f32 %v13954_v8, %v14191_v13 }
 0x97f   : > { %v7501_v3 = vmul.f32 %v14175_v31, %v7486_v26  ;;  %v7515_v27 = vadd.f32 %v14185_v59, %v7500_v10  ;;  %v7007_v52 = vmul.f32 %v13954_v8, %v14193_v45  ;;  %v7211_v55 = vsel %vm1955_vm5, %v7209_v21, %v7210_v42 }
 0x980   : > { %v7287_v39 = vrot.slane %v7252_v6, 2  ;;  %v7487_v32 = vadd.f32 %v7461_v48, %v7410_v47  ;;  %v7180_v41 = vmul.f32 %v14003_v18, %v14191_v13  ;;  %v7181_v57 = vmul.f32 %v14003_v18, %v14193_v45 }
 0x981   : > { %v7516_v28 = vadd.f32 %v14185_v59, %v7501_v3  ;;  %v7523_v30 = vmax.f32 %v7515_v27, 0.0  ;;  %v6904_v61 = vmax.f32 %v14031_v60, 0.0  ;;  %v7257_v46 = vmul.f32 %v14017_v62, %v14191_v13 }
 0x982   : > { %v7502_v9 = vmul.f32 %v14175_v31, %v7487_v32  ;;  %v7258_v56 = vmul.f32 %v14017_v62, %v14193_v45  ;;  %v6899_v14 = vadd.f32 %v13949_v1, %v14083_v53  ;;  %v7045_v38 = vrot.slane %v7006_v37, 1 }
 0x983   : > { %v7524_v44 = vmax.f32 %v7516_v28, 0.0  ;;  %7531 = vst.msk [vmem:[#allocation7] sm:$0xff] %vm6908_vm11, %v7523_v30  ;;  %v7046_v17 = vrot.slane %v7007_v52, 1  ;;  %6939 = vst.msk [vmem:[#allocation6 + $0x51] sm:$0xff] %vm6908_vm11, %v6904_v61  ;;  %v6882_v60 = vmul.f32 %v13946_v7, %v6858_v43  ;;  %v7235_v22 = vadd.f32 %v7211_v55, %v7158_v33 }
 0x984   : > { %v7084_v11 = vmul.f32 %v13960_v63, %v14193_v45  ;;  %v6907_v0 = vmax.f32 %v6899_v14, 0.0  ;;  %v7083_v40 = vmul.f32 %v13960_v63, %v14191_v13  ;;  %v7218_v53 = vrot.slane %v7180_v41, 1 }
 0x985   : > { %7532 = vst.msk [vmem:[#allocation7 + $0x8] sm:$0xff] %vm6908_vm11, %v7524_v44  ;;  %v7219_v34 = vrot.slane %v7181_v57, 1  ;;  %v6897_v49 = vadd.f32 %v13949_v1, %v6882_v60  ;;  %v7517_v19 = vadd.f32 %v14185_v59, %v7502_v9  ;;  %v15521_v21 = vrot.slane %v14076_v4, 2 }
 0x986   : > { %v7295_v42 = vrot.slane %v7257_v46, 2  ;;  %v7296_v6 = vrot.slane %v7258_v56, 2  ;;  %v14238_v23 = vmul.f32 %v13979_v58, %v14191_v13  ;;  %6945 = vst.msk [vmem:[#allocation6 + $0x81] sm:$0xff] %vm6908_vm11, %v6907_v0  ;;  %v7047_v33 = vsel %vm1955_vm5, %v7045_v38, %v7046_v17 }
 0x987   : > { %v7115_v7 = vsel %vm1350_vm1, %v15521_v21, %v7114_v20  ;;  %v14244_v15 = vmul.f32 %v13979_v58, %v14193_v45  ;;  %v6905_v1 = vmax.f32 %v6897_v49, 0.0  ;;  %v7525_v26 = vmax.f32 %v7517_v19, 0.0 }
 0x988   : > { %v7288_v4 = vsel %vm1350_vm1, %v7286_v54, %v7287_v39  ;;  %v7123_v10 = vrot.slane %v7084_v11, 2  ;;  %v6978_v20 = vmul.f32 %v13971_v36, %v14191_v13  ;;  %v7122_v48 = vrot.slane %v7083_v40, 2 }
 0x989   : > { %v7137_v47 = vadd.f32 %v7115_v7, %v7060_v25  ;;  %v7312_v3 = vadd.f32 %v7288_v4, %v7235_v22  ;;  %v14250_v27 = vsel %vm1955_vm5, %v7218_v53, %v7219_v34  ;;  %v15522_v37 = vrot.slane %v13997_v29, 2  ;;  %6941 = vst.msk [vmem:[#allocation6 + $0x61] sm:$0xff] %vm6908_vm11, %v6905_v1  ;;  %7533 = vst.msk [vmem:[#allocation7 + $0x10] sm:$0xff] %vm6908_vm11, %v7525_v26 }
 0x98a   : > { %v15523_v52 = vrot.slane %v13994_v50, 2  ;;  %v14262_v54 = vsel %vm1350_vm1, %v7295_v42, %v7296_v6  ;;  %v7391_v25 = vrot.slane %v14238_v23, 1  ;;  %v14267_v39 = vmul.f32 %v13990_v5, %v14191_v13  ;;  %v6956_v32 = vld [vmem:[#allocation6 + $0x50] sm:$0xff]  ;;  %v6957_v29 = vld [vmem:[#allocation6 + $0x58] sm:$0x3] }
 0x98b   : > { %v7063_v41 = vadd.f32 %v7047_v33, %v6978_v20  ;;  %v7392_v50 = vrot.slane %v14244_v15, 1  ;;  %v7002_v43 = vmul.f32 %v13954_v8, %v6956_v32  ;;  %v7003_v28 = vmul.f32 %v13954_v8, %v6957_v29 }
 0x98c   : > { %v14257_v55 = vsel %vm1350_vm1, %v15523_v52, %v15522_v37  ;;  %v7079_v30 = vmul.f32 %v13960_v63, %v6956_v32  ;;  %v7080_v57 = vmul.f32 %v13960_v63, %v6957_v29  ;;  %v7176_v61 = vmul.f32 %v14003_v18, %v6956_v32 }
 0x98d   : > { %v7177_v9 = vmul.f32 %v14003_v18, %v6957_v29  ;;  %v7124_v46 = vsel %vm1350_vm1, %v7122_v48, %v7123_v10  ;;  %v7039_v56 = vrot.slane %v7002_v43, 1  ;;  %v7040_v14 = vrot.slane %v7003_v28, 1  ;;  %v14289_v42 = vld [vmem:[#allocation6 + $0x80] sm:$0xff]  ;;  %v14292_v26 = vld [vmem:[#allocation6 + $0x88] sm:$0x3] }
 0x98e   : > { %v7151_v44 = vmul.f32 %v14044_v12, %v6956_v32  ;;  %v7253_v38 = vmul.f32 %v14017_v62, %v6956_v32  ;;  %v14281_v17 = vmul.f32 %v13990_v5, %v14193_v45  ;;  %v7468_v60 = vrot.slane %v14267_v39, 2 }
 0x98f   : > { %v6976_v22 = vmul.f32 %v13971_v36, %v6956_v32  ;;  %v7140_v11 = vadd.f32 %v7124_v46, %v7063_v41  ;;  %v7041_v0 = vsel %vm1955_vm5, %v7039_v56, %v7040_v14  ;;  %v7116_v40 = vrot.slane %v7079_v30, 2 }
 0x990   : > { %v7212_v53 = vrot.slane %v7176_v61, 1  ;;  %v7213_v34 = vrot.slane %v7177_v9, 1  ;;  %v7117_v49 = vrot.slane %v7080_v57, 2  ;;  %v7254_v19 = vmul.f32 %v14017_v62, %v6957_v29 }
 0x991   : > { %v7326_v21 = vmul.f32 %v14007_v2, %v6956_v32  ;;  %v7350_v7 = vmul.f32 %v13979_v58, %v6956_v32  ;;  %v7061_v45 = vadd.f32 %v7041_v0, %v6976_v22  ;;  %v7159_v6 = vadd.f32 %v7151_v44, %v7137_v47 }
 0x992   : > { %v7289_v33 = vrot.slane %v7253_v38, 2  ;;  %v7351_v1 = vmul.f32 %v13979_v58, %v6957_v29  ;;  %v7427_v20 = vmul.f32 %v13990_v5, %v6956_v32  ;;  %v7428_v48 = vmul.f32 %v13990_v5, %v6957_v29 }
 0x993   : > { %v7334_v4 = vadd.f32 %v7326_v21, %v7312_v3  ;;  %v7385_v10 = vrot.slane %v7350_v7, 1  ;;  %v7214_v37 = vsel %vm1955_vm5, %v7212_v53, %v7213_v34  ;;  %v7154_v41 = vmul.f32 %v14044_v12, %v14289_v42  ;;  %v6958_v21 = vld [vmem:[#allocation6 + $0x60] sm:$0xff] }
 0x994   : > { %v7386_v52 = vrot.slane %v7351_v1, 1  ;;  %v7182_v47 = vmul.f32 %v14003_v18, %v14289_v42  ;;  %v7290_v43 = vrot.slane %v7254_v19, 2  ;;  %v7462_v28 = vrot.slane %v7427_v20, 2 }
 0x995   : > { %v7463_v30 = vrot.slane %v7428_v48, 2  ;;  %v7183_v3 = vmul.f32 %v14003_v18, %v14292_v26  ;;  %v7162_v32 = vadd.f32 %v7154_v41, %v7140_v11  ;;  %v7259_v29 = vmul.f32 %v14017_v62, %v14289_v42 }
 0x996   : > { %v7387_v57 = vsel %vm1955_vm5, %v7385_v10, %v7386_v52  ;;  %v7221_v61 = vrot.slane %v7182_v47, 1  ;;  %v7236_v9 = vadd.f32 %v7214_v37, %v7159_v6  ;;  %v7260_v14 = vmul.f32 %v14017_v62, %v14292_v26 }
 0x997   : > { %v7411_v46 = vadd.f32 %v7387_v57, %v7334_v4  ;;  %v7222_v56 = vrot.slane %v7183_v3, 1  ;;  %v7469_v44 = vrot.slane %v14281_v17, 2  ;;  %v7464_v38 = vsel %vm1350_vm1, %v7462_v28, %v7463_v30  ;;  %v6959_v4 = vld [vmem:[#allocation6 + $0x68] sm:$0x3] }
 0x998   : > { %v7298_v22 = vrot.slane %v7259_v29, 2  ;;  %v7153_v0 = vmul.f32 %v14044_v12, %v14191_v13  ;;  %v7118_v11 = vsel %vm1350_vm1, %v7116_v40, %v7117_v49  ;;  %v7299_v19 = vrot.slane %v7260_v14, 2 }
 0x999   : > { %v7488_v53 = vadd.f32 %v7464_v38, %v7411_v46  ;;  %v7223_v34 = vsel %vm1955_vm5, %v7221_v61, %v7222_v56  ;;  %v7138_v7 = vadd.f32 %v7118_v11, %v7061_v45  ;;  %v7291_v6 = vsel %vm1350_vm1, %v7289_v33, %v7290_v43 }
 0x99a   : > { %v7239_v1 = vadd.f32 %v7223_v34, %v7162_v32  ;;  %v7328_v10 = vmul.f32 %v14007_v2, %v14191_v13  ;;  %v7313_v20 = vadd.f32 %v7291_v6, %v7236_v9  ;;  %v7300_v37 = vsel %vm1350_vm1, %v7298_v22, %v7299_v19 }
 0x99b   : > { %v7503_v48 = vmul.f32 %v14175_v31, %v7488_v53  ;;  %v14321_v40 = vmul.f32 %v13979_v58, %v14289_v42  ;;  %v14325_v45 = vmul.f32 %v13979_v58, %v14292_v26  ;;  %v14329_v33 = vmul.f32 %v13990_v5, %v14289_v42 }
 0x99c   : > { %v7316_v49 = vadd.f32 %v7300_v37, %v7239_v1  ;;  %v7004_v13 = vmul.f32 %v13954_v8, %v6958_v21  ;;  %v7005_v41 = vmul.f32 %v13954_v8, %v6959_v4  ;;  %v7081_v47 = vmul.f32 %v13960_v63, %v6958_v21 }
 0x99d   : > { %v7518_v52 = vadd.f32 %v14185_v59, %v7503_v48  ;;  %v7082_v43 = vmul.f32 %v13960_v63, %v6959_v4  ;;  %v6977_v30 = vmul.f32 %v13971_v36, %v6958_v21  ;;  %v7152_v57 = vmul.f32 %v14044_v12, %v6958_v21 }
 0x99e   : > { %v7338_v28 = vadd.f32 %v14020_v24, %v7316_v49  ;;  %v7042_v3 = vrot.slane %v7004_v13, 1  ;;  %v7043_v61 = vrot.slane %v7005_v41, 1  ;;  %v7119_v29 = vrot.slane %v7081_v47, 2 }
 0x99f   : > { %v7526_v32 = vmax.f32 %v7518_v52, 0.0  ;;  %v7120_v9 = vrot.slane %v7082_v43, 2  ;;  %v7160_v56 = vadd.f32 %v7152_v57, %v7138_v7  ;;  %v7178_v8 = vmul.f32 %v14003_v18, %v6958_v21 }
 0x9a0   : > { %v7415_v46 = vadd.f32 %v14025_v16, %v7338_v28  ;;  %v7179_v14 = vmul.f32 %v14003_v18, %v6959_v4  ;;  %v7044_v63 = vsel %vm1955_vm5, %v7042_v3, %v7043_v61  ;;  %v7255_v24 = vmul.f32 %v14017_v62, %v6958_v21 }
 0x9a1   : > { %7534 = vst.msk [vmem:[#allocation7 + $0x18] sm:$0xff] %vm6908_vm11, %v7526_v32  ;;  %v7121_v36 = vsel %vm1350_vm1, %v7119_v29, %v7120_v9  ;;  %v7256_v12 = vmul.f32 %v14017_v62, %v6959_v4  ;;  %v7062_v22 = vadd.f32 %v7044_v63, %v6977_v30  ;;  %v7215_v11 = vrot.slane %v7178_v8, 1 }
 0x9a2   : > { %v7492_v38 = vadd.f32 %v14257_v55, %v7415_v46  ;;  %v7216_v16 = vrot.slane %v7179_v14, 1  ;;  %v7292_v53 = vrot.slane %v7255_v24, 2  ;;  %v7327_v19 = vmul.f32 %v14007_v2, %v6958_v21  ;;  %v14385_v46 = vld [vmem:[#allocation7 + $0x10] sm:$0xff] }
 0x9a3   : > { %v7293_v34 = vrot.slane %v7256_v12, 2  ;;  %v7352_v18 = vmul.f32 %v13979_v58, %v6958_v21  ;;  %v7139_v6 = vadd.f32 %v7121_v36, %v7062_v22  ;;  %v7353_v48 = vmul.f32 %v13979_v58, %v6959_v4 }
 0x9a4   : > { %v7507_v7 = vmul.f32 %v14175_v31, %v7492_v38  ;;  %v7217_v1 = vsel %vm1955_vm5, %v7215_v11, %v7216_v16  ;;  %v7335_v55 = vadd.f32 %v7327_v19, %v7313_v20  ;;  %v7429_v41 = vmul.f32 %v13990_v5, %v6958_v21 }
 0x9a5   : > { %v7237_v37 = vadd.f32 %v7217_v1, %v7160_v56  ;;  %v7294_v62 = vsel %vm1350_vm1, %v7292_v53, %v7293_v34  ;;  %v7388_v49 = vrot.slane %v7352_v18, 1  ;;  %v7161_v13 = vadd.f32 %v7153_v0, %v7139_v6 }
 0x9a6   : > { %v7389_v52 = vrot.slane %v7353_v48, 1  ;;  %v7430_v47 = vmul.f32 %v13990_v5, %v6959_v4  ;;  %v7394_v43 = vrot.slane %v14321_v40, 1  ;;  %v7434_v28 = vmul.f32 %v13990_v5, %v14292_v26 }
 0x9a7   : > { %v7314_v30 = vadd.f32 %v7294_v62, %v7237_v37  ;;  %v7522_v3 = vadd.f32 %v14185_v59, %v7507_v7  ;;  %v7238_v58 = vadd.f32 %v14250_v27, %v7161_v13  ;;  %v7465_v20 = vrot.slane %v7429_v41, 2 }
 0x9a8   : > { %v7390_v57 = vsel %vm1955_vm5, %v7388_v49, %v7389_v52  ;;  %v7466_v32 = vrot.slane %v7430_v47, 2  ;;  %v7395_v0 = vrot.slane %v14325_v45, 1  ;;  %v7393_v5 = vsel %vm1955_vm5, %v7391_v25, %v7392_v50  ;;  %v14379_v25 = vld [vmem:[#allocation7 + $0x8] sm:$0xff]  ;;  %v14400_v11 = vld [vmem:[#allocation7 + $0x18] sm:$0xff] }
 0x9a9   : > { %v7336_v61 = vadd.f32 %v7328_v10, %v7314_v30  ;;  %v7412_v21 = vadd.f32 %v7390_v57, %v7335_v55  ;;  %v7530_v29 = vmax.f32 %v7522_v3, 0.0  ;;  %v7329_v26 = vmul.f32 %v14007_v2, %v14289_v42  ;;  %v8849_v57 = vld [vmem:[%s15524_s3 + $0x8] ss:$0 sps:$4 sm:$0xff]  }
 0x9aa   : > { %v7315_v27 = vadd.f32 %v14262_v54, %v7238_v58  ;;  %v7467_v4 = vsel %vm1350_vm1, %v7465_v20, %v7466_v32  ;;  %v7471_v40 = vrot.slane %v14329_v33, 2  ;;  %v7472_v9 = vrot.slane %v7434_v28, 2  ;;  %v14383_v33 = vld [vmem:[#allocation7] sm:$0xff] }
 0x9ab   : > { %v7413_v45 = vadd.f32 %v7393_v5, %v7336_v61  ;;  %v7489_v10 = vadd.f32 %v7467_v4, %v7412_v21  ;;  %7538 = vst.msk [vmem:[#allocation7 + $0x38] sm:$0xff] %vm6908_vm11, %v7530_v29  ;;  %v7470_v23 = vsel %vm1350_vm1, %v7468_v60, %v7469_v44  ;;  %v7396_v2 = vsel %vm1955_vm5, %v7394_v43, %v7395_v0  ;;  %v8850_v32 = vld [vmem:[%s15524_s3] sm:$0xff]  }
 0x9ac   : > { %v7337_v15 = vadd.f32 %v7329_v26, %v7315_v27  ;;  %v7473_v56 = vsel %vm1350_vm1, %v7471_v40, %v7472_v9  ;;  %v7548_v60 = vsel %vm6908_vm11, %v14379_v25, 0.0  ;;  %v7547_v63 = vsel %vm6908_vm11, %v14383_v33, 0.0  ;;  %v7579_v0 = vld [vmem:[%s15525_s8] sm:$0x1]  ;;  %v8852_v9 = vld [vmem:[%s15526_s2 + $0x18] sm:$0xff]   ;;  %s15529_s8 = sld [smem:[#allocation41_spill]] }
 0x9ad   : > { %v7490_v54 = vadd.f32 %v7470_v23, %v7413_v45  ;;  %v7504_v50 = vmul.f32 %v14175_v31, %v7489_v10  ;;  %v7550_v36 = vsel %vm6908_vm11, %v14385_v46, 0.0  ;;  %v7549_v12 = vadd.f32 %v7548_v60, %v7547_v63  ;;  %v8851_v40 = vld [vmem:[%s15526_s2 + $0x20] ss:$0 sps:$4 sm:$0xff]   ;;  %v8853_v10 = vld [vmem:[%s15526_s2 + $0x10] sm:$0xff]   ;;  %v8854_v23 = vld [vmem:[%s15526_s2 + $0x8] sm:$0xff]  }
 0x9ae   : > { %v7414_v42 = vadd.f32 %v7396_v2, %v7337_v15  ;;  %v7552_v34 = vsel %vm6908_vm11, %v14400_v11, 0.0  ;;  %v7672_v20 = vsel %vm6801_vm9, %v8849_v57, 0  ;;  %v7785_v45 = vsel %vm6801_vm9, %v8851_v40, 0  ;;  %v8855_v15 = vld [vmem:[%s15526_s2] sm:$0xff]   ;;  %s15531_s2 = sld [smem:[#allocation40_spill]] }
 0x9af   : > { %v7505_v17 = vmul.f32 %v14175_v31, %v7490_v54  ;;  %v7519_v39 = vadd.f32 %v14185_v59, %v7504_v50  ;;  %v7551_v16 = vadd.f32 %v7550_v36, %v7549_v12  ;;  %v7658_v2 = vld [vmem:[%s15527_s5] sm:$0x1]  ;;  %s15530_s5 = sld [smem:[#allocation39_spill]] }
 0x9b0   : > { %v7491_v44 = vadd.f32 %v7473_v56, %v7414_v42 }
 0x9b1   : > { %v7527_v8 = vmax.f32 %v7519_v39, 0.0  ;;  %v7520_v14 = vadd.f32 %v14185_v59, %v7505_v17  ;;  %v7553_v19 = vadd.f32 %v7552_v34, %v7551_v16 }
 0x9b2   : > { %v7506_v24 = vmul.f32 %v14175_v31, %v7491_v44  ;;  %v14416_v37 = vld [vmem:[#allocation7 + $0x38] sm:$0xff] }
 0x9b3   : > { %7535 = vst.msk [vmem:[#allocation7 + $0x20] sm:$0xff] %vm6908_vm11, %v7527_v8  ;;  %v7528_v38 = vmax.f32 %v7520_v14, 0.0  ;;  %v7560_v49 = vsel %vm6908_vm11, %v14416_v37, 0.0  ;;  %v15528_v14 = vsub.s32 0, %v13842_v51 }
 0x9b4   : > { %v7521_v22 = vadd.f32 %v14185_v59, %v7506_v24 }
 0x9b5   : > { %7536 = vst.msk [vmem:[#allocation7 + $0x28] sm:$0xff] %vm6908_vm11, %v7528_v38 }
 0x9b6   : > { %v7529_v53 = vmax.f32 %v7521_v22, 0.0 }
 0x9b8   : > { %7537 = vst.msk [vmem:[#allocation7 + $0x30] sm:$0xff] %vm6908_vm11, %v7529_v53 }
 0x9ba   : > { %v14406_v18 = vld [vmem:[#allocation7 + $0x20] sm:$0xff] }
 0x9bb   : > { %v7554_v31 = vsel %vm6908_vm11, %v14406_v18, 0.0 }
 0x9bc   : > { %v14410_v7 = vld [vmem:[#allocation7 + $0x28] sm:$0xff]  ;;  %v7555_v59 = vadd.f32 %v7554_v31, %v7553_v19 }
 0x9bd   : > { %v7556_v6 = vsel %vm6908_vm11, %v14410_v7, 0.0 }
 0x9be   : > { %v7557_v1 = vadd.f32 %v7556_v6, %v7555_v59 }
 0x9bf   : > { %v14414_v48 = vld [vmem:[#allocation7 + $0x30] sm:$0xff] }
 0x9c0   : > { %v7558_v62 = vsel %vm6908_vm11, %v14414_v48, 0.0 }
 0x9c1   : > { %v7559_v55 = vadd.f32 %v7558_v62, %v7557_v1 }
 0x9c3   : > { %v7561_v13 = vadd.f32 %v7560_v49, %v7559_v55 }
 0x9c5   : > { %v7562_v52 = vrot.slane %v7561_v13, 4 }
 0x9c7   : > { %v7563_v41 = vadd.f32 %v7562_v52, %v7561_v13 }
 0x9c9   : > { %v7564_v47 = vrot.slane %v7563_v41, 2 }
 0x9cb   : > { %v7565_v43 = vadd.f32 %v7564_v47, %v7563_v41  ;;  %v15532_v41 = vld [vmem:[#allocation148_spill] sm:$0xff] }
 0x9cd   : > { %v7566_v28 = vrot.slane %v7565_v43, 1 }
 0x9cf   : > { %v7567_v30 = vadd.f32 %v7566_v28, %v7565_v43 }
 0x9d1   : > { %v7568_v3 = vmul.f32 0.015625, %v7567_v30 }
 0x9d3   : > { %v7569_v58 = vpack.c.bf16 %v7568_v3, %v7568_v3 }
 0x9d5   : > { %8687 = vmatmul.mubr.msk.bf16.vlgmr.msra.gmra.mxu0 %vm6908_vm11, %v7569_v58  ;;  %v15533_v58 = vld [vmem:[#allocation153_spill] sm:$0xff] }
 0x9d6   : > { %8694 = vmatprep.mubr.msk.bf16.mxu0 %vm9071_vm8, %v15496_v35  ;;  %8691 = vmatpush3.bf16.msra.mxu0 %v7672_v20  ;;  %v15534_v20 = vld [vmem:[#allocation152_spill] sm:$0xff] }
 0x9d7   : > { %8692 = vmatprep.subr.bf16.mxu0 %v15496_v35 }
 0x9da   : > { %8693 = vmatpush3.bf16.msra.mxu0 %v8850_v32 }
 0x9db   : > { %8745 = vmatprep.subr.msk.bf16.mxu0 %vm6801_vm9, %v8851_v40 }
 0xa95   : > { %v7647_v61 = vpop.f32.mrf.mxu0 }
 0xa96   : > { %v7648_v21 = vadd.f32 %v7647_v61, %v7579_v0 }
 0xa97   : > { %v8688_v29 = vpop.f32.mrf.mxu0 }
 0xa98   : > { %v7653_v5 = vmax.f32 %v7648_v21, 0.0 }
 0xa99   : > { %v7650_v26 = vpop.f32.mrf.mxu0 }
 0xa9a   : > { %v7654_v27 = vpack.c.bf16 %v7653_v5, %v7653_v5  ;;  %v15535_v5 = vld [vmem:[#allocation147_spill] sm:$0xff] }
 0xa9b   : > { %v8689_v4 = vpop.f32.mrf.mxu0 }
 0xa9c   : > { %8695 = vmatmul.mubr.msk.bf16.vlgmr.msra.gmra.mxu0 %vm6788_vm10, %v7654_v27 }
 0xa9d   : > { %8699 = vmatpush3.bf16.msra.mxu0 %v7785_v45 }
 0xa9e   : > { %8700 = vmatprep.subr.bf16.mxu0 %v8852_v9 }
 0xaa1   : > { %8701 = vmatpush3.bf16.msra.mxu0 %v8852_v9 }
 0xaa2   : > { %8702 = vmatprep.subr.bf16.mxu0 %v8853_v10 }
 0xaa5   : > { %8703 = vmatpush3.bf16.msra.mxu0 %v8853_v10 }
 0xaa6   : > { %8704 = vmatprep.subr.bf16.mxu0 %v8854_v23 }
 0xaa9   : > { %8705 = vmatpush3.bf16.msra.mxu0 %v8854_v23 }
 0xaaa   : > { %8706 = vmatprep.subr.bf16.mxu0 %v8855_v15 }
 0xaad   : > { %8707 = vmatpush3.bf16.msra.mxu0 %v8855_v15  ;;  %v15536_v15 = vld [vmem:[#allocation145_spill] sm:$0xff] }
 0xb5c   : > { %v7708_v54 = vpop.f32.mrf.mxu0 }
 0xb5d   : > { %v7709_v50 = vadd.f32 %v7708_v54, %v7658_v2 }
 0xb5e   : > { %v8696_v42 = vpop.f32.mrf.mxu0 }
 0xb5f   : > { %v8340_v56 = vmul.f32 -1.442695, %v7709_v50 }
 0xb60   : > { %v7711_v17 = vpop.f32.mrf.mxu0 }
 0xb61   : > { %8870 = vpow2.f32 %v8340_v56 }
 0xb62   : > { %v8697_v39 = vpop.f32.mrf.mxu0 }
 0xb6e   : > { %v8871_v60 = vpop.eup %8870 }
 0xb6f   : > { %v7717_v44 = vadd.f32 1.0, %v8871_v60  ;;  %v15537_v60 = vld [vmem:[#allocation146_spill] sm:$0xff] }
 0xb71   : > { %8872 = vrcp.f32 %v7717_v44 }
 0xb7e   : > { %v8873_v8 = vpop.eup %8872 }
 0xb7f   : > { %v7723_v63 = vrot.slane %v8873_v8, %v15528_v14  ;;  %v15538_v14 = vld [vmem:[#allocation151_spill] sm:$0xff] }
 0xb81   : > { %v7724_v36 = vmul.f32 %v7723_v63, %v14383_v33  ;;  %v7725_v24 = vmul.f32 %v7723_v63, %v14379_v25  ;;  %v7726_v12 = vmul.f32 %v7723_v63, %v14385_v46  ;;  %v7727_v38 = vmul.f32 %v7723_v63, %v14400_v11  ;;  %v8856_v11 = vld [vmem:[%s15529_s8 + $0x8] ss:$0 sps:$4 sm:$0xff]  }
 0xb82   : > { %v7728_v22 = vmul.f32 %v7723_v63, %v14406_v18  ;;  %v7729_v16 = vmul.f32 %v7723_v63, %v14410_v7  ;;  %v7730_v25 = vmul.f32 %v7723_v63, %v14414_v48  ;;  %v7731_v33 = vmul.f32 %v7723_v63, %v14416_v37  ;;  %v8857_v18 = vld [vmem:[%s15529_s8] sm:$0xff]  }
 0xb83   : > { %v7732_v53 = vpack.c.bf16 %v7725_v24, %v7724_v36  ;;  %v7733_v34 = vpack.c.bf16 %v7727_v38, %v7726_v12  ;;  %v7930_v19 = vsel %vm6801_vm9, %v8856_v11, 0  ;;  %v8350_v7 = vld [vmem:[%s15530_s5] ss:$0 sm:$0xff]  ;;  %v15539_v24 = vld [vmem:[#allocation149_spill] sm:$0xff]  ;;  %s8363_s5 = sshll.u32 %s9309_s0, 4  ;;  %s9072_s0 = smov [#allocation8]  }
 0xb84   : > { %v7734_v51 = vpack.c.bf16 %v7729_v16, %v7728_v22  ;;  %v7735_v46 = vpack.c.bf16 %v7731_v33, %v7730_v25  ;;  %8717 = vmatpush3.bf16.msra.mxu1 %v7930_v19  ;;  %v8351_v48 = vld [vmem:[%s15531_s2] ss:$0 sm:$0xff]  ;;  %s1229_s2 = sand.u32 1, %s9018_s10   ;;  %s14499_s8 = scalar_lea.hbm %s9286_s4, %s8363_s5 }
 0xb85   : > { %8708 = vmatprep.mubr.msk.bf16.mxu0 %vm6908_vm11, %v7732_v53  ;;  %8718 = vmatprep.subr.bf16.mxu1 %v15496_v35  ;;  %s1230_s3 = scalar_lea.vmem [#allocation8], %s1229_s2  ;;  %s8970_s13 = sshll.u32 %s9072_s0, 4  ;;  %s8971_s13 = int_to_ptr.vmem [resolvable:$false] %s8970_s13 }
 0xb86   : > { %8709 = vmatmul.mubr.msk.bf16.vlgmr.msra.gmra.mxu0 %vm6908_vm11, %v7733_v34  ;;  %s8094_s6 = sshll.u32 %s1230_s3, 4  ;;  %s8972_s14 = scalar_lea.vmem %s8971_s13, 32  ;;  %s14501_s6 = int_to_ptr.vmem [resolvable:$true] %s8094_s6 }
 0xb87   : > { %8712 = vmatprep.mubr.msk.bf16.mxu0 %vm6908_vm11, %v7734_v51  ;;  %s8966_s12 = scalar_lea.vmem %s14501_s6, 16  ;;  %p8973_p0 = scmp.lt.s32.totalorder %s14501_s6, %s8971_s13 }
 0xb88   : > { %8719 = vmatpush3.bf16.msra.mxu1 %v8857_v18  ;;  %p8967_p11 = scmp.ne.s32.totalorder %s14501_s6, %s8966_s12  ;;  %p8974_p1 = scmp.lt.s32.totalorder %s8972_s14, %s8966_s12 }
 0xb89   : > { %8724 = vmatprep.subr.bf16.mxu1 %v15496_v35 }
 0xb8a   : > { %p8968_p12 = pnand %p8967_p11, %p9326_p5  ;;  %p8975_p2 = por %p8974_p1, %p8973_p0 }
 0xb8c   : > { %p8969_p13 = pneg %p8968_p12 }
 0xb8e   : > { %8713 = vmatmul.mubr.msk.bf16.gmra.mxu0 %vm6908_vm11, %v7735_v46  ;;  %p8976_p3 = pnand %p8975_p2, %p8969_p13 }
 0xc46   : > { %v8710_v31 = vpop.f32.mrf.mxu0 }
 0xc47   : > { %v7861_v6 = vmul.f32 %v8710_v31, %v8350_v7 }
 0xc48   : > { %v7821_v59 = vpop.f32.mrf.mxu0 }
 0xc49   : > { %v7859_v1 = vmul.f32 %v8350_v7, %v7821_v59  ;;  %v7876_v13 = vadd.f32 %v8351_v48, %v7861_v6  ;;  %v8859_v6 = vld [vmem:[%s9276_s20 + $0x30] sm:$0xff]  }
 0xc4a   : > { %v8711_v37 = vpop.f32.mrf.mxu0 }
 0xc4b   : > { %v7874_v62 = vadd.f32 %v8351_v48, %v7859_v1  ;;  %v7862_v55 = vmul.f32 %v8711_v37, %v8350_v7  ;;  %v7884_v57 = vadd.f32 %v7876_v13, %v15533_v58  ;;  %v8860_v1 = vld [vmem:[%s9276_s20 + $0x28] sm:$0xff]   ;;  %v8862_v37 = vld [vmem:[%s9276_s20 + $0x18] sm:$0xff]   ;;  %v7916_v13 = vld [vmem:[%s15540_s9] sm:$0x1]  ;;  %s8082_s9 = scalar_lea.sflag [#allocation9], %s1229_s2 }
 0xc4c   : > { %v7824_v49 = vpop.f32.mrf.mxu0  ;;  %v7990_v58 = vld [vmem:[%s9281_s27] sm:$0x1] }
 0xc4d   : > { %v7860_v52 = vmul.f32 %v8350_v7, %v7824_v49  ;;  %v7882_v47 = vadd.f32 %v7874_v62, %v15532_v41  ;;  %v7877_v28 = vadd.f32 %v8351_v48, %v7862_v55  ;;  %v7893_v10 = vsel %vm6788_vm10, %v7884_v57, 0.0  ;;  %v8863_v62 = vld [vmem:[%s9276_s20 + $0x10] sm:$0xff]   ;;  %v8864_v55 = vld [vmem:[%s9276_s20 + $0x8] sm:$0xff]   ;;  %v8865_v49 = vld [vmem:[%s9276_s20] sm:$0xff]  }
 0xc4e   : > { %v8714_v43 = vpop.f32.mrf.mxu0 }
 0xc4f   : > { %v7875_v30 = vadd.f32 %v8351_v48, %v7860_v52  ;;  %v7865_v0 = vmul.f32 %v8714_v43, %v8350_v7  ;;  %v7890_v21 = vsel %vm6788_vm10, %v7882_v47, 0.0  ;;  %v7885_v26 = vadd.f32 %v7877_v28, %v15535_v5 }
 0xc50   : > { %v7837_v3 = vpop.f32.mrf.mxu0 }
 0xc51   : > { %v7883_v32 = vadd.f32 %v7875_v30, %v15534_v20  ;;  %v7863_v61 = vmul.f32 %v8350_v7, %v7837_v3  ;;  %v7880_v23 = vadd.f32 %v8351_v48, %v7865_v0  ;;  %v7895_v42 = vsel %vm6788_vm10, %v7885_v26, 0.0 }
 0xc52   : > { %v8715_v29 = vpop.f32.mrf.mxu0 }
 0xc53   : > { %v7891_v27 = vsel %vm6788_vm10, %v7883_v32, 0.0  ;;  %v7878_v4 = vadd.f32 %v8351_v48, %v7863_v61  ;;  %v7866_v40 = vmul.f32 %v8715_v29, %v8350_v7  ;;  %v7888_v44 = vadd.f32 %v7880_v23, %v15537_v60 }
 0xc54   : > { %v7892_v9 = vadd.f32 %v7891_v27, %v7890_v21  ;;  %v7840_v45 = vpop.f32.mrf.mxu0 }
 0xc55   : > { %v7886_v2 = vadd.f32 %v7878_v4, %v15536_v15  ;;  %v7864_v54 = vmul.f32 %v8350_v7, %v7840_v45  ;;  %v7881_v56 = vadd.f32 %v8351_v48, %v7866_v40  ;;  %v7901_v16 = vsel %vm6788_vm10, %v7888_v44, 0.0  ;;  %v8858_v7 = vld [vmem:[%s9276_s20 + $0x38] sm:$0xff]  }
 0xc56   : > { %v7894_v50 = vadd.f32 %v7893_v10, %v7892_v9 }
 0xc57   : > { %v7879_v17 = vadd.f32 %v8351_v48, %v7864_v54  ;;  %v7897_v8 = vsel %vm6788_vm10, %v7886_v2, 0.0  ;;  %v7889_v12 = vadd.f32 %v7881_v56, %v15539_v24  ;;  %v8861_v48 = vld [vmem:[%s9276_s20 + $0x20] sm:$0xff]  }
 0xc58   : > { %v7896_v39 = vadd.f32 %v7895_v42, %v7894_v50 }
 0xc59   : > { %v7887_v63 = vadd.f32 %v7879_v17, %v15538_v14  ;;  %v7903_v34 = vsel %vm6788_vm10, %v7889_v12, 0.0 }
 0xc5a   : > { %v7898_v36 = vadd.f32 %v7897_v8, %v7896_v39 }
 0xc5b   : > { %v7899_v38 = vsel %vm6788_vm10, %v7887_v63, 0.0 }
 0xc5c   : > { %v7900_v22 = vadd.f32 %v7899_v38, %v7898_v36 }
 0xc5e   : > { %v7902_v53 = vadd.f32 %v7901_v16, %v7900_v22 }
 0xc60   : > { %v7904_v51 = vadd.f32 %v7903_v34, %v7902_v53 }
 0xc62   : > { %v7905_v25 = vrot.slane %v7904_v51, 4 }
 0xc64   : > { %v7906_v33 = vadd.f32 %v7905_v25, %v7904_v51 }
 0xc66   : > { %v7907_v46 = vrot.slane %v7906_v33, 2 }
 0xc68   : > { %v7908_v11 = vadd.f32 %v7907_v46, %v7906_v33 }
 0xc6a   : > { %v7909_v19 = vrot.slane %v7908_v11, 1 }
 0xc6c   : > { %v7910_v18 = vadd.f32 %v7909_v19, %v7908_v11 }
 0xc6e   : > { %v7911_v31 = vmul.f32 0.015625, %v7910_v18 }
 0xc70   : > { %v7912_v59 = vpack.c.bf16 %v7911_v31, %v7911_v31 }
 0xc72   : > { %8721 = vmatmul.mubr.msk.bf16.vlgmr.msra.gmra.mxu1 %vm6788_vm10, %v7912_v59 }
 0xc73   : > { %8725 = vmatpush3.bf16.msra.mxu1 %v8858_v7  ;;  %8740 = vmatprep.mubr.msk.bf16.mxu1 %vm9071_vm8, %v15496_v35 }
 0xc74   : > { %8726 = vmatprep.subr.bf16.mxu1 %v15496_v35 }
 0xc77   : > { %8727 = vmatpush3.bf16.msra.mxu1 %v8859_v6 }
 0xc78   : > { %8728 = vmatprep.subr.bf16.mxu1 %v15496_v35 }
 0xc7b   : > { %8729 = vmatpush3.bf16.msra.mxu1 %v8860_v1 }
 0xc7c   : > { %8730 = vmatprep.subr.bf16.mxu1 %v15496_v35 }
 0xc7f   : > { %8731 = vmatpush3.bf16.msra.mxu1 %v8861_v48 }
 0xc80   : > { %8732 = vmatprep.subr.bf16.mxu1 %v15496_v35 }
 0xc83   : > { %8733 = vmatpush3.bf16.msra.mxu1 %v8862_v37 }
 0xc84   : > { %8734 = vmatprep.subr.bf16.mxu1 %v15496_v35 }
 0xc87   : > { %8735 = vmatpush3.bf16.msra.mxu1 %v8863_v62 }
 0xc88   : > { %8736 = vmatprep.subr.bf16.mxu1 %v15496_v35 }
 0xc8b   : > { %8737 = vmatpush3.bf16.msra.mxu1 %v8864_v55 }
 0xc8c   : > { %8738 = vmatprep.subr.bf16.mxu1 %v15496_v35 }
 0xc8f   : > { %8739 = vmatpush3.bf16.msra.mxu1 %v8865_v49 }
 0xd32   : > { %v7966_v52 = vpop.f32.mrf.mxu1 }
 0xd33   : > { %v7967_v41 = vadd.f32 %v7966_v52, %v7916_v13 }
 0xd34   : > { %v8722_v47 = vpop.f32.mrf.mxu1 }
 0xd35   : > { %v7972_v43 = vmax.f32 %v7967_v41, 0.0 }
 0xd36   : > { %v7969_v28 = vpop.f32.mrf.mxu1 }
 0xd37   : > { %v7973_v30 = vpack.c.bf16 %v7972_v43, %v7972_v43 }
 0xd38   : > { %v8723_v3 = vpop.f32.mrf.mxu1 }
 0xd39   : > { %8741 = vmatmul.mubr.bf16.vlgmr.msra.gmra.mxu1 %v7973_v30 }
 0xdf9   : > { %v8073_v57 = vpop.f32.mrf.mxu1 }
 0xdfa   : > { %v8074_v35 = vadd.f32 %v8073_v57, %v7990_v58 }
 0xdfb   : > { %v8742_v20 = vpop.f32.mrf.mxu1 }
 0xdfc   : > { %8080 = vst.msk [vmem:[%s1230_s3] sm:$0x1] %vm8079_vm13, %v8074_v35 }
 0xdfd   : > { %v8076_v32 = vpop.f32.mrf.mxu1 }
 0xdfe   : > { %8979 = shalt.err (!%p8976_p3)
}
 0xdff   : > { %s8980_s3 = scalar_lea.hbm %s14499_s8, 16  ;;  %s8984_s2 = scalar_lea.hbm %s9286_s4, 32 }
 0xe00   : > { %p8981_p4 = scmp.ne.s32.totalorder %s14499_s8, %s8980_s3  ;;  %p8985_p9 = scmp.lt.s32.totalorder %s14499_s8, %s9286_s4 }
 0xe01   : > { %p8986_p10 = scmp.lt.s32.totalorder %s8984_s2, %s8980_s3 }
 0xe02   : > { %p8982_p7 = pnand %p8981_p4, %p9326_p5 }
 0xe03   : > { %p8987_p11 = por %p8986_p10, %p8985_p9 }
 0xe04   : > { %p8983_p8 = pneg %p8982_p7 }
 0xe06   : > { %p8988_p12 = pnand %p8987_p11, %p8983_p8 }
 0xe08   : > { %8991 = shalt.err (!%p8988_p12)
}
 0xe09   : > { %8746 = dma.vmem_to_hbm [thread:$0]  (%p9326_p5), %s14501_s6, 16, %s14499_s8, %s8082_s9   ;;  %v8743_v0 = vpop.f32.mrf.mxu1 }
 0xe0a PF: > { %p8752_p13 = scmp.ge.s32.totalorder %s9026_s15, 2  ;;  %s8106_s13 = sand.u32 1, %s9014_s7  }
 0xe0b   : > { %s8107_s14 = scalar_lea.sflag [#allocation9], %s8106_s13 }
 0xe0c   : > { %p8749_p0 = pnand %p8752_p13, %p9330_p6 }
 0xe0e   : > { %p8750_p1 = pneg %p8749_p0 }
 0xe10   : > { %9009 = dma.done.wait (%p8750_p1), %s8107_s14, 16  }
 0xe11   : > { %9011 = vsyncadd (%p8750_p1), %s8107_s14, 4294967280  ;;  %p93_p2 = scmp.ge.s32.totalorder %s9313_s18, 4   ;;  %s15541_s7 = smov %s9018_s10 }
 0xe12   : > { %s15542_s10 = smov %s9022_s11  ;;  %s15543_s11 = smov %s9324_s26 }
 0xe13   : > { %s15544_s15 = smov %s9313_s18  ;;  %95 = sbr.rel (!%p93_p2) target bundleno = 88 (0x58), region = 306 }
 0xe18   :  { %8111 = vsyncpa [#allocation9], 1 }
 0xe19   :  { %8113 = vsyncpa [#allocation9 + $0x1], 1 }

</bundles_post_ra>
